<compile_context>
chip_gen: v7x
topology: tpu7x:2x2x1
jax: 0.10.0
libtpu: 0.0.40
codegen_flags: <defaults>
</compile_context>

<pallas_src>
import jax
import jax.numpy as jnp
from jax.experimental import pallas as pl
from jax.experimental.pallas import tpu as pltpu


_VMEM_LIMIT = 32 * 1024 * 1024      # explicit scoped-VMEM cap; safe on v5e/v6e/v7x


# ---------------------------------------------------------------------------
# Tiling helper (double-buffer aware, generation-safe)
# ---------------------------------------------------------------------------
def _round_up(v, m):
    return (v + m - 1) // m * m


def _choose_tm(M, K, N, itemsize=2, budget=8 * 1024 * 1024):
    """Pick an M tile: full-extent for small M, otherwise 2-4 tiles (>=256 rows,
    8-aligned) so the BlockSpec pipeline overlaps DMA with MXU work.  The budget
    accounts for double-buffered in+out tiles plus one weight block."""
    if M <= 512:
        return M, M, 1                      # full-extent block (legal even if M % 8)
    n = 4 if M > 1024 else 2
    tm = _round_up(-(-M // n), 8)
    per_row = 2 * (K + N) * itemsize        # double-buffered input + output rows
    while tm > 256 and tm * per_row + K * N * itemsize > budget:
        n *= 2
        tm = _round_up(-(-M // n), 8)
    Mp = _round_up(M, tm)
    return tm, Mp, Mp // tm


# ---------------------------------------------------------------------------
# Kernel 1: generic relu(x @ w + b) tile (used by conv1 / conv2 / conv3)
# ---------------------------------------------------------------------------
def _mm_bias_relu_kernel(x_ref, w_ref, b_ref, o_ref):
    y = jnp.dot(x_ref[...], w_ref[...], preferred_element_type=jnp.float32)
    o_ref[...] = jnp.maximum(y + b_ref[...], 0.0).astype(o_ref.dtype)


def conv1_matmul(x, w, b):
    """conv1 with both critics' filters concatenated along N.
    x: (M, 48) bf16 shared cols, w: (48, 128) bf16, b: (1, 128) f32 -> (M, 128) bf16."""
    M, K = x.shape
    N = w.shape[1]
    tm, Mp, n_m = _choose_tm(M, K, N)
    if Mp != M:
        x = jnp.pad(x, ((0, Mp - M), (0, 0)))
    out = pl.pallas_call(
        _mm_bias_relu_kernel,
        out_shape=jax.ShapeDtypeStruct((Mp, N), jnp.bfloat16),
        grid=(n_m,),
        in_specs=[pl.BlockSpec((tm, K), lambda i: (i, 0)),
                  pl.BlockSpec((K, N), lambda i: (0, 0)),
                  pl.BlockSpec((1, N), lambda i: (0, 0))],
        out_specs=pl.BlockSpec((tm, N), lambda i: (i, 0)),
        compiler_params=pltpu.CompilerParams(
            dimension_semantics=("parallel",),
            vmem_limit_bytes=_VMEM_LIMIT),
        cost_estimate=pl.CostEstimate(
            flops=2 * Mp * K * N, transcendentals=0,
            bytes_accessed=Mp * K * 2 + K * N * 2 + Mp * N * 2),
    )(x, w, b)
    return out[:M] if Mp != M else out


def dual_conv_matmul(x, w, b, *, split_k):
    """relu(x @ w + b) for both critic branches in one pallas_call.

    split_k=True : x is (M, 2K) shared cols; branch s consumes K-block s (conv2).
    split_k=False: x is (2, M, K) per-branch cols (conv3).
    w: (2, K, N) bf16, b: (2, 1, N) f32.  Returns (2, M, N) bf16."""
    K, N = w.shape[1], w.shape[2]
    M = x.shape[0] if split_k else x.shape[1]
    tm, Mp, n_m = _choose_tm(M, K, N)
    if Mp != M:
        pad = ((0, Mp - M), (0, 0)) if split_k else ((0, 0), (0, Mp - M), (0, 0))
        x = jnp.pad(x, pad)
    if split_k:
        x_spec = pl.BlockSpec((tm, K), lambda s, i: (i, s))
        x_bytes = Mp * 2 * K * 2
    else:
        x_spec = pl.BlockSpec((None, tm, K), lambda s, i: (s, i, 0))
        x_bytes = 2 * Mp * K * 2

    out = pl.pallas_call(
        _mm_bias_relu_kernel,
        out_shape=jax.ShapeDtypeStruct((2, Mp, N), jnp.bfloat16),
        grid=(2, n_m),
        in_specs=[x_spec,
                  pl.BlockSpec((None, K, N), lambda s, i: (s, 0, 0)),
                  pl.BlockSpec((None, 1, N), lambda s, i: (s, 0, 0))],
        out_specs=pl.BlockSpec((None, tm, N), lambda s, i: (s, i, 0)),
        compiler_params=pltpu.CompilerParams(
            dimension_semantics=("parallel", "parallel"),
            vmem_limit_bytes=_VMEM_LIMIT),
        cost_estimate=pl.CostEstimate(
            flops=2 * 2 * Mp * K * N, transcendentals=0,
            bytes_accessed=x_bytes + 2 * K * N * 2 + 2 * Mp * N * 2),
    )(x, w, b)
    return out[:, :M, :] if Mp != M else out


# ---------------------------------------------------------------------------
# Kernel 2: fused tail for both critics (grid = (branch,))
#   conv4 (+ReLU) + NCHW-flatten (folded into fc weight) + fc 192->64
#   acts fc 2->64 (VPU unrolled) ; concat folded into split fc1 ; ReLU ; fc2 64->1
# ---------------------------------------------------------------------------
def _tail_kernel(cols4_ref, acts_ref, w4_ref, b4_ref, wfc_ref, bfc_ref,
                 wa_ref, ba_ref, wh1s_ref, wh1a_ref, bh1_ref, wh2_ref, bh2_ref,
                 o_ref):
    f32 = jnp.float32
    n_pos, bsz, _ = cols4_ref.shape
    w4 = w4_ref[...]                                   # (512, 8)  bf16
    b4 = b4_ref[...]                                   # (1, 8)    f32

    # conv4 + ReLU + flatten + fc(192->64), one spatial position at a time:
    # all dots are rank-2 and all loads are leading-dim ref indexing.
    s = jnp.zeros((bsz, 64), f32)
    for p in range(n_pos):
        y = jnp.dot(cols4_ref[p], w4, preferred_element_type=f32) + b4   # (B, 8)
        y = jnp.maximum(y, 0.0).astype(jnp.bfloat16)
        s = s + jnp.dot(y, wfc_ref[p], preferred_element_type=f32)       # (B, 64)
    s = s + bfc_ref[...]

    # action features: contraction dim is only 2 -> unroll on the VPU
    acts = acts_ref[...]
    wa = wa_ref[...]
    a = acts[:, 0:1] * wa[0:1, :] + acts[:, 1:2] * wa[1:2, :] + ba_ref[...]

    # fused concat + fc1 + ReLU (fc1 weight pre-split into state/action halves)
    h = (jnp.dot(s.astype(jnp.bfloat16), wh1s_ref[...], preferred_element_type=f32)
         + jnp.dot(a.astype(jnp.bfloat16), wh1a_ref[...], preferred_element_type=f32)
         + bh1_ref[...])
    h = jnp.maximum(h, 0.0)

    # fc2 (64 -> 1) as a lane reduction
    out = jnp.sum(h * wh2_ref[...], axis=-1, keepdims=True) + bh2_ref[...]
    o_ref[...] = out.astype(o_ref.dtype)


def tail_forward(cols4, acts, p):
    """cols4: (2, 24, B, 512) bf16 (position-major conv4 cols), acts: (B, 2) f32."""
    n_pos, B, k4 = cols4.shape[1], cols4.shape[2], cols4.shape[3]
    in_specs = [
        pl.BlockSpec((None, n_pos, B, k4), lambda s: (s, 0, 0, 0)),   # cols4
        pl.BlockSpec((B, 2), lambda s: (0, 0)),                       # acts (shared)
        pl.BlockSpec((None, k4, 8), lambda s: (s, 0, 0)),             # conv4 w
        pl.BlockSpec((None, 1, 8), lambda s: (s, 0, 0)),              # conv4 b
        pl.BlockSpec((None, n_pos, 8, 64), lambda s: (s, 0, 0, 0)),   # fc w (per pos)
        pl.BlockSpec((None, 1, 64), lambda s: (s, 0, 0)),             # fc b
        pl.BlockSpec((None, 2, 64), lambda s: (s, 0, 0)),             # act w
        pl.BlockSpec((None, 1, 64), lambda s: (s, 0, 0)),             # act b
        pl.BlockSpec((None, 64, 64), lambda s: (s, 0, 0)),            # fc1 w (state)
        pl.BlockSpec((None, 64, 64), lambda s: (s, 0, 0)),            # fc1 w (action)
        pl.BlockSpec((None, 1, 64), lambda s: (s, 0, 0)),             # fc1 b
        pl.BlockSpec((None, 1, 64), lambda s: (s, 0, 0)),             # fc2 w row
        pl.BlockSpec((None, 1, 1), lambda s: (s, 0, 0)),              # fc2 b
    ]
    return pl.pallas_call(
        _tail_kernel,
        out_shape=jax.ShapeDtypeStruct((2, B, 1), jnp.float32),
        grid=(2,),
        in_specs=in_specs,
        out_specs=pl.BlockSpec((None, B, 1), lambda s: (s, 0, 0)),
        compiler_params=pltpu.CompilerParams(
            dimension_semantics=("parallel",),
            vmem_limit_bytes=_VMEM_LIMIT),
    )(cols4, acts, p["c4_w"], p["c4_b"], p["fc_w"], p["fc_b"],
      p["act_w"], p["act_b"], p["h1_ws"], p["h1_wa"], p["h1_b"],
      p["h2_wT"], p["h2_b"])


# ---------------------------------------------------------------------------
# im2col (XLA data movement).  Feature order is channel-major (c, kh, kw) so the
# concatenated conv1 output channels map to contiguous K blocks for conv2.
# ---------------------------------------------------------------------------
def im2col_cmajor(x, kh, kw, stride):
    *lead, H, W, C = x.shape
    Ho = (H - kh) // stride + 1
    Wo = (W - kw) // stride + 1
    taps = []
    for i in range(kh):
        for j in range(kw):
            taps.append(x[..., i:i + stride * (Ho - 1) + 1:stride,
                          j:j + stride * (Wo - 1) + 1:stride, :])
    p = jnp.stack(taps, axis=-1)                           # (..., Ho, Wo, C, kh*kw)
    cols = p.reshape(tuple(lead) + (Ho * Wo, C * kh * kw))
    return cols, Ho, Wo


# ---------------------------------------------------------------------------
# Parameter init (kaiming_normal_ weights, PyTorch-default uniform biases) and
# one-time packing into kernel-friendly layouts.
# ---------------------------------------------------------------------------
def _kaiming_normal(key, shape, fan_in):
    std = (2.0 / fan_in) ** 0.5
    return std * jax.random.normal(key, shape, dtype=jnp.float32)


def _bias_uniform(key, shape, fan_in):
    bound = 1.0 / (fan_in ** 0.5)
    return jax.random.uniform(key, shape, minval=-bound, maxval=bound,
                              dtype=jnp.float32)


def _conv_params(key, cin, cout, k=4):
    kw_, kb_ = jax.random.split(key)
    fan_in = cin * k * k
    return (_kaiming_normal(kw_, (cout, cin, k, k), fan_in),
            _bias_uniform(kb_, (cout,), fan_in))


def _linear_params(key, fin, fout):
    kw_, kb_ = jax.random.split(key)
    return (_kaiming_normal(kw_, (fout, fin), fin),
            _bias_uniform(kb_, (fout,), fin))


def _pack_conv_w(w_oihw):
    """(Cout, Cin, kh, kw) -> (Cin*kh*kw, Cout) in channel-major feature order."""
    cout, cin, kh, kw = w_oihw.shape
    return jnp.transpose(w_oihw, (1, 2, 3, 0)).reshape(cin * kh * kw, cout)


def _pack_fc_w(w_oi):
    """nn.Linear(192,64) weight (out, in) with `in` in NCHW flatten order
    (c*24 + h*4 + w) -> (24 positions, 8 channels, 64 out) so the tail kernel can
    consume conv4's output position by position (flatten folded into the weight)."""
    return jnp.transpose(w_oi.reshape(64, 8, 24), (2, 1, 0))


def init_critic_params(key):
    keys = iter(jax.random.split(key, 16))
    conv_cfg = [(3, 64), (64, 64), (64, 32), (32, 8)]

    def conv_branch():
        convs = [_conv_params(next(keys), cin, cout) for cin, cout in conv_cfg]
        fc = _linear_params(next(keys), 192, 64)
        return convs, fc

    convs_a, fc_a = conv_branch()                   # net1
    convs_b, fc_b = conv_branch()                   # net1_2
    act_a = _linear_params(next(keys), 2, 64)       # net2
    act_b = _linear_params(next(keys), 2, 64)       # net2_2
    h1_a = _linear_params(next(keys), 128, 64)      # net3.fc1
    h2_a = _linear_params(next(keys), 64, 1)        # net3.fc2
    h1_b = _linear_params(next(keys), 128, 64)      # net3_2.fc1
    h2_b = _linear_params(next(keys), 64, 1)        # net3_2.fc2

    # conv1: both branches concatenated along N (lane-dense 128-wide output)
    (w1a, b1a), (w1b, b1b) = convs_a[0], convs_b[0]
    c1_w = jnp.concatenate([_pack_conv_w(w1a), _pack_conv_w(w1b)],
                           axis=1).astype(jnp.bfloat16)                  # (48, 128)
    c1_b = jnp.concatenate([b1a, b1b])[None, :].astype(jnp.float32)      # (1, 128)

    def stack_conv(idx):
        wa, ba = convs_a[idx]
        wb, bb = convs_b[idx]
        return (jnp.stack([_pack_conv_w(wa), _pack_conv_w(wb)]).astype(jnp.bfloat16),
                jnp.stack([ba, bb])[:, None, :].astype(jnp.float32))

    c2_w, c2_b = stack_conv(1)                      # (2, 1024, 64), (2, 1, 64)
    c3_w, c3_b = stack_conv(2)                      # (2, 1024, 32), (2, 1, 32)
    c4_w, c4_b = stack_conv(3)                      # (2, 512, 8),   (2, 1, 8)

    fc_w = jnp.stack([_pack_fc_w(fc_a[0]),
                      _pack_fc_w(fc_b[0])]).astype(jnp.bfloat16)         # (2,24,8,64)
    fc_b = jnp.stack([fc_a[1], fc_b[1]])[:, None, :].astype(jnp.float32)

    act_w = jnp.stack([act_a[0].T, act_b[0].T]).astype(jnp.float32)      # (2, 2, 64)
    act_b_ = jnp.stack([act_a[1], act_b[1]])[:, None, :].astype(jnp.float32)

    h1_w = jnp.stack([h1_a[0].T, h1_b[0].T])                             # (2,128,64)
    return {
        "c1_w": c1_w, "c1_b": c1_b,
        "c2_w": c2_w, "c2_b": c2_b,
        "c3_w": c3_w, "c3_b": c3_b,
        "c4_w": c4_w, "c4_b": c4_b,
        "fc_w": fc_w, "fc_b": fc_b,
        "act_w": act_w, "act_b": act_b_,
        "h1_ws": h1_w[:, :64, :].astype(jnp.bfloat16),   # multiplies state features
        "h1_wa": h1_w[:, 64:, :].astype(jnp.bfloat16),   # multiplies action features
        "h1_b": jnp.stack([h1_a[1], h1_b[1]])[:, None, :].astype(jnp.float32),
        "h2_wT": jnp.stack([h2_a[0], h2_b[0]]).astype(jnp.float32),      # (2, 1, 64)
        "h2_b": jnp.stack([h2_a[1], h2_b[1]])[:, None, :].astype(jnp.float32),
    }


# ---------------------------------------------------------------------------
# Forward pass (mirrors CriticNetwork2.forward)
# ---------------------------------------------------------------------------
def critic_forward(params, states_nchw, acts):
    B = states_nchw.shape[0]
    x = jnp.transpose(states_nchw, (0, 2, 3, 1)).astype(jnp.bfloat16)    # NHWC bf16

    # conv1: one matmul for both critics (filters concatenated along N)
    cols1, h1h, h1w = im2col_cmajor(x, 4, 4, 2)                          # (B,2961,48)
    cols1 = cols1.reshape(B * h1h * h1w, 48)
    h1 = conv1_matmul(cols1, params["c1_w"], params["c1_b"])             # (M, 128)
    h1 = h1.reshape(B, h1h, h1w, 128)                                    # [A(64)|B(64)]

    # conv2: one shared column matrix; each branch reads its contiguous K half
    cols2, h2h, h2w = im2col_cmajor(h1, 4, 4, 2)                         # (B,660,2048)
    cols2 = cols2.reshape(B * h2h * h2w, 2048)
    h2 = dual_conv_matmul(cols2, params["c2_w"], params["c2_b"], split_k=True)
    h2 = h2.reshape(2, B, h2h, h2w, 64)

    # conv3: per-branch cols
    cols3, h3h, h3w = im2col_cmajor(h2, 4, 4, 2)                         # (2,B,140,1024)
    cols3 = cols3.reshape(2, B * h3h * h3w, 1024)
    h3 = dual_conv_matmul(cols3, params["c3_w"], params["c3_b"], split_k=False)
    h3 = h3.reshape(2, B, h3h, h3w, 32)

    # conv4 cols, position-major rows, then the fully fused tail kernel
    cols4, _, _ = im2col_cmajor(h3, 4, 4, 2)                             # (2,B,24,512)
    cols4 = jnp.transpose(cols4, (0, 2, 1, 3))                           # (2,24,B,512)
    out = tail_forward(cols4, acts.astype(jnp.float32), params)          # (2, B, 1)
    return out[0], out[1]


# ---------------------------------------------------------------------------
if __name__ == "__main__":
    key = jax.random.PRNGKey(0)
    k_params, k_states, k_acts = jax.random.split(key, 3)

    params = init_critic_params(k_params)

    B = 2
    # 128x96 input -> four k=4 stride-2 convs -> (6, 4, 8) -> 192 features,
    # matching nn.Linear(192, 64) in the reference module.
    states = jax.random.normal(k_states, (B, 3, 128, 96), dtype=jnp.float32)
    acts = jax.random.normal(k_acts, (B, 2), dtype=jnp.float32)

    fwd = jax.jit(critic_forward)
    out1, out2 = fwd(params, states, acts)
    jax.block_until_ready((out1, out2))

    assert out1.shape == (B, 1) and out2.shape == (B, 1)
    assert bool(jnp.all(jnp.isfinite(out1))) and bool(jnp.all(jnp.isfinite(out2)))
    print("KERNEL_OK")
</pallas_src>

<mosaic_0001>
module attributes {stable_mosaic.version = 11 : i64} {
  func.func @_mm_bias_relu_kernel(%arg0: i32, %arg1: memref<1488x48xbf16, #tpu.memory_space<vmem>>, %arg2: memref<48x128xbf16, #tpu.memory_space<vmem>>, %arg3: memref<1x128xf32, #tpu.memory_space<vmem>>, %arg4: memref<1488x128xbf16, #tpu.memory_space<vmem>>) attributes {dimension_semantics = [#tpu.dimension_semantics<parallel>], iteration_bounds = array<i64: 4>, scalar_prefetch = 0 : i64, scratch_operands = 0 : i64, tpu.core_type = #tpu.core_type<tc>, window_params = [{transform_indices = @transform_0, window_bounds = array<i64: 1488, 48>}, {pipeline_mode = #tpu.pipeline_mode<synchronous>, transform_indices = @transform_1, window_bounds = array<i64: 48, 128>}, {pipeline_mode = #tpu.pipeline_mode<synchronous>, transform_indices = @transform_2, window_bounds = array<i64: 1, 128>}, {transform_indices = @transform_3, window_bounds = array<i64: 1488, 128>}]} {
    %c0 = arith.constant 0 : index
    %c0_0 = arith.constant 0 : index
    %0 = vector.load %arg1[%c0, %c0_0] : memref<1488x48xbf16, #tpu.memory_space<vmem>>, vector<1488x48xbf16>
    %c0_1 = arith.constant 0 : index
    %c0_2 = arith.constant 0 : index
    %1 = vector.load %arg2[%c0_1, %c0_2] : memref<48x128xbf16, #tpu.memory_space<vmem>>, vector<48x128xbf16>
    %cst = arith.constant dense<0.000000e+00> : vector<1488x128xf32>
    %2 = tpu.matmul %0, %1, %cst {dimension_numbers = #tpu.dot_dimension_numbers<[1], [0], [0], [1], [0, 0, 1, 1], [], []>} : vector<1488x48xbf16>, vector<48x128xbf16>, vector<1488x128xf32> -> vector<1488x128xf32>
    %c0_3 = arith.constant 0 : index
    %c0_4 = arith.constant 0 : index
    %3 = vector.load %arg3[%c0_3, %c0_4] : memref<1x128xf32, #tpu.memory_space<vmem>>, vector<1x128xf32>
    %4 = vector.broadcast %3 : vector<1x128xf32> to vector<1488x128xf32>
    %5 = arith.addf %2, %4 : vector<1488x128xf32>
    %cst_5 = arith.constant 0.000000e+00 : f32
    %6 = vector.broadcast %cst_5 : f32 to vector<1488x128xf32>
    %7 = arith.maximumf %5, %6 : vector<1488x128xf32>
    %8 = arith.truncf %7 : vector<1488x128xf32> to vector<1488x128xbf16>
    %c0_6 = arith.constant 0 : index
    %c0_7 = arith.constant 0 : index
    %9 = vector.load %arg4[%c0_6, %c0_7] : memref<1488x128xbf16, #tpu.memory_space<vmem>>, vector<1488x128xbf16>
    tpu.vector_store %arg4[%c0_6, %c0_7], %8 {strides = array<i32>} : memref<1488x128xbf16, #tpu.memory_space<vmem>>, vector<1488x128xbf16>,
    return
  }
  func.func @transform_0(%arg0: i32) -> (i32, i32) {
    %c0_i32 = arith.constant 0 : i32
    %c0_i32_0 = arith.constant 0 : i32
    return %arg0, %c0_i32 : i32, i32
  }
  func.func @transform_1(%arg0: i32) -> (i32, i32) {
    %c0_i32 = arith.constant 0 : i32
    %c0_i32_0 = arith.constant 0 : i32
    %c0_i32_1 = arith.constant 0 : i32
    return %c0_i32, %c0_i32_0 : i32, i32
  }
  func.func @transform_2(%arg0: i32) -> (i32, i32) {
    %c0_i32 = arith.constant 0 : i32
    %c0_i32_0 = arith.constant 0 : i32
    %c0_i32_1 = arith.constant 0 : i32
    return %c0_i32, %c0_i32_0 : i32, i32
  }
  func.func @transform_3(%arg0: i32) -> (i32, i32) {
    %c0_i32 = arith.constant 0 : i32
    %c0_i32_0 = arith.constant 0 : i32
    return %arg0, %c0_i32 : i32, i32
  }
}

module attributes {stable_mosaic.version = 11 : i64} {
  func.func @_mm_bias_relu_kernel(%arg0: i32, %arg1: i32, %arg2: memref<336x1024xbf16, #tpu.memory_space<vmem>>, %arg3: memref<1x1024x64xbf16, #tpu.memory_space<vmem>>, %arg4: memref<1x1x64xf32, #tpu.memory_space<vmem>>, %arg5: memref<1x336x64xbf16, #tpu.memory_space<vmem>>) attributes {dimension_semantics = [#tpu.dimension_semantics<parallel>, #tpu.dimension_semantics<parallel>], iteration_bounds = array<i64: 2, 4>, scalar_prefetch = 0 : i64, scratch_operands = 0 : i64, tpu.core_type = #tpu.core_type<tc>, window_params = [{transform_indices = @transform_0, window_bounds = array<i64: 336, 1024>}, {transform_indices = @transform_1, window_bounds = array<i64: 1, 1024, 64>}, {transform_indices = @transform_2, window_bounds = array<i64: 1, 1, 64>}, {transform_indices = @transform_3, window_bounds = array<i64: 1, 336, 64>}]} {
    %c0 = arith.constant 0 : index
    %c0_0 = arith.constant 0 : index
    %0 = vector.load %arg2[%c0, %c0_0] : memref<336x1024xbf16, #tpu.memory_space<vmem>>, vector<336x1024xbf16>
    %c0_1 = arith.constant 0 : index
    %c0_2 = arith.constant 0 : index
    %c0_3 = arith.constant 0 : index
    %1 = vector.load %arg3[%c0_1, %c0_2, %c0_3] : memref<1x1024x64xbf16, #tpu.memory_space<vmem>>, vector<1x1024x64xbf16>
    %2 = vector.shape_cast %1 : vector<1x1024x64xbf16> to vector<1024x64xbf16>
    %cst = arith.constant dense<0.000000e+00> : vector<336x64xf32>
    %3 = tpu.matmul %0, %2, %cst {dimension_numbers = #tpu.dot_dimension_numbers<[1], [0], [0], [1], [0, 0, 1, 1], [], []>} : vector<336x1024xbf16>, vector<1024x64xbf16>, vector<336x64xf32> -> vector<336x64xf32>
    %c0_4 = arith.constant 0 : index
    %c0_5 = arith.constant 0 : index
    %c0_6 = arith.constant 0 : index
    %4 = vector.load %arg4[%c0_4, %c0_5, %c0_6] : memref<1x1x64xf32, #tpu.memory_space<vmem>>, vector<1x1x64xf32>
    %5 = vector.shape_cast %4 : vector<1x1x64xf32> to vector<1x64xf32>
    %6 = vector.broadcast %5 : vector<1x64xf32> to vector<336x64xf32>
    %7 = arith.addf %3, %6 : vector<336x64xf32>
    %cst_7 = arith.constant 0.000000e+00 : f32
    %8 = vector.broadcast %cst_7 : f32 to vector<336x64xf32>
    %9 = arith.maximumf %7, %8 : vector<336x64xf32>
    %10 = arith.truncf %9 : vector<336x64xf32> to vector<336x64xbf16>
    %c0_8 = arith.constant 0 : index
    %c0_9 = arith.constant 0 : index
    %c0_10 = arith.constant 0 : index
    %11 = vector.load %arg5[%c0_8, %c0_9, %c0_10] : memref<1x336x64xbf16, #tpu.memory_space<vmem>>, vector<1x336x64xbf16>
    %12 = vector.shape_cast %11 : vector<1x336x64xbf16> to vector<336x64xbf16>
    %13 = vector.shape_cast %10 : vector<336x64xbf16> to vector<1x336x64xbf16>
    tpu.vector_store %arg5[%c0_8, %c0_9, %c0_10], %13 {strides = array<i32>} : memref<1x336x64xbf16, #tpu.memory_space<vmem>>, vector<1x336x64xbf16>,
    return
  }
  func.func @transform_0(%arg0: i32, %arg1: i32) -> (i32, i32) {
    %c0_i32 = arith.constant 0 : i32
    return %arg1, %arg0 : i32, i32
  }
  func.func @transform_1(%arg0: i32, %arg1: i32) -> (i32, i32, i32) {
    %c0_i32 = arith.constant 0 : i32
    %c0_i32_0 = arith.constant 0 : i32
    %c0_i32_1 = arith.constant 0 : i32
    return %arg0, %c0_i32, %c0_i32_0 : i32, i32, i32
  }
  func.func @transform_2(%arg0: i32, %arg1: i32) -> (i32, i32, i32) {
    %c0_i32 = arith.constant 0 : i32
    %c0_i32_0 = arith.constant 0 : i32
    %c0_i32_1 = arith.constant 0 : i32
    return %arg0, %c0_i32, %c0_i32_0 : i32, i32, i32
  }
  func.func @transform_3(%arg0: i32, %arg1: i32) -> (i32, i32, i32) {
    %c0_i32 = arith.constant 0 : i32
    %c0_i32_0 = arith.constant 0 : i32
    return %arg0, %arg1, %c0_i32 : i32, i32, i32
  }
}

module attributes {stable_mosaic.version = 11 : i64} {
  func.func @_mm_bias_relu_kernel(%arg0: i32, %arg1: i32, %arg2: memref<1x280x1024xbf16, #tpu.memory_space<vmem>>, %arg3: memref<1x1024x32xbf16, #tpu.memory_space<vmem>>, %arg4: memref<1x1x32xf32, #tpu.memory_space<vmem>>, %arg5: memref<1x280x32xbf16, #tpu.memory_space<vmem>>) attributes {dimension_semantics = [#tpu.dimension_semantics<parallel>, #tpu.dimension_semantics<parallel>], iteration_bounds = array<i64: 2, 1>, scalar_prefetch = 0 : i64, scratch_operands = 0 : i64, tpu.core_type = #tpu.core_type<tc>, window_params = [{transform_indices = @transform_0, window_bounds = array<i64: 1, 280, 1024>}, {transform_indices = @transform_1, window_bounds = array<i64: 1, 1024, 32>}, {transform_indices = @transform_2, window_bounds = array<i64: 1, 1, 32>}, {transform_indices = @transform_3, window_bounds = array<i64: 1, 280, 32>}]} {
    %c0 = arith.constant 0 : index
    %c0_0 = arith.constant 0 : index
    %c0_1 = arith.constant 0 : index
    %0 = vector.load %arg2[%c0, %c0_0, %c0_1] : memref<1x280x1024xbf16, #tpu.memory_space<vmem>>, vector<1x280x1024xbf16>
    %1 = vector.shape_cast %0 : vector<1x280x1024xbf16> to vector<280x1024xbf16>
    %c0_2 = arith.constant 0 : index
    %c0_3 = arith.constant 0 : index
    %c0_4 = arith.constant 0 : index
    %2 = vector.load %arg3[%c0_2, %c0_3, %c0_4] : memref<1x1024x32xbf16, #tpu.memory_space<vmem>>, vector<1x1024x32xbf16>
    %3 = vector.shape_cast %2 : vector<1x1024x32xbf16> to vector<1024x32xbf16>
    %cst = arith.constant dense<0.000000e+00> : vector<280x32xf32>
    %4 = tpu.matmul %1, %3, %cst {dimension_numbers = #tpu.dot_dimension_numbers<[1], [0], [0], [1], [0, 0, 1, 1], [], []>} : vector<280x1024xbf16>, vector<1024x32xbf16>, vector<280x32xf32> -> vector<280x32xf32>
    %c0_5 = arith.constant 0 : index
    %c0_6 = arith.constant 0 : index
    %c0_7 = arith.constant 0 : index
    %5 = vector.load %arg4[%c0_5, %c0_6, %c0_7] : memref<1x1x32xf32, #tpu.memory_space<vmem>>, vector<1x1x32xf32>
    %6 = vector.shape_cast %5 : vector<1x1x32xf32> to vector<1x32xf32>
    %7 = vector.broadcast %6 : vector<1x32xf32> to vector<280x32xf32>
    %8 = arith.addf %4, %7 : vector<280x32xf32>
    %cst_8 = arith.constant 0.000000e+00 : f32
    %9 = vector.broadcast %cst_8 : f32 to vector<280x32xf32>
    %10 = arith.maximumf %8, %9 : vector<280x32xf32>
    %11 = arith.truncf %10 : vector<280x32xf32> to vector<280x32xbf16>
    %c0_9 = arith.constant 0 : index
    %c0_10 = arith.constant 0 : index
    %c0_11 = arith.constant 0 : index
    %12 = vector.load %arg5[%c0_9, %c0_10, %c0_11] : memref<1x280x32xbf16, #tpu.memory_space<vmem>>, vector<1x280x32xbf16>
    %13 = vector.shape_cast %12 : vector<1x280x32xbf16> to vector<280x32xbf16>
    %14 = vector.shape_cast %11 : vector<280x32xbf16> to vector<1x280x32xbf16>
    tpu.vector_store %arg5[%c0_9, %c0_10, %c0_11], %14 {strides = array<i32>} : memref<1x280x32xbf16, #tpu.memory_space<vmem>>, vector<1x280x32xbf16>,
    return
  }
  func.func @transform_0(%arg0: i32, %arg1: i32) -> (i32, i32, i32) {
    %c0_i32 = arith.constant 0 : i32
    %c0_i32_0 = arith.constant 0 : i32
    return %arg0, %arg1, %c0_i32 : i32, i32, i32
  }
  func.func @transform_1(%arg0: i32, %arg1: i32) -> (i32, i32, i32) {
    %c0_i32 = arith.constant 0 : i32
    %c0_i32_0 = arith.constant 0 : i32
    %c0_i32_1 = arith.constant 0 : i32
    return %arg0, %c0_i32, %c0_i32_0 : i32, i32, i32
  }
  func.func @transform_2(%arg0: i32, %arg1: i32) -> (i32, i32, i32) {
    %c0_i32 = arith.constant 0 : i32
    %c0_i32_0 = arith.constant 0 : i32
    %c0_i32_1 = arith.constant 0 : i32
    return %arg0, %c0_i32, %c0_i32_0 : i32, i32, i32
  }
  func.func @transform_3(%arg0: i32, %arg1: i32) -> (i32, i32, i32) {
    %c0_i32 = arith.constant 0 : i32
    %c0_i32_0 = arith.constant 0 : i32
    return %arg0, %arg1, %c0_i32 : i32, i32, i32
  }
}

module attributes {stable_mosaic.version = 11 : i64} {
  func.func @_tail_kernel(%arg0: i32, %arg1: memref<1x24x2x512xbf16, #tpu.memory_space<vmem>>, %arg2: memref<2x2xf32, #tpu.memory_space<vmem>>, %arg3: memref<1x512x8xbf16, #tpu.memory_space<vmem>>, %arg4: memref<1x1x8xf32, #tpu.memory_space<vmem>>, %arg5: memref<1x24x8x64xbf16, #tpu.memory_space<vmem>>, %arg6: memref<1x1x64xf32, #tpu.memory_space<vmem>>, %arg7: memref<1x2x64xf32, #tpu.memory_space<vmem>>, %arg8: memref<1x1x64xf32, #tpu.memory_space<vmem>>, %arg9: memref<1x64x64xbf16, #tpu.memory_space<vmem>>, %arg10: memref<1x64x64xbf16, #tpu.memory_space<vmem>>, %arg11: memref<1x1x64xf32, #tpu.memory_space<vmem>>, %arg12: memref<1x1x64xf32, #tpu.memory_space<vmem>>, %arg13: memref<1x1x1xf32, #tpu.memory_space<vmem>>, %arg14: memref<1x2x1xf32, #tpu.memory_space<vmem>>) attributes {dimension_semantics = [#tpu.dimension_semantics<parallel>], iteration_bounds = array<i64: 2>, scalar_prefetch = 0 : i64, scratch_operands = 0 : i64, tpu.core_type = #tpu.core_type<tc>, window_params = [{transform_indices = @transform_0, window_bounds = array<i64: 1, 24, 2, 512>}, {pipeline_mode = #tpu.pipeline_mode<synchronous>, transform_indices = @transform_1, window_bounds = array<i64: 2, 2>}, {transform_indices = @transform_2, window_bounds = array<i64: 1, 512, 8>}, {transform_indices = @transform_3, window_bounds = array<i64: 1, 1, 8>}, {transform_indices = @transform_4, window_bounds = array<i64: 1, 24, 8, 64>}, {transform_indices = @transform_5, window_bounds = array<i64: 1, 1, 64>}, {transform_indices = @transform_6, window_bounds = array<i64: 1, 2, 64>}, {transform_indices = @transform_7, window_bounds = array<i64: 1, 1, 64>}, {transform_indices = @transform_8, window_bounds = array<i64: 1, 64, 64>}, {transform_indices = @transform_9, window_bounds = array<i64: 1, 64, 64>}, {transform_indices = @transform_10, window_bounds = array<i64: 1, 1, 64>}, {transform_indices = @transform_11, window_bounds = array<i64: 1, 1, 64>}, {transform_indices = @transform_12, window_bounds = array<i64: 1, 1, 1>}, {transform_indices = @transform_13, window_bounds = array<i64: 1, 2, 1>}]} {
    %c0 = arith.constant 0 : index
    %c0_0 = arith.constant 0 : index
    %c0_1 = arith.constant 0 : index
    %0 = vector.load %arg3[%c0, %c0_0, %c0_1] : memref<1x512x8xbf16, #tpu.memory_space<vmem>>, vector<1x512x8xbf16>
    %1 = vector.shape_cast %0 : vector<1x512x8xbf16> to vector<512x8xbf16>
    %c0_2 = arith.constant 0 : index
    %c0_3 = arith.constant 0 : index
    %c0_4 = arith.constant 0 : index
    %2 = vector.load %arg4[%c0_2, %c0_3, %c0_4] : memref<1x1x8xf32, #tpu.memory_space<vmem>>, vector<1x1x8xf32>
    %3 = vector.shape_cast %2 : vector<1x1x8xf32> to vector<1x8xf32>
    %cst = arith.constant 0.000000e+00 : f32
    %4 = vector.broadcast %cst : f32 to vector<2x64xf32>
    %c0_5 = arith.constant 0 : index
    %c0_6 = arith.constant 0 : index
    %c0_7 = arith.constant 0 : index
    %c0_8 = arith.constant 0 : index
    %5 = vector.load %arg1[%c0_5, %c0_6, %c0_7, %c0_8] : memref<1x24x2x512xbf16, #tpu.memory_space<vmem>>, vector<1x1x2x512xbf16>
    %6 = vector.shape_cast %5 : vector<1x1x2x512xbf16> to vector<2x512xbf16>
    %cst_9 = arith.constant dense<0.000000e+00> : vector<2x8xf32>
    %7 = tpu.matmul %6, %1, %cst_9 {dimension_numbers = #tpu.dot_dimension_numbers<[1], [0], [0], [1], [0, 0, 1, 1], [], []>} : vector<2x512xbf16>, vector<512x8xbf16>, vector<2x8xf32> -> vector<2x8xf32>
    %8 = vector.broadcast %3 : vector<1x8xf32> to vector<2x8xf32>
    %9 = arith.addf %7, %8 : vector<2x8xf32>
    %cst_10 = arith.constant 0.000000e+00 : f32
    %10 = vector.broadcast %cst_10 : f32 to vector<2x8xf32>
    %11 = arith.maximumf %9, %10 : vector<2x8xf32>
    %12 = arith.truncf %11 : vector<2x8xf32> to vector<2x8xbf16>
    %c0_11 = arith.constant 0 : index
    %c0_12 = arith.constant 0 : index
    %c0_13 = arith.constant 0 : index
    %c0_14 = arith.constant 0 : index
    %13 = vector.load %arg5[%c0_11, %c0_12, %c0_13, %c0_14] : memref<1x24x8x64xbf16, #tpu.memory_space<vmem>>, vector<1x1x8x64xbf16>
    %14 = vector.shape_cast %13 : vector<1x1x8x64xbf16> to vector<8x64xbf16>
    %cst_15 = arith.constant dense<0.000000e+00> : vector<2x64xf32>
    %15 = tpu.matmul %12, %14, %cst_15 {dimension_numbers = #tpu.dot_dimension_numbers<[1], [0], [0], [1], [0, 0, 1, 1], [], []>} : vector<2x8xbf16>, vector<8x64xbf16>, vector<2x64xf32> -> vector<2x64xf32>
    %16 = arith.addf %4, %15 : vector<2x64xf32>
    %c0_16 = arith.constant 0 : index
    %c1 = arith.constant 1 : index
    %c0_17 = arith.constant 0 : index
    %c0_18 = arith.constant 0 : index
    %17 = vector.load %arg1[%c0_16, %c1, %c0_17, %c0_18] : memref<1x24x2x512xbf16, #tpu.memory_space<vmem>>, vector<1x1x2x512xbf16>
    %18 = vector.shape_cast %17 : vector<1x1x2x512xbf16> to vector<2x512xbf16>
    %cst_19 = arith.constant dense<0.000000e+00> : vector<2x8xf32>
    %19 = tpu.matmul %18, %1, %cst_19 {dimension_numbers = #tpu.dot_dimension_numbers<[1], [0], [0], [1], [0, 0, 1, 1], [], []>} : vector<2x512xbf16>, vector<512x8xbf16>, vector<2x8xf32> -> vector<2x8xf32>
    %20 = vector.broadcast %3 : vector<1x8xf32> to vector<2x8xf32>
    %21 = arith.addf %19, %20 : vector<2x8xf32>
    %cst_20 = arith.constant 0.000000e+00 : f32
    %22 = vector.broadcast %cst_20 : f32 to vector<2x8xf32>
    %23 = arith.maximumf %21, %22 : vector<2x8xf32>
    %24 = arith.truncf %23 : vector<2x8xf32> to vector<2x8xbf16>
    %c0_21 = arith.constant 0 : index
    %c1_22 = arith.constant 1 : index
    %c0_23 = arith.constant 0 : index
    %c0_24 = arith.constant 0 : index
    %25 = vector.load %arg5[%c0_21, %c1_22, %c0_23, %c0_24] : memref<1x24x8x64xbf16, #tpu.memory_space<vmem>>, vector<1x1x8x64xbf16>
    %26 = vector.shape_cast %25 : vector<1x1x8x64xbf16> to vector<8x64xbf16>
    %cst_25 = arith.constant dense<0.000000e+00> : vector<2x64xf32>
    %27 = tpu.matmul %24, %26, %cst_25 {dimension_numbers = #tpu.dot_dimension_numbers<[1], [0], [0], [1], [0, 0, 1, 1], [], []>} : vector<2x8xbf16>, vector<8x64xbf16>, vector<2x64xf32> -> vector<2x64xf32>
    %28 = arith.addf %16, %27 : vector<2x64xf32>
    %c0_26 = arith.constant 0 : index
    %c2 = arith.constant 2 : index
    %c0_27 = arith.constant 0 : index
    %c0_28 = arith.constant 0 : index
    %29 = vector.load %arg1[%c0_26, %c2, %c0_27, %c0_28] : memref<1x24x2x512xbf16, #tpu.memory_space<vmem>>, vector<1x1x2x512xbf16>
    %30 = vector.shape_cast %29 : vector<1x1x2x512xbf16> to vector<2x512xbf16>
    %cst_29 = arith.constant dense<0.000000e+00> : vector<2x8xf32>
    %31 = tpu.matmul %30, %1, %cst_29 {dimension_numbers = #tpu.dot_dimension_numbers<[1], [0], [0], [1], [0, 0, 1, 1], [], []>} : vector<2x512xbf16>, vector<512x8xbf16>, vector<2x8xf32> -> vector<2x8xf32>
    %32 = vector.broadcast %3 : vector<1x8xf32> to vector<2x8xf32>
    %33 = arith.addf %31, %32 : vector<2x8xf32>
    %cst_30 = arith.constant 0.000000e+00 : f32
    %34 = vector.broadcast %cst_30 : f32 to vector<2x8xf32>
    %35 = arith.maximumf %33, %34 : vector<2x8xf32>
    %36 = arith.truncf %35 : vector<2x8xf32> to vector<2x8xbf16>
    %c0_31 = arith.constant 0 : index
    %c2_32 = arith.constant 2 : index
    %c0_33 = arith.constant 0 : index
    %c0_34 = arith.constant 0 : index
    %37 = vector.load %arg5[%c0_31, %c2_32, %c0_33, %c0_34] : memref<1x24x8x64xbf16, #tpu.memory_space<vmem>>, vector<1x1x8x64xbf16>
    %38 = vector.shape_cast %37 : vector<1x1x8x64xbf16> to vector<8x64xbf16>
    %cst_35 = arith.constant dense<0.000000e+00> : vector<2x64xf32>
    %39 = tpu.matmul %36, %38, %cst_35 {dimension_numbers = #tpu.dot_dimension_numbers<[1], [0], [0], [1], [0, 0, 1, 1], [], []>} : vector<2x8xbf16>, vector<8x64xbf16>, vector<2x64xf32> -> vector<2x64xf32>
    %40 = arith.addf %28, %39 : vector<2x64xf32>
    %c0_36 = arith.constant 0 : index
    %c3 = arith.constant 3 : index
    %c0_37 = arith.constant 0 : index
    %c0_38 = arith.constant 0 : index
    %41 = vector.load %arg1[%c0_36, %c3, %c0_37, %c0_38] : memref<1x24x2x512xbf16, #tpu.memory_space<vmem>>, vector<1x1x2x512xbf16>
    %42 = vector.shape_cast %41 : vector<1x1x2x512xbf16> to vector<2x512xbf16>
    %cst_39 = arith.constant dense<0.000000e+00> : vector<2x8xf32>
    %43 = tpu.matmul %42, %1, %cst_39 {dimension_numbers = #tpu.dot_dimension_numbers<[1], [0], [0], [1], [0, 0, 1, 1], [], []>} : vector<2x512xbf16>, vector<512x8xbf16>, vector<2x8xf32> -> vector<2x8xf32>
    %44 = vector.broadcast %3 : vector<1x8xf32> to vector<2x8xf32>
    %45 = arith.addf %43, %44 : vector<2x8xf32>
    %cst_40 = arith.constant 0.000000e+00 : f32
    %46 = vector.broadcast %cst_40 : f32 to vector<2x8xf32>
    %47 = arith.maximumf %45, %46 : vector<2x8xf32>
    %48 = arith.truncf %47 : vector<2x8xf32> to vector<2x8xbf16>
    %c0_41 = arith.constant 0 : index
    %c3_42 = arith.constant 3 : index
    %c0_43 = arith.constant 0 : index
    %c0_44 = arith.constant 0 : index
    %49 = vector.load %arg5[%c0_41, %c3_42, %c0_43, %c0_44] : memref<1x24x8x64xbf16, #tpu.memory_space<vmem>>, vector<1x1x8x64xbf16>
    %50 = vector.shape_cast %49 : vector<1x1x8x64xbf16> to vector<8x64xbf16>
    %cst_45 = arith.constant dense<0.000000e+00> : vector<2x64xf32>
    %51 = tpu.matmul %48, %50, %cst_45 {dimension_numbers = #tpu.dot_dimension_numbers<[1], [0], [0], [1], [0, 0, 1, 1], [], []>} : vector<2x8xbf16>, vector<8x64xbf16>, vector<2x64xf32> -> vector<2x64xf32>
    %52 = arith.addf %40, %51 : vector<2x64xf32>
    %c0_46 = arith.constant 0 : index
    %c4 = arith.constant 4 : index
    %c0_47 = arith.constant 0 : index
    %c0_48 = arith.constant 0 : index
    %53 = vector.load %arg1[%c0_46, %c4, %c0_47, %c0_48] : memref<1x24x2x512xbf16, #tpu.memory_space<vmem>>, vector<1x1x2x512xbf16>
    %54 = vector.shape_cast %53 : vector<1x1x2x512xbf16> to vector<2x512xbf16>
    %cst_49 = arith.constant dense<0.000000e+00> : vector<2x8xf32>
    %55 = tpu.matmul %54, %1, %cst_49 {dimension_numbers = #tpu.dot_dimension_numbers<[1], [0], [0], [1], [0, 0, 1, 1], [], []>} : vector<2x512xbf16>, vector<512x8xbf16>, vector<2x8xf32> -> vector<2x8xf32>
    %56 = vector.broadcast %3 : vector<1x8xf32> to vector<2x8xf32>
    %57 = arith.addf %55, %56 : vector<2x8xf32>
    %cst_50 = arith.constant 0.000000e+00 : f32
    %58 = vector.broadcast %cst_50 : f32 to vector<2x8xf32>
    %59 = arith.maximumf %57, %58 : vector<2x8xf32>
    %60 = arith.truncf %59 : vector<2x8xf32> to vector<2x8xbf16>
    %c0_51 = arith.constant 0 : index
    %c4_52 = arith.constant 4 : index
    %c0_53 = arith.constant 0 : index
    %c0_54 = arith.constant 0 : index
    %61 = vector.load %arg5[%c0_51, %c4_52, %c0_53, %c0_54] : memref<1x24x8x64xbf16, #tpu.memory_space<vmem>>, vector<1x1x8x64xbf16>
    %62 = vector.shape_cast %61 : vector<1x1x8x64xbf16> to vector<8x64xbf16>
    %cst_55 = arith.constant dense<0.000000e+00> : vector<2x64xf32>
    %63 = tpu.matmul %60, %62, %cst_55 {dimension_numbers = #tpu.dot_dimension_numbers<[1], [0], [0], [1], [0, 0, 1, 1], [], []>} : vector<2x8xbf16>, vector<8x64xbf16>, vector<2x64xf32> -> vector<2x64xf32>
    %64 = arith.addf %52, %63 : vector<2x64xf32>
    %c0_56 = arith.constant 0 : index
    %c5 = arith.constant 5 : index
    %c0_57 = arith.constant 0 : index
    %c0_58 = arith.constant 0 : index
    %65 = vector.load %arg1[%c0_56, %c5, %c0_57, %c0_58] : memref<1x24x2x512xbf16, #tpu.memory_space<vmem>>, vector<1x1x2x512xbf16>
    %66 = vector.shape_cast %65 : vector<1x1x2x512xbf16> to vector<2x512xbf16>
    %cst_59 = arith.constant dense<0.000000e+00> : vector<2x8xf32>
    %67 = tpu.matmul %66, %1, %cst_59 {dimension_numbers = #tpu.dot_dimension_numbers<[1], [0], [0], [1], [0, 0, 1, 1], [], []>} : vector<2x512xbf16>, vector<512x8xbf16>, vector<2x8xf32> -> vector<2x8xf32>
    %68 = vector.broadcast %3 : vector<1x8xf32> to vector<2x8xf32>
    %69 = arith.addf %67, %68 : vector<2x8xf32>
    %cst_60 = arith.constant 0.000000e+00 : f32
    %70 = vector.broadcast %cst_60 : f32 to vector<2x8xf32>
    %71 = arith.maximumf %69, %70 : vector<2x8xf32>
    %72 = arith.truncf %71 : vector<2x8xf32> to vector<2x8xbf16>
    %c0_61 = arith.constant 0 : index
    %c5_62 = arith.constant 5 : index
    %c0_63 = arith.constant 0 : index
    %c0_64 = arith.constant 0 : index
    %73 = vector.load %arg5[%c0_61, %c5_62, %c0_63, %c0_64] : memref<1x24x8x64xbf16, #tpu.memory_space<vmem>>, vector<1x1x8x64xbf16>
    %74 = vector.shape_cast %73 : vector<1x1x8x64xbf16> to vector<8x64xbf16>
    %cst_65 = arith.constant dense<0.000000e+00> : vector<2x64xf32>
    %75 = tpu.matmul %72, %74, %cst_65 {dimension_numbers = #tpu.dot_dimension_numbers<[1], [0], [0], [1], [0, 0, 1, 1], [], []>} : vector<2x8xbf16>, vector<8x64xbf16>, vector<2x64xf32> -> vector<2x64xf32>
    %76 = arith.addf %64, %75 : vector<2x64xf32>
    %c0_66 = arith.constant 0 : index
    %c6 = arith.constant 6 : index
    %c0_67 = arith.constant 0 : index
    %c0_68 = arith.constant 0 : index
    %77 = vector.load %arg1[%c0_66, %c6, %c0_67, %c0_68] : memref<1x24x2x512xbf16, #tpu.memory_space<vmem>>, vector<1x1x2x512xbf16>
    %78 = vector.shape_cast %77 : vector<1x1x2x512xbf16> to vector<2x512xbf16>
    %cst_69 = arith.constant dense<0.000000e+00> : vector<2x8xf32>
    %79 = tpu.matmul %78, %1, %cst_69 {dimension_numbers = #tpu.dot_dimension_numbers<[1], [0], [0], [1], [0, 0, 1, 1], [], []>} : vector<2x512xbf16>, vector<512x8xbf16>, vector<2x8xf32> -> vector<2x8xf32>
    %80 = vector.broadcast %3 : vector<1x8xf32> to vector<2x8xf32>
    %81 = arith.addf %79, %80 : vector<2x8xf32>
    %cst_70 = arith.constant 0.000000e+00 : f32
    %82 = vector.broadcast %cst_70 : f32 to vector<2x8xf32>
    %83 = arith.maximumf %81, %82 : vector<2x8xf32>
    %84 = arith.truncf %83 : vector<2x8xf32> to vector<2x8xbf16>
    %c0_71 = arith.constant 0 : index
    %c6_72 = arith.constant 6 : index
    %c0_73 = arith.constant 0 : index
    %c0_74 = arith.constant 0 : index
    %85 = vector.load %arg5[%c0_71, %c6_72, %c0_73, %c0_74] : memref<1x24x8x64xbf16, #tpu.memory_space<vmem>>, vector<1x1x8x64xbf16>
    %86 = vector.shape_cast %85 : vector<1x1x8x64xbf16> to vector<8x64xbf16>
    %cst_75 = arith.constant dense<0.000000e+00> : vector<2x64xf32>
    %87 = tpu.matmul %84, %86, %cst_75 {dimension_numbers = #tpu.dot_dimension_numbers<[1], [0], [0], [1], [0, 0, 1, 1], [], []>} : vector<2x8xbf16>, vector<8x64xbf16>, vector<2x64xf32> -> vector<2x64xf32>
    %88 = arith.addf %76, %87 : vector<2x64xf32>
    %c0_76 = arith.constant 0 : index
    %c7 = arith.constant 7 : index
    %c0_77 = arith.constant 0 : index
    %c0_78 = arith.constant 0 : index
    %89 = vector.load %arg1[%c0_76, %c7, %c0_77, %c0_78] : memref<1x24x2x512xbf16, #tpu.memory_space<vmem>>, vector<1x1x2x512xbf16>
    %90 = vector.shape_cast %89 : vector<1x1x2x512xbf16> to vector<2x512xbf16>
    %cst_79 = arith.constant dense<0.000000e+00> : vector<2x8xf32>
    %91 = tpu.matmul %90, %1, %cst_79 {dimension_numbers = #tpu.dot_dimension_numbers<[1], [0], [0], [1], [0, 0, 1, 1], [], []>} : vector<2x512xbf16>, vector<512x8xbf16>, vector<2x8xf32> -> vector<2x8xf32>
    %92 = vector.broadcast %3 : vector<1x8xf32> to vector<2x8xf32>
    %93 = arith.addf %91, %92 : vector<2x8xf32>
    %cst_80 = arith.constant 0.000000e+00 : f32
    %94 = vector.broadcast %cst_80 : f32 to vector<2x8xf32>
    %95 = arith.maximumf %93, %94 : vector<2x8xf32>
    %96 = arith.truncf %95 : vector<2x8xf32> to vector<2x8xbf16>
    %c0_81 = arith.constant 0 : index
    %c7_82 = arith.constant 7 : index
    %c0_83 = arith.constant 0 : index
    %c0_84 = arith.constant 0 : index
    %97 = vector.load %arg5[%c0_81, %c7_82, %c0_83, %c0_84] : memref<1x24x8x64xbf16, #tpu.memory_space<vmem>>, vector<1x1x8x64xbf16>
    %98 = vector.shape_cast %97 : vector<1x1x8x64xbf16> to vector<8x64xbf16>
    %cst_85 = arith.constant dense<0.000000e+00> : vector<2x64xf32>
    %99 = tpu.matmul %96, %98, %cst_85 {dimension_numbers = #tpu.dot_dimension_numbers<[1], [0], [0], [1], [0, 0, 1, 1], [], []>} : vector<2x8xbf16>, vector<8x64xbf16>, vector<2x64xf32> -> vector<2x64xf32>
    %100 = arith.addf %88, %99 : vector<2x64xf32>
    %c0_86 = arith.constant 0 : index
    %c8 = arith.constant 8 : index
    %c0_87 = arith.constant 0 : index
    %c0_88 = arith.constant 0 : index
    %101 = vector.load %arg1[%c0_86, %c8, %c0_87, %c0_88] : memref<1x24x2x512xbf16, #tpu.memory_space<vmem>>, vector<1x1x2x512xbf16>
    %102 = vector.shape_cast %101 : vector<1x1x2x512xbf16> to vector<2x512xbf16>
    %cst_89 = arith.constant dense<0.000000e+00> : vector<2x8xf32>
    %103 = tpu.matmul %102, %1, %cst_89 {dimension_numbers = #tpu.dot_dimension_numbers<[1], [0], [0], [1], [0, 0, 1, 1], [], []>} : vector<2x512xbf16>, vector<512x8xbf16>, vector<2x8xf32> -> vector<2x8xf32>
    %104 = vector.broadcast %3 : vector<1x8xf32> to vector<2x8xf32>
    %105 = arith.addf %103, %104 : vector<2x8xf32>
    %cst_90 = arith.constant 0.000000e+00 : f32
    %106 = vector.broadcast %cst_90 : f32 to vector<2x8xf32>
    %107 = arith.maximumf %105, %106 : vector<2x8xf32>
    %108 = arith.truncf %107 : vector<2x8xf32> to vector<2x8xbf16>
    %c0_91 = arith.constant 0 : index
    %c8_92 = arith.constant 8 : index
    %c0_93 = arith.constant 0 : index
    %c0_94 = arith.constant 0 : index
    %109 = vector.load %arg5[%c0_91, %c8_92, %c0_93, %c0_94] : memref<1x24x8x64xbf16, #tpu.memory_space<vmem>>, vector<1x1x8x64xbf16>
    %110 = vector.shape_cast %109 : vector<1x1x8x64xbf16> to vector<8x64xbf16>
    %cst_95 = arith.constant dense<0.000000e+00> : vector<2x64xf32>
    %111 = tpu.matmul %108, %110, %cst_95 {dimension_numbers = #tpu.dot_dimension_numbers<[1], [0], [0], [1], [0, 0, 1, 1], [], []>} : vector<2x8xbf16>, vector<8x64xbf16>, vector<2x64xf32> -> vector<2x64xf32>
    %112 = arith.addf %100, %111 : vector<2x64xf32>
    %c0_96 = arith.constant 0 : index
    %c9 = arith.constant 9 : index
    %c0_97 = arith.constant 0 : index
    %c0_98 = arith.constant 0 : index
    %113 = vector.load %arg1[%c0_96, %c9, %c0_97, %c0_98] : memref<1x24x2x512xbf16, #tpu.memory_space<vmem>>, vector<1x1x2x512xbf16>
    %114 = vector.shape_cast %113 : vector<1x1x2x512xbf16> to vector<2x512xbf16>
    %cst_99 = arith.constant dense<0.000000e+00> : vector<2x8xf32>
    %115 = tpu.matmul %114, %1, %cst_99 {dimension_numbers = #tpu.dot_dimension_numbers<[1], [0], [0], [1], [0, 0, 1, 1], [], []>} : vector<2x512xbf16>, vector<512x8xbf16>, vector<2x8xf32> -> vector<2x8xf32>
    %116 = vector.broadcast %3 : vector<1x8xf32> to vector<2x8xf32>
    %117 = arith.addf %115, %116 : vector<2x8xf32>
    %cst_100 = arith.constant 0.000000e+00 : f32
    %118 = vector.broadcast %cst_100 : f32 to vector<2x8xf32>
    %119 = arith.maximumf %117, %118 : vector<2x8xf32>
    %120 = arith.truncf %119 : vector<2x8xf32> to vector<2x8xbf16>
    %c0_101 = arith.constant 0 : index
    %c9_102 = arith.constant 9 : index
    %c0_103 = arith.constant 0 : index
    %c0_104 = arith.constant 0 : index
    %121 = vector.load %arg5[%c0_101, %c9_102, %c0_103, %c0_104] : memref<1x24x8x64xbf16, #tpu.memory_space<vmem>>, vector<1x1x8x64xbf16>
    %122 = vector.shape_cast %121 : vector<1x1x8x64xbf16> to vector<8x64xbf16>
    %cst_105 = arith.constant dense<0.000000e+00> : vector<2x64xf32>
    %123 = tpu.matmul %120, %122, %cst_105 {dimension_numbers = #tpu.dot_dimension_numbers<[1], [0], [0], [1], [0, 0, 1, 1], [], []>} : vector<2x8xbf16>, vector<8x64xbf16>, vector<2x64xf32> -> vector<2x64xf32>
    %124 = arith.addf %112, %123 : vector<2x64xf32>
    %c0_106 = arith.constant 0 : index
    %c10 = arith.constant 10 : index
    %c0_107 = arith.constant 0 : index
    %c0_108 = arith.constant 0 : index
    %125 = vector.load %arg1[%c0_106, %c10, %c0_107, %c0_108] : memref<1x24x2x512xbf16, #tpu.memory_space<vmem>>, vector<1x1x2x512xbf16>
    %126 = vector.shape_cast %125 : vector<1x1x2x512xbf16> to vector<2x512xbf16>
    %cst_109 = arith.constant dense<0.000000e+00> : vector<2x8xf32>
    %127 = tpu.matmul %126, %1, %cst_109 {dimension_numbers = #tpu.dot_dimension_numbers<[1], [0], [0], [1], [0, 0, 1, 1], [], []>} : vector<2x512xbf16>, vector<512x8xbf16>, vector<2x8xf32> -> vector<2x8xf32>
    %128 = vector.broadcast %3 : vector<1x8xf32> to vector<2x8xf32>
    %129 = arith.addf %127, %128 : vector<2x8xf32>
    %cst_110 = arith.constant 0.000000e+00 : f32
    %130 = vector.broadcast %cst_110 : f32 to vector<2x8xf32>
    %131 = arith.maximumf %129, %130 : vector<2x8xf32>
    %132 = arith.truncf %131 : vector<2x8xf32> to vector<2x8xbf16>
    %c0_111 = arith.constant 0 : index
    %c10_112 = arith.constant 10 : index
    %c0_113 = arith.constant 0 : index
    %c0_114 = arith.constant 0 : index
    %133 = vector.load %arg5[%c0_111, %c10_112, %c0_113, %c0_114] : memref<1x24x8x64xbf16, #tpu.memory_space<vmem>>, vector<1x1x8x64xbf16>
    %134 = vector.shape_cast %133 : vector<1x1x8x64xbf16> to vector<8x64xbf16>
    %cst_115 = arith.constant dense<0.000000e+00> : vector<2x64xf32>
    %135 = tpu.matmul %132, %134, %cst_115 {dimension_numbers = #tpu.dot_dimension_numbers<[1], [0], [0], [1], [0, 0, 1, 1], [], []>} : vector<2x8xbf16>, vector<8x64xbf16>, vector<2x64xf32> -> vector<2x64xf32>
    %136 = arith.addf %124, %135 : vector<2x64xf32>
    %c0_116 = arith.constant 0 : index
    %c11 = arith.constant 11 : index
    %c0_117 = arith.constant 0 : index
    %c0_118 = arith.constant 0 : index
    %137 = vector.load %arg1[%c0_116, %c11, %c0_117, %c0_118] : memref<1x24x2x512xbf16, #tpu.memory_space<vmem>>, vector<1x1x2x512xbf16>
    %138 = vector.shape_cast %137 : vector<1x1x2x512xbf16> to vector<2x512xbf16>
    %cst_119 = arith.constant dense<0.000000e+00> : vector<2x8xf32>
    %139 = tpu.matmul %138, %1, %cst_119 {dimension_numbers = #tpu.dot_dimension_numbers<[1], [0], [0], [1], [0, 0, 1, 1], [], []>} : vector<2x512xbf16>, vector<512x8xbf16>, vector<2x8xf32> -> vector<2x8xf32>
    %140 = vector.broadcast %3 : vector<1x8xf32> to vector<2x8xf32>
    %141 = arith.addf %139, %140 : vector<2x8xf32>
    %cst_120 = arith.constant 0.000000e+00 : f32
    %142 = vector.broadcast %cst_120 : f32 to vector<2x8xf32>
    %143 = arith.maximumf %141, %142 : vector<2x8xf32>
    %144 = arith.truncf %143 : vector<2x8xf32> to vector<2x8xbf16>
    %c0_121 = arith.constant 0 : index
    %c11_122 = arith.constant 11 : index
    %c0_123 = arith.constant 0 : index
    %c0_124 = arith.constant 0 : index
    %145 = vector.load %arg5[%c0_121, %c11_122, %c0_123, %c0_124] : memref<1x24x8x64xbf16, #tpu.memory_space<vmem>>, vector<1x1x8x64xbf16>
    %146 = vector.shape_cast %145 : vector<1x1x8x64xbf16> to vector<8x64xbf16>
    %cst_125 = arith.constant dense<0.000000e+00> : vector<2x64xf32>
    %147 = tpu.matmul %144, %146, %cst_125 {dimension_numbers = #tpu.dot_dimension_numbers<[1], [0], [0], [1], [0, 0, 1, 1], [], []>} : vector<2x8xbf16>, vector<8x64xbf16>, vector<2x64xf32> -> vector<2x64xf32>
    %148 = arith.addf %136, %147 : vector<2x64xf32>
    %c0_126 = arith.constant 0 : index
    %c12 = arith.constant 12 : index
    %c0_127 = arith.constant 0 : index
    %c0_128 = arith.constant 0 : index
    %149 = vector.load %arg1[%c0_126, %c12, %c0_127, %c0_128] : memref<1x24x2x512xbf16, #tpu.memory_space<vmem>>, vector<1x1x2x512xbf16>
    %150 = vector.shape_cast %149 : vector<1x1x2x512xbf16> to vector<2x512xbf16>
    %cst_129 = arith.constant dense<0.000000e+00> : vector<2x8xf32>
    %151 = tpu.matmul %150, %1, %cst_129 {dimension_numbers = #tpu.dot_dimension_numbers<[1], [0], [0], [1], [0, 0, 1, 1], [], []>} : vector<2x512xbf16>, vector<512x8xbf16>, vector<2x8xf32> -> vector<2x8xf32>
    %152 = vector.broadcast %3 : vector<1x8xf32> to vector<2x8xf32>
    %153 = arith.addf %151, %152 : vector<2x8xf32>
    %cst_130 = arith.constant 0.000000e+00 : f32
    %154 = vector.broadcast %cst_130 : f32 to vector<2x8xf32>
    %155 = arith.maximumf %153, %154 : vector<2x8xf32>
    %156 = arith.truncf %155 : vector<2x8xf32> to vector<2x8xbf16>
    %c0_131 = arith.constant 0 : index
    %c12_132 = arith.constant 12 : index
    %c0_133 = arith.constant 0 : index
    %c0_134 = arith.constant 0 : index
    %157 = vector.load %arg5[%c0_131, %c12_132, %c0_133, %c0_134] : memref<1x24x8x64xbf16, #tpu.memory_space<vmem>>, vector<1x1x8x64xbf16>
    %158 = vector.shape_cast %157 : vector<1x1x8x64xbf16> to vector<8x64xbf16>
    %cst_135 = arith.constant dense<0.000000e+00> : vector<2x64xf32>
    %159 = tpu.matmul %156, %158, %cst_135 {dimension_numbers = #tpu.dot_dimension_numbers<[1], [0], [0], [1], [0, 0, 1, 1], [], []>} : vector<2x8xbf16>, vector<8x64xbf16>, vector<2x64xf32> -> vector<2x64xf32>
    %160 = arith.addf %148, %159 : vector<2x64xf32>
    %c0_136 = arith.constant 0 : index
    %c13 = arith.constant 13 : index
    %c0_137 = arith.constant 0 : index
    %c0_138 = arith.constant 0 : index
    %161 = vector.load %arg1[%c0_136, %c13, %c0_137, %c0_138] : memref<1x24x2x512xbf16, #tpu.memory_space<vmem>>, vector<1x1x2x512xbf16>
    %162 = vector.shape_cast %161 : vector<1x1x2x512xbf16> to vector<2x512xbf16>
    %cst_139 = arith.constant dense<0.000000e+00> : vector<2x8xf32>
    %163 = tpu.matmul %162, %1, %cst_139 {dimension_numbers = #tpu.dot_dimension_numbers<[1], [0], [0], [1], [0, 0, 1, 1], [], []>} : vector<2x512xbf16>, vector<512x8xbf16>, vector<2x8xf32> -> vector<2x8xf32>
    %164 = vector.broadcast %3 : vector<1x8xf32> to vector<2x8xf32>
    %165 = arith.addf %163, %164 : vector<2x8xf32>
    %cst_140 = arith.constant 0.000000e+00 : f32
    %166 = vector.broadcast %cst_140 : f32 to vector<2x8xf32>
    %167 = arith.maximumf %165, %166 : vector<2x8xf32>
    %168 = arith.truncf %167 : vector<2x8xf32> to vector<2x8xbf16>
    %c0_141 = arith.constant 0 : index
    %c13_142 = arith.constant 13 : index
    %c0_143 = arith.constant 0 : index
    %c0_144 = arith.constant 0 : index
    %169 = vector.load %arg5[%c0_141, %c13_142, %c0_143, %c0_144] : memref<1x24x8x64xbf16, #tpu.memory_space<vmem>>, vector<1x1x8x64xbf16>
    %170 = vector.shape_cast %169 : vector<1x1x8x64xbf16> to vector<8x64xbf16>
    %cst_145 = arith.constant dense<0.000000e+00> : vector<2x64xf32>
    %171 = tpu.matmul %168, %170, %cst_145 {dimension_numbers = #tpu.dot_dimension_numbers<[1], [0], [0], [1], [0, 0, 1, 1], [], []>} : vector<2x8xbf16>, vector<8x64xbf16>, vector<2x64xf32> -> vector<2x64xf32>
    %172 = arith.addf %160, %171 : vector<2x64xf32>
    %c0_146 = arith.constant 0 : index
    %c14 = arith.constant 14 : index
    %c0_147 = arith.constant 0 : index
    %c0_148 = arith.constant 0 : index
    %173 = vector.load %arg1[%c0_146, %c14, %c0_147, %c0_148] : memref<1x24x2x512xbf16, #tpu.memory_space<vmem>>, vector<1x1x2x512xbf16>
    %174 = vector.shape_cast %173 : vector<1x1x2x512xbf16> to vector<2x512xbf16>
    %cst_149 = arith.constant dense<0.000000e+00> : vector<2x8xf32>
    %175 = tpu.matmul %174, %1, %cst_149 {dimension_numbers = #tpu.dot_dimension_numbers<[1], [0], [0], [1], [0, 0, 1, 1], [], []>} : vector<2x512xbf16>, vector<512x8xbf16>, vector<2x8xf32> -> vector<2x8xf32>
    %176 = vector.broadcast %3 : vector<1x8xf32> to vector<2x8xf32>
    %177 = arith.addf %175, %176 : vector<2x8xf32>
    %cst_150 = arith.constant 0.000000e+00 : f32
    %178 = vector.broadcast %cst_150 : f32 to vector<2x8xf32>
    %179 = arith.maximumf %177, %178 : vector<2x8xf32>
    %180 = arith.truncf %179 : vector<2x8xf32> to vector<2x8xbf16>
    %c0_151 = arith.constant 0 : index
    %c14_152 = arith.constant 14 : index
    %c0_153 = arith.constant 0 : index
    %c0_154 = arith.constant 0 : index
    %181 = vector.load %arg5[%c0_151, %c14_152, %c0_153, %c0_154] : memref<1x24x8x64xbf16, #tpu.memory_space<vmem>>, vector<1x1x8x64xbf16>
    %182 = vector.shape_cast %181 : vector<1x1x8x64xbf16> to vector<8x64xbf16>
    %cst_155 = arith.constant dense<0.000000e+00> : vector<2x64xf32>
    %183 = tpu.matmul %180, %182, %cst_155 {dimension_numbers = #tpu.dot_dimension_numbers<[1], [0], [0], [1], [0, 0, 1, 1], [], []>} : vector<2x8xbf16>, vector<8x64xbf16>, vector<2x64xf32> -> vector<2x64xf32>
    %184 = arith.addf %172, %183 : vector<2x64xf32>
    %c0_156 = arith.constant 0 : index
    %c15 = arith.constant 15 : index
    %c0_157 = arith.constant 0 : index
    %c0_158 = arith.constant 0 : index
    %185 = vector.load %arg1[%c0_156, %c15, %c0_157, %c0_158] : memref<1x24x2x512xbf16, #tpu.memory_space<vmem>>, vector<1x1x2x512xbf16>
    %186 = vector.shape_cast %185 : vector<1x1x2x512xbf16> to vector<2x512xbf16>
    %cst_159 = arith.constant dense<0.000000e+00> : vector<2x8xf32>
    %187 = tpu.matmul %186, %1, %cst_159 {dimension_numbers = #tpu.dot_dimension_numbers<[1], [0], [0], [1], [0, 0, 1, 1], [], []>} : vector<2x512xbf16>, vector<512x8xbf16>, vector<2x8xf32> -> vector<2x8xf32>
    %188 = vector.broadcast %3 : vector<1x8xf32> to vector<2x8xf32>
    %189 = arith.addf %187, %188 : vector<2x8xf32>
    %cst_160 = arith.constant 0.000000e+00 : f32
    %190 = vector.broadcast %cst_160 : f32 to vector<2x8xf32>
    %191 = arith.maximumf %189, %190 : vector<2x8xf32>
    %192 = arith.truncf %191 : vector<2x8xf32> to vector<2x8xbf16>
    %c0_161 = arith.constant 0 : index
    %c15_162 = arith.constant 15 : index
    %c0_163 = arith.constant 0 : index
    %c0_164 = arith.constant 0 : index
    %193 = vector.load %arg5[%c0_161, %c15_162, %c0_163, %c0_164] : memref<1x24x8x64xbf16, #tpu.memory_space<vmem>>, vector<1x1x8x64xbf16>
    %194 = vector.shape_cast %193 : vector<1x1x8x64xbf16> to vector<8x64xbf16>
    %cst_165 = arith.constant dense<0.000000e+00> : vector<2x64xf32>
    %195 = tpu.matmul %192, %194, %cst_165 {dimension_numbers = #tpu.dot_dimension_numbers<[1], [0], [0], [1], [0, 0, 1, 1], [], []>} : vector<2x8xbf16>, vector<8x64xbf16>, vector<2x64xf32> -> vector<2x64xf32>
    %196 = arith.addf %184, %195 : vector<2x64xf32>
    %c0_166 = arith.constant 0 : index
    %c16 = arith.constant 16 : index
    %c0_167 = arith.constant 0 : index
    %c0_168 = arith.constant 0 : index
    %197 = vector.load %arg1[%c0_166, %c16, %c0_167, %c0_168] : memref<1x24x2x512xbf16, #tpu.memory_space<vmem>>, vector<1x1x2x512xbf16>
    %198 = vector.shape_cast %197 : vector<1x1x2x512xbf16> to vector<2x512xbf16>
    %cst_169 = arith.constant dense<0.000000e+00> : vector<2x8xf32>
    %199 = tpu.matmul %198, %1, %cst_169 {dimension_numbers = #tpu.dot_dimension_numbers<[1], [0], [0], [1], [0, 0, 1, 1], [], []>} : vector<2x512xbf16>, vector<512x8xbf16>, vector<2x8xf32> -> vector<2x8xf32>
    %200 = vector.broadcast %3 : vector<1x8xf32> to vector<2x8xf32>
    %201 = arith.addf %199, %200 : vector<2x8xf32>
    %cst_170 = arith.constant 0.000000e+00 : f32
    %202 = vector.broadcast %cst_170 : f32 to vector<2x8xf32>
    %203 = arith.maximumf %201, %202 : vector<2x8xf32>
    %204 = arith.truncf %203 : vector<2x8xf32> to vector<2x8xbf16>
    %c0_171 = arith.constant 0 : index
    %c16_172 = arith.constant 16 : index
    %c0_173 = arith.constant 0 : index
    %c0_174 = arith.constant 0 : index
    %205 = vector.load %arg5[%c0_171, %c16_172, %c0_173, %c0_174] : memref<1x24x8x64xbf16, #tpu.memory_space<vmem>>, vector<1x1x8x64xbf16>
    %206 = vector.shape_cast %205 : vector<1x1x8x64xbf16> to vector<8x64xbf16>
    %cst_175 = arith.constant dense<0.000000e+00> : vector<2x64xf32>
    %207 = tpu.matmul %204, %206, %cst_175 {dimension_numbers = #tpu.dot_dimension_numbers<[1], [0], [0], [1], [0, 0, 1, 1], [], []>} : vector<2x8xbf16>, vector<8x64xbf16>, vector<2x64xf32> -> vector<2x64xf32>
    %208 = arith.addf %196, %207 : vector<2x64xf32>
    %c0_176 = arith.constant 0 : index
    %c17 = arith.constant 17 : index
    %c0_177 = arith.constant 0 : index
    %c0_178 = arith.constant 0 : index
    %209 = vector.load %arg1[%c0_176, %c17, %c0_177, %c0_178] : memref<1x24x2x512xbf16, #tpu.memory_space<vmem>>, vector<1x1x2x512xbf16>
    %210 = vector.shape_cast %209 : vector<1x1x2x512xbf16> to vector<2x512xbf16>
    %cst_179 = arith.constant dense<0.000000e+00> : vector<2x8xf32>
    %211 = tpu.matmul %210, %1, %cst_179 {dimension_numbers = #tpu.dot_dimension_numbers<[1], [0], [0], [1], [0, 0, 1, 1], [], []>} : vector<2x512xbf16>, vector<512x8xbf16>, vector<2x8xf32> -> vector<2x8xf32>
    %212 = vector.broadcast %3 : vector<1x8xf32> to vector<2x8xf32>
    %213 = arith.addf %211, %212 : vector<2x8xf32>
    %cst_180 = arith.constant 0.000000e+00 : f32
    %214 = vector.broadcast %cst_180 : f32 to vector<2x8xf32>
    %215 = arith.maximumf %213, %214 : vector<2x8xf32>
    %216 = arith.truncf %215 : vector<2x8xf32> to vector<2x8xbf16>
    %c0_181 = arith.constant 0 : index
    %c17_182 = arith.constant 17 : index
    %c0_183 = arith.constant 0 : index
    %c0_184 = arith.constant 0 : index
    %217 = vector.load %arg5[%c0_181, %c17_182, %c0_183, %c0_184] : memref<1x24x8x64xbf16, #tpu.memory_space<vmem>>, vector<1x1x8x64xbf16>
    %218 = vector.shape_cast %217 : vector<1x1x8x64xbf16> to vector<8x64xbf16>
    %cst_185 = arith.constant dense<0.000000e+00> : vector<2x64xf32>
    %219 = tpu.matmul %216, %218, %cst_185 {dimension_numbers = #tpu.dot_dimension_numbers<[1], [0], [0], [1], [0, 0, 1, 1], [], []>} : vector<2x8xbf16>, vector<8x64xbf16>, vector<2x64xf32> -> vector<2x64xf32>
    %220 = arith.addf %208, %219 : vector<2x64xf32>
    %c0_186 = arith.constant 0 : index
    %c18 = arith.constant 18 : index
    %c0_187 = arith.constant 0 : index
    %c0_188 = arith.constant 0 : index
    %221 = vector.load %arg1[%c0_186, %c18, %c0_187, %c0_188] : memref<1x24x2x512xbf16, #tpu.memory_space<vmem>>, vector<1x1x2x512xbf16>
    %222 = vector.shape_cast %221 : vector<1x1x2x512xbf16> to vector<2x512xbf16>
    %cst_189 = arith.constant dense<0.000000e+00> : vector<2x8xf32>
    %223 = tpu.matmul %222, %1, %cst_189 {dimension_numbers = #tpu.dot_dimension_numbers<[1], [0], [0], [1], [0, 0, 1, 1], [], []>} : vector<2x512xbf16>, vector<512x8xbf16>, vector<2x8xf32> -> vector<2x8xf32>
    %224 = vector.broadcast %3 : vector<1x8xf32> to vector<2x8xf32>
    %225 = arith.addf %223, %224 : vector<2x8xf32>
    %cst_190 = arith.constant 0.000000e+00 : f32
    %226 = vector.broadcast %cst_190 : f32 to vector<2x8xf32>
    %227 = arith.maximumf %225, %226 : vector<2x8xf32>
    %228 = arith.truncf %227 : vector<2x8xf32> to vector<2x8xbf16>
    %c0_191 = arith.constant 0 : index
    %c18_192 = arith.constant 18 : index
    %c0_193 = arith.constant 0 : index
    %c0_194 = arith.constant 0 : index
    %229 = vector.load %arg5[%c0_191, %c18_192, %c0_193, %c0_194] : memref<1x24x8x64xbf16, #tpu.memory_space<vmem>>, vector<1x1x8x64xbf16>
    %230 = vector.shape_cast %229 : vector<1x1x8x64xbf16> to vector<8x64xbf16>
    %cst_195 = arith.constant dense<0.000000e+00> : vector<2x64xf32>
    %231 = tpu.matmul %228, %230, %cst_195 {dimension_numbers = #tpu.dot_dimension_numbers<[1], [0], [0], [1], [0, 0, 1, 1], [], []>} : vector<2x8xbf16>, vector<8x64xbf16>, vector<2x64xf32> -> vector<2x64xf32>
    %232 = arith.addf %220, %231 : vector<2x64xf32>
    %c0_196 = arith.constant 0 : index
    %c19 = arith.constant 19 : index
    %c0_197 = arith.constant 0 : index
    %c0_198 = arith.constant 0 : index
    %233 = vector.load %arg1[%c0_196, %c19, %c0_197, %c0_198] : memref<1x24x2x512xbf16, #tpu.memory_space<vmem>>, vector<1x1x2x512xbf16>
    %234 = vector.shape_cast %233 : vector<1x1x2x512xbf16> to vector<2x512xbf16>
    %cst_199 = arith.constant dense<0.000000e+00> : vector<2x8xf32>
    %235 = tpu.matmul %234, %1, %cst_199 {dimension_numbers = #tpu.dot_dimension_numbers<[1], [0], [0], [1], [0, 0, 1, 1], [], []>} : vector<2x512xbf16>, vector<512x8xbf16>, vector<2x8xf32> -> vector<2x8xf32>
    %236 = vector.broadcast %3 : vector<1x8xf32> to vector<2x8xf32>
    %237 = arith.addf %235, %236 : vector<2x8xf32>
    %cst_200 = arith.constant 0.000000e+00 : f32
    %238 = vector.broadcast %cst_200 : f32 to vector<2x8xf32>
    %239 = arith.maximumf %237, %238 : vector<2x8xf32>
    %240 = arith.truncf %239 : vector<2x8xf32> to vector<2x8xbf16>
    %c0_201 = arith.constant 0 : index
    %c19_202 = arith.constant 19 : index
    %c0_203 = arith.constant 0 : index
    %c0_204 = arith.constant 0 : index
    %241 = vector.load %arg5[%c0_201, %c19_202, %c0_203, %c0_204] : memref<1x24x8x64xbf16, #tpu.memory_space<vmem>>, vector<1x1x8x64xbf16>
    %242 = vector.shape_cast %241 : vector<1x1x8x64xbf16> to vector<8x64xbf16>
    %cst_205 = arith.constant dense<0.000000e+00> : vector<2x64xf32>
    %243 = tpu.matmul %240, %242, %cst_205 {dimension_numbers = #tpu.dot_dimension_numbers<[1], [0], [0], [1], [0, 0, 1, 1], [], []>} : vector<2x8xbf16>, vector<8x64xbf16>, vector<2x64xf32> -> vector<2x64xf32>
    %244 = arith.addf %232, %243 : vector<2x64xf32>
    %c0_206 = arith.constant 0 : index
    %c20 = arith.constant 20 : index
    %c0_207 = arith.constant 0 : index
    %c0_208 = arith.constant 0 : index
    %245 = vector.load %arg1[%c0_206, %c20, %c0_207, %c0_208] : memref<1x24x2x512xbf16, #tpu.memory_space<vmem>>, vector<1x1x2x512xbf16>
    %246 = vector.shape_cast %245 : vector<1x1x2x512xbf16> to vector<2x512xbf16>
    %cst_209 = arith.constant dense<0.000000e+00> : vector<2x8xf32>
    %247 = tpu.matmul %246, %1, %cst_209 {dimension_numbers = #tpu.dot_dimension_numbers<[1], [0], [0], [1], [0, 0, 1, 1], [], []>} : vector<2x512xbf16>, vector<512x8xbf16>, vector<2x8xf32> -> vector<2x8xf32>
    %248 = vector.broadcast %3 : vector<1x8xf32> to vector<2x8xf32>
    %249 = arith.addf %247, %248 : vector<2x8xf32>
    %cst_210 = arith.constant 0.000000e+00 : f32
    %250 = vector.broadcast %cst_210 : f32 to vector<2x8xf32>
    %251 = arith.maximumf %249, %250 : vector<2x8xf32>
    %252 = arith.truncf %251 : vector<2x8xf32> to vector<2x8xbf16>
    %c0_211 = arith.constant 0 : index
    %c20_212 = arith.constant 20 : index
    %c0_213 = arith.constant 0 : index
    %c0_214 = arith.constant 0 : index
    %253 = vector.load %arg5[%c0_211, %c20_212, %c0_213, %c0_214] : memref<1x24x8x64xbf16, #tpu.memory_space<vmem>>, vector<1x1x8x64xbf16>
    %254 = vector.shape_cast %253 : vector<1x1x8x64xbf16> to vector<8x64xbf16>
    %cst_215 = arith.constant dense<0.000000e+00> : vector<2x64xf32>
    %255 = tpu.matmul %252, %254, %cst_215 {dimension_numbers = #tpu.dot_dimension_numbers<[1], [0], [0], [1], [0, 0, 1, 1], [], []>} : vector<2x8xbf16>, vector<8x64xbf16>, vector<2x64xf32> -> vector<2x64xf32>
    %256 = arith.addf %244, %255 : vector<2x64xf32>
    %c0_216 = arith.constant 0 : index
    %c21 = arith.constant 21 : index
    %c0_217 = arith.constant 0 : index
    %c0_218 = arith.constant 0 : index
    %257 = vector.load %arg1[%c0_216, %c21, %c0_217, %c0_218] : memref<1x24x2x512xbf16, #tpu.memory_space<vmem>>, vector<1x1x2x512xbf16>
    %258 = vector.shape_cast %257 : vector<1x1x2x512xbf16> to vector<2x512xbf16>
    %cst_219 = arith.constant dense<0.000000e+00> : vector<2x8xf32>
    %259 = tpu.matmul %258, %1, %cst_219 {dimension_numbers = #tpu.dot_dimension_numbers<[1], [0], [0], [1], [0, 0, 1, 1], [], []>} : vector<2x512xbf16>, vector<512x8xbf16>, vector<2x8xf32> -> vector<2x8xf32>
    %260 = vector.broadcast %3 : vector<1x8xf32> to vector<2x8xf32>
    %261 = arith.addf %259, %260 : vector<2x8xf32>
    %cst_220 = arith.constant 0.000000e+00 : f32
    %262 = vector.broadcast %cst_220 : f32 to vector<2x8xf32>
    %263 = arith.maximumf %261, %262 : vector<2x8xf32>
    %264 = arith.truncf %263 : vector<2x8xf32> to vector<2x8xbf16>
    %c0_221 = arith.constant 0 : index
    %c21_222 = arith.constant 21 : index
    %c0_223 = arith.constant 0 : index
    %c0_224 = arith.constant 0 : index
    %265 = vector.load %arg5[%c0_221, %c21_222, %c0_223, %c0_224] : memref<1x24x8x64xbf16, #tpu.memory_space<vmem>>, vector<1x1x8x64xbf16>
    %266 = vector.shape_cast %265 : vector<1x1x8x64xbf16> to vector<8x64xbf16>
    %cst_225 = arith.constant dense<0.000000e+00> : vector<2x64xf32>
    %267 = tpu.matmul %264, %266, %cst_225 {dimension_numbers = #tpu.dot_dimension_numbers<[1], [0], [0], [1], [0, 0, 1, 1], [], []>} : vector<2x8xbf16>, vector<8x64xbf16>, vector<2x64xf32> -> vector<2x64xf32>
    %268 = arith.addf %256, %267 : vector<2x64xf32>
    %c0_226 = arith.constant 0 : index
    %c22 = arith.constant 22 : index
    %c0_227 = arith.constant 0 : index
    %c0_228 = arith.constant 0 : index
    %269 = vector.load %arg1[%c0_226, %c22, %c0_227, %c0_228] : memref<1x24x2x512xbf16, #tpu.memory_space<vmem>>, vector<1x1x2x512xbf16>
    %270 = vector.shape_cast %269 : vector<1x1x2x512xbf16> to vector<2x512xbf16>
    %cst_229 = arith.constant dense<0.000000e+00> : vector<2x8xf32>
    %271 = tpu.matmul %270, %1, %cst_229 {dimension_numbers = #tpu.dot_dimension_numbers<[1], [0], [0], [1], [0, 0, 1, 1], [], []>} : vector<2x512xbf16>, vector<512x8xbf16>, vector<2x8xf32> -> vector<2x8xf32>
    %272 = vector.broadcast %3 : vector<1x8xf32> to vector<2x8xf32>
    %273 = arith.addf %271, %272 : vector<2x8xf32>
    %cst_230 = arith.constant 0.000000e+00 : f32
    %274 = vector.broadcast %cst_230 : f32 to vector<2x8xf32>
    %275 = arith.maximumf %273, %274 : vector<2x8xf32>
    %276 = arith.truncf %275 : vector<2x8xf32> to vector<2x8xbf16>
    %c0_231 = arith.constant 0 : index
    %c22_232 = arith.constant 22 : index
    %c0_233 = arith.constant 0 : index
    %c0_234 = arith.constant 0 : index
    %277 = vector.load %arg5[%c0_231, %c22_232, %c0_233, %c0_234] : memref<1x24x8x64xbf16, #tpu.memory_space<vmem>>, vector<1x1x8x64xbf16>
    %278 = vector.shape_cast %277 : vector<1x1x8x64xbf16> to vector<8x64xbf16>
    %cst_235 = arith.constant dense<0.000000e+00> : vector<2x64xf32>
    %279 = tpu.matmul %276, %278, %cst_235 {dimension_numbers = #tpu.dot_dimension_numbers<[1], [0], [0], [1], [0, 0, 1, 1], [], []>} : vector<2x8xbf16>, vector<8x64xbf16>, vector<2x64xf32> -> vector<2x64xf32>
    %280 = arith.addf %268, %279 : vector<2x64xf32>
    %c0_236 = arith.constant 0 : index
    %c23 = arith.constant 23 : index
    %c0_237 = arith.constant 0 : index
    %c0_238 = arith.constant 0 : index
    %281 = vector.load %arg1[%c0_236, %c23, %c0_237, %c0_238] : memref<1x24x2x512xbf16, #tpu.memory_space<vmem>>, vector<1x1x2x512xbf16>
    %282 = vector.shape_cast %281 : vector<1x1x2x512xbf16> to vector<2x512xbf16>
    %cst_239 = arith.constant dense<0.000000e+00> : vector<2x8xf32>
    %283 = tpu.matmul %282, %1, %cst_239 {dimension_numbers = #tpu.dot_dimension_numbers<[1], [0], [0], [1], [0, 0, 1, 1], [], []>} : vector<2x512xbf16>, vector<512x8xbf16>, vector<2x8xf32> -> vector<2x8xf32>
    %284 = vector.broadcast %3 : vector<1x8xf32> to vector<2x8xf32>
    %285 = arith.addf %283, %284 : vector<2x8xf32>
    %cst_240 = arith.constant 0.000000e+00 : f32
    %286 = vector.broadcast %cst_240 : f32 to vector<2x8xf32>
    %287 = arith.maximumf %285, %286 : vector<2x8xf32>
    %288 = arith.truncf %287 : vector<2x8xf32> to vector<2x8xbf16>
    %c0_241 = arith.constant 0 : index
    %c23_242 = arith.constant 23 : index
    %c0_243 = arith.constant 0 : index
    %c0_244 = arith.constant 0 : index
    %289 = vector.load %arg5[%c0_241, %c23_242, %c0_243, %c0_244] : memref<1x24x8x64xbf16, #tpu.memory_space<vmem>>, vector<1x1x8x64xbf16>
    %290 = vector.shape_cast %289 : vector<1x1x8x64xbf16> to vector<8x64xbf16>
    %cst_245 = arith.constant dense<0.000000e+00> : vector<2x64xf32>
    %291 = tpu.matmul %288, %290, %cst_245 {dimension_numbers = #tpu.dot_dimension_numbers<[1], [0], [0], [1], [0, 0, 1, 1], [], []>} : vector<2x8xbf16>, vector<8x64xbf16>, vector<2x64xf32> -> vector<2x64xf32>
    %292 = arith.addf %280, %291 : vector<2x64xf32>
    %c0_246 = arith.constant 0 : index
    %c0_247 = arith.constant 0 : index
    %c0_248 = arith.constant 0 : index
    %293 = vector.load %arg6[%c0_246, %c0_247, %c0_248] : memref<1x1x64xf32, #tpu.memory_space<vmem>>, vector<1x1x64xf32>
    %294 = vector.shape_cast %293 : vector<1x1x64xf32> to vector<1x64xf32>
    %295 = vector.broadcast %294 : vector<1x64xf32> to vector<2x64xf32>
    %296 = arith.addf %292, %295 : vector<2x64xf32>
    %c0_249 = arith.constant 0 : index
    %c0_250 = arith.constant 0 : index
    %297 = vector.load %arg2[%c0_249, %c0_250] : memref<2x2xf32, #tpu.memory_space<vmem>>, vector<2x2xf32>
    %c0_251 = arith.constant 0 : index
    %c0_252 = arith.constant 0 : index
    %c0_253 = arith.constant 0 : index
    %298 = vector.load %arg7[%c0_251, %c0_252, %c0_253] : memref<1x2x64xf32, #tpu.memory_space<vmem>>, vector<1x2x64xf32>
    %299 = vector.shape_cast %298 : vector<1x2x64xf32> to vector<2x64xf32>
    %300 = vector.extract_strided_slice %297 {offsets = [0, 0], sizes = [2, 1], strides = [1, 1]} : vector<2x2xf32> to vector<2x1xf32>
    %301 = vector.extract_strided_slice %299 {offsets = [0, 0], sizes = [1, 64], strides = [1, 1]} : vector<2x64xf32> to vector<1x64xf32>
    %302 = vector.broadcast %300 : vector<2x1xf32> to vector<2x64xf32>
    %303 = vector.broadcast %301 : vector<1x64xf32> to vector<2x64xf32>
    %304 = arith.mulf %302, %303 : vector<2x64xf32>
    %305 = vector.extract_strided_slice %297 {offsets = [0, 1], sizes = [2, 1], strides = [1, 1]} : vector<2x2xf32> to vector<2x1xf32>
    %306 = vector.extract_strided_slice %299 {offsets = [1, 0], sizes = [1, 64], strides = [1, 1]} : vector<2x64xf32> to vector<1x64xf32>
    %307 = vector.broadcast %305 : vector<2x1xf32> to vector<2x64xf32>
    %308 = vector.broadcast %306 : vector<1x64xf32> to vector<2x64xf32>
    %309 = arith.mulf %307, %308 : vector<2x64xf32>
    %310 = arith.addf %304, %309 : vector<2x64xf32>
    %c0_254 = arith.constant 0 : index
    %c0_255 = arith.constant 0 : index
    %c0_256 = arith.constant 0 : index
    %311 = vector.load %arg8[%c0_254, %c0_255, %c0_256] : memref<1x1x64xf32, #tpu.memory_space<vmem>>, vector<1x1x64xf32>
    %312 = vector.shape_cast %311 : vector<1x1x64xf32> to vector<1x64xf32>
    %313 = vector.broadcast %312 : vector<1x64xf32> to vector<2x64xf32>
    %314 = arith.addf %310, %313 : vector<2x64xf32>
    %315 = arith.truncf %296 : vector<2x64xf32> to vector<2x64xbf16>
    %c0_257 = arith.constant 0 : index
    %c0_258 = arith.constant 0 : index
    %c0_259 = arith.constant 0 : index
    %316 = vector.load %arg9[%c0_257, %c0_258, %c0_259] : memref<1x64x64xbf16, #tpu.memory_space<vmem>>, vector<1x64x64xbf16>
    %317 = vector.shape_cast %316 : vector<1x64x64xbf16> to vector<64x64xbf16>
    %cst_260 = arith.constant dense<0.000000e+00> : vector<2x64xf32>
    %318 = tpu.matmul %315, %317, %cst_260 {dimension_numbers = #tpu.dot_dimension_numbers<[1], [0], [0], [1], [0, 0, 1, 1], [], []>} : vector<2x64xbf16>, vector<64x64xbf16>, vector<2x64xf32> -> vector<2x64xf32>
    %319 = arith.truncf %314 : vector<2x64xf32> to vector<2x64xbf16>
    %c0_261 = arith.constant 0 : index
    %c0_262 = arith.constant 0 : index
    %c0_263 = arith.constant 0 : index
    %320 = vector.load %arg10[%c0_261, %c0_262, %c0_263] : memref<1x64x64xbf16, #tpu.memory_space<vmem>>, vector<1x64x64xbf16>
    %321 = vector.shape_cast %320 : vector<1x64x64xbf16> to vector<64x64xbf16>
    %cst_264 = arith.constant dense<0.000000e+00> : vector<2x64xf32>
    %322 = tpu.matmul %319, %321, %cst_264 {dimension_numbers = #tpu.dot_dimension_numbers<[1], [0], [0], [1], [0, 0, 1, 1], [], []>} : vector<2x64xbf16>, vector<64x64xbf16>, vector<2x64xf32> -> vector<2x64xf32>
    %323 = arith.addf %318, %322 : vector<2x64xf32>
    %c0_265 = arith.constant 0 : index
    %c0_266 = arith.constant 0 : index
    %c0_267 = arith.constant 0 : index
    %324 = vector.load %arg11[%c0_265, %c0_266, %c0_267] : memref<1x1x64xf32, #tpu.memory_space<vmem>>, vector<1x1x64xf32>
    %325 = vector.shape_cast %324 : vector<1x1x64xf32> to vector<1x64xf32>
    %326 = vector.broadcast %325 : vector<1x64xf32> to vector<2x64xf32>
    %327 = arith.addf %323, %326 : vector<2x64xf32>
    %cst_268 = arith.constant 0.000000e+00 : f32
    %328 = vector.broadcast %cst_268 : f32 to vector<2x64xf32>
    %329 = arith.maximumf %327, %328 : vector<2x64xf32>
    %c0_269 = arith.constant 0 : index
    %c0_270 = arith.constant 0 : index
    %c0_271 = arith.constant 0 : index
    %330 = vector.load %arg12[%c0_269, %c0_270, %c0_271] : memref<1x1x64xf32, #tpu.memory_space<vmem>>, vector<1x1x64xf32>
    %331 = vector.shape_cast %330 : vector<1x1x64xf32> to vector<1x64xf32>
    %332 = vector.broadcast %331 : vector<1x64xf32> to vector<2x64xf32>
    %333 = arith.mulf %329, %332 : vector<2x64xf32>
    %cst_272 = arith.constant dense<0.000000e+00> : vector<2xf32>
    %334 = vector.multi_reduction <add>, %333, %cst_272 [1] : vector<2x64xf32> to vector<2xf32>
    %335 = vector.shape_cast %334 : vector<2xf32> to vector<2x1xf32>
    %c0_273 = arith.constant 0 : index
    %c0_274 = arith.constant 0 : index
    %c0_275 = arith.constant 0 : index
    %336 = vector.load %arg13[%c0_273, %c0_274, %c0_275] : memref<1x1x1xf32, #tpu.memory_space<vmem>>, vector<1x1x1xf32>
    %337 = vector.shape_cast %336 : vector<1x1x1xf32> to vector<1x1xf32>
    %338 = vector.broadcast %337 : vector<1x1xf32> to vector<2x1xf32>
    %339 = arith.addf %335, %338 : vector<2x1xf32>
    %c0_276 = arith.constant 0 : index
    %c0_277 = arith.constant 0 : index
    %c0_278 = arith.constant 0 : index
    %340 = vector.load %arg14[%c0_276, %c0_277, %c0_278] : memref<1x2x1xf32, #tpu.memory_space<vmem>>, vector<1x2x1xf32>
    %341 = vector.shape_cast %340 : vector<1x2x1xf32> to vector<2x1xf32>
    %342 = vector.shape_cast %339 : vector<2x1xf32> to vector<1x2x1xf32>
    tpu.vector_store %arg14[%c0_276, %c0_277, %c0_278], %342 {strides = array<i32>} : memref<1x2x1xf32, #tpu.memory_space<vmem>>, vector<1x2x1xf32>,
    return
  }
  func.func @transform_0(%arg0: i32) -> (i32, i32, i32, i32) {
    %c0_i32 = arith.constant 0 : i32
    %c0_i32_0 = arith.constant 0 : i32
    %c0_i32_1 = arith.constant 0 : i32
    %c0_i32_2 = arith.constant 0 : i32
    return %arg0, %c0_i32, %c0_i32_0, %c0_i32_1 : i32, i32, i32, i32
  }
  func.func @transform_1(%arg0: i32) -> (i32, i32) {
    %c0_i32 = arith.constant 0 : i32
    %c0_i32_0 = arith.constant 0 : i32
    %c0_i32_1 = arith.constant 0 : i32
    return %c0_i32, %c0_i32_0 : i32, i32
  }
  func.func @transform_2(%arg0: i32) -> (i32, i32, i32) {
    %c0_i32 = arith.constant 0 : i32
    %c0_i32_0 = arith.constant 0 : i32
    %c0_i32_1 = arith.constant 0 : i32
    return %arg0, %c0_i32, %c0_i32_0 : i32, i32, i32
  }
  func.func @transform_3(%arg0: i32) -> (i32, i32, i32) {
    %c0_i32 = arith.constant 0 : i32
    %c0_i32_0 = arith.constant 0 : i32
    %c0_i32_1 = arith.constant 0 : i32
    return %arg0, %c0_i32, %c0_i32_0 : i32, i32, i32
  }
  func.func @transform_4(%arg0: i32) -> (i32, i32, i32, i32) {
    %c0_i32 = arith.constant 0 : i32
    %c0_i32_0 = arith.constant 0 : i32
    %c0_i32_1 = arith.constant 0 : i32
    %c0_i32_2 = arith.constant 0 : i32
    return %arg0, %c0_i32, %c0_i32_0, %c0_i32_1 : i32, i32, i32, i32
  }
  func.func @transform_5(%arg0: i32) -> (i32, i32, i32) {
    %c0_i32 = arith.constant 0 : i32
    %c0_i32_0 = arith.constant 0 : i32
    %c0_i32_1 = arith.constant 0 : i32
    return %arg0, %c0_i32, %c0_i32_0 : i32, i32, i32
  }
  func.func @transform_6(%arg0: i32) -> (i32, i32, i32) {
    %c0_i32 = arith.constant 0 : i32
    %c0_i32_0 = arith.constant 0 : i32
    %c0_i32_1 = arith.constant 0 : i32
    return %arg0, %c0_i32, %c0_i32_0 : i32, i32, i32
  }
  func.func @transform_7(%arg0: i32) -> (i32, i32, i32) {
    %c0_i32 = arith.constant 0 : i32
    %c0_i32_0 = arith.constant 0 : i32
    %c0_i32_1 = arith.constant 0 : i32
    return %arg0, %c0_i32, %c0_i32_0 : i32, i32, i32
  }
  func.func @transform_8(%arg0: i32) -> (i32, i32, i32) {
    %c0_i32 = arith.constant 0 : i32
    %c0_i32_0 = arith.constant 0 : i32
    %c0_i32_1 = arith.constant 0 : i32
    return %arg0, %c0_i32, %c0_i32_0 : i32, i32, i32
  }
  func.func @transform_9(%arg0: i32) -> (i32, i32, i32) {
    %c0_i32 = arith.constant 0 : i32
    %c0_i32_0 = arith.constant 0 : i32
    %c0_i32_1 = arith.constant 0 : i32
    return %arg0, %c0_i32, %c0_i32_0 : i32, i32, i32
  }
  func.func @transform_10(%arg0: i32) -> (i32, i32, i32) {
    %c0_i32 = arith.constant 0 : i32
    %c0_i32_0 = arith.constant 0 : i32
    %c0_i32_1 = arith.constant 0 : i32
    return %arg0, %c0_i32, %c0_i32_0 : i32, i32, i32
  }
  func.func @transform_11(%arg0: i32) -> (i32, i32, i32) {
    %c0_i32 = arith.constant 0 : i32
    %c0_i32_0 = arith.constant 0 : i32
    %c0_i32_1 = arith.constant 0 : i32
    return %arg0, %c0_i32, %c0_i32_0 : i32, i32, i32
  }
  func.func @transform_12(%arg0: i32) -> (i32, i32, i32) {
    %c0_i32 = arith.constant 0 : i32
    %c0_i32_0 = arith.constant 0 : i32
    %c0_i32_1 = arith.constant 0 : i32
    return %arg0, %c0_i32, %c0_i32_0 : i32, i32, i32
  }
  func.func @transform_13(%arg0: i32) -> (i32, i32, i32) {
    %c0_i32 = arith.constant 0 : i32
    %c0_i32_0 = arith.constant 0 : i32
    %c0_i32_1 = arith.constant 0 : i32
    return %arg0, %c0_i32, %c0_i32_0 : i32, i32, i32
  }
}

</mosaic_0001>

<bundles_post_ra>
// kernel: critic_forward.4
= control target key start
LH: loop header
LB: loop body
LE: loop exit
PB: predicated region body
PF: predicated region fallthrough
CT: control target
= control target key end

     0   :  { %s4832_s12 = smov 0   ;;  %s5537_s0 = inlined_call_operand.vmem [shape: bf16[5952,48], index: 0, kind: input, shape index: {}]   ;;  %s5538_s1 = inlined_call_operand.vmem [shape: bf16[48,128], index: 1, kind: input, shape index: {}]   ;;  %s5539_s2 = inlined_call_operand.vmem [shape: f32[1,128], index: 2, kind: input, shape index: {}]   ;;  %s5540_s3 = inlined_call_operand.vmem [shape: bf16[5952,128], index: 3, kind: output, shape index: {}]  }
   0x1 LB: > { %s3086_s13 = sadd.s32 4294967295, %s4808_s12   ;;  %p3090_p0 = scmp.ge.s32.totalorder %s4808_s12, 1  ;;  %s4808_s12 = sphi %s4832_s12, %s13_s12  }
   0x2   : > { %p138_p1 = scmp.lt.s32.totalorder %s4808_s12, 5 }
   0x4   : > { %p139_p2 = pnand %p3090_p0, %p138_p1 }
   0x5   : > { %v4704_v0 = vld [vmem:[%s5538_s1] sm:$0xff] (!%p139_p2)   ;;  %v4810_v1 = vmov (!%p139_p2), 0.0   ;;  %v4705_v2 = vld [vmem:[%s5538_s1 + $0x8] sm:$0xff] (!%p139_p2)   ;;  %s162_s18 = smul.u32 (!%p139_p2), 186, %s3086_s13  ;;  %vm4811_vm0 = vmmov (!%p139_p2), 0   ;;  %v4706_v3 = vld [vmem:[%s5538_s1 + $0x10] sm:$0xff] (!%p139_p2)  }
   0x6   : > { %142 = sbr.rel (%p139_p2) target bundleno = 607 (0x25f), region = 32  ;;  %4310 = vmatprep.subr.bf16.mxu0 (!%p139_p2), %v4810_v1  ;;  %4688 = vmatprep.subr.bf16.mxu1 (!%p139_p2), %v4810_v1  ;;  %vm857_vm1 = vcmask (!%p139_p2), 392192   ;;  %v5084_v58 = vld [vmem:[%s5539_s2] ss:$0 sm:$0xff] (!%p139_p2) }
   0x7   : > { %4311 = vmatpush3.bf16.msra.mxu0 (!%p139_p2), %v4704_v0  ;;  %4691 = vmatpush3.bf16.msra.mxu1 (!%p139_p2), %v4704_v0  ;;  %p163_p3 = scmp.lt.s32.totalorder (!%p139_p2), %s162_s18, 743 }
   0x8   : > { %4312 = vmatprep.subr.bf16.mxu0 (!%p139_p2), %v4810_v1  ;;  %4689 = vmatprep.subr.bf16.mxu1 (!%p139_p2), %v4810_v1 }
   0x9   : > { %4316 = vmatprep.mubr.msk.bf16.mxu0 (!%p139_p2), %vm4811_vm0, %v4810_v1  ;;  %4504 = vmatprep.mubr.msk.bf16.mxu1 (!%p139_p2), %vm4811_vm0, %v4810_v1 }
   0xb   : > { %4313 = vmatpush3.bf16.msra.mxu0 (!%p139_p2), %v4705_v2  ;;  %4692 = vmatpush3.bf16.msra.mxu1 (!%p139_p2), %v4705_v2 }
   0xc   : > { %4314 = vmatprep.subr.bf16.mxu0 (!%p139_p2), %v4810_v1  ;;  %4690 = vmatprep.subr.bf16.mxu1 (!%p139_p2), %v4810_v1 }
   0xd   : > { %s5542_s18 = smov (!%p163_p3, %s162_s18), 743 }
   0xe   : > { %s3091_s21 = sshll.u32 %s5542_s18, 2 }
   0xf   : > { %s4867_s24 = scalar_lea.vmem %s5537_s0, %s3091_s21  ;;  %4315 = vmatpush3.bf16.msra.mxu0 %v4706_v3  ;;  %4693 = vmatpush3.bf16.msra.mxu1 %v4706_v3  ;;  %s5103_s29 = scalar_lea.vmem %s5540_s3, %s3091_s21 }
  0x10   : > { %v4707_v4 = vld [vmem:[%s4867_s24] sm:$0xff]   ;;  %v4708_v5 = vld [vmem:[%s4867_s24 + $0x178] sm:$0xff]   ;;  %v4709_v6 = vld [vmem:[%s4867_s24 + $0x8] sm:$0xff]  }
  0x11   : > { %v4710_v7 = vld [vmem:[%s4867_s24 + $0x180] sm:$0xff]   ;;  %v4711_v8 = vld [vmem:[%s4867_s24 + $0x10] sm:$0xff]   ;;  %v4712_v9 = vld [vmem:[%s4867_s24 + $0x188] sm:$0xff]  }
  0x12   : > { %4317 = vmatmul.mubr.msk.bf16.vlgmr.msra.gmra.mrb[0].mxu0 %vm857_vm1, %v4707_v4  ;;  %4505 = vmatmul.mubr.msk.bf16.vlgmr.msra.gmra.mrb[0].mxu1 %vm857_vm1, %v4708_v5  ;;  %v4713_v10 = vld [vmem:[%s4867_s24 + $0x18] sm:$0xff]   ;;  %v4714_v11 = vld [vmem:[%s4867_s24 + $0x190] sm:$0xff]   ;;  %v4715_v12 = vld [vmem:[%s4867_s24 + $0x20] sm:$0xff]  }
  0x13   : > { %4320 = vmatprep.mubr.msk.bf16.mxu0 %vm4811_vm0, %v4810_v1  ;;  %4508 = vmatprep.mubr.msk.bf16.mxu1 %vm4811_vm0, %v4810_v1  ;;  %v4716_v13 = vld [vmem:[%s4867_s24 + $0x198] sm:$0xff]   ;;  %v4717_v14 = vld [vmem:[%s4867_s24 + $0x28] sm:$0xff]   ;;  %v4718_v15 = vld [vmem:[%s4867_s24 + $0x1a0] sm:$0xff]  }
  0x14   : > { %v4719_v16 = vld [vmem:[%s4867_s24 + $0x30] sm:$0xff]   ;;  %v4720_v17 = vld [vmem:[%s4867_s24 + $0x1a8] sm:$0xff]   ;;  %v4721_v18 = vld [vmem:[%s4867_s24 + $0x38] sm:$0xff]  }
  0x15   : > { %v4722_v19 = vld [vmem:[%s4867_s24 + $0x1b0] sm:$0xff]   ;;  %v4723_v20 = vld [vmem:[%s4867_s24 + $0x40] sm:$0xff]   ;;  %v4724_v21 = vld [vmem:[%s4867_s24 + $0x1b8] sm:$0xff]  }
  0x16   : > { %v4725_v22 = vld [vmem:[%s4867_s24 + $0x48] sm:$0xff]   ;;  %v4726_v23 = vld [vmem:[%s4867_s24 + $0x1c0] sm:$0xff]   ;;  %v4727_v24 = vld [vmem:[%s4867_s24 + $0x50] sm:$0xff]  }
  0x17   : > { %v4728_v25 = vld [vmem:[%s4867_s24 + $0x1c8] sm:$0xff]   ;;  %v4729_v26 = vld [vmem:[%s4867_s24 + $0x58] sm:$0xff]   ;;  %v4730_v27 = vld [vmem:[%s4867_s24 + $0x1d0] sm:$0xff]  }
  0x18   : > { %v4731_v28 = vld [vmem:[%s4867_s24 + $0x60] sm:$0xff]   ;;  %v4732_v29 = vld [vmem:[%s4867_s24 + $0x1d8] sm:$0xff]   ;;  %v4733_v30 = vld [vmem:[%s4867_s24 + $0x68] sm:$0xff]  }
  0x19   : > { %v4734_v31 = vld [vmem:[%s4867_s24 + $0x1e0] sm:$0xff]   ;;  %v4735_v32 = vld [vmem:[%s4867_s24 + $0x70] sm:$0xff]   ;;  %v4736_v33 = vld [vmem:[%s4867_s24 + $0x1e8] sm:$0xff]  }
  0x1a   : > { %4321 = vmatmul.mubr.msk.bf16.gmra.mrb[4].mxu0 %vm857_vm1, %v4709_v6  ;;  %4509 = vmatmul.mubr.msk.bf16.gmra.mrb[4].mxu1 %vm857_vm1, %v4710_v7  ;;  %v4737_v34 = vld [vmem:[%s4867_s24 + $0x78] sm:$0xff]   ;;  %v4738_v35 = vld [vmem:[%s4867_s24 + $0x1f0] sm:$0xff]   ;;  %v4739_v36 = vld [vmem:[%s4867_s24 + $0x80] sm:$0xff]  }
  0x1b   : > { %4324 = vmatprep.mubr.msk.bf16.mxu0 %vm4811_vm0, %v4810_v1  ;;  %4512 = vmatprep.mubr.msk.bf16.mxu1 %vm4811_vm0, %v4810_v1  ;;  %v4740_v37 = vld [vmem:[%s4867_s24 + $0x1f8] sm:$0xff]   ;;  %v4741_v38 = vld [vmem:[%s4867_s24 + $0x88] sm:$0xff]   ;;  %v4742_v39 = vld [vmem:[%s4867_s24 + $0x200] sm:$0xff]  }
  0x1c   : > { %v4743_v40 = vld [vmem:[%s4867_s24 + $0x90] sm:$0xff]   ;;  %v4744_v41 = vld [vmem:[%s4867_s24 + $0x208] sm:$0xff]   ;;  %v4745_v42 = vld [vmem:[%s4867_s24 + $0x98] sm:$0xff]  }
  0x1d   : > { %v4746_v43 = vld [vmem:[%s4867_s24 + $0x210] sm:$0xff]   ;;  %v4747_v44 = vld [vmem:[%s4867_s24 + $0xa0] sm:$0xff]   ;;  %v4748_v45 = vld [vmem:[%s4867_s24 + $0x218] sm:$0xff]  }
  0x1e   : > { %v4749_v46 = vld [vmem:[%s4867_s24 + $0xa8] sm:$0xff]   ;;  %v4750_v47 = vld [vmem:[%s4867_s24 + $0x220] sm:$0xff]   ;;  %v4751_v48 = vld [vmem:[%s4867_s24 + $0xb0] sm:$0xff]  }
  0x1f   : > { %v4752_v49 = vld [vmem:[%s4867_s24 + $0x228] sm:$0xff]   ;;  %v4753_v50 = vld [vmem:[%s4867_s24 + $0xb8] sm:$0xff]   ;;  %v4754_v51 = vld [vmem:[%s4867_s24 + $0x230] sm:$0xff]  }
  0x20   : > { %v4755_v52 = vld [vmem:[%s4867_s24 + $0xc0] sm:$0xff]   ;;  %v4756_v53 = vld [vmem:[%s4867_s24 + $0x238] sm:$0xff]   ;;  %v4757_v54 = vld [vmem:[%s4867_s24 + $0xc8] sm:$0xff]  }
  0x21   : > { %v4758_v55 = vld [vmem:[%s4867_s24 + $0x240] sm:$0xff]   ;;  %v4759_v56 = vld [vmem:[%s4867_s24 + $0xd0] sm:$0xff]   ;;  %v4760_v57 = vld [vmem:[%s4867_s24 + $0x248] sm:$0xff]  }
  0x22   : > { %4325 = vmatmul.mubr.msk.bf16.gmra.mrb[8].mxu0 %vm857_vm1, %v4711_v8  ;;  %4513 = vmatmul.mubr.msk.bf16.gmra.mrb[8].mxu1 %vm857_vm1, %v4712_v9  ;;  %v4761_v63 = vld [vmem:[%s4867_s24 + $0xd8] sm:$0xff]   ;;  %v4762_v3 = vld [vmem:[%s4867_s24 + $0x250] sm:$0xff]  }
  0x23   : > { %4328 = vmatprep.mubr.msk.bf16.mxu0 %vm4811_vm0, %v4810_v1  ;;  %4516 = vmatprep.mubr.msk.bf16.mxu1 %vm4811_vm0, %v4810_v1 }
  0x2a   : > { %4329 = vmatmul.mubr.msk.bf16.gmra.mrb[12].mxu0 %vm857_vm1, %v4713_v10  ;;  %4517 = vmatmul.mubr.msk.bf16.gmra.mrb[12].mxu1 %vm857_vm1, %v4714_v11 }
  0x2b   : > { %4332 = vmatprep.mubr.msk.bf16.mxu0 %vm4811_vm0, %v4810_v1  ;;  %4520 = vmatprep.mubr.msk.bf16.mxu1 %vm4811_vm0, %v4810_v1 }
  0x32   : > { %4333 = vmatmul.mubr.msk.bf16.gmra.mrb[16].mxu0 %vm857_vm1, %v4715_v12  ;;  %4521 = vmatmul.mubr.msk.bf16.gmra.mrb[16].mxu1 %vm857_vm1, %v4716_v13 }
  0x33   : > { %4336 = vmatprep.mubr.msk.bf16.mxu0 %vm4811_vm0, %v4810_v1  ;;  %4524 = vmatprep.mubr.msk.bf16.mxu1 %vm4811_vm0, %v4810_v1 }
  0x3a   : > { %4337 = vmatmul.mubr.msk.bf16.gmra.mrb[20].mxu0 %vm857_vm1, %v4717_v14  ;;  %4525 = vmatmul.mubr.msk.bf16.gmra.mrb[20].mxu1 %vm857_vm1, %v4718_v15 }
  0x3b   : > { %4340 = vmatprep.mubr.msk.bf16.mxu0 %vm4811_vm0, %v4810_v1  ;;  %4528 = vmatprep.mubr.msk.bf16.mxu1 %vm4811_vm0, %v4810_v1 }
  0x42   : > { %4341 = vmatmul.mubr.msk.bf16.gmra.mrb[24].mxu0 %vm857_vm1, %v4719_v16  ;;  %4529 = vmatmul.mubr.msk.bf16.gmra.mrb[24].mxu1 %vm857_vm1, %v4720_v17 }
  0x43   : > { %4344 = vmatprep.mubr.msk.bf16.mxu0 %vm4811_vm0, %v4810_v1  ;;  %4532 = vmatprep.mubr.msk.bf16.mxu1 %vm4811_vm0, %v4810_v1 }
  0x4a   : > { %4345 = vmatmul.mubr.msk.bf16.gmra.mrb[28].mxu0 %vm857_vm1, %v4721_v18  ;;  %4533 = vmatmul.mubr.msk.bf16.gmra.mrb[28].mxu1 %vm857_vm1, %v4722_v19 }
  0x4b   : > { %4348 = vmatprep.mubr.msk.bf16.mxu0 %vm4811_vm0, %v4810_v1  ;;  %4536 = vmatprep.mubr.msk.bf16.mxu1 %vm4811_vm0, %v4810_v1 }
  0x52   : > { %4349 = vmatmul.mubr.msk.bf16.gmra.mrb[32].mxu0 %vm857_vm1, %v4723_v20  ;;  %4537 = vmatmul.mubr.msk.bf16.gmra.mrb[32].mxu1 %vm857_vm1, %v4724_v21  ;;  %v4763_v20 = vld [vmem:[%s4867_s24 + $0xe0] sm:$0xff]  }
  0x53   : > { %4352 = vmatprep.mubr.msk.bf16.mxu0 %vm4811_vm0, %v4810_v1  ;;  %4540 = vmatprep.mubr.msk.bf16.mxu1 %vm4811_vm0, %v4810_v1 }
  0x5a   : > { %4353 = vmatmul.mubr.msk.bf16.gmra.mrb[36].mxu0 %vm857_vm1, %v4725_v22  ;;  %4541 = vmatmul.mubr.msk.bf16.gmra.mrb[36].mxu1 %vm857_vm1, %v4726_v23  ;;  %v4764_v23 = vld [vmem:[%s4867_s24 + $0x258] sm:$0xff]  }
  0x5b   : > { %4356 = vmatprep.mubr.msk.bf16.mxu0 %vm4811_vm0, %v4810_v1  ;;  %4544 = vmatprep.mubr.msk.bf16.mxu1 %vm4811_vm0, %v4810_v1 }
  0x62   : > { %4357 = vmatmul.mubr.msk.bf16.gmra.mrb[40].mxu0 %vm857_vm1, %v4727_v24  ;;  %4545 = vmatmul.mubr.msk.bf16.gmra.mrb[40].mxu1 %vm857_vm1, %v4728_v25 }
  0x63   : > { %4360 = vmatprep.mubr.msk.bf16.mxu0 %vm4811_vm0, %v4810_v1  ;;  %4548 = vmatprep.mubr.msk.bf16.mxu1 %vm4811_vm0, %v4810_v1 }
  0x6a   : > { %4361 = vmatmul.mubr.msk.bf16.gmra.mrb[44].mxu0 %vm857_vm1, %v4729_v26  ;;  %4549 = vmatmul.mubr.msk.bf16.gmra.mrb[44].mxu1 %vm857_vm1, %v4730_v27 }
  0x6b   : > { %4364 = vmatprep.mubr.msk.bf16.mxu0 %vm4811_vm0, %v4810_v1  ;;  %4552 = vmatprep.mubr.msk.bf16.mxu1 %vm4811_vm0, %v4810_v1 }
  0x72   : > { %4365 = vmatmul.mubr.msk.bf16.gmra.mrb[48].mxu0 %vm857_vm1, %v4731_v28  ;;  %4553 = vmatmul.mubr.msk.bf16.gmra.mrb[48].mxu1 %vm857_vm1, %v4732_v29 }
  0x73   : > { %4368 = vmatprep.mubr.msk.bf16.mxu0 %vm4811_vm0, %v4810_v1  ;;  %4556 = vmatprep.mubr.msk.bf16.mxu1 %vm4811_vm0, %v4810_v1 }
  0x7a   : > { %4369 = vmatmul.mubr.msk.bf16.gmra.mrb[52].mxu0 %vm857_vm1, %v4733_v30  ;;  %4557 = vmatmul.mubr.msk.bf16.gmra.mrb[52].mxu1 %vm857_vm1, %v4734_v31 }
  0x7b   : > { %4372 = vmatprep.mubr.msk.bf16.mxu0 %vm4811_vm0, %v4810_v1  ;;  %4560 = vmatprep.mubr.msk.bf16.mxu1 %vm4811_vm0, %v4810_v1 }
  0x82   : > { %4373 = vmatmul.mubr.msk.bf16.gmra.mrb[56].mxu0 %vm857_vm1, %v4735_v32  ;;  %4561 = vmatmul.mubr.msk.bf16.gmra.mrb[56].mxu1 %vm857_vm1, %v4736_v33 }
  0x83   : > { %4376 = vmatprep.mubr.msk.bf16.mxu0 %vm4811_vm0, %v4810_v1  ;;  %4564 = vmatprep.mubr.msk.bf16.mxu1 %vm4811_vm0, %v4810_v1 }
  0x8a   : > { %4377 = vmatmul.mubr.msk.bf16.gmra.mrb[60].mxu0 %vm857_vm1, %v4737_v34  ;;  %4565 = vmatmul.mubr.msk.bf16.gmra.mrb[60].mxu1 %vm857_vm1, %v4738_v35 }
  0x8b   : > { %4380 = vmatprep.mubr.msk.bf16.mxu0 %vm4811_vm0, %v4810_v1  ;;  %4568 = vmatprep.mubr.msk.bf16.mxu1 %vm4811_vm0, %v4810_v1 }
  0x92   : > { %4381 = vmatmul.mubr.msk.bf16.gmra.mrb[64].mxu0 %vm857_vm1, %v4739_v36  ;;  %4569 = vmatmul.mubr.msk.bf16.gmra.mrb[64].mxu1 %vm857_vm1, %v4740_v37 }
  0x93   : > { %4384 = vmatprep.mubr.msk.bf16.mxu0 %vm4811_vm0, %v4810_v1  ;;  %4572 = vmatprep.mubr.msk.bf16.mxu1 %vm4811_vm0, %v4810_v1 }
  0x9a   : > { %4385 = vmatmul.mubr.msk.bf16.gmra.mrb[68].mxu0 %vm857_vm1, %v4741_v38  ;;  %4573 = vmatmul.mubr.msk.bf16.gmra.mrb[68].mxu1 %vm857_vm1, %v4742_v39 }
  0x9b   : > { %4388 = vmatprep.mubr.msk.bf16.mxu0 %vm4811_vm0, %v4810_v1  ;;  %4576 = vmatprep.mubr.msk.bf16.mxu1 %vm4811_vm0, %v4810_v1 }
  0xa2   : > { %4389 = vmatmul.mubr.msk.bf16.gmra.mrb[72].mxu0 %vm857_vm1, %v4743_v40  ;;  %4577 = vmatmul.mubr.msk.bf16.gmra.mrb[72].mxu1 %vm857_vm1, %v4744_v41  ;;  %v4765_v40 = vld [vmem:[%s4867_s24 + $0xe8] sm:$0xff]  }
  0xa3   : > { %4392 = vmatprep.mubr.msk.bf16.mxu0 %vm4811_vm0, %v4810_v1  ;;  %4580 = vmatprep.mubr.msk.bf16.mxu1 %vm4811_vm0, %v4810_v1 }
  0xaa   : > { %4393 = vmatmul.mubr.msk.bf16.gmra.mrb[76].mxu0 %vm857_vm1, %v4745_v42  ;;  %4581 = vmatmul.mubr.msk.bf16.gmra.mrb[76].mxu1 %vm857_vm1, %v4746_v43  ;;  %v4766_v43 = vld [vmem:[%s4867_s24 + $0x260] sm:$0xff]  }
  0xab   : > { %4396 = vmatprep.mubr.msk.bf16.mxu0 %vm4811_vm0, %v4810_v1  ;;  %4584 = vmatprep.mubr.msk.bf16.mxu1 %vm4811_vm0, %v4810_v1 }
  0xb2   : > { %4397 = vmatmul.mubr.msk.bf16.gmra.mrb[80].mxu0 %vm857_vm1, %v4747_v44  ;;  %4585 = vmatmul.mubr.msk.bf16.gmra.mrb[80].mxu1 %vm857_vm1, %v4748_v45 }
  0xb3   : > { %4400 = vmatprep.mubr.msk.bf16.mxu0 %vm4811_vm0, %v4810_v1  ;;  %4588 = vmatprep.mubr.msk.bf16.mxu1 %vm4811_vm0, %v4810_v1 }
  0xba   : > { %4401 = vmatmul.mubr.msk.bf16.gmra.mrb[84].mxu0 %vm857_vm1, %v4749_v46  ;;  %4589 = vmatmul.mubr.msk.bf16.gmra.mrb[84].mxu1 %vm857_vm1, %v4750_v47 }
  0xbb   : > { %4404 = vmatprep.mubr.msk.bf16.mxu0 %vm4811_vm0, %v4810_v1  ;;  %4592 = vmatprep.mubr.msk.bf16.mxu1 %vm4811_vm0, %v4810_v1 }
  0xc2   : > { %4405 = vmatmul.mubr.msk.bf16.gmra.mrb[88].mxu0 %vm857_vm1, %v4751_v48  ;;  %4593 = vmatmul.mubr.msk.bf16.gmra.mrb[88].mxu1 %vm857_vm1, %v4752_v49 }
  0xc3   : > { %4408 = vmatprep.mubr.msk.bf16.mxu0 %vm4811_vm0, %v4810_v1  ;;  %4596 = vmatprep.mubr.msk.bf16.mxu1 %vm4811_vm0, %v4810_v1 }
  0xca   : > { %4409 = vmatmul.mubr.msk.bf16.gmra.mrb[92].mxu0 %vm857_vm1, %v4753_v50  ;;  %4597 = vmatmul.mubr.msk.bf16.gmra.mrb[92].mxu1 %vm857_vm1, %v4754_v51 }
  0xcb   : > { %4412 = vmatprep.mubr.msk.bf16.mxu0 %vm4811_vm0, %v4810_v1  ;;  %4600 = vmatprep.mubr.msk.bf16.mxu1 %vm4811_vm0, %v4810_v1 }
  0xd2   : > { %4413 = vmatmul.mubr.msk.bf16.gmra.mrb[96].mxu0 %vm857_vm1, %v4755_v52  ;;  %4601 = vmatmul.mubr.msk.bf16.gmra.mrb[96].mxu1 %vm857_vm1, %v4756_v53 }
  0xd3   : > { %4416 = vmatprep.mubr.msk.bf16.mxu0 %vm4811_vm0, %v4810_v1  ;;  %4604 = vmatprep.mubr.msk.bf16.mxu1 %vm4811_vm0, %v4810_v1 }
  0xda   : > { %4417 = vmatmul.mubr.msk.bf16.gmra.mrb[100].mxu0 %vm857_vm1, %v4757_v54  ;;  %4605 = vmatmul.mubr.msk.bf16.gmra.mrb[100].mxu1 %vm857_vm1, %v4758_v55 }
  0xdb   : > { %4420 = vmatprep.mubr.msk.bf16.mxu0 %vm4811_vm0, %v4810_v1  ;;  %4608 = vmatprep.mubr.msk.bf16.mxu1 %vm4811_vm0, %v4810_v1 }
  0xe2   : > { %4421 = vmatmul.mubr.msk.bf16.gmra.mrb[104].mxu0 %vm857_vm1, %v4759_v56  ;;  %4609 = vmatmul.mubr.msk.bf16.gmra.mrb[104].mxu1 %vm857_vm1, %v4760_v57 }
  0xe3   : > { %4424 = vmatprep.mubr.msk.bf16.mxu0 %vm4811_vm0, %v4810_v1  ;;  %4612 = vmatprep.mubr.msk.bf16.mxu1 %vm4811_vm0, %v4810_v1 }
  0xe5   : > { %v1171_v59 = vpop.f32.mrb[0].mxu0  ;;  %v1547_v60 = vpop.f32.mrb[0].mxu1 }
  0xe6   : > { %v1172_v61 = vadd.f32 %v5084_v58, %v1171_v59  ;;  %v4318_v62 = vpop.f32.mrb[1].mxu0  ;;  %v1548_v0 = vadd.f32 %v5084_v58, %v1547_v60  ;;  %v4506_v2 = vpop.f32.mrb[1].mxu1 }
  0xe7   : > { %v1174_v4 = vpop.f32.mrb[2].mxu0  ;;  %v1550_v5 = vpop.f32.mrb[2].mxu1 }
  0xe8   : > { %v1175_v6 = vadd.f32 %v5084_v58, %v1174_v4  ;;  %v4319_v7 = vpop.f32.mrb[3].mxu0  ;;  %v2008_v8 = vmax.f32 %v1548_v0, 0.0  ;;  %v1551_v9 = vadd.f32 %v5084_v58, %v1550_v5  ;;  %v4507_v10 = vpop.f32.mrb[3].mxu1  ;;  %v1914_v11 = vmax.f32 %v1172_v61, 0.0  ;;  %v4767_v61 = vld [vmem:[%s4867_s24 + $0xf0] sm:$0xff]   ;;  %v4768_v0 = vld [vmem:[%s4867_s24 + $0x268] sm:$0xff]  }
  0xea   : > { %v1915_v12 = vmax.f32 %v1175_v6, 0.0  ;;  %4425 = vmatmul.mubr.msk.bf16.gmra.mrb[108].mxu0 %vm857_vm1, %v4761_v63  ;;  %v2009_v13 = vmax.f32 %v1551_v9, 0.0  ;;  %4613 = vmatmul.mubr.msk.bf16.gmra.mrb[108].mxu1 %vm857_vm1, %v4762_v3 }
  0xeb   : > { %4428 = vmatprep.mubr.msk.bf16.mxu0 %vm4811_vm0, %v4810_v1  ;;  %4616 = vmatprep.mubr.msk.bf16.mxu1 %vm4811_vm0, %v4810_v1 }
  0xec   : > { %v3660_v14 = vpack.c.bf16 %v1915_v12, %v1914_v11  ;;  %v3895_v15 = vpack.c.bf16 %v2009_v13, %v2008_v8 }
  0xed   : > { %v1179_v16 = vpop.f32.mrb[4].mxu0  ;;  %v1555_v17 = vpop.f32.mrb[4].mxu1 }
  0xee   : > { %3661 = vst [vmem:[%s5103_s29] sm:$0xff] %v3660_v14   ;;  %4168 = vst [vmem:[%s5103_s29 + $0x178] sm:$0xff] %v3895_v15   ;;  %v1180_v18 = vadd.f32 %v5084_v58, %v1179_v16  ;;  %v4322_v19 = vpop.f32.mrb[5].mxu0  ;;  %v1556_v21 = vadd.f32 %v5084_v58, %v1555_v17  ;;  %v4510_v22 = vpop.f32.mrb[5].mxu1 }
  0xef   : > { %v1182_v24 = vpop.f32.mrb[6].mxu0  ;;  %v1558_v25 = vpop.f32.mrb[6].mxu1 }
  0xf0   : > { %v1183_v26 = vadd.f32 %v5084_v58, %v1182_v24  ;;  %v4323_v27 = vpop.f32.mrb[7].mxu0  ;;  %v2010_v28 = vmax.f32 %v1556_v21, 0.0  ;;  %v1559_v29 = vadd.f32 %v5084_v58, %v1558_v25  ;;  %v4511_v30 = vpop.f32.mrb[7].mxu1  ;;  %v1916_v31 = vmax.f32 %v1180_v18, 0.0  ;;  %v4769_v18 = vld [vmem:[%s4867_s24 + $0xf8] sm:$0xff]   ;;  %v4770_v21 = vld [vmem:[%s4867_s24 + $0x270] sm:$0xff]  }
  0xf2   : > { %v1917_v32 = vmax.f32 %v1183_v26, 0.0  ;;  %4429 = vmatmul.mubr.msk.bf16.gmra.mrb[112].mxu0 %vm857_vm1, %v4763_v20  ;;  %v2011_v33 = vmax.f32 %v1559_v29, 0.0  ;;  %4617 = vmatmul.mubr.msk.bf16.gmra.mrb[112].mxu1 %vm857_vm1, %v4764_v23 }
  0xf3   : > { %4432 = vmatprep.mubr.msk.bf16.mxu0 %vm4811_vm0, %v4810_v1  ;;  %4620 = vmatprep.mubr.msk.bf16.mxu1 %vm4811_vm0, %v4810_v1 }
  0xf4   : > { %v3665_v34 = vpack.c.bf16 %v1917_v32, %v1916_v31  ;;  %v3900_v35 = vpack.c.bf16 %v2011_v33, %v2010_v28 }
  0xf5   : > { %v1187_v36 = vpop.f32.mrb[8].mxu0  ;;  %v1563_v37 = vpop.f32.mrb[8].mxu1 }
  0xf6   : > { %4122 = vst [vmem:[%s5103_s29 + $0x8] sm:$0xff] %v3665_v34   ;;  %4169 = vst [vmem:[%s5103_s29 + $0x180] sm:$0xff] %v3900_v35   ;;  %v1188_v38 = vadd.f32 %v5084_v58, %v1187_v36  ;;  %v4326_v39 = vpop.f32.mrb[9].mxu0  ;;  %v1564_v41 = vadd.f32 %v5084_v58, %v1563_v37  ;;  %v4514_v42 = vpop.f32.mrb[9].mxu1 }
  0xf7   : > { %v1190_v44 = vpop.f32.mrb[10].mxu0  ;;  %v1566_v45 = vpop.f32.mrb[10].mxu1 }
  0xf8   : > { %v1191_v46 = vadd.f32 %v5084_v58, %v1190_v44  ;;  %v4327_v47 = vpop.f32.mrb[11].mxu0  ;;  %v2012_v48 = vmax.f32 %v1564_v41, 0.0  ;;  %v1567_v49 = vadd.f32 %v5084_v58, %v1566_v45  ;;  %v4515_v50 = vpop.f32.mrb[11].mxu1  ;;  %v1918_v51 = vmax.f32 %v1188_v38, 0.0  ;;  %v4771_v38 = vld [vmem:[%s4867_s24 + $0x100] sm:$0xff]   ;;  %v4772_v41 = vld [vmem:[%s4867_s24 + $0x278] sm:$0xff]  }
  0xfa   : > { %v1919_v52 = vmax.f32 %v1191_v46, 0.0  ;;  %4433 = vmatmul.mubr.msk.bf16.gmra.mrb[116].mxu0 %vm857_vm1, %v4765_v40  ;;  %v2013_v53 = vmax.f32 %v1567_v49, 0.0  ;;  %4621 = vmatmul.mubr.msk.bf16.gmra.mrb[116].mxu1 %vm857_vm1, %v4766_v43 }
  0xfb   : > { %4436 = vmatprep.mubr.msk.bf16.mxu0 %vm4811_vm0, %v4810_v1  ;;  %4624 = vmatprep.mubr.msk.bf16.mxu1 %vm4811_vm0, %v4810_v1 }
  0xfc   : > { %v3670_v54 = vpack.c.bf16 %v1919_v52, %v1918_v51  ;;  %v3905_v55 = vpack.c.bf16 %v2013_v53, %v2012_v48 }
  0xfd   : > { %v1195_v56 = vpop.f32.mrb[12].mxu0  ;;  %v1571_v57 = vpop.f32.mrb[12].mxu1 }
  0xfe   : > { %4123 = vst [vmem:[%s5103_s29 + $0x10] sm:$0xff] %v3670_v54   ;;  %4170 = vst [vmem:[%s5103_s29 + $0x188] sm:$0xff] %v3905_v55   ;;  %v1196_v59 = vadd.f32 %v5084_v58, %v1195_v56  ;;  %v4330_v60 = vpop.f32.mrb[13].mxu0  ;;  %v1572_v62 = vadd.f32 %v5084_v58, %v1571_v57  ;;  %v4518_v63 = vpop.f32.mrb[13].mxu1 }
  0xff   : > { %v1198_v2 = vpop.f32.mrb[14].mxu0  ;;  %v1574_v3 = vpop.f32.mrb[14].mxu1 }
 0x100   : > { %v1199_v4 = vadd.f32 %v5084_v58, %v1198_v2  ;;  %v4331_v5 = vpop.f32.mrb[15].mxu0  ;;  %v2014_v6 = vmax.f32 %v1572_v62, 0.0  ;;  %v1575_v7 = vadd.f32 %v5084_v58, %v1574_v3  ;;  %v4519_v8 = vpop.f32.mrb[15].mxu1  ;;  %v1920_v9 = vmax.f32 %v1196_v59, 0.0  ;;  %v4773_v59 = vld [vmem:[%s4867_s24 + $0x108] sm:$0xff]   ;;  %v4774_v62 = vld [vmem:[%s4867_s24 + $0x280] sm:$0xff]  }
 0x102   : > { %v1921_v10 = vmax.f32 %v1199_v4, 0.0  ;;  %4437 = vmatmul.mubr.msk.bf16.gmra.mrb[120].mxu0 %vm857_vm1, %v4767_v61  ;;  %v2015_v11 = vmax.f32 %v1575_v7, 0.0  ;;  %4625 = vmatmul.mubr.msk.bf16.gmra.mrb[120].mxu1 %vm857_vm1, %v4768_v0 }
 0x103   : > { %4440 = vmatprep.mubr.msk.bf16.mxu0 %vm4811_vm0, %v4810_v1  ;;  %4628 = vmatprep.mubr.msk.bf16.mxu1 %vm4811_vm0, %v4810_v1 }
 0x104   : > { %v3675_v12 = vpack.c.bf16 %v1921_v10, %v1920_v9  ;;  %v3910_v13 = vpack.c.bf16 %v2015_v11, %v2014_v6 }
 0x105   : > { %v1203_v14 = vpop.f32.mrb[16].mxu0  ;;  %v1579_v15 = vpop.f32.mrb[16].mxu1 }
 0x106   : > { %4124 = vst [vmem:[%s5103_s29 + $0x18] sm:$0xff] %v3675_v12   ;;  %4171 = vst [vmem:[%s5103_s29 + $0x190] sm:$0xff] %v3910_v13   ;;  %v1204_v16 = vadd.f32 %v5084_v58, %v1203_v14  ;;  %v4334_v17 = vpop.f32.mrb[17].mxu0  ;;  %v1580_v19 = vadd.f32 %v5084_v58, %v1579_v15  ;;  %v4522_v20 = vpop.f32.mrb[17].mxu1 }
 0x107   : > { %v1206_v22 = vpop.f32.mrb[18].mxu0  ;;  %v1582_v23 = vpop.f32.mrb[18].mxu1 }
 0x108   : > { %v1207_v24 = vadd.f32 %v5084_v58, %v1206_v22  ;;  %v4335_v25 = vpop.f32.mrb[19].mxu0  ;;  %v2016_v26 = vmax.f32 %v1580_v19, 0.0  ;;  %v1583_v27 = vadd.f32 %v5084_v58, %v1582_v23  ;;  %v4523_v28 = vpop.f32.mrb[19].mxu1  ;;  %v1922_v29 = vmax.f32 %v1204_v16, 0.0  ;;  %v4775_v16 = vld [vmem:[%s4867_s24 + $0x110] sm:$0xff]   ;;  %v4776_v19 = vld [vmem:[%s4867_s24 + $0x288] sm:$0xff]  }
 0x10a   : > { %v1923_v30 = vmax.f32 %v1207_v24, 0.0  ;;  %4441 = vmatmul.mubr.msk.bf16.gmra.mrb[124].mxu0 %vm857_vm1, %v4769_v18  ;;  %v2017_v31 = vmax.f32 %v1583_v27, 0.0  ;;  %4629 = vmatmul.mubr.msk.bf16.gmra.mrb[124].mxu1 %vm857_vm1, %v4770_v21 }
 0x10b   : > { %4444 = vmatprep.mubr.msk.bf16.mxu0 %vm4811_vm0, %v4810_v1  ;;  %4632 = vmatprep.mubr.msk.bf16.mxu1 %vm4811_vm0, %v4810_v1 }
 0x10c   : > { %v3680_v32 = vpack.c.bf16 %v1923_v30, %v1922_v29  ;;  %v3915_v33 = vpack.c.bf16 %v2017_v31, %v2016_v26 }
 0x10d   : > { %v1211_v34 = vpop.f32.mrb[20].mxu0  ;;  %v1587_v35 = vpop.f32.mrb[20].mxu1 }
 0x10e   : > { %4125 = vst [vmem:[%s5103_s29 + $0x20] sm:$0xff] %v3680_v32   ;;  %4172 = vst [vmem:[%s5103_s29 + $0x198] sm:$0xff] %v3915_v33   ;;  %v1212_v36 = vadd.f32 %v5084_v58, %v1211_v34  ;;  %v4338_v37 = vpop.f32.mrb[21].mxu0  ;;  %v1588_v39 = vadd.f32 %v5084_v58, %v1587_v35  ;;  %v4526_v40 = vpop.f32.mrb[21].mxu1 }
 0x10f   : > { %v1214_v42 = vpop.f32.mrb[22].mxu0  ;;  %v1590_v43 = vpop.f32.mrb[22].mxu1 }
 0x110   : > { %v1215_v44 = vadd.f32 %v5084_v58, %v1214_v42  ;;  %v4339_v45 = vpop.f32.mrb[23].mxu0  ;;  %v2018_v46 = vmax.f32 %v1588_v39, 0.0  ;;  %v1591_v47 = vadd.f32 %v5084_v58, %v1590_v43  ;;  %v4527_v48 = vpop.f32.mrb[23].mxu1  ;;  %v1924_v49 = vmax.f32 %v1212_v36, 0.0  ;;  %v4777_v36 = vld [vmem:[%s4867_s24 + $0x118] sm:$0xff]   ;;  %v4778_v39 = vld [vmem:[%s4867_s24 + $0x290] sm:$0xff]  }
 0x112   : > { %v1925_v50 = vmax.f32 %v1215_v44, 0.0  ;;  %4445 = vmatmul.mubr.msk.bf16.gmra.mrb[128].mxu0 %vm857_vm1, %v4771_v38  ;;  %v2019_v51 = vmax.f32 %v1591_v47, 0.0  ;;  %4633 = vmatmul.mubr.msk.bf16.gmra.mrb[128].mxu1 %vm857_vm1, %v4772_v41 }
 0x113   : > { %4448 = vmatprep.mubr.msk.bf16.mxu0 %vm4811_vm0, %v4810_v1  ;;  %4636 = vmatprep.mubr.msk.bf16.mxu1 %vm4811_vm0, %v4810_v1 }
 0x114   : > { %v3685_v52 = vpack.c.bf16 %v1925_v50, %v1924_v49  ;;  %v3920_v53 = vpack.c.bf16 %v2019_v51, %v2018_v46 }
 0x115   : > { %v1219_v54 = vpop.f32.mrb[24].mxu0  ;;  %v1595_v55 = vpop.f32.mrb[24].mxu1 }
 0x116   : > { %4126 = vst [vmem:[%s5103_s29 + $0x28] sm:$0xff] %v3685_v52   ;;  %4173 = vst [vmem:[%s5103_s29 + $0x1a0] sm:$0xff] %v3920_v53   ;;  %v1220_v56 = vadd.f32 %v5084_v58, %v1219_v54  ;;  %v4342_v57 = vpop.f32.mrb[25].mxu0  ;;  %v1596_v60 = vadd.f32 %v5084_v58, %v1595_v55  ;;  %v4530_v61 = vpop.f32.mrb[25].mxu1 }
 0x117   : > { %v1222_v63 = vpop.f32.mrb[26].mxu0  ;;  %v1598_v0 = vpop.f32.mrb[26].mxu1 }
 0x118   : > { %v1223_v2 = vadd.f32 %v5084_v58, %v1222_v63  ;;  %v4343_v3 = vpop.f32.mrb[27].mxu0  ;;  %v2020_v4 = vmax.f32 %v1596_v60, 0.0  ;;  %v1599_v5 = vadd.f32 %v5084_v58, %v1598_v0  ;;  %v4531_v6 = vpop.f32.mrb[27].mxu1  ;;  %v1926_v7 = vmax.f32 %v1220_v56, 0.0  ;;  %v4779_v56 = vld [vmem:[%s4867_s24 + $0x120] sm:$0xff]   ;;  %v4780_v60 = vld [vmem:[%s4867_s24 + $0x298] sm:$0xff]  }
 0x11a   : > { %v1927_v8 = vmax.f32 %v1223_v2, 0.0  ;;  %4449 = vmatmul.mubr.msk.bf16.gmra.mrb[132].mxu0 %vm857_vm1, %v4773_v59  ;;  %v2021_v9 = vmax.f32 %v1599_v5, 0.0  ;;  %4637 = vmatmul.mubr.msk.bf16.gmra.mrb[132].mxu1 %vm857_vm1, %v4774_v62 }
 0x11b   : > { %4452 = vmatprep.mubr.msk.bf16.mxu0 %vm4811_vm0, %v4810_v1  ;;  %4640 = vmatprep.mubr.msk.bf16.mxu1 %vm4811_vm0, %v4810_v1 }
 0x11c   : > { %v3690_v10 = vpack.c.bf16 %v1927_v8, %v1926_v7  ;;  %v3925_v11 = vpack.c.bf16 %v2021_v9, %v2020_v4 }
 0x11d   : > { %v1227_v12 = vpop.f32.mrb[28].mxu0  ;;  %v1603_v13 = vpop.f32.mrb[28].mxu1 }
 0x11e   : > { %4127 = vst [vmem:[%s5103_s29 + $0x30] sm:$0xff] %v3690_v10   ;;  %4174 = vst [vmem:[%s5103_s29 + $0x1a8] sm:$0xff] %v3925_v11   ;;  %v1228_v14 = vadd.f32 %v5084_v58, %v1227_v12  ;;  %v4346_v15 = vpop.f32.mrb[29].mxu0  ;;  %v1604_v17 = vadd.f32 %v5084_v58, %v1603_v13  ;;  %v4534_v18 = vpop.f32.mrb[29].mxu1 }
 0x11f   : > { %v1230_v20 = vpop.f32.mrb[30].mxu0  ;;  %v1606_v21 = vpop.f32.mrb[30].mxu1 }
 0x120   : > { %v1231_v22 = vadd.f32 %v5084_v58, %v1230_v20  ;;  %v4347_v23 = vpop.f32.mrb[31].mxu0  ;;  %v2022_v24 = vmax.f32 %v1604_v17, 0.0  ;;  %v1607_v25 = vadd.f32 %v5084_v58, %v1606_v21  ;;  %v4535_v26 = vpop.f32.mrb[31].mxu1  ;;  %v1928_v27 = vmax.f32 %v1228_v14, 0.0  ;;  %v4781_v14 = vld [vmem:[%s4867_s24 + $0x128] sm:$0xff]   ;;  %v4782_v17 = vld [vmem:[%s4867_s24 + $0x2a0] sm:$0xff]  }
 0x122   : > { %v1929_v28 = vmax.f32 %v1231_v22, 0.0  ;;  %4453 = vmatmul.mubr.msk.bf16.gmra.mrb[136].mxu0 %vm857_vm1, %v4775_v16  ;;  %v2023_v29 = vmax.f32 %v1607_v25, 0.0  ;;  %4641 = vmatmul.mubr.msk.bf16.gmra.mrb[136].mxu1 %vm857_vm1, %v4776_v19 }
 0x123   : > { %4456 = vmatprep.mubr.msk.bf16.mxu0 %vm4811_vm0, %v4810_v1  ;;  %4644 = vmatprep.mubr.msk.bf16.mxu1 %vm4811_vm0, %v4810_v1 }
 0x124   : > { %v3695_v30 = vpack.c.bf16 %v1929_v28, %v1928_v27  ;;  %v3930_v31 = vpack.c.bf16 %v2023_v29, %v2022_v24 }
 0x125   : > { %v1235_v32 = vpop.f32.mrb[32].mxu0  ;;  %v1611_v33 = vpop.f32.mrb[32].mxu1 }
 0x126   : > { %4128 = vst [vmem:[%s5103_s29 + $0x38] sm:$0xff] %v3695_v30   ;;  %4175 = vst [vmem:[%s5103_s29 + $0x1b0] sm:$0xff] %v3930_v31   ;;  %v1236_v34 = vadd.f32 %v5084_v58, %v1235_v32  ;;  %v4350_v35 = vpop.f32.mrb[33].mxu0  ;;  %v1612_v37 = vadd.f32 %v5084_v58, %v1611_v33  ;;  %v4538_v38 = vpop.f32.mrb[33].mxu1 }
 0x127   : > { %v1238_v40 = vpop.f32.mrb[34].mxu0  ;;  %v1614_v41 = vpop.f32.mrb[34].mxu1 }
 0x128   : > { %v1239_v42 = vadd.f32 %v5084_v58, %v1238_v40  ;;  %v4351_v43 = vpop.f32.mrb[35].mxu0  ;;  %v2024_v44 = vmax.f32 %v1612_v37, 0.0  ;;  %v1615_v45 = vadd.f32 %v5084_v58, %v1614_v41  ;;  %v4539_v46 = vpop.f32.mrb[35].mxu1  ;;  %v1930_v47 = vmax.f32 %v1236_v34, 0.0  ;;  %v4783_v34 = vld [vmem:[%s4867_s24 + $0x130] sm:$0xff]   ;;  %v4784_v37 = vld [vmem:[%s4867_s24 + $0x2a8] sm:$0xff]  }
 0x12a   : > { %v1931_v48 = vmax.f32 %v1239_v42, 0.0  ;;  %4457 = vmatmul.mubr.msk.bf16.gmra.mrb[140].mxu0 %vm857_vm1, %v4777_v36  ;;  %v2025_v49 = vmax.f32 %v1615_v45, 0.0  ;;  %4645 = vmatmul.mubr.msk.bf16.gmra.mrb[140].mxu1 %vm857_vm1, %v4778_v39 }
 0x12b   : > { %4460 = vmatprep.mubr.msk.bf16.mxu0 %vm4811_vm0, %v4810_v1  ;;  %4648 = vmatprep.mubr.msk.bf16.mxu1 %vm4811_vm0, %v4810_v1 }
 0x12c   : > { %v3700_v50 = vpack.c.bf16 %v1931_v48, %v1930_v47  ;;  %v3935_v51 = vpack.c.bf16 %v2025_v49, %v2024_v44 }
 0x12d   : > { %v1243_v52 = vpop.f32.mrb[36].mxu0  ;;  %v1619_v53 = vpop.f32.mrb[36].mxu1 }
 0x12e   : > { %4129 = vst [vmem:[%s5103_s29 + $0x40] sm:$0xff] %v3700_v50   ;;  %4176 = vst [vmem:[%s5103_s29 + $0x1b8] sm:$0xff] %v3935_v51   ;;  %v1244_v54 = vadd.f32 %v5084_v58, %v1243_v52  ;;  %v4354_v55 = vpop.f32.mrb[37].mxu0  ;;  %v1620_v57 = vadd.f32 %v5084_v58, %v1619_v53  ;;  %v4542_v59 = vpop.f32.mrb[37].mxu1 }
 0x12f   : > { %v1246_v61 = vpop.f32.mrb[38].mxu0  ;;  %v1622_v62 = vpop.f32.mrb[38].mxu1 }
 0x130   : > { %v1247_v63 = vadd.f32 %v5084_v58, %v1246_v61  ;;  %v4355_v0 = vpop.f32.mrb[39].mxu0  ;;  %v2026_v2 = vmax.f32 %v1620_v57, 0.0  ;;  %v1623_v3 = vadd.f32 %v5084_v58, %v1622_v62  ;;  %v4543_v4 = vpop.f32.mrb[39].mxu1  ;;  %v1932_v5 = vmax.f32 %v1244_v54, 0.0  ;;  %v4785_v54 = vld [vmem:[%s4867_s24 + $0x138] sm:$0xff]   ;;  %v4786_v57 = vld [vmem:[%s4867_s24 + $0x2b0] sm:$0xff]  }
 0x132   : > { %v1933_v6 = vmax.f32 %v1247_v63, 0.0  ;;  %4461 = vmatmul.mubr.msk.bf16.gmra.mrb[144].mxu0 %vm857_vm1, %v4779_v56  ;;  %v2027_v7 = vmax.f32 %v1623_v3, 0.0  ;;  %4649 = vmatmul.mubr.msk.bf16.gmra.mrb[144].mxu1 %vm857_vm1, %v4780_v60 }
 0x133   : > { %4464 = vmatprep.mubr.msk.bf16.mxu0 %vm4811_vm0, %v4810_v1  ;;  %4652 = vmatprep.mubr.msk.bf16.mxu1 %vm4811_vm0, %v4810_v1 }
 0x134   : > { %v3705_v8 = vpack.c.bf16 %v1933_v6, %v1932_v5  ;;  %v3940_v9 = vpack.c.bf16 %v2027_v7, %v2026_v2 }
 0x135   : > { %v1251_v10 = vpop.f32.mrb[40].mxu0  ;;  %v1627_v11 = vpop.f32.mrb[40].mxu1 }
 0x136   : > { %4130 = vst [vmem:[%s5103_s29 + $0x48] sm:$0xff] %v3705_v8   ;;  %4177 = vst [vmem:[%s5103_s29 + $0x1c0] sm:$0xff] %v3940_v9   ;;  %v1252_v12 = vadd.f32 %v5084_v58, %v1251_v10  ;;  %v4358_v13 = vpop.f32.mrb[41].mxu0  ;;  %v1628_v15 = vadd.f32 %v5084_v58, %v1627_v11  ;;  %v4546_v16 = vpop.f32.mrb[41].mxu1 }
 0x137   : > { %v1254_v18 = vpop.f32.mrb[42].mxu0  ;;  %v1630_v19 = vpop.f32.mrb[42].mxu1 }
 0x138   : > { %v1255_v20 = vadd.f32 %v5084_v58, %v1254_v18  ;;  %v4359_v21 = vpop.f32.mrb[43].mxu0  ;;  %v2028_v22 = vmax.f32 %v1628_v15, 0.0  ;;  %v1631_v23 = vadd.f32 %v5084_v58, %v1630_v19  ;;  %v4547_v24 = vpop.f32.mrb[43].mxu1  ;;  %v1934_v25 = vmax.f32 %v1252_v12, 0.0  ;;  %v4787_v12 = vld [vmem:[%s4867_s24 + $0x140] sm:$0xff]   ;;  %v4788_v15 = vld [vmem:[%s4867_s24 + $0x2b8] sm:$0xff]  }
 0x13a   : > { %v1935_v26 = vmax.f32 %v1255_v20, 0.0  ;;  %4465 = vmatmul.mubr.msk.bf16.gmra.mrb[148].mxu0 %vm857_vm1, %v4781_v14  ;;  %v2029_v27 = vmax.f32 %v1631_v23, 0.0  ;;  %4653 = vmatmul.mubr.msk.bf16.gmra.mrb[148].mxu1 %vm857_vm1, %v4782_v17 }
 0x13b   : > { %4468 = vmatprep.mubr.msk.bf16.mxu0 %vm4811_vm0, %v4810_v1  ;;  %4656 = vmatprep.mubr.msk.bf16.mxu1 %vm4811_vm0, %v4810_v1 }
 0x13c   : > { %v3710_v28 = vpack.c.bf16 %v1935_v26, %v1934_v25  ;;  %v3945_v29 = vpack.c.bf16 %v2029_v27, %v2028_v22 }
 0x13d   : > { %v1259_v30 = vpop.f32.mrb[44].mxu0  ;;  %v1635_v31 = vpop.f32.mrb[44].mxu1 }
 0x13e   : > { %4131 = vst [vmem:[%s5103_s29 + $0x50] sm:$0xff] %v3710_v28   ;;  %4178 = vst [vmem:[%s5103_s29 + $0x1c8] sm:$0xff] %v3945_v29   ;;  %v1260_v32 = vadd.f32 %v5084_v58, %v1259_v30  ;;  %v4362_v33 = vpop.f32.mrb[45].mxu0  ;;  %v1636_v35 = vadd.f32 %v5084_v58, %v1635_v31  ;;  %v4550_v36 = vpop.f32.mrb[45].mxu1 }
 0x13f   : > { %v1262_v38 = vpop.f32.mrb[46].mxu0  ;;  %v1638_v39 = vpop.f32.mrb[46].mxu1 }
 0x140   : > { %v1263_v40 = vadd.f32 %v5084_v58, %v1262_v38  ;;  %v4363_v41 = vpop.f32.mrb[47].mxu0  ;;  %v2030_v42 = vmax.f32 %v1636_v35, 0.0  ;;  %v1639_v43 = vadd.f32 %v5084_v58, %v1638_v39  ;;  %v4551_v44 = vpop.f32.mrb[47].mxu1  ;;  %v1936_v45 = vmax.f32 %v1260_v32, 0.0  ;;  %v4789_v32 = vld [vmem:[%s4867_s24 + $0x148] sm:$0xff]   ;;  %v4790_v35 = vld [vmem:[%s4867_s24 + $0x2c0] sm:$0xff]  }
 0x142   : > { %v1937_v46 = vmax.f32 %v1263_v40, 0.0  ;;  %4469 = vmatmul.mubr.msk.bf16.gmra.mrb[152].mxu0 %vm857_vm1, %v4783_v34  ;;  %v2031_v47 = vmax.f32 %v1639_v43, 0.0  ;;  %4657 = vmatmul.mubr.msk.bf16.gmra.mrb[152].mxu1 %vm857_vm1, %v4784_v37 }
 0x143   : > { %4472 = vmatprep.mubr.msk.bf16.mxu0 %vm4811_vm0, %v4810_v1  ;;  %4660 = vmatprep.mubr.msk.bf16.mxu1 %vm4811_vm0, %v4810_v1 }
 0x144   : > { %v3715_v48 = vpack.c.bf16 %v1937_v46, %v1936_v45  ;;  %v3950_v49 = vpack.c.bf16 %v2031_v47, %v2030_v42 }
 0x145   : > { %v1267_v50 = vpop.f32.mrb[48].mxu0  ;;  %v1643_v51 = vpop.f32.mrb[48].mxu1 }
 0x146   : > { %4132 = vst [vmem:[%s5103_s29 + $0x58] sm:$0xff] %v3715_v48   ;;  %4179 = vst [vmem:[%s5103_s29 + $0x1d0] sm:$0xff] %v3950_v49   ;;  %v1268_v52 = vadd.f32 %v5084_v58, %v1267_v50  ;;  %v4366_v53 = vpop.f32.mrb[49].mxu0  ;;  %v1644_v55 = vadd.f32 %v5084_v58, %v1643_v51  ;;  %v4554_v56 = vpop.f32.mrb[49].mxu1 }
 0x147   : > { %v1270_v59 = vpop.f32.mrb[50].mxu0  ;;  %v1646_v60 = vpop.f32.mrb[50].mxu1 }
 0x148   : > { %v1271_v61 = vadd.f32 %v5084_v58, %v1270_v59  ;;  %v4367_v62 = vpop.f32.mrb[51].mxu0  ;;  %v2032_v63 = vmax.f32 %v1644_v55, 0.0  ;;  %v1647_v0 = vadd.f32 %v5084_v58, %v1646_v60  ;;  %v4555_v2 = vpop.f32.mrb[51].mxu1  ;;  %v1938_v3 = vmax.f32 %v1268_v52, 0.0  ;;  %v4791_v52 = vld [vmem:[%s4867_s24 + $0x150] sm:$0xff]   ;;  %v4792_v55 = vld [vmem:[%s4867_s24 + $0x2c8] sm:$0xff]  }
 0x14a   : > { %v1939_v4 = vmax.f32 %v1271_v61, 0.0  ;;  %4473 = vmatmul.mubr.msk.bf16.gmra.mrb[156].mxu0 %vm857_vm1, %v4785_v54  ;;  %v2033_v5 = vmax.f32 %v1647_v0, 0.0  ;;  %4661 = vmatmul.mubr.msk.bf16.gmra.mrb[156].mxu1 %vm857_vm1, %v4786_v57 }
 0x14b   : > { %4476 = vmatprep.mubr.msk.bf16.mxu0 %vm4811_vm0, %v4810_v1  ;;  %4664 = vmatprep.mubr.msk.bf16.mxu1 %vm4811_vm0, %v4810_v1 }
 0x14c   : > { %v3720_v6 = vpack.c.bf16 %v1939_v4, %v1938_v3  ;;  %v3955_v7 = vpack.c.bf16 %v2033_v5, %v2032_v63 }
 0x14d   : > { %v1275_v8 = vpop.f32.mrb[52].mxu0  ;;  %v1651_v9 = vpop.f32.mrb[52].mxu1 }
 0x14e   : > { %4133 = vst [vmem:[%s5103_s29 + $0x60] sm:$0xff] %v3720_v6   ;;  %4180 = vst [vmem:[%s5103_s29 + $0x1d8] sm:$0xff] %v3955_v7   ;;  %v1276_v10 = vadd.f32 %v5084_v58, %v1275_v8  ;;  %v4370_v11 = vpop.f32.mrb[53].mxu0  ;;  %v1652_v13 = vadd.f32 %v5084_v58, %v1651_v9  ;;  %v4558_v14 = vpop.f32.mrb[53].mxu1 }
 0x14f   : > { %v1278_v16 = vpop.f32.mrb[54].mxu0  ;;  %v1654_v17 = vpop.f32.mrb[54].mxu1 }
 0x150   : > { %v1279_v18 = vadd.f32 %v5084_v58, %v1278_v16  ;;  %v4371_v19 = vpop.f32.mrb[55].mxu0  ;;  %v2034_v20 = vmax.f32 %v1652_v13, 0.0  ;;  %v1655_v21 = vadd.f32 %v5084_v58, %v1654_v17  ;;  %v4559_v22 = vpop.f32.mrb[55].mxu1  ;;  %v1940_v23 = vmax.f32 %v1276_v10, 0.0  ;;  %v4793_v10 = vld [vmem:[%s4867_s24 + $0x158] sm:$0xff]   ;;  %v4794_v13 = vld [vmem:[%s4867_s24 + $0x2d0] sm:$0xff]  }
 0x152   : > { %v1941_v24 = vmax.f32 %v1279_v18, 0.0  ;;  %4477 = vmatmul.mubr.msk.bf16.gmra.mrb[160].mxu0 %vm857_vm1, %v4787_v12  ;;  %v2035_v25 = vmax.f32 %v1655_v21, 0.0  ;;  %4665 = vmatmul.mubr.msk.bf16.gmra.mrb[160].mxu1 %vm857_vm1, %v4788_v15 }
 0x153   : > { %4480 = vmatprep.mubr.msk.bf16.mxu0 %vm4811_vm0, %v4810_v1  ;;  %4668 = vmatprep.mubr.msk.bf16.mxu1 %vm4811_vm0, %v4810_v1 }
 0x154   : > { %v3725_v26 = vpack.c.bf16 %v1941_v24, %v1940_v23  ;;  %v3960_v27 = vpack.c.bf16 %v2035_v25, %v2034_v20 }
 0x155   : > { %v1283_v28 = vpop.f32.mrb[56].mxu0  ;;  %v1659_v29 = vpop.f32.mrb[56].mxu1 }
 0x156   : > { %4134 = vst [vmem:[%s5103_s29 + $0x68] sm:$0xff] %v3725_v26   ;;  %4181 = vst [vmem:[%s5103_s29 + $0x1e0] sm:$0xff] %v3960_v27   ;;  %v1284_v30 = vadd.f32 %v5084_v58, %v1283_v28  ;;  %v4374_v31 = vpop.f32.mrb[57].mxu0  ;;  %v1660_v33 = vadd.f32 %v5084_v58, %v1659_v29  ;;  %v4562_v34 = vpop.f32.mrb[57].mxu1 }
 0x157   : > { %v1286_v36 = vpop.f32.mrb[58].mxu0  ;;  %v1662_v37 = vpop.f32.mrb[58].mxu1 }
 0x158   : > { %v1287_v38 = vadd.f32 %v5084_v58, %v1286_v36  ;;  %v4375_v39 = vpop.f32.mrb[59].mxu0  ;;  %v2036_v40 = vmax.f32 %v1660_v33, 0.0  ;;  %v1663_v41 = vadd.f32 %v5084_v58, %v1662_v37  ;;  %v4563_v42 = vpop.f32.mrb[59].mxu1  ;;  %v1942_v43 = vmax.f32 %v1284_v30, 0.0  ;;  %v4795_v30 = vld [vmem:[%s4867_s24 + $0x160] sm:$0xff]   ;;  %v4796_v33 = vld [vmem:[%s4867_s24 + $0x2d8] sm:$0xff]  }
 0x15a   : > { %v1943_v44 = vmax.f32 %v1287_v38, 0.0  ;;  %4481 = vmatmul.mubr.msk.bf16.gmra.mrb[164].mxu0 %vm857_vm1, %v4789_v32  ;;  %v2037_v45 = vmax.f32 %v1663_v41, 0.0  ;;  %4669 = vmatmul.mubr.msk.bf16.gmra.mrb[164].mxu1 %vm857_vm1, %v4790_v35 }
 0x15b   : > { %4484 = vmatprep.mubr.msk.bf16.mxu0 %vm4811_vm0, %v4810_v1  ;;  %4672 = vmatprep.mubr.msk.bf16.mxu1 %vm4811_vm0, %v4810_v1 }
 0x15c   : > { %v3730_v46 = vpack.c.bf16 %v1943_v44, %v1942_v43  ;;  %v3965_v47 = vpack.c.bf16 %v2037_v45, %v2036_v40 }
 0x15d   : > { %v1291_v48 = vpop.f32.mrb[60].mxu0  ;;  %v1667_v49 = vpop.f32.mrb[60].mxu1 }
 0x15e   : > { %4135 = vst [vmem:[%s5103_s29 + $0x70] sm:$0xff] %v3730_v46   ;;  %4182 = vst [vmem:[%s5103_s29 + $0x1e8] sm:$0xff] %v3965_v47   ;;  %v1292_v50 = vadd.f32 %v5084_v58, %v1291_v48  ;;  %v4378_v51 = vpop.f32.mrb[61].mxu0  ;;  %v1668_v53 = vadd.f32 %v5084_v58, %v1667_v49  ;;  %v4566_v54 = vpop.f32.mrb[61].mxu1 }
 0x15f   : > { %v1294_v56 = vpop.f32.mrb[62].mxu0  ;;  %v1670_v57 = vpop.f32.mrb[62].mxu1 }
 0x160   : > { %v1295_v59 = vadd.f32 %v5084_v58, %v1294_v56  ;;  %v4379_v60 = vpop.f32.mrb[63].mxu0  ;;  %v2038_v61 = vmax.f32 %v1668_v53, 0.0  ;;  %v1671_v62 = vadd.f32 %v5084_v58, %v1670_v57  ;;  %v4567_v63 = vpop.f32.mrb[63].mxu1  ;;  %v1944_v0 = vmax.f32 %v1292_v50, 0.0  ;;  %v4797_v50 = vld [vmem:[%s4867_s24 + $0x168] sm:$0xff]   ;;  %v4798_v53 = vld [vmem:[%s4867_s24 + $0x2e0] sm:$0xff]  }
 0x162   : > { %v1945_v2 = vmax.f32 %v1295_v59, 0.0  ;;  %4485 = vmatmul.mubr.msk.bf16.gmra.mrb[168].mxu0 %vm857_vm1, %v4791_v52  ;;  %v2039_v3 = vmax.f32 %v1671_v62, 0.0  ;;  %4673 = vmatmul.mubr.msk.bf16.gmra.mrb[168].mxu1 %vm857_vm1, %v4792_v55 }
 0x163   : > { %4488 = vmatprep.mubr.msk.bf16.mxu0 %vm4811_vm0, %v4810_v1  ;;  %4676 = vmatprep.mubr.msk.bf16.mxu1 %vm4811_vm0, %v4810_v1 }
 0x164   : > { %v3735_v4 = vpack.c.bf16 %v1945_v2, %v1944_v0  ;;  %v3970_v5 = vpack.c.bf16 %v2039_v3, %v2038_v61 }
 0x165   : > { %v1299_v6 = vpop.f32.mrb[64].mxu0  ;;  %v1675_v7 = vpop.f32.mrb[64].mxu1 }
 0x166   : > { %4136 = vst [vmem:[%s5103_s29 + $0x78] sm:$0xff] %v3735_v4   ;;  %4183 = vst [vmem:[%s5103_s29 + $0x1f0] sm:$0xff] %v3970_v5   ;;  %v1300_v8 = vadd.f32 %v5084_v58, %v1299_v6  ;;  %v4382_v9 = vpop.f32.mrb[65].mxu0  ;;  %v1676_v11 = vadd.f32 %v5084_v58, %v1675_v7  ;;  %v4570_v12 = vpop.f32.mrb[65].mxu1 }
 0x167   : > { %v1302_v14 = vpop.f32.mrb[66].mxu0  ;;  %v1678_v15 = vpop.f32.mrb[66].mxu1 }
 0x168   : > { %v1303_v16 = vadd.f32 %v5084_v58, %v1302_v14  ;;  %v4383_v17 = vpop.f32.mrb[67].mxu0  ;;  %v2040_v18 = vmax.f32 %v1676_v11, 0.0  ;;  %v1679_v19 = vadd.f32 %v5084_v58, %v1678_v15  ;;  %v4571_v20 = vpop.f32.mrb[67].mxu1  ;;  %v1946_v21 = vmax.f32 %v1300_v8, 0.0  ;;  %v4799_v8 = vld [vmem:[%s4867_s24 + $0x170] sm:$0xff]  }
 0x16a   : > { %v1947_v22 = vmax.f32 %v1303_v16, 0.0  ;;  %4489 = vmatmul.mubr.msk.bf16.gmra.mrb[172].mxu0 %vm857_vm1, %v4793_v10  ;;  %v2041_v23 = vmax.f32 %v1679_v19, 0.0  ;;  %4677 = vmatmul.mubr.msk.bf16.gmra.mrb[172].mxu1 %vm857_vm1, %v4794_v13 }
 0x16b   : > { %4492 = vmatprep.mubr.msk.bf16.mxu0 %vm4811_vm0, %v4810_v1  ;;  %4680 = vmatprep.mubr.msk.bf16.mxu1 %vm4811_vm0, %v4810_v1 }
 0x16c   : > { %v3740_v24 = vpack.c.bf16 %v1947_v22, %v1946_v21  ;;  %v3975_v25 = vpack.c.bf16 %v2041_v23, %v2040_v18 }
 0x16d   : > { %v1307_v26 = vpop.f32.mrb[68].mxu0  ;;  %v1683_v27 = vpop.f32.mrb[68].mxu1 }
 0x16e   : > { %4137 = vst [vmem:[%s5103_s29 + $0x80] sm:$0xff] %v3740_v24   ;;  %4184 = vst [vmem:[%s5103_s29 + $0x1f8] sm:$0xff] %v3975_v25   ;;  %v1308_v28 = vadd.f32 %v5084_v58, %v1307_v26  ;;  %v4386_v29 = vpop.f32.mrb[69].mxu0  ;;  %v1684_v31 = vadd.f32 %v5084_v58, %v1683_v27  ;;  %v4574_v32 = vpop.f32.mrb[69].mxu1  ;;  %v5372_v24 = vld [vmem:[%s5539_s2] ss:$0 sm:$0xff] }
 0x16f   : > { %v1310_v34 = vpop.f32.mrb[70].mxu0  ;;  %v1686_v35 = vpop.f32.mrb[70].mxu1 }
 0x170   : > { %v1311_v36 = vadd.f32 %v5084_v58, %v1310_v34  ;;  %v4387_v37 = vpop.f32.mrb[71].mxu0  ;;  %v2042_v38 = vmax.f32 %v1684_v31, 0.0  ;;  %v1687_v39 = vadd.f32 %v5084_v58, %v1686_v35  ;;  %v4575_v40 = vpop.f32.mrb[71].mxu1  ;;  %v1948_v41 = vmax.f32 %v1308_v28, 0.0 }
 0x172   : > { %v1949_v42 = vmax.f32 %v1311_v36, 0.0  ;;  %4493 = vmatmul.mubr.msk.bf16.gmra.mrb[176].mxu0 %vm857_vm1, %v4795_v30  ;;  %v2043_v43 = vmax.f32 %v1687_v39, 0.0  ;;  %4681 = vmatmul.mubr.msk.bf16.gmra.mrb[176].mxu1 %vm857_vm1, %v4796_v33 }
 0x173   : > { %4496 = vmatprep.mubr.msk.bf16.mxu0 %vm4811_vm0, %v4810_v1  ;;  %4684 = vmatprep.mubr.msk.bf16.mxu1 %vm4811_vm0, %v4810_v1 }
 0x174   : > { %v3745_v44 = vpack.c.bf16 %v1949_v42, %v1948_v41  ;;  %v3980_v45 = vpack.c.bf16 %v2043_v43, %v2042_v38 }
 0x175   : > { %v1315_v46 = vpop.f32.mrb[72].mxu0  ;;  %v1691_v47 = vpop.f32.mrb[72].mxu1 }
 0x176   : > { %4138 = vst [vmem:[%s5103_s29 + $0x88] sm:$0xff] %v3745_v44   ;;  %4185 = vst [vmem:[%s5103_s29 + $0x200] sm:$0xff] %v3980_v45   ;;  %v1316_v48 = vadd.f32 %v5084_v58, %v1315_v46  ;;  %v4390_v49 = vpop.f32.mrb[73].mxu0  ;;  %v1692_v51 = vadd.f32 %v5084_v58, %v1691_v47  ;;  %v4578_v52 = vpop.f32.mrb[73].mxu1 }
 0x177   : > { %v1318_v54 = vpop.f32.mrb[74].mxu0  ;;  %v1694_v55 = vpop.f32.mrb[74].mxu1 }
 0x178   : > { %v1319_v56 = vadd.f32 %v5084_v58, %v1318_v54  ;;  %v4391_v57 = vpop.f32.mrb[75].mxu0  ;;  %v2044_v59 = vmax.f32 %v1692_v51, 0.0  ;;  %v1695_v60 = vadd.f32 %v5084_v58, %v1694_v55  ;;  %v4579_v61 = vpop.f32.mrb[75].mxu1  ;;  %v1950_v62 = vmax.f32 %v1316_v48, 0.0 }
 0x17a   : > { %v1951_v63 = vmax.f32 %v1319_v56, 0.0  ;;  %4497 = vmatmul.mubr.msk.bf16.gmra.mrb[180].mxu0 %vm857_vm1, %v4797_v50  ;;  %v2045_v0 = vmax.f32 %v1695_v60, 0.0  ;;  %4685 = vmatmul.mubr.msk.bf16.gmra.mrb[180].mxu1 %vm857_vm1, %v4798_v53 }
 0x17b   : > { %4500 = vmatprep.mubr.msk.bf16.mxu0 %vm4811_vm0, %v4810_v1 }
 0x17c   : > { %v3750_v2 = vpack.c.bf16 %v1951_v63, %v1950_v62  ;;  %v3985_v3 = vpack.c.bf16 %v2045_v0, %v2044_v59 }
 0x17d   : > { %v1323_v4 = vpop.f32.mrb[76].mxu0  ;;  %v1699_v5 = vpop.f32.mrb[76].mxu1 }
 0x17e   : > { %4139 = vst [vmem:[%s5103_s29 + $0x90] sm:$0xff] %v3750_v2   ;;  %4186 = vst [vmem:[%s5103_s29 + $0x208] sm:$0xff] %v3985_v3   ;;  %v1324_v6 = vadd.f32 %v5084_v58, %v1323_v4  ;;  %v4394_v7 = vpop.f32.mrb[77].mxu0  ;;  %v1700_v9 = vadd.f32 %v5084_v58, %v1699_v5  ;;  %v4582_v10 = vpop.f32.mrb[77].mxu1 }
 0x17f   : > { %v1326_v11 = vpop.f32.mrb[78].mxu0  ;;  %v1702_v12 = vpop.f32.mrb[78].mxu1 }
 0x180   : > { %v1327_v13 = vadd.f32 %v5084_v58, %v1326_v11  ;;  %v4395_v1 = vpop.f32.mrb[79].mxu0  ;;  %v2046_v14 = vmax.f32 %v1700_v9, 0.0  ;;  %v1703_v15 = vadd.f32 %v5084_v58, %v1702_v12  ;;  %v4583_v16 = vpop.f32.mrb[79].mxu1  ;;  %v1952_v17 = vmax.f32 %v1324_v6, 0.0 }
 0x182   : > { %v1953_v18 = vmax.f32 %v1327_v13, 0.0  ;;  %4501 = vmatmul.mubr.msk.bf16.gmra.mrb[184].mxu0 %vm857_vm1, %v4799_v8  ;;  %v2047_v19 = vmax.f32 %v1703_v15, 0.0 }
 0x184   : > { %v3755_v20 = vpack.c.bf16 %v1953_v18, %v1952_v17  ;;  %v3990_v21 = vpack.c.bf16 %v2047_v19, %v2046_v14 }
 0x185   : > { %v1331_v22 = vpop.f32.mrb[80].mxu0  ;;  %v1707_v23 = vpop.f32.mrb[80].mxu1 }
 0x186   : > { %4140 = vst [vmem:[%s5103_s29 + $0x98] sm:$0xff] %v3755_v20   ;;  %4187 = vst [vmem:[%s5103_s29 + $0x210] sm:$0xff] %v3990_v21   ;;  %v1332_v25 = vadd.f32 %v5372_v24, %v1331_v22  ;;  %v4398_v58 = vpop.f32.mrb[81].mxu0  ;;  %v1708_v26 = vadd.f32 %v5372_v24, %v1707_v23  ;;  %v4586_v27 = vpop.f32.mrb[81].mxu1 }
 0x187   : > { %v1334_v28 = vpop.f32.mrb[82].mxu0  ;;  %v1710_v29 = vpop.f32.mrb[82].mxu1 }
 0x188   : > { %v1335_v30 = vadd.f32 %v5372_v24, %v1334_v28  ;;  %v4399_v31 = vpop.f32.mrb[83].mxu0  ;;  %v2048_v32 = vmax.f32 %v1708_v26, 0.0  ;;  %v1711_v33 = vadd.f32 %v5372_v24, %v1710_v29  ;;  %v4587_v34 = vpop.f32.mrb[83].mxu1  ;;  %v1954_v35 = vmax.f32 %v1332_v25, 0.0 }
 0x18a   : > { %v1955_v36 = vmax.f32 %v1335_v30, 0.0  ;;  %v2049_v37 = vmax.f32 %v1711_v33, 0.0 }
 0x18c   : > { %v3760_v38 = vpack.c.bf16 %v1955_v36, %v1954_v35  ;;  %v3995_v39 = vpack.c.bf16 %v2049_v37, %v2048_v32 }
 0x18d   : > { %v1339_v40 = vpop.f32.mrb[84].mxu0  ;;  %v1715_v41 = vpop.f32.mrb[84].mxu1 }
 0x18e   : > { %4141 = vst [vmem:[%s5103_s29 + $0xa0] sm:$0xff] %v3760_v38   ;;  %4188 = vst [vmem:[%s5103_s29 + $0x218] sm:$0xff] %v3995_v39   ;;  %v1340_v42 = vadd.f32 %v5372_v24, %v1339_v40  ;;  %v4402_v43 = vpop.f32.mrb[85].mxu0  ;;  %v1716_v44 = vadd.f32 %v5372_v24, %v1715_v41  ;;  %v4590_v45 = vpop.f32.mrb[85].mxu1 }
 0x18f   : > { %v1342_v46 = vpop.f32.mrb[86].mxu0  ;;  %v1718_v47 = vpop.f32.mrb[86].mxu1 }
 0x190   : > { %v1343_v48 = vadd.f32 %v5372_v24, %v1342_v46  ;;  %v4403_v49 = vpop.f32.mrb[87].mxu0  ;;  %v2050_v50 = vmax.f32 %v1716_v44, 0.0  ;;  %v1719_v51 = vadd.f32 %v5372_v24, %v1718_v47  ;;  %v4591_v52 = vpop.f32.mrb[87].mxu1  ;;  %v1956_v53 = vmax.f32 %v1340_v42, 0.0 }
 0x192   : > { %v1957_v54 = vmax.f32 %v1343_v48, 0.0  ;;  %v2051_v55 = vmax.f32 %v1719_v51, 0.0 }
 0x194   : > { %v3765_v56 = vpack.c.bf16 %v1957_v54, %v1956_v53  ;;  %v4000_v57 = vpack.c.bf16 %v2051_v55, %v2050_v50 }
 0x195   : > { %v1347_v59 = vpop.f32.mrb[88].mxu0  ;;  %v1723_v60 = vpop.f32.mrb[88].mxu1 }
 0x196   : > { %4142 = vst [vmem:[%s5103_s29 + $0xa8] sm:$0xff] %v3765_v56   ;;  %4189 = vst [vmem:[%s5103_s29 + $0x220] sm:$0xff] %v4000_v57   ;;  %v1348_v61 = vadd.f32 %v5372_v24, %v1347_v59  ;;  %v4406_v62 = vpop.f32.mrb[89].mxu0  ;;  %v1724_v63 = vadd.f32 %v5372_v24, %v1723_v60  ;;  %v4594_v0 = vpop.f32.mrb[89].mxu1 }
 0x197   : > { %v1350_v2 = vpop.f32.mrb[90].mxu0  ;;  %v1726_v3 = vpop.f32.mrb[90].mxu1 }
 0x198   : > { %v1351_v4 = vadd.f32 %v5372_v24, %v1350_v2  ;;  %v4407_v5 = vpop.f32.mrb[91].mxu0  ;;  %v2052_v6 = vmax.f32 %v1724_v63, 0.0  ;;  %v1727_v7 = vadd.f32 %v5372_v24, %v1726_v3  ;;  %v4595_v8 = vpop.f32.mrb[91].mxu1  ;;  %v1958_v9 = vmax.f32 %v1348_v61, 0.0 }
 0x19a   : > { %v1959_v10 = vmax.f32 %v1351_v4, 0.0  ;;  %v2053_v11 = vmax.f32 %v1727_v7, 0.0 }
 0x19c   : > { %v3770_v12 = vpack.c.bf16 %v1959_v10, %v1958_v9  ;;  %v4005_v13 = vpack.c.bf16 %v2053_v11, %v2052_v6 }
 0x19d   : > { %v1355_v1 = vpop.f32.mrb[92].mxu0  ;;  %v1731_v14 = vpop.f32.mrb[92].mxu1 }
 0x19e   : > { %4143 = vst [vmem:[%s5103_s29 + $0xb0] sm:$0xff] %v3770_v12   ;;  %4190 = vst [vmem:[%s5103_s29 + $0x228] sm:$0xff] %v4005_v13   ;;  %v1356_v15 = vadd.f32 %v5372_v24, %v1355_v1  ;;  %v4410_v16 = vpop.f32.mrb[93].mxu0  ;;  %v1732_v17 = vadd.f32 %v5372_v24, %v1731_v14  ;;  %v4598_v18 = vpop.f32.mrb[93].mxu1 }
 0x19f   : > { %v1358_v19 = vpop.f32.mrb[94].mxu0  ;;  %v1734_v20 = vpop.f32.mrb[94].mxu1 }
 0x1a0   : > { %v1359_v21 = vadd.f32 %v5372_v24, %v1358_v19  ;;  %v4411_v22 = vpop.f32.mrb[95].mxu0  ;;  %v2054_v23 = vmax.f32 %v1732_v17, 0.0  ;;  %v1735_v25 = vadd.f32 %v5372_v24, %v1734_v20  ;;  %v4599_v58 = vpop.f32.mrb[95].mxu1  ;;  %v1960_v26 = vmax.f32 %v1356_v15, 0.0 }
 0x1a2   : > { %v1961_v27 = vmax.f32 %v1359_v21, 0.0  ;;  %v2055_v28 = vmax.f32 %v1735_v25, 0.0 }
 0x1a4   : > { %v3775_v29 = vpack.c.bf16 %v1961_v27, %v1960_v26  ;;  %v4010_v30 = vpack.c.bf16 %v2055_v28, %v2054_v23 }
 0x1a5   : > { %v1363_v31 = vpop.f32.mrb[96].mxu0  ;;  %v1739_v32 = vpop.f32.mrb[96].mxu1 }
 0x1a6   : > { %4144 = vst [vmem:[%s5103_s29 + $0xb8] sm:$0xff] %v3775_v29   ;;  %4191 = vst [vmem:[%s5103_s29 + $0x230] sm:$0xff] %v4010_v30   ;;  %v1364_v33 = vadd.f32 %v5372_v24, %v1363_v31  ;;  %v4414_v34 = vpop.f32.mrb[97].mxu0  ;;  %v1740_v35 = vadd.f32 %v5372_v24, %v1739_v32  ;;  %v4602_v36 = vpop.f32.mrb[97].mxu1 }
 0x1a7   : > { %v1366_v37 = vpop.f32.mrb[98].mxu0  ;;  %v1742_v38 = vpop.f32.mrb[98].mxu1 }
 0x1a8   : > { %v1367_v39 = vadd.f32 %v5372_v24, %v1366_v37  ;;  %v4415_v40 = vpop.f32.mrb[99].mxu0  ;;  %v2056_v41 = vmax.f32 %v1740_v35, 0.0  ;;  %v1743_v42 = vadd.f32 %v5372_v24, %v1742_v38  ;;  %v4603_v43 = vpop.f32.mrb[99].mxu1  ;;  %v1962_v44 = vmax.f32 %v1364_v33, 0.0 }
 0x1aa   : > { %v1963_v45 = vmax.f32 %v1367_v39, 0.0  ;;  %v2057_v46 = vmax.f32 %v1743_v42, 0.0 }
 0x1ac   : > { %v3780_v47 = vpack.c.bf16 %v1963_v45, %v1962_v44  ;;  %v4015_v48 = vpack.c.bf16 %v2057_v46, %v2056_v41 }
 0x1ad   : > { %v1371_v49 = vpop.f32.mrb[100].mxu0  ;;  %v1747_v50 = vpop.f32.mrb[100].mxu1 }
 0x1ae   : > { %4145 = vst [vmem:[%s5103_s29 + $0xc0] sm:$0xff] %v3780_v47   ;;  %4192 = vst [vmem:[%s5103_s29 + $0x238] sm:$0xff] %v4015_v48   ;;  %v1372_v51 = vadd.f32 %v5372_v24, %v1371_v49  ;;  %v4418_v52 = vpop.f32.mrb[101].mxu0  ;;  %v1748_v53 = vadd.f32 %v5372_v24, %v1747_v50  ;;  %v4606_v54 = vpop.f32.mrb[101].mxu1 }
 0x1af   : > { %v1374_v55 = vpop.f32.mrb[102].mxu0  ;;  %v1750_v56 = vpop.f32.mrb[102].mxu1 }
 0x1b0   : > { %v1375_v57 = vadd.f32 %v5372_v24, %v1374_v55  ;;  %v4419_v59 = vpop.f32.mrb[103].mxu0  ;;  %v2058_v60 = vmax.f32 %v1748_v53, 0.0  ;;  %v1751_v61 = vadd.f32 %v5372_v24, %v1750_v56  ;;  %v4607_v62 = vpop.f32.mrb[103].mxu1  ;;  %v1964_v63 = vmax.f32 %v1372_v51, 0.0 }
 0x1b2   : > { %v1965_v0 = vmax.f32 %v1375_v57, 0.0  ;;  %v2059_v2 = vmax.f32 %v1751_v61, 0.0 }
 0x1b4   : > { %v3785_v3 = vpack.c.bf16 %v1965_v0, %v1964_v63  ;;  %v4020_v4 = vpack.c.bf16 %v2059_v2, %v2058_v60 }
 0x1b5   : > { %v1379_v5 = vpop.f32.mrb[104].mxu0  ;;  %v1755_v6 = vpop.f32.mrb[104].mxu1 }
 0x1b6   : > { %4146 = vst [vmem:[%s5103_s29 + $0xc8] sm:$0xff] %v3785_v3   ;;  %4193 = vst [vmem:[%s5103_s29 + $0x240] sm:$0xff] %v4020_v4   ;;  %v1380_v7 = vadd.f32 %v5372_v24, %v1379_v5  ;;  %v4422_v8 = vpop.f32.mrb[105].mxu0  ;;  %v1756_v9 = vadd.f32 %v5372_v24, %v1755_v6  ;;  %v4610_v10 = vpop.f32.mrb[105].mxu1 }
 0x1b7   : > { %v1382_v11 = vpop.f32.mrb[106].mxu0  ;;  %v1758_v12 = vpop.f32.mrb[106].mxu1 }
 0x1b8   : > { %v1383_v13 = vadd.f32 %v5372_v24, %v1382_v11  ;;  %v4423_v1 = vpop.f32.mrb[107].mxu0  ;;  %v2060_v14 = vmax.f32 %v1756_v9, 0.0  ;;  %v1759_v15 = vadd.f32 %v5372_v24, %v1758_v12  ;;  %v4611_v16 = vpop.f32.mrb[107].mxu1  ;;  %v1966_v17 = vmax.f32 %v1380_v7, 0.0 }
 0x1ba   : > { %v1967_v18 = vmax.f32 %v1383_v13, 0.0  ;;  %v2061_v19 = vmax.f32 %v1759_v15, 0.0 }
 0x1bc   : > { %v3790_v20 = vpack.c.bf16 %v1967_v18, %v1966_v17  ;;  %v4025_v21 = vpack.c.bf16 %v2061_v19, %v2060_v14 }
 0x1bd   : > { %v1387_v22 = vpop.f32.mrb[108].mxu0  ;;  %v1763_v23 = vpop.f32.mrb[108].mxu1 }
 0x1be   : > { %4147 = vst [vmem:[%s5103_s29 + $0xd0] sm:$0xff] %v3790_v20   ;;  %4194 = vst [vmem:[%s5103_s29 + $0x248] sm:$0xff] %v4025_v21   ;;  %v1388_v25 = vadd.f32 %v5372_v24, %v1387_v22  ;;  %v4426_v58 = vpop.f32.mrb[109].mxu0  ;;  %v1764_v26 = vadd.f32 %v5372_v24, %v1763_v23  ;;  %v4614_v27 = vpop.f32.mrb[109].mxu1 }
 0x1bf   : > { %v1390_v28 = vpop.f32.mrb[110].mxu0  ;;  %v1766_v29 = vpop.f32.mrb[110].mxu1 }
 0x1c0   : > { %v1391_v30 = vadd.f32 %v5372_v24, %v1390_v28  ;;  %v4427_v31 = vpop.f32.mrb[111].mxu0  ;;  %v2062_v32 = vmax.f32 %v1764_v26, 0.0  ;;  %v1767_v33 = vadd.f32 %v5372_v24, %v1766_v29  ;;  %v4615_v34 = vpop.f32.mrb[111].mxu1  ;;  %v1968_v35 = vmax.f32 %v1388_v25, 0.0 }
 0x1c2   : > { %v1969_v36 = vmax.f32 %v1391_v30, 0.0  ;;  %v2063_v37 = vmax.f32 %v1767_v33, 0.0 }
 0x1c4   : > { %v3795_v38 = vpack.c.bf16 %v1969_v36, %v1968_v35  ;;  %v4030_v39 = vpack.c.bf16 %v2063_v37, %v2062_v32 }
 0x1c5   : > { %v1395_v40 = vpop.f32.mrb[112].mxu0  ;;  %v1771_v41 = vpop.f32.mrb[112].mxu1 }
 0x1c6   : > { %4148 = vst [vmem:[%s5103_s29 + $0xd8] sm:$0xff] %v3795_v38   ;;  %4195 = vst [vmem:[%s5103_s29 + $0x250] sm:$0xff] %v4030_v39   ;;  %v1396_v42 = vadd.f32 %v5372_v24, %v1395_v40  ;;  %v4430_v43 = vpop.f32.mrb[113].mxu0  ;;  %v1772_v44 = vadd.f32 %v5372_v24, %v1771_v41  ;;  %v4618_v45 = vpop.f32.mrb[113].mxu1 }
 0x1c7   : > { %v1398_v46 = vpop.f32.mrb[114].mxu0  ;;  %v1774_v47 = vpop.f32.mrb[114].mxu1 }
 0x1c8   : > { %v1399_v48 = vadd.f32 %v5372_v24, %v1398_v46  ;;  %v4431_v49 = vpop.f32.mrb[115].mxu0  ;;  %v2064_v50 = vmax.f32 %v1772_v44, 0.0  ;;  %v1775_v51 = vadd.f32 %v5372_v24, %v1774_v47  ;;  %v4619_v52 = vpop.f32.mrb[115].mxu1  ;;  %v1970_v53 = vmax.f32 %v1396_v42, 0.0 }
 0x1ca   : > { %v1971_v54 = vmax.f32 %v1399_v48, 0.0  ;;  %v2065_v55 = vmax.f32 %v1775_v51, 0.0 }
 0x1cc   : > { %v3800_v56 = vpack.c.bf16 %v1971_v54, %v1970_v53  ;;  %v4035_v57 = vpack.c.bf16 %v2065_v55, %v2064_v50 }
 0x1cd   : > { %v1403_v59 = vpop.f32.mrb[116].mxu0  ;;  %v1779_v60 = vpop.f32.mrb[116].mxu1 }
 0x1ce   : > { %4149 = vst [vmem:[%s5103_s29 + $0xe0] sm:$0xff] %v3800_v56   ;;  %4196 = vst [vmem:[%s5103_s29 + $0x258] sm:$0xff] %v4035_v57   ;;  %v1404_v61 = vadd.f32 %v5372_v24, %v1403_v59  ;;  %v4434_v62 = vpop.f32.mrb[117].mxu0  ;;  %v1780_v63 = vadd.f32 %v5372_v24, %v1779_v60  ;;  %v4622_v0 = vpop.f32.mrb[117].mxu1 }
 0x1cf   : > { %v1406_v2 = vpop.f32.mrb[118].mxu0  ;;  %v1782_v3 = vpop.f32.mrb[118].mxu1 }
 0x1d0   : > { %v1407_v4 = vadd.f32 %v5372_v24, %v1406_v2  ;;  %v4435_v5 = vpop.f32.mrb[119].mxu0  ;;  %v2066_v6 = vmax.f32 %v1780_v63, 0.0  ;;  %v1783_v7 = vadd.f32 %v5372_v24, %v1782_v3  ;;  %v4623_v8 = vpop.f32.mrb[119].mxu1  ;;  %v1972_v9 = vmax.f32 %v1404_v61, 0.0 }
 0x1d2   : > { %v1973_v10 = vmax.f32 %v1407_v4, 0.0  ;;  %v2067_v11 = vmax.f32 %v1783_v7, 0.0 }
 0x1d4   : > { %v3805_v12 = vpack.c.bf16 %v1973_v10, %v1972_v9  ;;  %v4040_v13 = vpack.c.bf16 %v2067_v11, %v2066_v6 }
 0x1d5   : > { %v1411_v1 = vpop.f32.mrb[120].mxu0  ;;  %v1787_v14 = vpop.f32.mrb[120].mxu1 }
 0x1d6   : > { %4150 = vst [vmem:[%s5103_s29 + $0xe8] sm:$0xff] %v3805_v12   ;;  %4197 = vst [vmem:[%s5103_s29 + $0x260] sm:$0xff] %v4040_v13   ;;  %v1412_v15 = vadd.f32 %v5372_v24, %v1411_v1  ;;  %v4438_v16 = vpop.f32.mrb[121].mxu0  ;;  %v1788_v17 = vadd.f32 %v5372_v24, %v1787_v14  ;;  %v4626_v18 = vpop.f32.mrb[121].mxu1 }
 0x1d7   : > { %v1414_v19 = vpop.f32.mrb[122].mxu0  ;;  %v1790_v20 = vpop.f32.mrb[122].mxu1 }
 0x1d8   : > { %v1415_v21 = vadd.f32 %v5372_v24, %v1414_v19  ;;  %v4439_v22 = vpop.f32.mrb[123].mxu0  ;;  %v2068_v23 = vmax.f32 %v1788_v17, 0.0  ;;  %v1791_v25 = vadd.f32 %v5372_v24, %v1790_v20  ;;  %v4627_v58 = vpop.f32.mrb[123].mxu1  ;;  %v1974_v26 = vmax.f32 %v1412_v15, 0.0 }
 0x1da   : > { %v1975_v27 = vmax.f32 %v1415_v21, 0.0  ;;  %v2069_v28 = vmax.f32 %v1791_v25, 0.0 }
 0x1dc   : > { %v3810_v29 = vpack.c.bf16 %v1975_v27, %v1974_v26  ;;  %v4045_v30 = vpack.c.bf16 %v2069_v28, %v2068_v23 }
 0x1dd   : > { %v1419_v31 = vpop.f32.mrb[124].mxu0  ;;  %v1795_v32 = vpop.f32.mrb[124].mxu1 }
 0x1de   : > { %4151 = vst [vmem:[%s5103_s29 + $0xf0] sm:$0xff] %v3810_v29   ;;  %4198 = vst [vmem:[%s5103_s29 + $0x268] sm:$0xff] %v4045_v30   ;;  %v1420_v33 = vadd.f32 %v5372_v24, %v1419_v31  ;;  %v4442_v34 = vpop.f32.mrb[125].mxu0  ;;  %v1796_v35 = vadd.f32 %v5372_v24, %v1795_v32  ;;  %v4630_v36 = vpop.f32.mrb[125].mxu1 }
 0x1df   : > { %v1422_v37 = vpop.f32.mrb[126].mxu0  ;;  %v1798_v38 = vpop.f32.mrb[126].mxu1 }
 0x1e0   : > { %v1423_v39 = vadd.f32 %v5372_v24, %v1422_v37  ;;  %v4443_v40 = vpop.f32.mrb[127].mxu0  ;;  %v2070_v41 = vmax.f32 %v1796_v35, 0.0  ;;  %v1799_v42 = vadd.f32 %v5372_v24, %v1798_v38  ;;  %v4631_v43 = vpop.f32.mrb[127].mxu1  ;;  %v1976_v44 = vmax.f32 %v1420_v33, 0.0 }
 0x1e2   : > { %v1977_v45 = vmax.f32 %v1423_v39, 0.0  ;;  %v2071_v46 = vmax.f32 %v1799_v42, 0.0 }
 0x1e4   : > { %v3815_v47 = vpack.c.bf16 %v1977_v45, %v1976_v44  ;;  %v4050_v48 = vpack.c.bf16 %v2071_v46, %v2070_v41 }
 0x1e5   : > { %v1427_v49 = vpop.f32.mrb[128].mxu0  ;;  %v1803_v50 = vpop.f32.mrb[128].mxu1 }
 0x1e6   : > { %4152 = vst [vmem:[%s5103_s29 + $0xf8] sm:$0xff] %v3815_v47   ;;  %4199 = vst [vmem:[%s5103_s29 + $0x270] sm:$0xff] %v4050_v48   ;;  %v1428_v51 = vadd.f32 %v5372_v24, %v1427_v49  ;;  %v4446_v52 = vpop.f32.mrb[129].mxu0  ;;  %v1804_v53 = vadd.f32 %v5372_v24, %v1803_v50  ;;  %v4634_v54 = vpop.f32.mrb[129].mxu1 }
 0x1e7   : > { %v1430_v55 = vpop.f32.mrb[130].mxu0  ;;  %v1806_v56 = vpop.f32.mrb[130].mxu1 }
 0x1e8   : > { %v1431_v57 = vadd.f32 %v5372_v24, %v1430_v55  ;;  %v4447_v59 = vpop.f32.mrb[131].mxu0  ;;  %v2072_v60 = vmax.f32 %v1804_v53, 0.0  ;;  %v1807_v61 = vadd.f32 %v5372_v24, %v1806_v56  ;;  %v4635_v62 = vpop.f32.mrb[131].mxu1  ;;  %v1978_v63 = vmax.f32 %v1428_v51, 0.0 }
 0x1ea   : > { %v1979_v0 = vmax.f32 %v1431_v57, 0.0  ;;  %v2073_v2 = vmax.f32 %v1807_v61, 0.0 }
 0x1ec   : > { %v3820_v3 = vpack.c.bf16 %v1979_v0, %v1978_v63  ;;  %v4055_v4 = vpack.c.bf16 %v2073_v2, %v2072_v60 }
 0x1ed   : > { %v1435_v5 = vpop.f32.mrb[132].mxu0  ;;  %v1811_v6 = vpop.f32.mrb[132].mxu1 }
 0x1ee   : > { %4153 = vst [vmem:[%s5103_s29 + $0x100] sm:$0xff] %v3820_v3   ;;  %4200 = vst [vmem:[%s5103_s29 + $0x278] sm:$0xff] %v4055_v4   ;;  %v1436_v7 = vadd.f32 %v5372_v24, %v1435_v5  ;;  %v4450_v8 = vpop.f32.mrb[133].mxu0  ;;  %v1812_v9 = vadd.f32 %v5372_v24, %v1811_v6  ;;  %v4638_v10 = vpop.f32.mrb[133].mxu1 }
 0x1ef   : > { %v1438_v11 = vpop.f32.mrb[134].mxu0  ;;  %v1814_v12 = vpop.f32.mrb[134].mxu1 }
 0x1f0   : > { %v1439_v13 = vadd.f32 %v5372_v24, %v1438_v11  ;;  %v4451_v1 = vpop.f32.mrb[135].mxu0  ;;  %v2074_v14 = vmax.f32 %v1812_v9, 0.0  ;;  %v1815_v15 = vadd.f32 %v5372_v24, %v1814_v12  ;;  %v4639_v16 = vpop.f32.mrb[135].mxu1  ;;  %v1980_v17 = vmax.f32 %v1436_v7, 0.0 }
 0x1f2   : > { %v1981_v18 = vmax.f32 %v1439_v13, 0.0  ;;  %v2075_v19 = vmax.f32 %v1815_v15, 0.0 }
 0x1f4   : > { %v3825_v20 = vpack.c.bf16 %v1981_v18, %v1980_v17  ;;  %v4060_v21 = vpack.c.bf16 %v2075_v19, %v2074_v14 }
 0x1f5   : > { %v1443_v22 = vpop.f32.mrb[136].mxu0  ;;  %v1819_v23 = vpop.f32.mrb[136].mxu1 }
 0x1f6   : > { %4154 = vst [vmem:[%s5103_s29 + $0x108] sm:$0xff] %v3825_v20   ;;  %4201 = vst [vmem:[%s5103_s29 + $0x280] sm:$0xff] %v4060_v21   ;;  %v1444_v25 = vadd.f32 %v5372_v24, %v1443_v22  ;;  %v4454_v58 = vpop.f32.mrb[137].mxu0  ;;  %v1820_v26 = vadd.f32 %v5372_v24, %v1819_v23  ;;  %v4642_v27 = vpop.f32.mrb[137].mxu1 }
 0x1f7   : > { %v1446_v28 = vpop.f32.mrb[138].mxu0  ;;  %v1822_v29 = vpop.f32.mrb[138].mxu1 }
 0x1f8   : > { %v1447_v30 = vadd.f32 %v5372_v24, %v1446_v28  ;;  %v4455_v31 = vpop.f32.mrb[139].mxu0  ;;  %v2076_v32 = vmax.f32 %v1820_v26, 0.0  ;;  %v1823_v33 = vadd.f32 %v5372_v24, %v1822_v29  ;;  %v4643_v34 = vpop.f32.mrb[139].mxu1  ;;  %v1982_v35 = vmax.f32 %v1444_v25, 0.0 }
 0x1fa   : > { %v1983_v36 = vmax.f32 %v1447_v30, 0.0  ;;  %v2077_v37 = vmax.f32 %v1823_v33, 0.0 }
 0x1fc   : > { %v3830_v38 = vpack.c.bf16 %v1983_v36, %v1982_v35  ;;  %v4065_v39 = vpack.c.bf16 %v2077_v37, %v2076_v32 }
 0x1fd   : > { %v1451_v40 = vpop.f32.mrb[140].mxu0  ;;  %v1827_v41 = vpop.f32.mrb[140].mxu1 }
 0x1fe   : > { %4155 = vst [vmem:[%s5103_s29 + $0x110] sm:$0xff] %v3830_v38   ;;  %4202 = vst [vmem:[%s5103_s29 + $0x288] sm:$0xff] %v4065_v39   ;;  %v1452_v42 = vadd.f32 %v5372_v24, %v1451_v40  ;;  %v4458_v43 = vpop.f32.mrb[141].mxu0  ;;  %v1828_v44 = vadd.f32 %v5372_v24, %v1827_v41  ;;  %v4646_v45 = vpop.f32.mrb[141].mxu1 }
 0x1ff   : > { %v1454_v46 = vpop.f32.mrb[142].mxu0  ;;  %v1830_v47 = vpop.f32.mrb[142].mxu1 }
 0x200   : > { %v1455_v48 = vadd.f32 %v5372_v24, %v1454_v46  ;;  %v4459_v49 = vpop.f32.mrb[143].mxu0  ;;  %v2078_v50 = vmax.f32 %v1828_v44, 0.0  ;;  %v1831_v51 = vadd.f32 %v5372_v24, %v1830_v47  ;;  %v4647_v52 = vpop.f32.mrb[143].mxu1  ;;  %v1984_v53 = vmax.f32 %v1452_v42, 0.0 }
 0x202   : > { %v1985_v54 = vmax.f32 %v1455_v48, 0.0  ;;  %v2079_v55 = vmax.f32 %v1831_v51, 0.0 }
 0x204   : > { %v3835_v56 = vpack.c.bf16 %v1985_v54, %v1984_v53  ;;  %v4070_v57 = vpack.c.bf16 %v2079_v55, %v2078_v50 }
 0x205   : > { %v1459_v59 = vpop.f32.mrb[144].mxu0  ;;  %v1835_v60 = vpop.f32.mrb[144].mxu1 }
 0x206   : > { %4156 = vst [vmem:[%s5103_s29 + $0x118] sm:$0xff] %v3835_v56   ;;  %4203 = vst [vmem:[%s5103_s29 + $0x290] sm:$0xff] %v4070_v57   ;;  %v1460_v61 = vadd.f32 %v5372_v24, %v1459_v59  ;;  %v4462_v62 = vpop.f32.mrb[145].mxu0  ;;  %v1836_v63 = vadd.f32 %v5372_v24, %v1835_v60  ;;  %v4650_v0 = vpop.f32.mrb[145].mxu1 }
 0x207   : > { %v1462_v2 = vpop.f32.mrb[146].mxu0  ;;  %v1838_v3 = vpop.f32.mrb[146].mxu1 }
 0x208   : > { %v1463_v4 = vadd.f32 %v5372_v24, %v1462_v2  ;;  %v4463_v5 = vpop.f32.mrb[147].mxu0  ;;  %v2080_v6 = vmax.f32 %v1836_v63, 0.0  ;;  %v1839_v7 = vadd.f32 %v5372_v24, %v1838_v3  ;;  %v4651_v8 = vpop.f32.mrb[147].mxu1  ;;  %v1986_v9 = vmax.f32 %v1460_v61, 0.0 }
 0x20a   : > { %v1987_v10 = vmax.f32 %v1463_v4, 0.0  ;;  %v2081_v11 = vmax.f32 %v1839_v7, 0.0 }
 0x20c   : > { %v3840_v12 = vpack.c.bf16 %v1987_v10, %v1986_v9  ;;  %v4075_v13 = vpack.c.bf16 %v2081_v11, %v2080_v6 }
 0x20d   : > { %v1467_v1 = vpop.f32.mrb[148].mxu0  ;;  %v1843_v14 = vpop.f32.mrb[148].mxu1 }
 0x20e   : > { %4157 = vst [vmem:[%s5103_s29 + $0x120] sm:$0xff] %v3840_v12   ;;  %4204 = vst [vmem:[%s5103_s29 + $0x298] sm:$0xff] %v4075_v13   ;;  %v1468_v15 = vadd.f32 %v5372_v24, %v1467_v1  ;;  %v4466_v16 = vpop.f32.mrb[149].mxu0  ;;  %v1844_v17 = vadd.f32 %v5372_v24, %v1843_v14  ;;  %v4654_v18 = vpop.f32.mrb[149].mxu1 }
 0x20f   : > { %v1470_v19 = vpop.f32.mrb[150].mxu0  ;;  %v1846_v20 = vpop.f32.mrb[150].mxu1 }
 0x210   : > { %v1471_v21 = vadd.f32 %v5372_v24, %v1470_v19  ;;  %v4467_v22 = vpop.f32.mrb[151].mxu0  ;;  %v2082_v23 = vmax.f32 %v1844_v17, 0.0  ;;  %v1847_v25 = vadd.f32 %v5372_v24, %v1846_v20  ;;  %v4655_v58 = vpop.f32.mrb[151].mxu1  ;;  %v1988_v26 = vmax.f32 %v1468_v15, 0.0 }
 0x212   : > { %v1989_v27 = vmax.f32 %v1471_v21, 0.0  ;;  %v2083_v28 = vmax.f32 %v1847_v25, 0.0 }
 0x214   : > { %v3845_v29 = vpack.c.bf16 %v1989_v27, %v1988_v26  ;;  %v4080_v30 = vpack.c.bf16 %v2083_v28, %v2082_v23 }
 0x215   : > { %v1475_v31 = vpop.f32.mrb[152].mxu0  ;;  %v1851_v32 = vpop.f32.mrb[152].mxu1 }
 0x216   : > { %4158 = vst [vmem:[%s5103_s29 + $0x128] sm:$0xff] %v3845_v29   ;;  %4205 = vst [vmem:[%s5103_s29 + $0x2a0] sm:$0xff] %v4080_v30   ;;  %v1476_v33 = vadd.f32 %v5372_v24, %v1475_v31  ;;  %v4470_v34 = vpop.f32.mrb[153].mxu0  ;;  %v1852_v35 = vadd.f32 %v5372_v24, %v1851_v32  ;;  %v4658_v36 = vpop.f32.mrb[153].mxu1 }
 0x217   : > { %v1478_v37 = vpop.f32.mrb[154].mxu0  ;;  %v1854_v38 = vpop.f32.mrb[154].mxu1 }
 0x218   : > { %v1479_v39 = vadd.f32 %v5372_v24, %v1478_v37  ;;  %v4471_v40 = vpop.f32.mrb[155].mxu0  ;;  %v2084_v41 = vmax.f32 %v1852_v35, 0.0  ;;  %v1855_v42 = vadd.f32 %v5372_v24, %v1854_v38  ;;  %v4659_v43 = vpop.f32.mrb[155].mxu1  ;;  %v1990_v44 = vmax.f32 %v1476_v33, 0.0 }
 0x21a   : > { %v1991_v45 = vmax.f32 %v1479_v39, 0.0  ;;  %v2085_v46 = vmax.f32 %v1855_v42, 0.0 }
 0x21c   : > { %v3850_v47 = vpack.c.bf16 %v1991_v45, %v1990_v44  ;;  %v4085_v48 = vpack.c.bf16 %v2085_v46, %v2084_v41 }
 0x21d   : > { %v1483_v49 = vpop.f32.mrb[156].mxu0  ;;  %v1859_v50 = vpop.f32.mrb[156].mxu1 }
 0x21e   : > { %4159 = vst [vmem:[%s5103_s29 + $0x130] sm:$0xff] %v3850_v47   ;;  %4206 = vst [vmem:[%s5103_s29 + $0x2a8] sm:$0xff] %v4085_v48   ;;  %v1484_v51 = vadd.f32 %v5372_v24, %v1483_v49  ;;  %v4474_v52 = vpop.f32.mrb[157].mxu0  ;;  %v1860_v53 = vadd.f32 %v5372_v24, %v1859_v50  ;;  %v4662_v54 = vpop.f32.mrb[157].mxu1 }
 0x21f   : > { %v1486_v55 = vpop.f32.mrb[158].mxu0  ;;  %v1862_v56 = vpop.f32.mrb[158].mxu1 }
 0x220   : > { %v1487_v57 = vadd.f32 %v5372_v24, %v1486_v55  ;;  %v4475_v59 = vpop.f32.mrb[159].mxu0  ;;  %v2086_v60 = vmax.f32 %v1860_v53, 0.0  ;;  %v1863_v61 = vadd.f32 %v5372_v24, %v1862_v56  ;;  %v4663_v62 = vpop.f32.mrb[159].mxu1  ;;  %v1992_v63 = vmax.f32 %v1484_v51, 0.0 }
 0x222   : > { %v1993_v0 = vmax.f32 %v1487_v57, 0.0  ;;  %v2087_v2 = vmax.f32 %v1863_v61, 0.0 }
 0x224   : > { %v3855_v3 = vpack.c.bf16 %v1993_v0, %v1992_v63  ;;  %v4090_v4 = vpack.c.bf16 %v2087_v2, %v2086_v60 }
 0x225   : > { %v1491_v5 = vpop.f32.mrb[160].mxu0  ;;  %v1867_v6 = vpop.f32.mrb[160].mxu1 }
 0x226   : > { %4160 = vst [vmem:[%s5103_s29 + $0x138] sm:$0xff] %v3855_v3   ;;  %4207 = vst [vmem:[%s5103_s29 + $0x2b0] sm:$0xff] %v4090_v4   ;;  %v1492_v7 = vadd.f32 %v5372_v24, %v1491_v5  ;;  %v4478_v8 = vpop.f32.mrb[161].mxu0  ;;  %v1868_v9 = vadd.f32 %v5372_v24, %v1867_v6  ;;  %v4666_v10 = vpop.f32.mrb[161].mxu1 }
 0x227   : > { %v1494_v11 = vpop.f32.mrb[162].mxu0  ;;  %v1870_v12 = vpop.f32.mrb[162].mxu1 }
 0x228   : > { %v1495_v13 = vadd.f32 %v5372_v24, %v1494_v11  ;;  %v4479_v1 = vpop.f32.mrb[163].mxu0  ;;  %v2088_v14 = vmax.f32 %v1868_v9, 0.0  ;;  %v1871_v15 = vadd.f32 %v5372_v24, %v1870_v12  ;;  %v4667_v16 = vpop.f32.mrb[163].mxu1  ;;  %v1994_v17 = vmax.f32 %v1492_v7, 0.0 }
 0x22a   : > { %v1995_v18 = vmax.f32 %v1495_v13, 0.0  ;;  %v2089_v19 = vmax.f32 %v1871_v15, 0.0 }
 0x22c   : > { %v3860_v20 = vpack.c.bf16 %v1995_v18, %v1994_v17  ;;  %v4095_v21 = vpack.c.bf16 %v2089_v19, %v2088_v14 }
 0x22d   : > { %v1499_v22 = vpop.f32.mrb[164].mxu0  ;;  %v1875_v23 = vpop.f32.mrb[164].mxu1 }
 0x22e   : > { %4161 = vst [vmem:[%s5103_s29 + $0x140] sm:$0xff] %v3860_v20   ;;  %4208 = vst [vmem:[%s5103_s29 + $0x2b8] sm:$0xff] %v4095_v21   ;;  %v1500_v25 = vadd.f32 %v5372_v24, %v1499_v22  ;;  %v4482_v58 = vpop.f32.mrb[165].mxu0  ;;  %v1876_v26 = vadd.f32 %v5372_v24, %v1875_v23  ;;  %v4670_v27 = vpop.f32.mrb[165].mxu1 }
 0x22f   : > { %v1502_v28 = vpop.f32.mrb[166].mxu0  ;;  %v1878_v29 = vpop.f32.mrb[166].mxu1 }
 0x230   : > { %v1503_v30 = vadd.f32 %v5372_v24, %v1502_v28  ;;  %v4483_v31 = vpop.f32.mrb[167].mxu0  ;;  %v2090_v32 = vmax.f32 %v1876_v26, 0.0  ;;  %v1879_v33 = vadd.f32 %v5372_v24, %v1878_v29  ;;  %v4671_v34 = vpop.f32.mrb[167].mxu1  ;;  %v1996_v35 = vmax.f32 %v1500_v25, 0.0 }
 0x232   : > { %v1997_v36 = vmax.f32 %v1503_v30, 0.0  ;;  %v2091_v37 = vmax.f32 %v1879_v33, 0.0 }
 0x234   : > { %v3865_v38 = vpack.c.bf16 %v1997_v36, %v1996_v35  ;;  %v4100_v39 = vpack.c.bf16 %v2091_v37, %v2090_v32 }
 0x235   : > { %v1507_v40 = vpop.f32.mrb[168].mxu0  ;;  %v1883_v41 = vpop.f32.mrb[168].mxu1 }
 0x236   : > { %4162 = vst [vmem:[%s5103_s29 + $0x148] sm:$0xff] %v3865_v38   ;;  %4209 = vst [vmem:[%s5103_s29 + $0x2c0] sm:$0xff] %v4100_v39   ;;  %v1508_v42 = vadd.f32 %v5372_v24, %v1507_v40  ;;  %v4486_v43 = vpop.f32.mrb[169].mxu0  ;;  %v1884_v44 = vadd.f32 %v5372_v24, %v1883_v41  ;;  %v4674_v45 = vpop.f32.mrb[169].mxu1 }
 0x237   : > { %v1510_v46 = vpop.f32.mrb[170].mxu0  ;;  %v1886_v47 = vpop.f32.mrb[170].mxu1 }
 0x238   : > { %v1511_v48 = vadd.f32 %v5372_v24, %v1510_v46  ;;  %v4487_v49 = vpop.f32.mrb[171].mxu0  ;;  %v2092_v50 = vmax.f32 %v1884_v44, 0.0  ;;  %v1887_v51 = vadd.f32 %v5372_v24, %v1886_v47  ;;  %v4675_v52 = vpop.f32.mrb[171].mxu1  ;;  %v1998_v53 = vmax.f32 %v1508_v42, 0.0 }
 0x23a   : > { %v1999_v54 = vmax.f32 %v1511_v48, 0.0  ;;  %v2093_v55 = vmax.f32 %v1887_v51, 0.0 }
 0x23c   : > { %v3870_v56 = vpack.c.bf16 %v1999_v54, %v1998_v53  ;;  %v4105_v57 = vpack.c.bf16 %v2093_v55, %v2092_v50  ;;  %v4801_v50 = vld [vmem:[%s5539_s2] ss:$0 sm:$0xff] }
 0x23d   : > { %v1515_v59 = vpop.f32.mrb[172].mxu0  ;;  %v1891_v60 = vpop.f32.mrb[172].mxu1 }
 0x23e   : > { %4163 = vst [vmem:[%s5103_s29 + $0x150] sm:$0xff] %v3870_v56   ;;  %4210 = vst [vmem:[%s5103_s29 + $0x2c8] sm:$0xff] %v4105_v57   ;;  %v1516_v61 = vadd.f32 %v5372_v24, %v1515_v59  ;;  %v4490_v62 = vpop.f32.mrb[173].mxu0  ;;  %v1892_v63 = vadd.f32 %v5372_v24, %v1891_v60  ;;  %v4678_v0 = vpop.f32.mrb[173].mxu1 }
 0x23f   : > { %v1518_v2 = vpop.f32.mrb[174].mxu0  ;;  %v1894_v3 = vpop.f32.mrb[174].mxu1 }
 0x240   : > { %v1519_v4 = vadd.f32 %v5372_v24, %v1518_v2  ;;  %v4491_v5 = vpop.f32.mrb[175].mxu0  ;;  %v2094_v6 = vmax.f32 %v1892_v63, 0.0  ;;  %v1895_v7 = vadd.f32 %v5372_v24, %v1894_v3  ;;  %v4679_v8 = vpop.f32.mrb[175].mxu1  ;;  %v2000_v9 = vmax.f32 %v1516_v61, 0.0 }
 0x242   : > { %v2001_v10 = vmax.f32 %v1519_v4, 0.0  ;;  %v2095_v11 = vmax.f32 %v1895_v7, 0.0 }
 0x244   : > { %v3875_v12 = vpack.c.bf16 %v2001_v10, %v2000_v9  ;;  %v4110_v13 = vpack.c.bf16 %v2095_v11, %v2094_v6 }
 0x245   : > { %v1523_v1 = vpop.f32.mrb[176].mxu0  ;;  %v1899_v14 = vpop.f32.mrb[176].mxu1 }
 0x246   : > { %4164 = vst [vmem:[%s5103_s29 + $0x158] sm:$0xff] %v3875_v12   ;;  %4211 = vst [vmem:[%s5103_s29 + $0x2d0] sm:$0xff] %v4110_v13   ;;  %v1524_v15 = vadd.f32 %v5372_v24, %v1523_v1  ;;  %v4494_v16 = vpop.f32.mrb[177].mxu0  ;;  %v1900_v17 = vadd.f32 %v5372_v24, %v1899_v14  ;;  %v4682_v18 = vpop.f32.mrb[177].mxu1 }
 0x247   : > { %v1526_v19 = vpop.f32.mrb[178].mxu0  ;;  %v1902_v20 = vpop.f32.mrb[178].mxu1 }
 0x248   : > { %v1527_v21 = vadd.f32 %v5372_v24, %v1526_v19  ;;  %v4495_v22 = vpop.f32.mrb[179].mxu0  ;;  %v2096_v23 = vmax.f32 %v1900_v17, 0.0  ;;  %v1903_v25 = vadd.f32 %v5372_v24, %v1902_v20  ;;  %v4683_v58 = vpop.f32.mrb[179].mxu1  ;;  %v2002_v26 = vmax.f32 %v1524_v15, 0.0 }
 0x24a   : > { %v2003_v27 = vmax.f32 %v1527_v21, 0.0  ;;  %v2097_v28 = vmax.f32 %v1903_v25, 0.0 }
 0x24c   : > { %v3880_v29 = vpack.c.bf16 %v2003_v27, %v2002_v26  ;;  %v4115_v30 = vpack.c.bf16 %v2097_v28, %v2096_v23 }
 0x24d   : > { %v1531_v31 = vpop.f32.mrb[180].mxu0  ;;  %v1907_v32 = vpop.f32.mrb[180].mxu1 }
 0x24e   : > { %4165 = vst [vmem:[%s5103_s29 + $0x160] sm:$0xff] %v3880_v29   ;;  %4212 = vst [vmem:[%s5103_s29 + $0x2d8] sm:$0xff] %v4115_v30   ;;  %v1532_v33 = vadd.f32 %v5372_v24, %v1531_v31  ;;  %v4498_v34 = vpop.f32.mrb[181].mxu0  ;;  %v1908_v35 = vadd.f32 %v5372_v24, %v1907_v32  ;;  %v4686_v36 = vpop.f32.mrb[181].mxu1 }
 0x24f   : > { %v1534_v37 = vpop.f32.mrb[182].mxu0  ;;  %v1910_v38 = vpop.f32.mrb[182].mxu1 }
 0x250   : > { %v1535_v39 = vadd.f32 %v5372_v24, %v1534_v37  ;;  %v4499_v40 = vpop.f32.mrb[183].mxu0  ;;  %v2098_v41 = vmax.f32 %v1908_v35, 0.0  ;;  %v1911_v42 = vadd.f32 %v5372_v24, %v1910_v38  ;;  %v4687_v43 = vpop.f32.mrb[183].mxu1  ;;  %v2004_v44 = vmax.f32 %v1532_v33, 0.0 }
 0x252   : > { %v2005_v45 = vmax.f32 %v1535_v39, 0.0  ;;  %v2099_v46 = vmax.f32 %v1911_v42, 0.0 }
 0x254   : > { %v3885_v47 = vpack.c.bf16 %v2005_v45, %v2004_v44  ;;  %v4120_v48 = vpack.c.bf16 %v2099_v46, %v2098_v41 }
 0x255   : > { %v1539_v49 = vpop.f32.mrb[184].mxu0 }
 0x256   : > { %4166 = vst [vmem:[%s5103_s29 + $0x168] sm:$0xff] %v3885_v47   ;;  %4213 = vst [vmem:[%s5103_s29 + $0x2e0] sm:$0xff] %v4120_v48   ;;  %v1540_v51 = vadd.f32 %v4801_v50, %v1539_v49  ;;  %v4502_v52 = vpop.f32.mrb[185].mxu0 }
 0x257   : > { %v1542_v53 = vpop.f32.mrb[186].mxu0 }
 0x258   : > { %v1543_v54 = vadd.f32 %v4801_v50, %v1542_v53  ;;  %v4503_v55 = vpop.f32.mrb[187].mxu0  ;;  %v2006_v24 = vmax.f32 %v1540_v51, 0.0 }
 0x25a   : > { %v2007_v56 = vmax.f32 %v1543_v54, 0.0 }
 0x25c   : > { %v3890_v57 = vpack.c.bf16 %v2007_v56, %v2006_v24 }
 0x25e   : > { %4167 = vst [vmem:[%s5103_s29 + $0x170] sm:$0xff] %v3890_v57  }
 0x25f PF: > { %s13_s12 = sadd.s32 1, %s4808_s12  }
 0x260   : > { %p10_p4 = scmp.ge.s32.totalorder %s13_s12, 6  }
 0x262   :  { %12 = sbr.rel (!%p10_p4) target bundleno = 1 (0x1), region = 62 }

// kernel: critic_forward.5
= control target key start
LH: loop header
LB: loop body
LE: loop exit
PB: predicated region body
PF: predicated region fallthrough
CT: control target
= control target key end

     0   :  { %s4073_s12 = smov 0   ;;  %s4075_s13 = smov 0   ;;  %s4966_s0 = inlined_call_operand.vmem [shape: bf16[1344,2048], index: 0, kind: input, shape index: {}]   ;;  %s4967_s1 = inlined_call_operand.vmem [shape: bf16[2,1024,64], index: 1, kind: input, shape index: {}]   ;;  %s4968_s2 = inlined_call_operand.vmem [shape: f32[2,1,64], index: 2, kind: input, shape index: {}]   ;;  %s4969_s3 = inlined_call_operand.vmem [shape: bf16[2,1344,64], index: 3, kind: output, shape index: {}]  }
   0x1   :  { %s4077_s14 = smov 0   ;;  %s4079_s15 = smov 0  }
   0x2   :  { %s4081_s16 = smov 0   ;;  %s4083_s17 = smov 0  }
   0x3   :  { %s4085_s18 = smov 0  }
   0x4 LB: > { %s22_s19 = sadd.s32 1, %s4042_s16  ;;  %s25_s20 = sadd.s32 1, %s4046_s17  ;;  %s4050_s18 = sphi %s4085_s18, %s13_s18   ;;  %s4046_s17 = sphi %s4083_s17, %s4975_s17   ;;  %s4042_s16 = sphi %s4081_s16, %s4974_s16   ;;  %s4038_s15 = sphi %s4079_s15, %s4973_s15   ;;  %s4034_s14 = sphi %s4077_s14, %s4972_s14   ;;  %s4030_s13 = sphi %s4075_s13, %s4971_s13   ;;  %s4026_s12 = sphi %s4073_s12, %s4970_s12  }
   0x5   : > { %p23_p0 = scmp.ge.s32.totalorder %s22_s19, 4  ;;  %p41_p1 = scmp.ne.s32.totalorder %s4030_s13, %s4026_s12 }
   0x6   : > { %p42_p2 = scmp.eq.s32.totalorder %s4050_s18, 0  ;;  %s34_s24 = sadd.s32 1, %s4030_s13 }
   0x7   : > { %s4977_s19 = smov (%p23_p0, %s22_s19), 0  ;;  %s4979_s20 = smov (!%p23_p0, %s25_s20), %s4046_s17 }
   0x8   : > { %p43_p3 = por %p42_p2, %p41_p1  ;;  %p27_p4 = scmp.ge.s32.totalorder %s4979_s20, 2 }
   0x9   : > { %s29_s21 = ssub.s32 %s4042_s16, %s4977_s19  ;;  %p3291_p6 = scmp.ge.s32.totalorder %s4050_s18, 8 }
   0xa   : > { %s4981_s20 = smov (%p27_p4, %s4979_s20), 0 }
   0xb   : > { %s30_s22 = ssub.s32 %s4046_s17, %s4981_s20  ;;  %147 = sbr.rel (%p3291_p6) target bundleno = 110 (0x6e), region = 16 }
   0xc   : > { %s31_s23 = sor.u32 %s30_s22, %s29_s21 }
   0xd   : > { %p32_p5 = scmp.eq.s32.totalorder %s31_s23, 0 }
   0xf   : > { %s4124_s25 = scalar_select %p32_p5, %s4030_s13, %s34_s24  }
  0x12   : > { %150 = sbr.rel (!%p43_p3) target bundleno = 110 (0x6e), region = 20  ;;  %s152_s26 = sand.u32 (%p43_p3), 1, %s4030_s13  }
  0x13   : > { %s3872_s27 = smul.u32 (%p43_p3), 1344, %s152_s26  ;;  %s3292_s28 = sshll.u32 (%p43_p3), %s4046_s17, 3 }
  0x14   : > { %s3576_s29 = smul.u32 (%p43_p3), 672, %s4042_s16 }
  0x15   : > { %s4138_s8 = scalar_lea.vmem (%p43_p3), [#allocation2], %s3872_s27 }
  0x16   : > { %s158_s30 = sadd.s32 (%p43_p3), %s3576_s29, %s3292_s28 }
  0x17   : > { %s3294_s4 = sshll.u32 (%p43_p3), %s158_s30, 2 }
  0x18   : > { %s4133_s7 = scalar_lea.vmem (%p43_p3), %s4966_s0, %s3294_s4 }
  0x19   : > { %v173_v0 = vld [vmem:[%s4133_s7] sm:$0xff]  ;;  %v175_v1 = vld [vmem:[%s4133_s7 + $0x8] sm:$0xff]  ;;  %v177_v2 = vld [vmem:[%s4133_s7 + $0x10] sm:$0xff] }
  0x1a   : > { %174 = vst [vmem:[%s4138_s8] sm:$0xff] %v173_v0  ;;  %176 = vst [vmem:[%s4138_s8 + $0x8] sm:$0xff] %v175_v1  ;;  %v179_v3 = vld [vmem:[%s4133_s7 + $0x18] sm:$0xff]  ;;  %v181_v4 = vld [vmem:[%s4133_s7 + $0x40] sm:$0xff] }
  0x1b   : > { %178 = vst [vmem:[%s4138_s8 + $0x10] sm:$0xff] %v177_v2  ;;  %v183_v5 = vld [vmem:[%s4133_s7 + $0x48] sm:$0xff]  ;;  %180 = vst [vmem:[%s4138_s8 + $0x18] sm:$0xff] %v179_v3  ;;  %v185_v6 = vld [vmem:[%s4133_s7 + $0x50] sm:$0xff] }
  0x1c   : > { %182 = vst [vmem:[%s4138_s8 + $0x20] sm:$0xff] %v181_v4  ;;  %184 = vst [vmem:[%s4138_s8 + $0x28] sm:$0xff] %v183_v5  ;;  %v187_v7 = vld [vmem:[%s4133_s7 + $0x58] sm:$0xff]  ;;  %v189_v8 = vld [vmem:[%s4133_s7 + $0x80] sm:$0xff] }
  0x1d   : > { %186 = vst [vmem:[%s4138_s8 + $0x30] sm:$0xff] %v185_v6  ;;  %188 = vst [vmem:[%s4138_s8 + $0x38] sm:$0xff] %v187_v7  ;;  %v191_v9 = vld [vmem:[%s4133_s7 + $0x88] sm:$0xff]  ;;  %v193_v10 = vld [vmem:[%s4133_s7 + $0x90] sm:$0xff] }
  0x1e   : > { %190 = vst [vmem:[%s4138_s8 + $0x40] sm:$0xff] %v189_v8  ;;  %v195_v11 = vld [vmem:[%s4133_s7 + $0x98] sm:$0xff]  ;;  %192 = vst [vmem:[%s4138_s8 + $0x48] sm:$0xff] %v191_v9  ;;  %v197_v12 = vld [vmem:[%s4133_s7 + $0xc0] sm:$0xff] }
  0x1f   : > { %194 = vst [vmem:[%s4138_s8 + $0x50] sm:$0xff] %v193_v10  ;;  %196 = vst [vmem:[%s4138_s8 + $0x58] sm:$0xff] %v195_v11  ;;  %v199_v13 = vld [vmem:[%s4133_s7 + $0xc8] sm:$0xff]  ;;  %v201_v14 = vld [vmem:[%s4133_s7 + $0xd0] sm:$0xff] }
  0x20   : > { %198 = vst [vmem:[%s4138_s8 + $0x60] sm:$0xff] %v197_v12  ;;  %200 = vst [vmem:[%s4138_s8 + $0x68] sm:$0xff] %v199_v13  ;;  %v203_v15 = vld [vmem:[%s4133_s7 + $0xd8] sm:$0xff]  ;;  %v205_v16 = vld [vmem:[%s4133_s7 + $0x100] sm:$0xff] }
  0x21   : > { %202 = vst [vmem:[%s4138_s8 + $0x70] sm:$0xff] %v201_v14  ;;  %v207_v17 = vld [vmem:[%s4133_s7 + $0x108] sm:$0xff]  ;;  %204 = vst [vmem:[%s4138_s8 + $0x78] sm:$0xff] %v203_v15  ;;  %v209_v18 = vld [vmem:[%s4133_s7 + $0x110] sm:$0xff] }
  0x22   : > { %206 = vst [vmem:[%s4138_s8 + $0x80] sm:$0xff] %v205_v16  ;;  %208 = vst [vmem:[%s4138_s8 + $0x88] sm:$0xff] %v207_v17  ;;  %v211_v19 = vld [vmem:[%s4133_s7 + $0x118] sm:$0xff]  ;;  %v213_v20 = vld [vmem:[%s4133_s7 + $0x140] sm:$0xff] }
  0x23   : > { %210 = vst [vmem:[%s4138_s8 + $0x90] sm:$0xff] %v209_v18  ;;  %212 = vst [vmem:[%s4138_s8 + $0x98] sm:$0xff] %v211_v19  ;;  %v215_v21 = vld [vmem:[%s4133_s7 + $0x148] sm:$0xff]  ;;  %v217_v22 = vld [vmem:[%s4133_s7 + $0x150] sm:$0xff] }
  0x24   : > { %214 = vst [vmem:[%s4138_s8 + $0xa0] sm:$0xff] %v213_v20  ;;  %v219_v23 = vld [vmem:[%s4133_s7 + $0x158] sm:$0xff]  ;;  %216 = vst [vmem:[%s4138_s8 + $0xa8] sm:$0xff] %v215_v21  ;;  %v221_v24 = vld [vmem:[%s4133_s7 + $0x180] sm:$0xff] }
  0x25   : > { %218 = vst [vmem:[%s4138_s8 + $0xb0] sm:$0xff] %v217_v22  ;;  %220 = vst [vmem:[%s4138_s8 + $0xb8] sm:$0xff] %v219_v23  ;;  %v223_v25 = vld [vmem:[%s4133_s7 + $0x188] sm:$0xff]  ;;  %v225_v26 = vld [vmem:[%s4133_s7 + $0x190] sm:$0xff] }
  0x26   : > { %222 = vst [vmem:[%s4138_s8 + $0xc0] sm:$0xff] %v221_v24  ;;  %224 = vst [vmem:[%s4138_s8 + $0xc8] sm:$0xff] %v223_v25  ;;  %v227_v27 = vld [vmem:[%s4133_s7 + $0x198] sm:$0xff]  ;;  %v229_v28 = vld [vmem:[%s4133_s7 + $0x1c0] sm:$0xff] }
  0x27   : > { %226 = vst [vmem:[%s4138_s8 + $0xd0] sm:$0xff] %v225_v26  ;;  %v231_v29 = vld [vmem:[%s4133_s7 + $0x1c8] sm:$0xff]  ;;  %228 = vst [vmem:[%s4138_s8 + $0xd8] sm:$0xff] %v227_v27  ;;  %v233_v30 = vld [vmem:[%s4133_s7 + $0x1d0] sm:$0xff] }
  0x28   : > { %230 = vst [vmem:[%s4138_s8 + $0xe0] sm:$0xff] %v229_v28  ;;  %232 = vst [vmem:[%s4138_s8 + $0xe8] sm:$0xff] %v231_v29  ;;  %v235_v31 = vld [vmem:[%s4133_s7 + $0x1d8] sm:$0xff]  ;;  %v237_v32 = vld [vmem:[%s4133_s7 + $0x200] sm:$0xff] }
  0x29   : > { %234 = vst [vmem:[%s4138_s8 + $0xf0] sm:$0xff] %v233_v30  ;;  %236 = vst [vmem:[%s4138_s8 + $0xf8] sm:$0xff] %v235_v31  ;;  %v239_v33 = vld [vmem:[%s4133_s7 + $0x208] sm:$0xff]  ;;  %v241_v34 = vld [vmem:[%s4133_s7 + $0x210] sm:$0xff] }
  0x2a   : > { %238 = vst [vmem:[%s4138_s8 + $0x100] sm:$0xff] %v237_v32  ;;  %v243_v35 = vld [vmem:[%s4133_s7 + $0x218] sm:$0xff]  ;;  %240 = vst [vmem:[%s4138_s8 + $0x108] sm:$0xff] %v239_v33  ;;  %v245_v36 = vld [vmem:[%s4133_s7 + $0x240] sm:$0xff] }
  0x2b   : > { %242 = vst [vmem:[%s4138_s8 + $0x110] sm:$0xff] %v241_v34  ;;  %244 = vst [vmem:[%s4138_s8 + $0x118] sm:$0xff] %v243_v35  ;;  %v247_v37 = vld [vmem:[%s4133_s7 + $0x248] sm:$0xff]  ;;  %v249_v38 = vld [vmem:[%s4133_s7 + $0x250] sm:$0xff] }
  0x2c   : > { %246 = vst [vmem:[%s4138_s8 + $0x120] sm:$0xff] %v245_v36  ;;  %248 = vst [vmem:[%s4138_s8 + $0x128] sm:$0xff] %v247_v37  ;;  %v251_v39 = vld [vmem:[%s4133_s7 + $0x258] sm:$0xff]  ;;  %v253_v40 = vld [vmem:[%s4133_s7 + $0x280] sm:$0xff] }
  0x2d   : > { %250 = vst [vmem:[%s4138_s8 + $0x130] sm:$0xff] %v249_v38  ;;  %v255_v41 = vld [vmem:[%s4133_s7 + $0x288] sm:$0xff]  ;;  %252 = vst [vmem:[%s4138_s8 + $0x138] sm:$0xff] %v251_v39  ;;  %v257_v42 = vld [vmem:[%s4133_s7 + $0x290] sm:$0xff] }
  0x2e   : > { %254 = vst [vmem:[%s4138_s8 + $0x140] sm:$0xff] %v253_v40  ;;  %256 = vst [vmem:[%s4138_s8 + $0x148] sm:$0xff] %v255_v41  ;;  %v259_v43 = vld [vmem:[%s4133_s7 + $0x298] sm:$0xff]  ;;  %v261_v44 = vld [vmem:[%s4133_s7 + $0x2c0] sm:$0xff] }
  0x2f   : > { %258 = vst [vmem:[%s4138_s8 + $0x150] sm:$0xff] %v257_v42  ;;  %260 = vst [vmem:[%s4138_s8 + $0x158] sm:$0xff] %v259_v43  ;;  %v263_v45 = vld [vmem:[%s4133_s7 + $0x2c8] sm:$0xff]  ;;  %v265_v46 = vld [vmem:[%s4133_s7 + $0x2d0] sm:$0xff] }
  0x30   : > { %262 = vst [vmem:[%s4138_s8 + $0x160] sm:$0xff] %v261_v44  ;;  %v267_v47 = vld [vmem:[%s4133_s7 + $0x2d8] sm:$0xff]  ;;  %264 = vst [vmem:[%s4138_s8 + $0x168] sm:$0xff] %v263_v45  ;;  %v269_v48 = vld [vmem:[%s4133_s7 + $0x300] sm:$0xff] }
  0x31   : > { %266 = vst [vmem:[%s4138_s8 + $0x170] sm:$0xff] %v265_v46  ;;  %268 = vst [vmem:[%s4138_s8 + $0x178] sm:$0xff] %v267_v47  ;;  %v271_v49 = vld [vmem:[%s4133_s7 + $0x308] sm:$0xff]  ;;  %v273_v50 = vld [vmem:[%s4133_s7 + $0x310] sm:$0xff] }
  0x32   : > { %270 = vst [vmem:[%s4138_s8 + $0x180] sm:$0xff] %v269_v48  ;;  %272 = vst [vmem:[%s4138_s8 + $0x188] sm:$0xff] %v271_v49  ;;  %v275_v51 = vld [vmem:[%s4133_s7 + $0x318] sm:$0xff]  ;;  %v277_v52 = vld [vmem:[%s4133_s7 + $0x340] sm:$0xff] }
  0x33   : > { %274 = vst [vmem:[%s4138_s8 + $0x190] sm:$0xff] %v273_v50  ;;  %v279_v53 = vld [vmem:[%s4133_s7 + $0x348] sm:$0xff]  ;;  %276 = vst [vmem:[%s4138_s8 + $0x198] sm:$0xff] %v275_v51  ;;  %v281_v54 = vld [vmem:[%s4133_s7 + $0x350] sm:$0xff] }
  0x34   : > { %278 = vst [vmem:[%s4138_s8 + $0x1a0] sm:$0xff] %v277_v52  ;;  %280 = vst [vmem:[%s4138_s8 + $0x1a8] sm:$0xff] %v279_v53  ;;  %v283_v55 = vld [vmem:[%s4133_s7 + $0x358] sm:$0xff]  ;;  %v285_v56 = vld [vmem:[%s4133_s7 + $0x380] sm:$0xff] }
  0x35   : > { %282 = vst [vmem:[%s4138_s8 + $0x1b0] sm:$0xff] %v281_v54  ;;  %284 = vst [vmem:[%s4138_s8 + $0x1b8] sm:$0xff] %v283_v55  ;;  %v287_v57 = vld [vmem:[%s4133_s7 + $0x388] sm:$0xff]  ;;  %v289_v58 = vld [vmem:[%s4133_s7 + $0x390] sm:$0xff] }
  0x36   : > { %286 = vst [vmem:[%s4138_s8 + $0x1c0] sm:$0xff] %v285_v56  ;;  %v291_v59 = vld [vmem:[%s4133_s7 + $0x398] sm:$0xff]  ;;  %288 = vst [vmem:[%s4138_s8 + $0x1c8] sm:$0xff] %v287_v57  ;;  %v293_v60 = vld [vmem:[%s4133_s7 + $0x3c0] sm:$0xff] }
  0x37   : > { %290 = vst [vmem:[%s4138_s8 + $0x1d0] sm:$0xff] %v289_v58  ;;  %292 = vst [vmem:[%s4138_s8 + $0x1d8] sm:$0xff] %v291_v59  ;;  %v295_v61 = vld [vmem:[%s4133_s7 + $0x3c8] sm:$0xff]  ;;  %v297_v62 = vld [vmem:[%s4133_s7 + $0x3d0] sm:$0xff] }
  0x38   : > { %294 = vst [vmem:[%s4138_s8 + $0x1e0] sm:$0xff] %v293_v60  ;;  %296 = vst [vmem:[%s4138_s8 + $0x1e8] sm:$0xff] %v295_v61  ;;  %v299_v63 = vld [vmem:[%s4133_s7 + $0x3d8] sm:$0xff]  ;;  %v301_v0 = vld [vmem:[%s4133_s7 + $0x400] sm:$0xff] }
  0x39   : > { %298 = vst [vmem:[%s4138_s8 + $0x1f0] sm:$0xff] %v297_v62  ;;  %v303_v1 = vld [vmem:[%s4133_s7 + $0x408] sm:$0xff]  ;;  %300 = vst [vmem:[%s4138_s8 + $0x1f8] sm:$0xff] %v299_v63  ;;  %v305_v2 = vld [vmem:[%s4133_s7 + $0x410] sm:$0xff] }
  0x3a   : > { %302 = vst [vmem:[%s4138_s8 + $0x200] sm:$0xff] %v301_v0  ;;  %304 = vst [vmem:[%s4138_s8 + $0x208] sm:$0xff] %v303_v1  ;;  %v307_v3 = vld [vmem:[%s4133_s7 + $0x418] sm:$0xff]  ;;  %v309_v4 = vld [vmem:[%s4133_s7 + $0x440] sm:$0xff] }
  0x3b   : > { %306 = vst [vmem:[%s4138_s8 + $0x210] sm:$0xff] %v305_v2  ;;  %308 = vst [vmem:[%s4138_s8 + $0x218] sm:$0xff] %v307_v3  ;;  %v311_v5 = vld [vmem:[%s4133_s7 + $0x448] sm:$0xff]  ;;  %v313_v6 = vld [vmem:[%s4133_s7 + $0x450] sm:$0xff] }
  0x3c   : > { %310 = vst [vmem:[%s4138_s8 + $0x220] sm:$0xff] %v309_v4  ;;  %v315_v7 = vld [vmem:[%s4133_s7 + $0x458] sm:$0xff]  ;;  %312 = vst [vmem:[%s4138_s8 + $0x228] sm:$0xff] %v311_v5  ;;  %v317_v8 = vld [vmem:[%s4133_s7 + $0x480] sm:$0xff] }
  0x3d   : > { %314 = vst [vmem:[%s4138_s8 + $0x230] sm:$0xff] %v313_v6  ;;  %316 = vst [vmem:[%s4138_s8 + $0x238] sm:$0xff] %v315_v7  ;;  %v319_v9 = vld [vmem:[%s4133_s7 + $0x488] sm:$0xff]  ;;  %v321_v10 = vld [vmem:[%s4133_s7 + $0x490] sm:$0xff] }
  0x3e   : > { %318 = vst [vmem:[%s4138_s8 + $0x240] sm:$0xff] %v317_v8  ;;  %320 = vst [vmem:[%s4138_s8 + $0x248] sm:$0xff] %v319_v9  ;;  %v323_v11 = vld [vmem:[%s4133_s7 + $0x498] sm:$0xff]  ;;  %v325_v12 = vld [vmem:[%s4133_s7 + $0x4c0] sm:$0xff] }
  0x3f   : > { %322 = vst [vmem:[%s4138_s8 + $0x250] sm:$0xff] %v321_v10  ;;  %v327_v13 = vld [vmem:[%s4133_s7 + $0x4c8] sm:$0xff]  ;;  %324 = vst [vmem:[%s4138_s8 + $0x258] sm:$0xff] %v323_v11  ;;  %v329_v14 = vld [vmem:[%s4133_s7 + $0x4d0] sm:$0xff] }
  0x40   : > { %326 = vst [vmem:[%s4138_s8 + $0x260] sm:$0xff] %v325_v12  ;;  %328 = vst [vmem:[%s4138_s8 + $0x268] sm:$0xff] %v327_v13  ;;  %v331_v15 = vld [vmem:[%s4133_s7 + $0x4d8] sm:$0xff]  ;;  %v333_v16 = vld [vmem:[%s4133_s7 + $0x500] sm:$0xff] }
  0x41   : > { %330 = vst [vmem:[%s4138_s8 + $0x270] sm:$0xff] %v329_v14  ;;  %332 = vst [vmem:[%s4138_s8 + $0x278] sm:$0xff] %v331_v15  ;;  %v335_v17 = vld [vmem:[%s4133_s7 + $0x508] sm:$0xff]  ;;  %v337_v18 = vld [vmem:[%s4133_s7 + $0x510] sm:$0xff] }
  0x42   : > { %334 = vst [vmem:[%s4138_s8 + $0x280] sm:$0xff] %v333_v16  ;;  %v339_v19 = vld [vmem:[%s4133_s7 + $0x518] sm:$0xff]  ;;  %336 = vst [vmem:[%s4138_s8 + $0x288] sm:$0xff] %v335_v17  ;;  %v341_v20 = vld [vmem:[%s4133_s7 + $0x540] sm:$0xff] }
  0x43   : > { %338 = vst [vmem:[%s4138_s8 + $0x290] sm:$0xff] %v337_v18  ;;  %340 = vst [vmem:[%s4138_s8 + $0x298] sm:$0xff] %v339_v19  ;;  %v343_v21 = vld [vmem:[%s4133_s7 + $0x548] sm:$0xff]  ;;  %v345_v22 = vld [vmem:[%s4133_s7 + $0x550] sm:$0xff] }
  0x44   : > { %342 = vst [vmem:[%s4138_s8 + $0x2a0] sm:$0xff] %v341_v20  ;;  %344 = vst [vmem:[%s4138_s8 + $0x2a8] sm:$0xff] %v343_v21  ;;  %v347_v23 = vld [vmem:[%s4133_s7 + $0x558] sm:$0xff]  ;;  %v349_v24 = vld [vmem:[%s4133_s7 + $0x580] sm:$0xff] }
  0x45   : > { %346 = vst [vmem:[%s4138_s8 + $0x2b0] sm:$0xff] %v345_v22  ;;  %v351_v25 = vld [vmem:[%s4133_s7 + $0x588] sm:$0xff]  ;;  %348 = vst [vmem:[%s4138_s8 + $0x2b8] sm:$0xff] %v347_v23  ;;  %v353_v26 = vld [vmem:[%s4133_s7 + $0x590] sm:$0xff] }
  0x46   : > { %350 = vst [vmem:[%s4138_s8 + $0x2c0] sm:$0xff] %v349_v24  ;;  %352 = vst [vmem:[%s4138_s8 + $0x2c8] sm:$0xff] %v351_v25  ;;  %v355_v27 = vld [vmem:[%s4133_s7 + $0x598] sm:$0xff]  ;;  %v357_v28 = vld [vmem:[%s4133_s7 + $0x5c0] sm:$0xff] }
  0x47   : > { %354 = vst [vmem:[%s4138_s8 + $0x2d0] sm:$0xff] %v353_v26  ;;  %356 = vst [vmem:[%s4138_s8 + $0x2d8] sm:$0xff] %v355_v27  ;;  %v359_v29 = vld [vmem:[%s4133_s7 + $0x5c8] sm:$0xff]  ;;  %v361_v30 = vld [vmem:[%s4133_s7 + $0x5d0] sm:$0xff] }
  0x48   : > { %358 = vst [vmem:[%s4138_s8 + $0x2e0] sm:$0xff] %v357_v28  ;;  %v363_v31 = vld [vmem:[%s4133_s7 + $0x5d8] sm:$0xff]  ;;  %360 = vst [vmem:[%s4138_s8 + $0x2e8] sm:$0xff] %v359_v29  ;;  %v365_v32 = vld [vmem:[%s4133_s7 + $0x600] sm:$0xff] }
  0x49   : > { %362 = vst [vmem:[%s4138_s8 + $0x2f0] sm:$0xff] %v361_v30  ;;  %364 = vst [vmem:[%s4138_s8 + $0x2f8] sm:$0xff] %v363_v31  ;;  %v367_v33 = vld [vmem:[%s4133_s7 + $0x608] sm:$0xff]  ;;  %v369_v34 = vld [vmem:[%s4133_s7 + $0x610] sm:$0xff] }
  0x4a   : > { %366 = vst [vmem:[%s4138_s8 + $0x300] sm:$0xff] %v365_v32  ;;  %368 = vst [vmem:[%s4138_s8 + $0x308] sm:$0xff] %v367_v33  ;;  %v371_v35 = vld [vmem:[%s4133_s7 + $0x618] sm:$0xff]  ;;  %v373_v36 = vld [vmem:[%s4133_s7 + $0x640] sm:$0xff] }
  0x4b   : > { %370 = vst [vmem:[%s4138_s8 + $0x310] sm:$0xff] %v369_v34  ;;  %v375_v37 = vld [vmem:[%s4133_s7 + $0x648] sm:$0xff]  ;;  %372 = vst [vmem:[%s4138_s8 + $0x318] sm:$0xff] %v371_v35  ;;  %v377_v38 = vld [vmem:[%s4133_s7 + $0x650] sm:$0xff] }
  0x4c   : > { %374 = vst [vmem:[%s4138_s8 + $0x320] sm:$0xff] %v373_v36  ;;  %376 = vst [vmem:[%s4138_s8 + $0x328] sm:$0xff] %v375_v37  ;;  %v379_v39 = vld [vmem:[%s4133_s7 + $0x658] sm:$0xff]  ;;  %v381_v40 = vld [vmem:[%s4133_s7 + $0x680] sm:$0xff] }
  0x4d   : > { %378 = vst [vmem:[%s4138_s8 + $0x330] sm:$0xff] %v377_v38  ;;  %380 = vst [vmem:[%s4138_s8 + $0x338] sm:$0xff] %v379_v39  ;;  %v383_v41 = vld [vmem:[%s4133_s7 + $0x688] sm:$0xff]  ;;  %v385_v42 = vld [vmem:[%s4133_s7 + $0x690] sm:$0xff] }
  0x4e   : > { %382 = vst [vmem:[%s4138_s8 + $0x340] sm:$0xff] %v381_v40  ;;  %v387_v43 = vld [vmem:[%s4133_s7 + $0x698] sm:$0xff]  ;;  %384 = vst [vmem:[%s4138_s8 + $0x348] sm:$0xff] %v383_v41  ;;  %v389_v44 = vld [vmem:[%s4133_s7 + $0x6c0] sm:$0xff] }
  0x4f   : > { %386 = vst [vmem:[%s4138_s8 + $0x350] sm:$0xff] %v385_v42  ;;  %388 = vst [vmem:[%s4138_s8 + $0x358] sm:$0xff] %v387_v43  ;;  %v391_v45 = vld [vmem:[%s4133_s7 + $0x6c8] sm:$0xff]  ;;  %v393_v46 = vld [vmem:[%s4133_s7 + $0x6d0] sm:$0xff] }
  0x50   : > { %390 = vst [vmem:[%s4138_s8 + $0x360] sm:$0xff] %v389_v44  ;;  %392 = vst [vmem:[%s4138_s8 + $0x368] sm:$0xff] %v391_v45  ;;  %v395_v47 = vld [vmem:[%s4133_s7 + $0x6d8] sm:$0xff]  ;;  %v397_v48 = vld [vmem:[%s4133_s7 + $0x700] sm:$0xff] }
  0x51   : > { %394 = vst [vmem:[%s4138_s8 + $0x370] sm:$0xff] %v393_v46  ;;  %v399_v49 = vld [vmem:[%s4133_s7 + $0x708] sm:$0xff]  ;;  %396 = vst [vmem:[%s4138_s8 + $0x378] sm:$0xff] %v395_v47  ;;  %v401_v50 = vld [vmem:[%s4133_s7 + $0x710] sm:$0xff] }
  0x52   : > { %398 = vst [vmem:[%s4138_s8 + $0x380] sm:$0xff] %v397_v48  ;;  %400 = vst [vmem:[%s4138_s8 + $0x388] sm:$0xff] %v399_v49  ;;  %v403_v51 = vld [vmem:[%s4133_s7 + $0x718] sm:$0xff]  ;;  %v405_v52 = vld [vmem:[%s4133_s7 + $0x740] sm:$0xff] }
  0x53   : > { %402 = vst [vmem:[%s4138_s8 + $0x390] sm:$0xff] %v401_v50  ;;  %404 = vst [vmem:[%s4138_s8 + $0x398] sm:$0xff] %v403_v51  ;;  %v407_v53 = vld [vmem:[%s4133_s7 + $0x748] sm:$0xff]  ;;  %v409_v54 = vld [vmem:[%s4133_s7 + $0x750] sm:$0xff] }
  0x54   : > { %406 = vst [vmem:[%s4138_s8 + $0x3a0] sm:$0xff] %v405_v52  ;;  %v411_v55 = vld [vmem:[%s4133_s7 + $0x758] sm:$0xff]  ;;  %408 = vst [vmem:[%s4138_s8 + $0x3a8] sm:$0xff] %v407_v53  ;;  %v413_v56 = vld [vmem:[%s4133_s7 + $0x780] sm:$0xff] }
  0x55   : > { %410 = vst [vmem:[%s4138_s8 + $0x3b0] sm:$0xff] %v409_v54  ;;  %412 = vst [vmem:[%s4138_s8 + $0x3b8] sm:$0xff] %v411_v55  ;;  %v415_v57 = vld [vmem:[%s4133_s7 + $0x788] sm:$0xff]  ;;  %v417_v58 = vld [vmem:[%s4133_s7 + $0x790] sm:$0xff] }
  0x56   : > { %414 = vst [vmem:[%s4138_s8 + $0x3c0] sm:$0xff] %v413_v56  ;;  %416 = vst [vmem:[%s4138_s8 + $0x3c8] sm:$0xff] %v415_v57  ;;  %v419_v59 = vld [vmem:[%s4133_s7 + $0x798] sm:$0xff]  ;;  %v421_v60 = vld [vmem:[%s4133_s7 + $0x7c0] sm:$0xff] }
  0x57   : > { %418 = vst [vmem:[%s4138_s8 + $0x3d0] sm:$0xff] %v417_v58  ;;  %v423_v61 = vld [vmem:[%s4133_s7 + $0x7c8] sm:$0xff]  ;;  %420 = vst [vmem:[%s4138_s8 + $0x3d8] sm:$0xff] %v419_v59  ;;  %v425_v62 = vld [vmem:[%s4133_s7 + $0x7d0] sm:$0xff] }
  0x58   : > { %422 = vst [vmem:[%s4138_s8 + $0x3e0] sm:$0xff] %v421_v60  ;;  %424 = vst [vmem:[%s4138_s8 + $0x3e8] sm:$0xff] %v423_v61  ;;  %v427_v63 = vld [vmem:[%s4133_s7 + $0x7d8] sm:$0xff]  ;;  %v429_v0 = vld [vmem:[%s4133_s7 + $0x800] sm:$0xff] }
  0x59   : > { %426 = vst [vmem:[%s4138_s8 + $0x3f0] sm:$0xff] %v425_v62  ;;  %428 = vst [vmem:[%s4138_s8 + $0x3f8] sm:$0xff] %v427_v63  ;;  %v431_v1 = vld [vmem:[%s4133_s7 + $0x808] sm:$0xff]  ;;  %v433_v2 = vld [vmem:[%s4133_s7 + $0x810] sm:$0xff] }
  0x5a   : > { %430 = vst [vmem:[%s4138_s8 + $0x400] sm:$0xff] %v429_v0  ;;  %v435_v3 = vld [vmem:[%s4133_s7 + $0x818] sm:$0xff]  ;;  %432 = vst [vmem:[%s4138_s8 + $0x408] sm:$0xff] %v431_v1  ;;  %v437_v4 = vld [vmem:[%s4133_s7 + $0x840] sm:$0xff] }
  0x5b   : > { %434 = vst [vmem:[%s4138_s8 + $0x410] sm:$0xff] %v433_v2  ;;  %436 = vst [vmem:[%s4138_s8 + $0x418] sm:$0xff] %v435_v3  ;;  %v439_v5 = vld [vmem:[%s4133_s7 + $0x848] sm:$0xff]  ;;  %v441_v6 = vld [vmem:[%s4133_s7 + $0x850] sm:$0xff] }
  0x5c   : > { %438 = vst [vmem:[%s4138_s8 + $0x420] sm:$0xff] %v437_v4  ;;  %440 = vst [vmem:[%s4138_s8 + $0x428] sm:$0xff] %v439_v5  ;;  %v443_v7 = vld [vmem:[%s4133_s7 + $0x858] sm:$0xff]  ;;  %v445_v8 = vld [vmem:[%s4133_s7 + $0x880] sm:$0xff] }
  0x5d   : > { %442 = vst [vmem:[%s4138_s8 + $0x430] sm:$0xff] %v441_v6  ;;  %v447_v9 = vld [vmem:[%s4133_s7 + $0x888] sm:$0xff]  ;;  %444 = vst [vmem:[%s4138_s8 + $0x438] sm:$0xff] %v443_v7  ;;  %v449_v10 = vld [vmem:[%s4133_s7 + $0x890] sm:$0xff] }
  0x5e   : > { %446 = vst [vmem:[%s4138_s8 + $0x440] sm:$0xff] %v445_v8  ;;  %448 = vst [vmem:[%s4138_s8 + $0x448] sm:$0xff] %v447_v9  ;;  %v451_v11 = vld [vmem:[%s4133_s7 + $0x898] sm:$0xff]  ;;  %v453_v12 = vld [vmem:[%s4133_s7 + $0x8c0] sm:$0xff] }
  0x5f   : > { %450 = vst [vmem:[%s4138_s8 + $0x450] sm:$0xff] %v449_v10  ;;  %452 = vst [vmem:[%s4138_s8 + $0x458] sm:$0xff] %v451_v11  ;;  %v455_v13 = vld [vmem:[%s4133_s7 + $0x8c8] sm:$0xff]  ;;  %v457_v14 = vld [vmem:[%s4133_s7 + $0x8d0] sm:$0xff] }
  0x60   : > { %454 = vst [vmem:[%s4138_s8 + $0x460] sm:$0xff] %v453_v12  ;;  %v459_v15 = vld [vmem:[%s4133_s7 + $0x8d8] sm:$0xff]  ;;  %456 = vst [vmem:[%s4138_s8 + $0x468] sm:$0xff] %v455_v13  ;;  %v461_v16 = vld [vmem:[%s4133_s7 + $0x900] sm:$0xff] }
  0x61   : > { %458 = vst [vmem:[%s4138_s8 + $0x470] sm:$0xff] %v457_v14  ;;  %460 = vst [vmem:[%s4138_s8 + $0x478] sm:$0xff] %v459_v15  ;;  %v463_v17 = vld [vmem:[%s4133_s7 + $0x908] sm:$0xff]  ;;  %v465_v18 = vld [vmem:[%s4133_s7 + $0x910] sm:$0xff] }
  0x62   : > { %462 = vst [vmem:[%s4138_s8 + $0x480] sm:$0xff] %v461_v16  ;;  %464 = vst [vmem:[%s4138_s8 + $0x488] sm:$0xff] %v463_v17  ;;  %v467_v19 = vld [vmem:[%s4133_s7 + $0x918] sm:$0xff]  ;;  %v469_v20 = vld [vmem:[%s4133_s7 + $0x940] sm:$0xff] }
  0x63   : > { %466 = vst [vmem:[%s4138_s8 + $0x490] sm:$0xff] %v465_v18  ;;  %v471_v21 = vld [vmem:[%s4133_s7 + $0x948] sm:$0xff]  ;;  %468 = vst [vmem:[%s4138_s8 + $0x498] sm:$0xff] %v467_v19  ;;  %v473_v22 = vld [vmem:[%s4133_s7 + $0x950] sm:$0xff] }
  0x64   : > { %470 = vst [vmem:[%s4138_s8 + $0x4a0] sm:$0xff] %v469_v20  ;;  %472 = vst [vmem:[%s4138_s8 + $0x4a8] sm:$0xff] %v471_v21  ;;  %v475_v23 = vld [vmem:[%s4133_s7 + $0x958] sm:$0xff]  ;;  %v477_v24 = vld [vmem:[%s4133_s7 + $0x980] sm:$0xff] }
  0x65   : > { %474 = vst [vmem:[%s4138_s8 + $0x4b0] sm:$0xff] %v473_v22  ;;  %476 = vst [vmem:[%s4138_s8 + $0x4b8] sm:$0xff] %v475_v23  ;;  %v479_v25 = vld [vmem:[%s4133_s7 + $0x988] sm:$0xff]  ;;  %v481_v26 = vld [vmem:[%s4133_s7 + $0x990] sm:$0xff] }
  0x66   : > { %478 = vst [vmem:[%s4138_s8 + $0x4c0] sm:$0xff] %v477_v24  ;;  %v483_v27 = vld [vmem:[%s4133_s7 + $0x998] sm:$0xff]  ;;  %480 = vst [vmem:[%s4138_s8 + $0x4c8] sm:$0xff] %v479_v25  ;;  %v485_v28 = vld [vmem:[%s4133_s7 + $0x9c0] sm:$0xff] }
  0x67   : > { %482 = vst [vmem:[%s4138_s8 + $0x4d0] sm:$0xff] %v481_v26  ;;  %484 = vst [vmem:[%s4138_s8 + $0x4d8] sm:$0xff] %v483_v27  ;;  %v487_v29 = vld [vmem:[%s4133_s7 + $0x9c8] sm:$0xff]  ;;  %v489_v30 = vld [vmem:[%s4133_s7 + $0x9d0] sm:$0xff] }
  0x68   : > { %486 = vst [vmem:[%s4138_s8 + $0x4e0] sm:$0xff] %v485_v28  ;;  %488 = vst [vmem:[%s4138_s8 + $0x4e8] sm:$0xff] %v487_v29  ;;  %v491_v31 = vld [vmem:[%s4133_s7 + $0x9d8] sm:$0xff]  ;;  %v493_v32 = vld [vmem:[%s4133_s7 + $0xa00] sm:$0xff] }
  0x69   : > { %490 = vst [vmem:[%s4138_s8 + $0x4f0] sm:$0xff] %v489_v30  ;;  %v495_v33 = vld [vmem:[%s4133_s7 + $0xa08] sm:$0xff]  ;;  %492 = vst [vmem:[%s4138_s8 + $0x4f8] sm:$0xff] %v491_v31  ;;  %v497_v34 = vld [vmem:[%s4133_s7 + $0xa10] sm:$0xff] }
  0x6a   : > { %494 = vst [vmem:[%s4138_s8 + $0x500] sm:$0xff] %v493_v32  ;;  %496 = vst [vmem:[%s4138_s8 + $0x508] sm:$0xff] %v495_v33  ;;  %v499_v35 = vld [vmem:[%s4133_s7 + $0xa18] sm:$0xff]  ;;  %v501_v36 = vld [vmem:[%s4133_s7 + $0xa40] sm:$0xff] }
  0x6b   : > { %498 = vst [vmem:[%s4138_s8 + $0x510] sm:$0xff] %v497_v34  ;;  %500 = vst [vmem:[%s4138_s8 + $0x518] sm:$0xff] %v499_v35  ;;  %v503_v37 = vld [vmem:[%s4133_s7 + $0xa48] sm:$0xff]  ;;  %v505_v38 = vld [vmem:[%s4133_s7 + $0xa50] sm:$0xff] }
  0x6c   : > { %502 = vst [vmem:[%s4138_s8 + $0x520] sm:$0xff] %v501_v36  ;;  %v507_v39 = vld [vmem:[%s4133_s7 + $0xa58] sm:$0xff]  ;;  %504 = vst [vmem:[%s4138_s8 + $0x528] sm:$0xff] %v503_v37 }
  0x6d   : > { %506 = vst [vmem:[%s4138_s8 + $0x530] sm:$0xff] %v505_v38  ;;  %508 = vst [vmem:[%s4138_s8 + $0x538] sm:$0xff] %v507_v39 }
  0x6e PF: > { %p3295_p7 = scmp.ge.s32.totalorder %s4050_s18, 1  ;;  %p527_p8 = scmp.lt.s32.totalorder %s4050_s18, 9 }
  0x70   : > { %p528_p9 = pnand %p3295_p7, %p527_p8 }
  0x71   : > { %p571_p10 = scmp.lt.s32.totalorder (!%p528_p9), %s4038_s15, 1  ;;  %s534_s9 = sand.u32 (!%p528_p9), 1, %s4026_s12   ;;  %v4052_v40 = vmov (!%p528_p9), 0   ;;  %vm3131_vm0 = vcmask (!%p528_p9), 519168  }
  0x72   : > { %531 = sbr.rel (%p528_p9) target bundleno = 739 (0x2e3), region = 51  ;;  %2117 = vmatprep.subr.bf16.mxu1 (!%p528_p9), %v4052_v40  ;;  %2519 = vmatprep.subr.bf16.mxu0 (!%p528_p9), %v4052_v40 }
  0x73   : > { %s3873_s10 = smul.u32 (!%p528_p9), 1344, %s534_s9 }
  0x74   : > { %s579_s24 = smul.u32 (!%p528_p9), 42, %s4034_s14 }
  0x75   : > { %s4483_s21 = scalar_lea.vmem (!%p528_p9), [#allocation2], %s3873_s10 }
  0x76   : > { %v4486_v41 = vld [vmem:[%s4483_s21] sm:$0xff] (!%p528_p9)  ;;  %v4492_v43 = vld [vmem:[%s4483_s21 + $0x10] sm:$0xff] (!%p528_p9)  ;;  %p582_p11 = scmp.lt.s32.totalorder (!%p528_p9), %s579_s24, 167 }
  0x77   : > { %v4489_v42 = vld [vmem:[%s4483_s21 + $0x20] sm:$0xff] (!%p528_p9)  ;;  %v4504_v46 = vld [vmem:[%s4483_s21 + $0x30] sm:$0xff] (!%p528_p9) }
  0x78   : > { %v3300_v44 = vcombine.low (!%p528_p9), %v4486_v41, %v4489_v42  ;;  %v3301_v45 = vcombine.high (!%p528_p9), %v4486_v41, %v4489_v42  ;;  %v3304_v48 = vcombine.low (!%p528_p9), %v4492_v43, %v4504_v46  ;;  %v3305_v49 = vcombine.high (!%p528_p9), %v4492_v43, %v4504_v46  ;;  %v598_v17 = vld [vmem:[%s4483_s21 + $0x40] sm:$0xff] (!%p528_p9)  ;;  %v600_v19 = vld [vmem:[%s4483_s21 + $0x50] sm:$0xff] (!%p528_p9) }
  0x79   : > { %s4983_s15 = smov (!%p571_p10, %s4038_s15), 1  ;;  %v602_v18 = vld [vmem:[%s4483_s21 + $0x60] sm:$0xff]  ;;  %v604_v20 = vld [vmem:[%s4483_s21 + $0x70] sm:$0xff]  ;;  %s4985_s24 = smov (!%p582_p11, %s579_s24), 167 }
  0x7a   : > { %s3577_s11 = sshll.u32 %s4983_s15, 9  ;;  %2149 = vmatprep.mubr.bf16.mxu1 %v3301_v45  ;;  %2551 = vmatprep.mubr.bf16.mxu0 %v3305_v49  ;;  %v3309_v23 = vcombine.high %v598_v17, %v602_v18  ;;  %v3313_v24 = vcombine.high %v600_v19, %v604_v20  ;;  %v606_v27 = vld [vmem:[%s4483_s21 + $0x80] sm:$0xff]  ;;  %v608_v29 = vld [vmem:[%s4483_s21 + $0x90] sm:$0xff]  ;;  %v3308_v31 = vcombine.low %v598_v17, %v602_v18  ;;  %s578_s28 = scalar_lea.vmem %s4968_s2, %s4983_s15 }
  0x7b   : > { %s4497_s23 = scalar_lea.vmem %s4967_s1, %s3577_s11  ;;  %v610_v28 = vld [vmem:[%s4483_s21 + $0xa0] sm:$0xff]  ;;  %v612_v30 = vld [vmem:[%s4483_s21 + $0xb0] sm:$0xff]  ;;  %v3312_v32 = vcombine.low %v600_v19, %v604_v20  ;;  %s3874_s29 = smul.u32 168, %s4983_s15 }
  0x7c   : > { %v3932_v47 = vld [vmem:[%s4497_s23] sm:$0xff]   ;;  %v3934_v51 = vld [vmem:[%s4497_s23 + $0x8] sm:$0xff]   ;;  %v3936_v53 = vld [vmem:[%s4497_s23 + $0x10] sm:$0xff]   ;;  %v3317_v33 = vcombine.high %v606_v27, %v610_v28  ;;  %v3321_v34 = vcombine.high %v608_v29, %v612_v30  ;;  %v3320_v45 = vcombine.low %v608_v29, %v612_v30 }
  0x7d   : > { %v3933_v50 = vld [vmem:[%s4497_s23 + $0x100] sm:$0xff]   ;;  %2118 = vmatpush1.bf16.msra.mxu1 %v3932_v47  ;;  %v3935_v52 = vld [vmem:[%s4497_s23 + $0x108] sm:$0xff]   ;;  %v3937_v54 = vld [vmem:[%s4497_s23 + $0x110] sm:$0xff]   ;;  %s585_s30 = sadd.s32 %s3874_s29, %s4985_s24 }
  0x7e   : > { %2520 = vmatpush1.bf16.msra.mxu0 %v3933_v50  ;;  %2119 = vmatprep.subr.bf16.mxu1 %v4052_v40  ;;  %v3938_v55 = vld [vmem:[%s4497_s23 + $0x18] sm:$0xff]   ;;  %v3940_v57 = vld [vmem:[%s4497_s23 + $0x20] sm:$0xff]   ;;  %v3942_v59 = vld [vmem:[%s4497_s23 + $0x28] sm:$0xff]   ;;  %s3298_s4 = sshll.u32 %s585_s30, 2 }
  0x7f   : > { %2521 = vmatprep.subr.bf16.mxu0 %v4052_v40  ;;  %v3939_v56 = vld [vmem:[%s4497_s23 + $0x118] sm:$0xff]   ;;  %v3941_v58 = vld [vmem:[%s4497_s23 + $0x120] sm:$0xff]   ;;  %v3943_v60 = vld [vmem:[%s4497_s23 + $0x128] sm:$0xff]   ;;  %s4819_s5 = scalar_lea.vmem %s4969_s3, %s3298_s4 }
  0x80   : > { %v3944_v61 = vld [vmem:[%s4497_s23 + $0x30] sm:$0xff]   ;;  %v3946_v63 = vld [vmem:[%s4497_s23 + $0x38] sm:$0xff]   ;;  %v3948_v1 = vld [vmem:[%s4497_s23 + $0x40] sm:$0xff]  }
  0x81   : > { %2120 = vmatpush1.bf16.msra.mxu1 %v3934_v51  ;;  %v3945_v62 = vld [vmem:[%s4497_s23 + $0x130] sm:$0xff]   ;;  %v3947_v0 = vld [vmem:[%s4497_s23 + $0x138] sm:$0xff]   ;;  %v3949_v2 = vld [vmem:[%s4497_s23 + $0x140] sm:$0xff]  }
  0x82   : > { %2522 = vmatpush1.bf16.msra.mxu0 %v3935_v52  ;;  %2121 = vmatprep.subr.bf16.mxu1 %v4052_v40  ;;  %v3950_v3 = vld [vmem:[%s4497_s23 + $0x48] sm:$0xff]   ;;  %v3952_v5 = vld [vmem:[%s4497_s23 + $0x50] sm:$0xff]   ;;  %v3954_v7 = vld [vmem:[%s4497_s23 + $0x58] sm:$0xff]  }
  0x83   : > { %2523 = vmatprep.subr.bf16.mxu0 %v4052_v40  ;;  %v3951_v4 = vld [vmem:[%s4497_s23 + $0x148] sm:$0xff]   ;;  %v3953_v6 = vld [vmem:[%s4497_s23 + $0x150] sm:$0xff]   ;;  %v3955_v8 = vld [vmem:[%s4497_s23 + $0x158] sm:$0xff]  }
  0x84   : > { %v3956_v9 = vld [vmem:[%s4497_s23 + $0x60] sm:$0xff]   ;;  %v3958_v11 = vld [vmem:[%s4497_s23 + $0x68] sm:$0xff]   ;;  %v3960_v13 = vld [vmem:[%s4497_s23 + $0x70] sm:$0xff]  }
  0x85   : > { %2122 = vmatpush1.bf16.msra.mxu1 %v3936_v53  ;;  %v3957_v10 = vld [vmem:[%s4497_s23 + $0x160] sm:$0xff]   ;;  %v3959_v12 = vld [vmem:[%s4497_s23 + $0x168] sm:$0xff]   ;;  %v3961_v14 = vld [vmem:[%s4497_s23 + $0x170] sm:$0xff]  }
  0x86   : > { %2524 = vmatpush1.bf16.msra.mxu0 %v3937_v54  ;;  %2123 = vmatprep.subr.bf16.mxu1 %v4052_v40  ;;  %v3962_v15 = vld [vmem:[%s4497_s23 + $0x78] sm:$0xff]   ;;  %v3964_v21 = vld [vmem:[%s4497_s23 + $0x80] sm:$0xff]   ;;  %v3966_v25 = vld [vmem:[%s4497_s23 + $0x88] sm:$0xff]  }
  0x87   : > { %2525 = vmatprep.subr.bf16.mxu0 %v4052_v40  ;;  %v3963_v16 = vld [vmem:[%s4497_s23 + $0x178] sm:$0xff]   ;;  %v3965_v22 = vld [vmem:[%s4497_s23 + $0x180] sm:$0xff]   ;;  %v3967_v26 = vld [vmem:[%s4497_s23 + $0x188] sm:$0xff]  }
  0x88   : > { %v3968_v35 = vld [vmem:[%s4497_s23 + $0x90] sm:$0xff]   ;;  %v614_v37 = vld [vmem:[%s4483_s21 + $0xc0] sm:$0xff]  ;;  %v3970_v42 = vld [vmem:[%s4497_s23 + $0x98] sm:$0xff]  }
  0x89   : > { %2124 = vmatpush1.bf16.msra.mxu1 %v3938_v55  ;;  %v3969_v36 = vld [vmem:[%s4497_s23 + $0x190] sm:$0xff]   ;;  %v618_v38 = vld [vmem:[%s4483_s21 + $0xe0] sm:$0xff]  ;;  %v3971_v43 = vld [vmem:[%s4497_s23 + $0x198] sm:$0xff]  }
  0x8a   : > { %2526 = vmatpush1.bf16.msra.mxu0 %v3939_v56  ;;  %2125 = vmatprep.subr.bf16.mxu1 %v4052_v40  ;;  %v616_v39 = vld [vmem:[%s4483_s21 + $0xd0] sm:$0xff]  ;;  %v3325_v46 = vcombine.high %v614_v37, %v618_v38  ;;  %v3973_v49 = vld [vmem:[%s4497_s23 + $0x1a0] sm:$0xff]   ;;  %v3974_v54 = vld [vmem:[%s4497_s23 + $0xa8] sm:$0xff]   ;;  %v3324_v56 = vcombine.low %v614_v37, %v618_v38 }
  0x8b   : > { %2527 = vmatprep.subr.bf16.mxu0 %v4052_v40  ;;  %v620_v41 = vld [vmem:[%s4483_s21 + $0xf0] sm:$0xff]  ;;  %v622_v50 = vld [vmem:[%s4483_s21 + $0x100] sm:$0xff]  ;;  %v3975_v55 = vld [vmem:[%s4497_s23 + $0x1a8] sm:$0xff]  }
  0x8c   : > { %v3329_v47 = vcombine.high %v616_v39, %v620_v41  ;;  %v626_v51 = vld [vmem:[%s4483_s21 + $0x120] sm:$0xff]  ;;  %v624_v52 = vld [vmem:[%s4483_s21 + $0x110] sm:$0xff] }
  0x8d   : > { %2126 = vmatpush1.bf16.msra.mxu1 %v3940_v57  ;;  %v628_v53 = vld [vmem:[%s4483_s21 + $0x130] sm:$0xff]  ;;  %v3328_v57 = vcombine.low %v616_v39, %v620_v41  ;;  %v3991_v39 = vld [vmem:[%s4497_s23 + $0x1e8] sm:$0xff]  }
  0x8e   : > { %2528 = vmatpush1.bf16.msra.mxu0 %v3941_v58  ;;  %2127 = vmatprep.subr.bf16.mxu1 %v4052_v40  ;;  %v3333_v58 = vcombine.high %v622_v50, %v626_v51  ;;  %v3984_v20 = vld [vmem:[%s4497_s23 + $0xd0] sm:$0xff]  }
  0x8f   : > { %2529 = vmatprep.subr.bf16.mxu0 %v4052_v40  ;;  %v656_v37 = vld [vmem:[%s4483_s21 + $0x210] sm:$0xff] }
  0x90   : > { %v660_v38 = vld [vmem:[%s4483_s21 + $0x230] sm:$0xff] }
  0x91   : > { %2128 = vmatpush1.bf16.msra.mxu1 %v3942_v59  ;;  %v3976_v59 = vld [vmem:[%s4497_s23 + $0xb0] sm:$0xff]  }
  0x92   : > { %2530 = vmatpush1.bf16.msra.mxu0 %v3943_v60  ;;  %2129 = vmatprep.subr.bf16.mxu1 %v4052_v40  ;;  %v3337_v60 = vcombine.high %v624_v52, %v628_v53 }
  0x93   : > { %2531 = vmatprep.subr.bf16.mxu0 %v4052_v40 }
  0x95   : > { %2130 = vmatpush1.bf16.msra.mxu1 %v3944_v61  ;;  %v3977_v61 = vld [vmem:[%s4497_s23 + $0x1b0] sm:$0xff]  }
  0x96   : > { %2532 = vmatpush1.bf16.msra.mxu0 %v3945_v62  ;;  %2131 = vmatprep.subr.bf16.mxu1 %v4052_v40  ;;  %v630_v62 = vld [vmem:[%s4483_s21 + $0x140] sm:$0xff] }
  0x97   : > { %2533 = vmatprep.subr.bf16.mxu0 %v4052_v40 }
  0x99   : > { %2132 = vmatpush1.bf16.msra.mxu1 %v3946_v63  ;;  %v634_v63 = vld [vmem:[%s4483_s21 + $0x160] sm:$0xff] }
  0x9a   : > { %2534 = vmatpush1.bf16.msra.mxu0 %v3947_v0  ;;  %2133 = vmatprep.subr.bf16.mxu1 %v4052_v40  ;;  %v3978_v0 = vld [vmem:[%s4497_s23 + $0xb8] sm:$0xff]  }
  0x9b   : > { %2535 = vmatprep.subr.bf16.mxu0 %v4052_v40 }
  0x9d   : > { %2134 = vmatpush1.bf16.msra.mxu1 %v3948_v1  ;;  %v632_v1 = vld [vmem:[%s4483_s21 + $0x150] sm:$0xff] }
  0x9e   : > { %2536 = vmatpush1.bf16.msra.mxu0 %v3949_v2  ;;  %2135 = vmatprep.subr.bf16.mxu1 %v4052_v40  ;;  %v636_v2 = vld [vmem:[%s4483_s21 + $0x170] sm:$0xff] }
  0x9f   : > { %2537 = vmatprep.subr.bf16.mxu0 %v4052_v40  ;;  %v3344_v17 = vcombine.low %v632_v1, %v636_v2 }
  0xa1   : > { %2136 = vmatpush1.bf16.msra.mxu1 %v3950_v3  ;;  %v3979_v3 = vld [vmem:[%s4497_s23 + $0x1b8] sm:$0xff]  }
  0xa2   : > { %2538 = vmatpush1.bf16.msra.mxu0 %v3951_v4  ;;  %2137 = vmatprep.subr.bf16.mxu1 %v4052_v40  ;;  %v3332_v4 = vcombine.low %v622_v50, %v626_v51  ;;  %v664_v50 = vld [vmem:[%s4483_s21 + $0x250] sm:$0xff] }
  0xa3   : > { %2539 = vmatprep.subr.bf16.mxu0 %v4052_v40  ;;  %v668_v51 = vld [vmem:[%s4483_s21 + $0x270] sm:$0xff] }
  0xa5   : > { %2138 = vmatpush1.bf16.msra.mxu1 %v3952_v5  ;;  %v3336_v5 = vcombine.low %v624_v52, %v628_v53  ;;  %v3995_v52 = vld [vmem:[%s4497_s23 + $0x1f8] sm:$0xff]  }
  0xa6   : > { %2540 = vmatpush1.bf16.msra.mxu0 %v3953_v6  ;;  %2139 = vmatprep.subr.bf16.mxu1 %v4052_v40  ;;  %v3341_v6 = vcombine.high %v630_v62, %v634_v63 }
  0xa7   : > { %2541 = vmatprep.subr.bf16.mxu0 %v4052_v40 }
  0xa9   : > { %2140 = vmatpush1.bf16.msra.mxu1 %v3954_v7  ;;  %v3345_v7 = vcombine.high %v632_v1, %v636_v2  ;;  %v682_v1 = vld [vmem:[%s4483_s21 + $0x2e0] sm:$0xff]  ;;  %v680_v2 = vld [vmem:[%s4483_s21 + $0x2d0] sm:$0xff] }
  0xaa   : > { %2542 = vmatpush1.bf16.msra.mxu0 %v3955_v8  ;;  %2141 = vmatprep.subr.bf16.mxu1 %v4052_v40  ;;  %v3980_v8 = vld [vmem:[%s4497_s23 + $0xc0] sm:$0xff]  }
  0xab   : > { %2543 = vmatprep.subr.bf16.mxu0 %v4052_v40 }
  0xad   : > { %2142 = vmatpush1.bf16.msra.mxu1 %v3956_v9  ;;  %v3981_v9 = vld [vmem:[%s4497_s23 + $0x1c0] sm:$0xff]  }
  0xae   : > { %2544 = vmatpush1.bf16.msra.mxu0 %v3957_v10  ;;  %2143 = vmatprep.subr.bf16.mxu1 %v4052_v40  ;;  %v638_v10 = vld [vmem:[%s4483_s21 + $0x180] sm:$0xff] }
  0xaf   : > { %2545 = vmatprep.subr.bf16.mxu0 %v4052_v40 }
  0xb1   : > { %2144 = vmatpush1.bf16.msra.mxu1 %v3958_v11  ;;  %v642_v11 = vld [vmem:[%s4483_s21 + $0x1a0] sm:$0xff] }
  0xb2   : > { %2546 = vmatpush1.bf16.msra.mxu0 %v3959_v12  ;;  %2145 = vmatprep.subr.bf16.mxu1 %v4052_v40  ;;  %v3982_v12 = vld [vmem:[%s4497_s23 + $0xc8] sm:$0xff]   ;;  %v3349_v18 = vcombine.high %v638_v10, %v642_v11 }
  0xb3   : > { %2547 = vmatprep.subr.bf16.mxu0 %v4052_v40 }
  0xb5   : > { %2146 = vmatpush1.bf16.msra.mxu1 %v3960_v13  ;;  %v640_v13 = vld [vmem:[%s4483_s21 + $0x190] sm:$0xff] }
  0xb6   : > { %2548 = vmatpush1.bf16.msra.mxu0 %v3961_v14  ;;  %2147 = vmatprep.subr.bf16.mxu1 %v4052_v40  ;;  %v644_v14 = vld [vmem:[%s4483_s21 + $0x1b0] sm:$0xff] }
  0xb7   : > { %2549 = vmatprep.subr.bf16.mxu0 %v4052_v40  ;;  %v3353_v19 = vcombine.high %v640_v13, %v644_v14  ;;  %v3352_v29 = vcombine.low %v640_v13, %v644_v14 }
  0xb9   : > { %2148 = vmatpush1.bf16.msra.mxu1 %v3962_v15  ;;  %v3983_v15 = vld [vmem:[%s4497_s23 + $0x1c8] sm:$0xff]  }
  0xba   : > { %2550 = vmatpush1.bf16.msra.mxu0 %v3963_v16  ;;  %2318 = vmatprep.subr.bf16.mxu1 %v4052_v40  ;;  %v3340_v16 = vcombine.low %v630_v62, %v634_v63  ;;  %v3376_v62 = vcombine.low %v664_v50, %v668_v51 }
  0xbb   : > { %2720 = vmatprep.subr.bf16.mxu0 %v4052_v40 }
  0xbc   : > { %2150 = vmatmul.mubr.bf16.vlgmr.msra.gmra.mrb[0].mxu1 %v3300_v44  ;;  %v3316_v44 = vcombine.low %v606_v27, %v610_v28  ;;  %v3987_v27 = vld [vmem:[%s4497_s23 + $0x1d8] sm:$0xff]   ;;  %v3348_v28 = vcombine.low %v638_v10, %v642_v11  ;;  %v688_v10 = vld [vmem:[%s4483_s21 + $0x310] sm:$0xff] }
  0xbd   : > { %2552 = vmatmul.mubr.bf16.vlgmr.msra.gmra.mrb[0].mxu0 %v3304_v48  ;;  %2319 = vmatpush1.bf16.msra.mxu1 %v3964_v21  ;;  %v3972_v48 = vld [vmem:[%s4497_s23 + $0xa0] sm:$0xff]   ;;  %v3985_v21 = vld [vmem:[%s4497_s23 + $0x1d0] sm:$0xff]  }
  0xbe   : > { %2721 = vmatpush1.bf16.msra.mxu0 %v3965_v22  ;;  %2157 = vmatprep.mubr.bf16.mxu1 %v3309_v23  ;;  %v646_v22 = vld [vmem:[%s4483_s21 + $0x1c0] sm:$0xff]  ;;  %v692_v11 = vld [vmem:[%s4483_s21 + $0x330] sm:$0xff] }
  0xbf   : > { %2559 = vmatprep.mubr.bf16.mxu0 %v3313_v24  ;;  %2320 = vmatprep.subr.bf16.mxu1 %v4052_v40  ;;  %v650_v23 = vld [vmem:[%s4483_s21 + $0x1e0] sm:$0xff]  ;;  %v3986_v24 = vld [vmem:[%s4497_s23 + $0xd8] sm:$0xff]  }
  0xc0   : > { %2722 = vmatprep.subr.bf16.mxu0 %v4052_v40  ;;  %v3357_v30 = vcombine.high %v646_v22, %v650_v23  ;;  %v3356_v41 = vcombine.low %v646_v22, %v650_v23 }
  0xc1   : > { %2321 = vmatpush1.bf16.msra.mxu1 %v3966_v25  ;;  %v648_v25 = vld [vmem:[%s4483_s21 + $0x1d0] sm:$0xff] }
  0xc2   : > { %2723 = vmatpush1.bf16.msra.mxu0 %v3967_v26  ;;  %2322 = vmatprep.subr.bf16.mxu1 %v4052_v40  ;;  %v652_v26 = vld [vmem:[%s4483_s21 + $0x1f0] sm:$0xff] }
  0xc3   : > { %2724 = vmatprep.subr.bf16.mxu0 %v4052_v40 }
  0xc4   : > { %2158 = vmatmul.mubr.bf16.gmra.mrb[4].mxu1 %v3308_v31  ;;  %v3361_v31 = vcombine.high %v648_v25, %v652_v26 }
  0xc5   : > { %2560 = vmatmul.mubr.bf16.gmra.mrb[4].mxu0 %v3312_v32  ;;  %2165 = vmatprep.mubr.bf16.mxu1 %v3317_v33  ;;  %v3988_v32 = vld [vmem:[%s4497_s23 + $0xe0] sm:$0xff]  }
  0xc6   : > { %2567 = vmatprep.mubr.bf16.mxu0 %v3321_v34  ;;  %2323 = vmatpush1.bf16.msra.mxu1 %v3968_v35  ;;  %v3989_v33 = vld [vmem:[%s4497_s23 + $0x1e0] sm:$0xff]  }
  0xc7   : > { %2725 = vmatpush1.bf16.msra.mxu0 %v3969_v36  ;;  %2324 = vmatprep.subr.bf16.mxu1 %v4052_v40  ;;  %v654_v34 = vld [vmem:[%s4483_s21 + $0x200] sm:$0xff]  ;;  %v3990_v36 = vld [vmem:[%s4497_s23 + $0xe8] sm:$0xff]  }
  0xc8   : > { %2726 = vmatprep.subr.bf16.mxu0 %v4052_v40  ;;  %v658_v35 = vld [vmem:[%s4483_s21 + $0x220] sm:$0xff] }
  0xc9   : > { %v3364_v53 = vcombine.low %v654_v34, %v658_v35 }
  0xca   : > { %2325 = vmatpush1.bf16.msra.mxu1 %v3970_v42  ;;  %v3360_v42 = vcombine.low %v648_v25, %v652_v26  ;;  %v706_v25 = vld [vmem:[%s4483_s21 + $0x3a0] sm:$0xff]  ;;  %v704_v26 = vld [vmem:[%s4483_s21 + $0x390] sm:$0xff] }
  0xcb   : > { %2727 = vmatpush1.bf16.msra.mxu0 %v3971_v43  ;;  %2326 = vmatprep.subr.bf16.mxu1 %v4052_v40  ;;  %v3365_v43 = vcombine.high %v654_v34, %v658_v35  ;;  %v712_v34 = vld [vmem:[%s4483_s21 + $0x3d0] sm:$0xff] }
  0xcc   : > { %2166 = vmatmul.mubr.bf16.gmra.mrb[8].mxu1 %v3316_v44  ;;  %2728 = vmatprep.subr.bf16.mxu0 %v4052_v40  ;;  %v3369_v44 = vcombine.high %v656_v37, %v660_v38  ;;  %v716_v35 = vld [vmem:[%s4483_s21 + $0x3f0] sm:$0xff] }
  0xcd   : > { %2568 = vmatmul.mubr.bf16.gmra.mrb[8].mxu0 %v3320_v45  ;;  %2173 = vmatprep.mubr.bf16.mxu1 %v3325_v46  ;;  %v3992_v45 = vld [vmem:[%s4497_s23 + $0xf0] sm:$0xff]  }
  0xce   : > { %2575 = vmatprep.mubr.bf16.mxu0 %v3329_v47  ;;  %2327 = vmatpush1.bf16.msra.mxu1 %v3972_v48  ;;  %v3993_v46 = vld [vmem:[%s4497_s23 + $0x1f0] sm:$0xff]   ;;  %v662_v47 = vld [vmem:[%s4483_s21 + $0x240] sm:$0xff] }
  0xcf   : > { %2729 = vmatpush1.bf16.msra.mxu0 %v3973_v49  ;;  %2328 = vmatprep.subr.bf16.mxu1 %v4052_v40  ;;  %v666_v48 = vld [vmem:[%s4483_s21 + $0x260] sm:$0xff]  ;;  %v3994_v49 = vld [vmem:[%s4497_s23 + $0xf8] sm:$0xff]  }
  0xd0   : > { %2730 = vmatprep.subr.bf16.mxu0 %v4052_v40 }
  0xd2   : > { %2329 = vmatpush1.bf16.msra.mxu1 %v3974_v54  ;;  %v3368_v54 = vcombine.low %v656_v37, %v660_v38 }
  0xd3   : > { %2731 = vmatpush1.bf16.msra.mxu0 %v3975_v55  ;;  %2330 = vmatprep.subr.bf16.mxu1 %v4052_v40  ;;  %v3373_v55 = vcombine.high %v662_v47, %v666_v48 }
  0xd4   : > { %2174 = vmatmul.mubr.bf16.gmra.mrb[12].mxu1 %v3324_v56  ;;  %2732 = vmatprep.subr.bf16.mxu0 %v4052_v40  ;;  %v3377_v56 = vcombine.high %v664_v50, %v668_v51  ;;  %v730_v50 = vld [vmem:[%s4483_s21 + $0x460] sm:$0xff]  ;;  %v728_v51 = vld [vmem:[%s4483_s21 + $0x450] sm:$0xff] }
  0xd5   : > { %2576 = vmatmul.mubr.bf16.gmra.mrb[12].mxu0 %v3328_v57  ;;  %2181 = vmatprep.mubr.bf16.mxu1 %v3333_v58  ;;  %v670_v57 = vld [vmem:[%s4483_s21 + $0x280] sm:$0xff] }
  0xd6   : > { %2583 = vmatprep.mubr.bf16.mxu0 %v3337_v60  ;;  %2331 = vmatpush1.bf16.msra.mxu1 %v3976_v59  ;;  %v674_v58 = vld [vmem:[%s4483_s21 + $0x2a0] sm:$0xff]  ;;  %v672_v59 = vld [vmem:[%s4483_s21 + $0x290] sm:$0xff] }
  0xd7   : > { %2733 = vmatpush1.bf16.msra.mxu0 %v3977_v61  ;;  %2332 = vmatprep.subr.bf16.mxu1 %v4052_v40  ;;  %v676_v60 = vld [vmem:[%s4483_s21 + $0x2b0] sm:$0xff]  ;;  %v3372_v61 = vcombine.low %v662_v47, %v666_v48 }
  0xd8   : > { %2734 = vmatprep.subr.bf16.mxu0 %v4052_v40  ;;  %v3385_v63 = vcombine.high %v672_v59, %v676_v60 }
  0xda   : > { %2333 = vmatpush1.bf16.msra.mxu1 %v3978_v0  ;;  %v678_v0 = vld [vmem:[%s4483_s21 + $0x2c0] sm:$0xff] }
  0xdb   : > { %2735 = vmatpush1.bf16.msra.mxu0 %v3979_v3  ;;  %2334 = vmatprep.subr.bf16.mxu1 %v4052_v40  ;;  %v684_v3 = vld [vmem:[%s4483_s21 + $0x2f0] sm:$0xff] }
  0xdc   : > { %2182 = vmatmul.mubr.bf16.gmra.mrb[16].mxu1 %v3332_v4  ;;  %2736 = vmatprep.subr.bf16.mxu0 %v4052_v40  ;;  %v3380_v4 = vcombine.low %v670_v57, %v674_v58  ;;  %v3392_v13 = vcombine.low %v680_v2, %v684_v3 }
  0xdd   : > { %2584 = vmatmul.mubr.bf16.gmra.mrb[16].mxu0 %v3336_v5  ;;  %2189 = vmatprep.mubr.bf16.mxu1 %v3341_v6  ;;  %v3384_v5 = vcombine.low %v672_v59, %v676_v60  ;;  %v3389_v6 = vcombine.high %v678_v0, %v682_v1  ;;  %v736_v59 = vld [vmem:[%s4483_s21 + $0x490] sm:$0xff] }
  0xde   : > { %2591 = vmatprep.mubr.bf16.mxu0 %v3345_v7  ;;  %2335 = vmatpush1.bf16.msra.mxu1 %v3980_v8  ;;  %v3393_v7 = vcombine.high %v680_v2, %v684_v3  ;;  %v686_v8 = vld [vmem:[%s4483_s21 + $0x300] sm:$0xff]  ;;  %v740_v60 = vld [vmem:[%s4483_s21 + $0x4b0] sm:$0xff] }
  0xdf   : > { %2737 = vmatpush1.bf16.msra.mxu0 %v3981_v9  ;;  %2336 = vmatprep.subr.bf16.mxu1 %v4052_v40  ;;  %v690_v9 = vld [vmem:[%s4483_s21 + $0x320] sm:$0xff]  ;;  %v744_v2 = vld [vmem:[%s4483_s21 + $0x4d0] sm:$0xff] }
  0xe0   : > { %2738 = vmatprep.subr.bf16.mxu0 %v4052_v40  ;;  %v3397_v14 = vcombine.high %v686_v8, %v690_v9  ;;  %v748_v3 = vld [vmem:[%s4483_s21 + $0x4f0] sm:$0xff] }
  0xe2   : > { %2337 = vmatpush1.bf16.msra.mxu1 %v3982_v12  ;;  %v3388_v12 = vcombine.low %v678_v0, %v682_v1  ;;  %v742_v0 = vld [vmem:[%s4483_s21 + $0x4c0] sm:$0xff] }
  0xe3   : > { %2739 = vmatpush1.bf16.msra.mxu0 %v3983_v15  ;;  %2338 = vmatprep.subr.bf16.mxu1 %v4052_v40  ;;  %v3401_v15 = vcombine.high %v688_v10, %v692_v11  ;;  %v746_v1 = vld [vmem:[%s4483_s21 + $0x4e0] sm:$0xff] }
  0xe4   : > { %2190 = vmatmul.mubr.bf16.gmra.mrb[20].mxu1 %v3340_v16  ;;  %2740 = vmatprep.subr.bf16.mxu0 %v4052_v40  ;;  %v694_v16 = vld [vmem:[%s4483_s21 + $0x340] sm:$0xff] }
  0xe5   : > { %2592 = vmatmul.mubr.bf16.gmra.mrb[20].mxu0 %v3344_v17  ;;  %2197 = vmatprep.mubr.bf16.mxu1 %v3349_v18  ;;  %v698_v17 = vld [vmem:[%s4483_s21 + $0x360] sm:$0xff]  ;;  %v696_v18 = vld [vmem:[%s4483_s21 + $0x350] sm:$0xff] }
  0xe6   : > { %2599 = vmatprep.mubr.bf16.mxu0 %v3353_v19  ;;  %2339 = vmatpush1.bf16.msra.mxu1 %v3984_v20  ;;  %v700_v19 = vld [vmem:[%s4483_s21 + $0x370] sm:$0xff]  ;;  %v3396_v20 = vcombine.low %v686_v8, %v690_v9  ;;  %v3405_v22 = vcombine.high %v694_v16, %v698_v17  ;;  %v750_v8 = vld [vmem:[%s4483_s21 + $0x500] sm:$0xff] }
  0xe7   : > { %2741 = vmatpush1.bf16.msra.mxu0 %v3985_v21  ;;  %2340 = vmatprep.subr.bf16.mxu1 %v4052_v40  ;;  %v3400_v21 = vcombine.low %v688_v10, %v692_v11  ;;  %v3409_v23 = vcombine.high %v696_v18, %v700_v19  ;;  %v754_v9 = vld [vmem:[%s4483_s21 + $0x520] sm:$0xff]  ;;  %v752_v10 = vld [vmem:[%s4483_s21 + $0x510] sm:$0xff] }
  0xe8   : > { %2742 = vmatprep.subr.bf16.mxu0 %v4052_v40  ;;  %v756_v11 = vld [vmem:[%s4483_s21 + $0x530] sm:$0xff] }
  0xea   : > { %2341 = vmatpush1.bf16.msra.mxu1 %v3986_v24  ;;  %v702_v24 = vld [vmem:[%s4483_s21 + $0x380] sm:$0xff] }
  0xeb   : > { %2743 = vmatpush1.bf16.msra.mxu0 %v3987_v27  ;;  %2342 = vmatprep.subr.bf16.mxu1 %v4052_v40  ;;  %v708_v27 = vld [vmem:[%s4483_s21 + $0x3b0] sm:$0xff] }
  0xec   : > { %2198 = vmatmul.mubr.bf16.gmra.mrb[24].mxu1 %v3348_v28  ;;  %2744 = vmatprep.subr.bf16.mxu0 %v4052_v40  ;;  %v3404_v28 = vcombine.low %v694_v16, %v698_v17  ;;  %v3416_v37 = vcombine.low %v704_v26, %v708_v27  ;;  %v591_v16 = vld [vmem:[%s4483_s21 + $0x8] sm:$0xff] }
  0xed   : > { %2600 = vmatmul.mubr.bf16.gmra.mrb[24].mxu0 %v3352_v29  ;;  %2205 = vmatprep.mubr.bf16.mxu1 %v3357_v30  ;;  %v3408_v29 = vcombine.low %v696_v18, %v700_v19  ;;  %v3413_v30 = vcombine.high %v702_v24, %v706_v25  ;;  %v595_v17 = vld [vmem:[%s4483_s21 + $0x28] sm:$0xff]  ;;  %v593_v18 = vld [vmem:[%s4483_s21 + $0x18] sm:$0xff] }
  0xee   : > { %2607 = vmatprep.mubr.bf16.mxu0 %v3361_v31  ;;  %2343 = vmatpush1.bf16.msra.mxu1 %v3988_v32  ;;  %v3417_v31 = vcombine.high %v704_v26, %v708_v27  ;;  %v710_v32 = vld [vmem:[%s4483_s21 + $0x3c0] sm:$0xff]  ;;  %v597_v19 = vld [vmem:[%s4483_s21 + $0x38] sm:$0xff] }
  0xef   : > { %2745 = vmatpush1.bf16.msra.mxu0 %v3989_v33  ;;  %2344 = vmatprep.subr.bf16.mxu1 %v4052_v40  ;;  %v714_v33 = vld [vmem:[%s4483_s21 + $0x3e0] sm:$0xff]  ;;  %v601_v26 = vld [vmem:[%s4483_s21 + $0x58] sm:$0xff] }
  0xf0   : > { %2746 = vmatprep.subr.bf16.mxu0 %v4052_v40  ;;  %v3421_v38 = vcombine.high %v710_v32, %v714_v33  ;;  %v605_v27 = vld [vmem:[%s4483_s21 + $0x78] sm:$0xff] }
  0xf2   : > { %2345 = vmatpush1.bf16.msra.mxu1 %v3990_v36  ;;  %v3412_v36 = vcombine.low %v702_v24, %v706_v25  ;;  %v599_v24 = vld [vmem:[%s4483_s21 + $0x48] sm:$0xff] }
  0xf3   : > { %2747 = vmatpush1.bf16.msra.mxu0 %v3991_v39  ;;  %2346 = vmatprep.subr.bf16.mxu1 %v4052_v40  ;;  %v3425_v39 = vcombine.high %v712_v34, %v716_v35  ;;  %v603_v25 = vld [vmem:[%s4483_s21 + $0x68] sm:$0xff] }
  0xf4   : > { %2206 = vmatmul.mubr.bf16.gmra.mrb[28].mxu1 %v3356_v41  ;;  %2748 = vmatprep.subr.bf16.mxu0 %v4052_v40  ;;  %v718_v41 = vld [vmem:[%s4483_s21 + $0x400] sm:$0xff] }
  0xf5   : > { %2608 = vmatmul.mubr.bf16.gmra.mrb[28].mxu0 %v3360_v42  ;;  %2213 = vmatprep.mubr.bf16.mxu1 %v3365_v43  ;;  %v722_v42 = vld [vmem:[%s4483_s21 + $0x420] sm:$0xff]  ;;  %v720_v43 = vld [vmem:[%s4483_s21 + $0x410] sm:$0xff] }
  0xf6   : > { %2615 = vmatprep.mubr.bf16.mxu0 %v3369_v44  ;;  %2347 = vmatpush1.bf16.msra.mxu1 %v3992_v45  ;;  %v724_v44 = vld [vmem:[%s4483_s21 + $0x430] sm:$0xff]  ;;  %v3420_v45 = vcombine.low %v710_v32, %v714_v33  ;;  %v3429_v47 = vcombine.high %v718_v41, %v722_v42  ;;  %v607_v32 = vld [vmem:[%s4483_s21 + $0x88] sm:$0xff] }
  0xf7   : > { %2749 = vmatpush1.bf16.msra.mxu0 %v3993_v46  ;;  %2348 = vmatprep.subr.bf16.mxu1 %v4052_v40  ;;  %v3424_v46 = vcombine.low %v712_v34, %v716_v35  ;;  %v3433_v48 = vcombine.high %v720_v43, %v724_v44  ;;  %v611_v33 = vld [vmem:[%s4483_s21 + $0xa8] sm:$0xff]  ;;  %v609_v34 = vld [vmem:[%s4483_s21 + $0x98] sm:$0xff] }
  0xf8   : > { %2750 = vmatprep.subr.bf16.mxu0 %v4052_v40  ;;  %v3381_v40 = vcombine.high %v670_v57, %v674_v58  ;;  %v734_v57 = vld [vmem:[%s4483_s21 + $0x480] sm:$0xff]  ;;  %v613_v35 = vld [vmem:[%s4483_s21 + $0xb8] sm:$0xff] }
  0xf9   : > { %v738_v58 = vld [vmem:[%s4483_s21 + $0x4a0] sm:$0xff] }
  0xfa   : > { %2349 = vmatpush1.bf16.msra.mxu1 %v3994_v49  ;;  %v726_v49 = vld [vmem:[%s4483_s21 + $0x440] sm:$0xff] }
  0xfb   : > { %2751 = vmatpush1.bf16.msra.mxu0 %v3995_v52  ;;  %v732_v52 = vld [vmem:[%s4483_s21 + $0x470] sm:$0xff] }
  0xfc   : > { %2214 = vmatmul.mubr.bf16.gmra.mrb[32].mxu1 %v3364_v53  ;;  %v3428_v53 = vcombine.low %v718_v41, %v722_v42  ;;  %v615_v41 = vld [vmem:[%s4483_s21 + $0xc8] sm:$0xff] }
  0xfd   : > { %2616 = vmatmul.mubr.bf16.gmra.mrb[32].mxu0 %v3368_v54  ;;  %2221 = vmatprep.mubr.bf16.mxu1 %v3373_v55  ;;  %v3432_v54 = vcombine.low %v720_v43, %v724_v44  ;;  %v3437_v55 = vcombine.high %v726_v49, %v730_v50  ;;  %v619_v42 = vld [vmem:[%s4483_s21 + $0xe8] sm:$0xff]  ;;  %v617_v43 = vld [vmem:[%s4483_s21 + $0xd8] sm:$0xff] }
  0xfe   : > { %2623 = vmatprep.mubr.bf16.mxu0 %v3377_v56  ;;  %v3441_v56 = vcombine.high %v728_v51, %v732_v52  ;;  %v621_v44 = vld [vmem:[%s4483_s21 + $0xf8] sm:$0xff] }
 0x104   : > { %2222 = vmatmul.mubr.bf16.gmra.mrb[36].mxu1 %v3372_v61  ;;  %v3436_v61 = vcombine.low %v726_v49, %v730_v50  ;;  %v623_v49 = vld [vmem:[%s4483_s21 + $0x108] sm:$0xff] }
 0x105   : > { %2624 = vmatmul.mubr.bf16.gmra.mrb[36].mxu0 %v3376_v62  ;;  %2229 = vmatprep.mubr.bf16.mxu1 %v3381_v40  ;;  %v3440_v62 = vcombine.low %v728_v51, %v732_v52  ;;  %v3445_v40 = vcombine.high %v734_v57, %v738_v58  ;;  %v627_v50 = vld [vmem:[%s4483_s21 + $0x128] sm:$0xff]  ;;  %v625_v51 = vld [vmem:[%s4483_s21 + $0x118] sm:$0xff] }
 0x106   : > { %2631 = vmatprep.mubr.bf16.mxu0 %v3385_v63  ;;  %v3449_v63 = vcombine.high %v736_v59, %v740_v60  ;;  %v629_v52 = vld [vmem:[%s4483_s21 + $0x138] sm:$0xff] }
 0x10c   : > { %2230 = vmatmul.mubr.bf16.gmra.mrb[40].mxu1 %v3380_v4  ;;  %v3444_v4 = vcombine.low %v734_v57, %v738_v58  ;;  %v631_v57 = vld [vmem:[%s4483_s21 + $0x148] sm:$0xff] }
 0x10d   : > { %2632 = vmatmul.mubr.bf16.gmra.mrb[40].mxu0 %v3384_v5  ;;  %2237 = vmatprep.mubr.bf16.mxu1 %v3389_v6  ;;  %v3448_v5 = vcombine.low %v736_v59, %v740_v60  ;;  %v3453_v6 = vcombine.high %v742_v0, %v746_v1  ;;  %v635_v58 = vld [vmem:[%s4483_s21 + $0x168] sm:$0xff]  ;;  %v633_v59 = vld [vmem:[%s4483_s21 + $0x158] sm:$0xff] }
 0x10e   : > { %2639 = vmatprep.mubr.bf16.mxu0 %v3393_v7  ;;  %v3457_v7 = vcombine.high %v744_v2, %v748_v3  ;;  %v637_v60 = vld [vmem:[%s4483_s21 + $0x178] sm:$0xff] }
 0x114   : > { %2238 = vmatmul.mubr.bf16.gmra.mrb[44].mxu1 %v3388_v12  ;;  %v3452_v12 = vcombine.low %v742_v0, %v746_v1  ;;  %v639_v0 = vld [vmem:[%s4483_s21 + $0x188] sm:$0xff] }
 0x115   : > { %2640 = vmatmul.mubr.bf16.gmra.mrb[44].mxu0 %v3392_v13  ;;  %2245 = vmatprep.mubr.bf16.mxu1 %v3397_v14  ;;  %v3456_v13 = vcombine.low %v744_v2, %v748_v3  ;;  %v3461_v14 = vcombine.high %v750_v8, %v754_v9  ;;  %v643_v1 = vld [vmem:[%s4483_s21 + $0x1a8] sm:$0xff]  ;;  %v641_v2 = vld [vmem:[%s4483_s21 + $0x198] sm:$0xff] }
 0x116   : > { %2647 = vmatprep.mubr.bf16.mxu0 %v3401_v15  ;;  %v3465_v15 = vcombine.high %v752_v10, %v756_v11  ;;  %v645_v3 = vld [vmem:[%s4483_s21 + $0x1b8] sm:$0xff] }
 0x11c   : > { %2246 = vmatmul.mubr.bf16.gmra.mrb[48].mxu1 %v3396_v20  ;;  %v3460_v20 = vcombine.low %v750_v8, %v754_v9  ;;  %v647_v8 = vld [vmem:[%s4483_s21 + $0x1c8] sm:$0xff] }
 0x11d   : > { %2648 = vmatmul.mubr.bf16.gmra.mrb[48].mxu0 %v3400_v21  ;;  %2253 = vmatprep.mubr.bf16.mxu1 %v3405_v22  ;;  %v3464_v21 = vcombine.low %v752_v10, %v756_v11  ;;  %v3303_v22 = vcombine.high %v591_v16, %v595_v17  ;;  %v651_v9 = vld [vmem:[%s4483_s21 + $0x1e8] sm:$0xff]  ;;  %v649_v10 = vld [vmem:[%s4483_s21 + $0x1d8] sm:$0xff] }
 0x11e   : > { %2655 = vmatprep.mubr.bf16.mxu0 %v3409_v23  ;;  %v3307_v23 = vcombine.high %v593_v18, %v597_v19  ;;  %v653_v11 = vld [vmem:[%s4483_s21 + $0x1f8] sm:$0xff] }
 0x124   : > { %2254 = vmatmul.mubr.bf16.gmra.mrb[52].mxu1 %v3404_v28  ;;  %v3302_v28 = vcombine.low %v591_v16, %v595_v17  ;;  %v655_v16 = vld [vmem:[%s4483_s21 + $0x208] sm:$0xff] }
 0x125   : > { %2656 = vmatmul.mubr.bf16.gmra.mrb[52].mxu0 %v3408_v29  ;;  %2261 = vmatprep.mubr.bf16.mxu1 %v3413_v30  ;;  %v3306_v29 = vcombine.low %v593_v18, %v597_v19  ;;  %v3311_v30 = vcombine.high %v599_v24, %v603_v25  ;;  %v659_v17 = vld [vmem:[%s4483_s21 + $0x228] sm:$0xff]  ;;  %v657_v18 = vld [vmem:[%s4483_s21 + $0x218] sm:$0xff] }
 0x126   : > { %2663 = vmatprep.mubr.bf16.mxu0 %v3417_v31  ;;  %v3315_v31 = vcombine.high %v601_v26, %v605_v27  ;;  %v661_v19 = vld [vmem:[%s4483_s21 + $0x238] sm:$0xff] }
 0x12c   : > { %2262 = vmatmul.mubr.bf16.gmra.mrb[56].mxu1 %v3412_v36  ;;  %v3310_v36 = vcombine.low %v599_v24, %v603_v25  ;;  %v663_v24 = vld [vmem:[%s4483_s21 + $0x248] sm:$0xff] }
 0x12d   : > { %2664 = vmatmul.mubr.bf16.gmra.mrb[56].mxu0 %v3416_v37  ;;  %2269 = vmatprep.mubr.bf16.mxu1 %v3421_v38  ;;  %v3314_v37 = vcombine.low %v601_v26, %v605_v27  ;;  %v3319_v38 = vcombine.high %v607_v32, %v611_v33  ;;  %v667_v25 = vld [vmem:[%s4483_s21 + $0x268] sm:$0xff]  ;;  %v665_v26 = vld [vmem:[%s4483_s21 + $0x258] sm:$0xff] }
 0x12e   : > { %2671 = vmatprep.mubr.bf16.mxu0 %v3425_v39  ;;  %v3323_v39 = vcombine.high %v609_v34, %v613_v35  ;;  %v669_v27 = vld [vmem:[%s4483_s21 + $0x278] sm:$0xff] }
 0x134   : > { %2270 = vmatmul.mubr.bf16.gmra.mrb[60].mxu1 %v3420_v45  ;;  %v3318_v45 = vcombine.low %v607_v32, %v611_v33  ;;  %v671_v32 = vld [vmem:[%s4483_s21 + $0x288] sm:$0xff] }
 0x135   : > { %2672 = vmatmul.mubr.bf16.gmra.mrb[60].mxu0 %v3424_v46  ;;  %2277 = vmatprep.mubr.bf16.mxu1 %v3429_v47  ;;  %v3322_v46 = vcombine.low %v609_v34, %v613_v35  ;;  %v3327_v47 = vcombine.high %v615_v41, %v619_v42  ;;  %v675_v33 = vld [vmem:[%s4483_s21 + $0x2a8] sm:$0xff]  ;;  %v673_v34 = vld [vmem:[%s4483_s21 + $0x298] sm:$0xff] }
 0x136   : > { %2679 = vmatprep.mubr.bf16.mxu0 %v3433_v48  ;;  %v3331_v48 = vcombine.high %v617_v43, %v621_v44  ;;  %v677_v35 = vld [vmem:[%s4483_s21 + $0x2b8] sm:$0xff] }
 0x13c   : > { %2278 = vmatmul.mubr.bf16.gmra.mrb[64].mxu1 %v3428_v53  ;;  %v3326_v53 = vcombine.low %v615_v41, %v619_v42  ;;  %v679_v41 = vld [vmem:[%s4483_s21 + $0x2c8] sm:$0xff] }
 0x13d   : > { %2680 = vmatmul.mubr.bf16.gmra.mrb[64].mxu0 %v3432_v54  ;;  %2285 = vmatprep.mubr.bf16.mxu1 %v3437_v55  ;;  %v3330_v54 = vcombine.low %v617_v43, %v621_v44  ;;  %v3335_v55 = vcombine.high %v623_v49, %v627_v50  ;;  %v683_v42 = vld [vmem:[%s4483_s21 + $0x2e8] sm:$0xff]  ;;  %v681_v43 = vld [vmem:[%s4483_s21 + $0x2d8] sm:$0xff] }
 0x13e   : > { %2687 = vmatprep.mubr.bf16.mxu0 %v3441_v56  ;;  %v3339_v56 = vcombine.high %v625_v51, %v629_v52  ;;  %v685_v44 = vld [vmem:[%s4483_s21 + $0x2f8] sm:$0xff] }
 0x144   : > { %2286 = vmatmul.mubr.bf16.gmra.mrb[68].mxu1 %v3436_v61  ;;  %v3334_v61 = vcombine.low %v623_v49, %v627_v50  ;;  %v687_v49 = vld [vmem:[%s4483_s21 + $0x308] sm:$0xff] }
 0x145   : > { %2688 = vmatmul.mubr.bf16.gmra.mrb[68].mxu0 %v3440_v62  ;;  %2293 = vmatprep.mubr.bf16.mxu1 %v3445_v40  ;;  %v3338_v62 = vcombine.low %v625_v51, %v629_v52  ;;  %v3343_v40 = vcombine.high %v631_v57, %v635_v58  ;;  %v691_v50 = vld [vmem:[%s4483_s21 + $0x328] sm:$0xff]  ;;  %v689_v51 = vld [vmem:[%s4483_s21 + $0x318] sm:$0xff] }
 0x146   : > { %2695 = vmatprep.mubr.bf16.mxu0 %v3449_v63  ;;  %v3347_v63 = vcombine.high %v633_v59, %v637_v60  ;;  %v693_v52 = vld [vmem:[%s4483_s21 + $0x338] sm:$0xff] }
 0x14c   : > { %2294 = vmatmul.mubr.bf16.gmra.mrb[72].mxu1 %v3444_v4  ;;  %v3342_v4 = vcombine.low %v631_v57, %v635_v58  ;;  %v695_v57 = vld [vmem:[%s4483_s21 + $0x348] sm:$0xff] }
 0x14d   : > { %2696 = vmatmul.mubr.bf16.gmra.mrb[72].mxu0 %v3448_v5  ;;  %2301 = vmatprep.mubr.bf16.mxu1 %v3453_v6  ;;  %v3346_v5 = vcombine.low %v633_v59, %v637_v60  ;;  %v3351_v6 = vcombine.high %v639_v0, %v643_v1  ;;  %v699_v58 = vld [vmem:[%s4483_s21 + $0x368] sm:$0xff]  ;;  %v697_v59 = vld [vmem:[%s4483_s21 + $0x358] sm:$0xff] }
 0x14e   : > { %2703 = vmatprep.mubr.bf16.mxu0 %v3457_v7  ;;  %v3355_v7 = vcombine.high %v641_v2, %v645_v3  ;;  %v701_v60 = vld [vmem:[%s4483_s21 + $0x378] sm:$0xff] }
 0x154   : > { %2302 = vmatmul.mubr.bf16.gmra.mrb[76].mxu1 %v3452_v12  ;;  %v3350_v12 = vcombine.low %v639_v0, %v643_v1  ;;  %v703_v0 = vld [vmem:[%s4483_s21 + $0x388] sm:$0xff] }
 0x155   : > { %2704 = vmatmul.mubr.bf16.gmra.mrb[76].mxu0 %v3456_v13  ;;  %2309 = vmatprep.mubr.bf16.mxu1 %v3461_v14  ;;  %v3354_v13 = vcombine.low %v641_v2, %v645_v3  ;;  %v3359_v14 = vcombine.high %v647_v8, %v651_v9  ;;  %v707_v1 = vld [vmem:[%s4483_s21 + $0x3a8] sm:$0xff]  ;;  %v705_v2 = vld [vmem:[%s4483_s21 + $0x398] sm:$0xff] }
 0x156   : > { %2711 = vmatprep.mubr.bf16.mxu0 %v3465_v15  ;;  %v3363_v15 = vcombine.high %v649_v10, %v653_v11  ;;  %v709_v3 = vld [vmem:[%s4483_s21 + $0x3b8] sm:$0xff] }
 0x15c   : > { %2310 = vmatmul.mubr.bf16.gmra.mrb[80].mxu1 %v3460_v20  ;;  %v3358_v20 = vcombine.low %v647_v8, %v651_v9  ;;  %v711_v8 = vld [vmem:[%s4483_s21 + $0x3c8] sm:$0xff] }
 0x15d   : > { %2712 = vmatmul.mubr.bf16.gmra.mrb[80].mxu0 %v3464_v21  ;;  %2350 = vmatprep.mubr.bf16.mxu1 %v3303_v22  ;;  %v3362_v21 = vcombine.low %v649_v10, %v653_v11  ;;  %v3367_v22 = vcombine.high %v655_v16, %v659_v17  ;;  %v715_v9 = vld [vmem:[%s4483_s21 + $0x3e8] sm:$0xff]  ;;  %v713_v10 = vld [vmem:[%s4483_s21 + $0x3d8] sm:$0xff] }
 0x15e   : > { %2752 = vmatprep.mubr.bf16.mxu0 %v3307_v23  ;;  %v3371_v23 = vcombine.high %v657_v18, %v661_v19  ;;  %v717_v11 = vld [vmem:[%s4483_s21 + $0x3f8] sm:$0xff] }
 0x164   : > { %2351 = vmatmul.mubr.bf16.vlgmr.msra.gmra.mrb[0].mxu1 %v3302_v28  ;;  %v3366_v28 = vcombine.low %v655_v16, %v659_v17  ;;  %v719_v16 = vld [vmem:[%s4483_s21 + $0x408] sm:$0xff] }
 0x165   : > { %2753 = vmatmul.mubr.bf16.vlgmr.msra.gmra.mrb[0].mxu0 %v3306_v29  ;;  %2358 = vmatprep.mubr.bf16.mxu1 %v3311_v30  ;;  %v3370_v29 = vcombine.low %v657_v18, %v661_v19  ;;  %v3375_v30 = vcombine.high %v663_v24, %v667_v25  ;;  %v723_v17 = vld [vmem:[%s4483_s21 + $0x428] sm:$0xff]  ;;  %v721_v18 = vld [vmem:[%s4483_s21 + $0x418] sm:$0xff] }
 0x166   : > { %2760 = vmatprep.mubr.bf16.mxu0 %v3315_v31  ;;  %v3379_v31 = vcombine.high %v665_v26, %v669_v27  ;;  %v725_v19 = vld [vmem:[%s4483_s21 + $0x438] sm:$0xff] }
 0x16c   : > { %2359 = vmatmul.mubr.bf16.gmra.mrb[4].mxu1 %v3310_v36  ;;  %v3374_v36 = vcombine.low %v663_v24, %v667_v25  ;;  %v727_v24 = vld [vmem:[%s4483_s21 + $0x448] sm:$0xff] }
 0x16d   : > { %2761 = vmatmul.mubr.bf16.gmra.mrb[4].mxu0 %v3314_v37  ;;  %2366 = vmatprep.mubr.bf16.mxu1 %v3319_v38  ;;  %v3378_v37 = vcombine.low %v665_v26, %v669_v27  ;;  %v3383_v38 = vcombine.high %v671_v32, %v675_v33  ;;  %v731_v25 = vld [vmem:[%s4483_s21 + $0x468] sm:$0xff]  ;;  %v729_v26 = vld [vmem:[%s4483_s21 + $0x458] sm:$0xff] }
 0x16e   : > { %2768 = vmatprep.mubr.bf16.mxu0 %v3323_v39  ;;  %v3387_v39 = vcombine.high %v673_v34, %v677_v35  ;;  %v733_v27 = vld [vmem:[%s4483_s21 + $0x478] sm:$0xff] }
 0x174   : > { %2367 = vmatmul.mubr.bf16.gmra.mrb[8].mxu1 %v3318_v45  ;;  %v3382_v45 = vcombine.low %v671_v32, %v675_v33  ;;  %v735_v32 = vld [vmem:[%s4483_s21 + $0x488] sm:$0xff] }
 0x175   : > { %2769 = vmatmul.mubr.bf16.gmra.mrb[8].mxu0 %v3322_v46  ;;  %2374 = vmatprep.mubr.bf16.mxu1 %v3327_v47  ;;  %v3386_v46 = vcombine.low %v673_v34, %v677_v35  ;;  %v3391_v47 = vcombine.high %v679_v41, %v683_v42  ;;  %v739_v33 = vld [vmem:[%s4483_s21 + $0x4a8] sm:$0xff]  ;;  %v737_v34 = vld [vmem:[%s4483_s21 + $0x498] sm:$0xff] }
 0x176   : > { %2776 = vmatprep.mubr.bf16.mxu0 %v3331_v48  ;;  %v3395_v48 = vcombine.high %v681_v43, %v685_v44  ;;  %v741_v35 = vld [vmem:[%s4483_s21 + $0x4b8] sm:$0xff] }
 0x17c   : > { %2375 = vmatmul.mubr.bf16.gmra.mrb[12].mxu1 %v3326_v53  ;;  %v3390_v53 = vcombine.low %v679_v41, %v683_v42  ;;  %v743_v41 = vld [vmem:[%s4483_s21 + $0x4c8] sm:$0xff] }
 0x17d   : > { %2777 = vmatmul.mubr.bf16.gmra.mrb[12].mxu0 %v3330_v54  ;;  %2382 = vmatprep.mubr.bf16.mxu1 %v3335_v55  ;;  %v3394_v54 = vcombine.low %v681_v43, %v685_v44  ;;  %v3399_v55 = vcombine.high %v687_v49, %v691_v50  ;;  %v747_v42 = vld [vmem:[%s4483_s21 + $0x4e8] sm:$0xff]  ;;  %v745_v43 = vld [vmem:[%s4483_s21 + $0x4d8] sm:$0xff] }
 0x17e   : > { %2784 = vmatprep.mubr.bf16.mxu0 %v3339_v56  ;;  %v3403_v56 = vcombine.high %v689_v51, %v693_v52  ;;  %v749_v44 = vld [vmem:[%s4483_s21 + $0x4f8] sm:$0xff] }
 0x184   : > { %2383 = vmatmul.mubr.bf16.gmra.mrb[16].mxu1 %v3334_v61  ;;  %v3398_v61 = vcombine.low %v687_v49, %v691_v50  ;;  %v751_v49 = vld [vmem:[%s4483_s21 + $0x508] sm:$0xff] }
 0x185   : > { %2785 = vmatmul.mubr.bf16.gmra.mrb[16].mxu0 %v3338_v62  ;;  %2390 = vmatprep.mubr.bf16.mxu1 %v3343_v40  ;;  %v3402_v62 = vcombine.low %v689_v51, %v693_v52  ;;  %v3407_v40 = vcombine.high %v695_v57, %v699_v58  ;;  %v755_v50 = vld [vmem:[%s4483_s21 + $0x528] sm:$0xff]  ;;  %v753_v51 = vld [vmem:[%s4483_s21 + $0x518] sm:$0xff] }
 0x186   : > { %2792 = vmatprep.mubr.bf16.mxu0 %v3347_v63  ;;  %v3411_v63 = vcombine.high %v697_v59, %v701_v60  ;;  %v757_v52 = vld [vmem:[%s4483_s21 + $0x538] sm:$0xff] }
 0x18c   : > { %2391 = vmatmul.mubr.bf16.gmra.mrb[20].mxu1 %v3342_v4  ;;  %v3406_v4 = vcombine.low %v695_v57, %v699_v58  ;;  %v3462_v57 = vcombine.low %v751_v49, %v755_v50  ;;  %v3466_v58 = vcombine.low %v753_v51, %v757_v52 }
 0x18d   : > { %2793 = vmatmul.mubr.bf16.gmra.mrb[20].mxu0 %v3346_v5  ;;  %2398 = vmatprep.mubr.bf16.mxu1 %v3351_v6  ;;  %v3410_v5 = vcombine.low %v697_v59, %v701_v60  ;;  %v3415_v6 = vcombine.high %v703_v0, %v707_v1  ;;  %v4812_v59 = vld [vmem:[%s578_s28] ss:$0 sm:$0xff] }
 0x18e   : > { %2800 = vmatprep.mubr.bf16.mxu0 %v3355_v7  ;;  %v3419_v7 = vcombine.high %v705_v2, %v709_v3 }
 0x194   : > { %2399 = vmatmul.mubr.bf16.gmra.mrb[24].mxu1 %v3350_v12  ;;  %v3414_v12 = vcombine.low %v703_v0, %v707_v1 }
 0x195   : > { %2801 = vmatmul.mubr.bf16.gmra.mrb[24].mxu0 %v3354_v13  ;;  %2406 = vmatprep.mubr.bf16.mxu1 %v3359_v14  ;;  %v3418_v13 = vcombine.low %v705_v2, %v709_v3  ;;  %v3423_v14 = vcombine.high %v711_v8, %v715_v9 }
 0x196   : > { %2808 = vmatprep.mubr.bf16.mxu0 %v3363_v15  ;;  %v3427_v15 = vcombine.high %v713_v10, %v717_v11 }
 0x19c   : > { %2407 = vmatmul.mubr.bf16.gmra.mrb[28].mxu1 %v3358_v20  ;;  %v3422_v20 = vcombine.low %v711_v8, %v715_v9 }
 0x19d   : > { %2809 = vmatmul.mubr.bf16.gmra.mrb[28].mxu0 %v3362_v21  ;;  %2414 = vmatprep.mubr.bf16.mxu1 %v3367_v22  ;;  %v3426_v21 = vcombine.low %v713_v10, %v717_v11  ;;  %v3431_v22 = vcombine.high %v719_v16, %v723_v17 }
 0x19e   : > { %2816 = vmatprep.mubr.bf16.mxu0 %v3371_v23  ;;  %v3435_v23 = vcombine.high %v721_v18, %v725_v19 }
 0x1a4   : > { %2415 = vmatmul.mubr.bf16.gmra.mrb[32].mxu1 %v3366_v28  ;;  %v3430_v28 = vcombine.low %v719_v16, %v723_v17 }
 0x1a5   : > { %2817 = vmatmul.mubr.bf16.gmra.mrb[32].mxu0 %v3370_v29  ;;  %2422 = vmatprep.mubr.bf16.mxu1 %v3375_v30  ;;  %v3434_v29 = vcombine.low %v721_v18, %v725_v19  ;;  %v3439_v30 = vcombine.high %v727_v24, %v731_v25 }
 0x1a6   : > { %2824 = vmatprep.mubr.bf16.mxu0 %v3379_v31  ;;  %v3443_v31 = vcombine.high %v729_v26, %v733_v27 }
 0x1ac   : > { %2423 = vmatmul.mubr.bf16.gmra.mrb[36].mxu1 %v3374_v36  ;;  %v3438_v36 = vcombine.low %v727_v24, %v731_v25 }
 0x1ad   : > { %2825 = vmatmul.mubr.bf16.gmra.mrb[36].mxu0 %v3378_v37  ;;  %2430 = vmatprep.mubr.bf16.mxu1 %v3383_v38  ;;  %v3442_v37 = vcombine.low %v729_v26, %v733_v27  ;;  %v3447_v38 = vcombine.high %v735_v32, %v739_v33 }
 0x1ae   : > { %2832 = vmatprep.mubr.bf16.mxu0 %v3387_v39  ;;  %v3451_v39 = vcombine.high %v737_v34, %v741_v35 }
 0x1b4   : > { %2431 = vmatmul.mubr.bf16.gmra.mrb[40].mxu1 %v3382_v45  ;;  %v3446_v45 = vcombine.low %v735_v32, %v739_v33 }
 0x1b5   : > { %2833 = vmatmul.mubr.bf16.gmra.mrb[40].mxu0 %v3386_v46  ;;  %2438 = vmatprep.mubr.bf16.mxu1 %v3391_v47  ;;  %v3450_v46 = vcombine.low %v737_v34, %v741_v35  ;;  %v3455_v47 = vcombine.high %v743_v41, %v747_v42 }
 0x1b6   : > { %2840 = vmatprep.mubr.bf16.mxu0 %v3395_v48  ;;  %v3459_v48 = vcombine.high %v745_v43, %v749_v44 }
 0x1bc   : > { %2439 = vmatmul.mubr.bf16.gmra.mrb[44].mxu1 %v3390_v53  ;;  %v3454_v53 = vcombine.low %v743_v41, %v747_v42 }
 0x1bd   : > { %2841 = vmatmul.mubr.bf16.gmra.mrb[44].mxu0 %v3394_v54  ;;  %2446 = vmatprep.mubr.bf16.mxu1 %v3399_v55  ;;  %v3458_v54 = vcombine.low %v745_v43, %v749_v44  ;;  %v3463_v55 = vcombine.high %v751_v49, %v755_v50 }
 0x1be   : > { %2848 = vmatprep.mubr.bf16.mxu0 %v3403_v56  ;;  %v3467_v56 = vcombine.high %v753_v51, %v757_v52 }
 0x1c4   : > { %2447 = vmatmul.mubr.bf16.gmra.mrb[48].mxu1 %v3398_v61 }
 0x1c5   : > { %2849 = vmatmul.mubr.bf16.gmra.mrb[48].mxu0 %v3402_v62  ;;  %2454 = vmatprep.mubr.bf16.mxu1 %v3407_v40 }
 0x1c6   : > { %2856 = vmatprep.mubr.bf16.mxu0 %v3411_v63 }
 0x1cc   : > { %2455 = vmatmul.mubr.bf16.gmra.mrb[52].mxu1 %v3406_v4 }
 0x1cd   : > { %2857 = vmatmul.mubr.bf16.gmra.mrb[52].mxu0 %v3410_v5  ;;  %2462 = vmatprep.mubr.bf16.mxu1 %v3415_v6 }
 0x1ce   : > { %2864 = vmatprep.mubr.bf16.mxu0 %v3419_v7 }
 0x1d4   : > { %2463 = vmatmul.mubr.bf16.gmra.mrb[56].mxu1 %v3414_v12 }
 0x1d5   : > { %2865 = vmatmul.mubr.bf16.gmra.mrb[56].mxu0 %v3418_v13  ;;  %2470 = vmatprep.mubr.bf16.mxu1 %v3423_v14 }
 0x1d6   : > { %2872 = vmatprep.mubr.bf16.mxu0 %v3427_v15 }
 0x1dc   : > { %2471 = vmatmul.mubr.bf16.gmra.mrb[60].mxu1 %v3422_v20 }
 0x1dd   : > { %2873 = vmatmul.mubr.bf16.gmra.mrb[60].mxu0 %v3426_v21  ;;  %2478 = vmatprep.mubr.bf16.mxu1 %v3431_v22 }
 0x1de   : > { %2880 = vmatprep.mubr.bf16.mxu0 %v3435_v23 }
 0x1e4   : > { %2479 = vmatmul.mubr.bf16.gmra.mrb[64].mxu1 %v3430_v28 }
 0x1e5   : > { %2881 = vmatmul.mubr.bf16.gmra.mrb[64].mxu0 %v3434_v29  ;;  %2486 = vmatprep.mubr.bf16.mxu1 %v3439_v30 }
 0x1e6   : > { %2888 = vmatprep.mubr.bf16.mxu0 %v3443_v31 }
 0x1ec   : > { %2487 = vmatmul.mubr.bf16.gmra.mrb[68].mxu1 %v3438_v36 }
 0x1ed   : > { %2889 = vmatmul.mubr.bf16.gmra.mrb[68].mxu0 %v3442_v37  ;;  %2494 = vmatprep.mubr.bf16.mxu1 %v3447_v38 }
 0x1ee   : > { %2896 = vmatprep.mubr.bf16.mxu0 %v3451_v39 }
 0x1f4   : > { %2495 = vmatmul.mubr.bf16.gmra.mrb[72].mxu1 %v3446_v45 }
 0x1f5   : > { %2897 = vmatmul.mubr.bf16.gmra.mrb[72].mxu0 %v3450_v46  ;;  %2502 = vmatprep.mubr.bf16.mxu1 %v3455_v47 }
 0x1f6   : > { %2904 = vmatprep.mubr.bf16.mxu0 %v3459_v48 }
 0x1fc   : > { %2503 = vmatmul.mubr.bf16.gmra.mrb[76].mxu1 %v3454_v53 }
 0x1fd   : > { %2905 = vmatmul.mubr.bf16.gmra.mrb[76].mxu0 %v3458_v54  ;;  %2510 = vmatprep.mubr.bf16.mxu1 %v3463_v55 }
 0x1fe   : > { %2912 = vmatprep.mubr.bf16.mxu0 %v3467_v56 }
 0x204   : > { %2511 = vmatmul.mubr.bf16.gmra.mrb[80].mxu1 %v3462_v57 }
 0x205   : > { %2913 = vmatmul.mubr.bf16.gmra.mrb[80].mxu0 %v3466_v58 }
 0x237   : > { %v2352_v60 = vpop.f32.mrb[0].mxu1 }
 0x238   : > { %v3620_v61 = vadd.f32 %v4812_v59, %v2352_v60  ;;  %v2754_v62 = vpop.f32.mrb[0].mxu0  ;;  %v2354_v40 = vpop.f32.mrb[1].mxu1 }
 0x239   : > { %v2756_v63 = vpop.f32.mrb[1].mxu0  ;;  %v2355_v0 = vpop.f32.mrb[2].mxu1 }
 0x23a   : > { %v3621_v1 = vadd.f32 %v3620_v61, %v2754_v62  ;;  %v3622_v2 = vadd.f32 %v4812_v59, %v2355_v0  ;;  %v2757_v3 = vpop.f32.mrb[2].mxu0  ;;  %v2357_v4 = vpop.f32.mrb[3].mxu1 }
 0x23b   : > { %v2759_v5 = vpop.f32.mrb[3].mxu0 }
 0x23c   : > { %v2921_v6 = vmax.f32 %v3621_v1, 0.0  ;;  %v3623_v7 = vadd.f32 %v3622_v2, %v2757_v3 }
 0x23e   : > { %v3578_v8 = vpack.c.bf16 %v2921_v6, %v2921_v6  ;;  %v2922_v9 = vmax.f32 %v3623_v7, 0.0 }
 0x23f   : > { %v2360_v10 = vpop.f32.mrb[4].mxu1 }
 0x240   : > { %3132 = vst.msk [vmem:[%s4819_s5] sm:$0xf] %vm3131_vm0, %v3578_v8  ;;  %v3579_v11 = vpack.c.bf16 %v2922_v9, %v2922_v9  ;;  %v3624_v12 = vadd.f32 %v4812_v59, %v2360_v10  ;;  %v2762_v13 = vpop.f32.mrb[4].mxu0  ;;  %v2362_v14 = vpop.f32.mrb[5].mxu1 }
 0x241   : > { %v2764_v15 = vpop.f32.mrb[5].mxu0  ;;  %v2363_v16 = vpop.f32.mrb[6].mxu1 }
 0x242   : > { %3133 = vst.msk [vmem:[%s4819_s5 + $0x4] sm:$0xf] %vm3131_vm0, %v3579_v11  ;;  %v3625_v17 = vadd.f32 %v3624_v12, %v2762_v13  ;;  %v3626_v18 = vadd.f32 %v4812_v59, %v2363_v16  ;;  %v2765_v19 = vpop.f32.mrb[6].mxu0  ;;  %v2365_v20 = vpop.f32.mrb[7].mxu1 }
 0x243   : > { %v2767_v21 = vpop.f32.mrb[7].mxu0 }
 0x244   : > { %v2923_v22 = vmax.f32 %v3625_v17, 0.0  ;;  %v3627_v23 = vadd.f32 %v3626_v18, %v2765_v19 }
 0x246   : > { %v3580_v24 = vpack.c.bf16 %v2923_v22, %v2923_v22  ;;  %v2924_v25 = vmax.f32 %v3627_v23, 0.0 }
 0x247   : > { %v2368_v26 = vpop.f32.mrb[8].mxu1 }
 0x248   : > { %3134 = vst.msk [vmem:[%s4819_s5 + $0x8] sm:$0xf] %vm3131_vm0, %v3580_v24  ;;  %v3581_v27 = vpack.c.bf16 %v2924_v25, %v2924_v25  ;;  %v3628_v28 = vadd.f32 %v4812_v59, %v2368_v26  ;;  %v2770_v29 = vpop.f32.mrb[8].mxu0  ;;  %v2370_v30 = vpop.f32.mrb[9].mxu1 }
 0x249   : > { %v2772_v31 = vpop.f32.mrb[9].mxu0  ;;  %v2371_v32 = vpop.f32.mrb[10].mxu1 }
 0x24a   : > { %3135 = vst.msk [vmem:[%s4819_s5 + $0xc] sm:$0xf] %vm3131_vm0, %v3581_v27  ;;  %v3629_v33 = vadd.f32 %v3628_v28, %v2770_v29  ;;  %v3630_v34 = vadd.f32 %v4812_v59, %v2371_v32  ;;  %v2773_v35 = vpop.f32.mrb[10].mxu0  ;;  %v2373_v36 = vpop.f32.mrb[11].mxu1 }
 0x24b   : > { %v2775_v37 = vpop.f32.mrb[11].mxu0 }
 0x24c   : > { %v2925_v38 = vmax.f32 %v3629_v33, 0.0  ;;  %v3631_v39 = vadd.f32 %v3630_v34, %v2773_v35 }
 0x24e   : > { %v3582_v41 = vpack.c.bf16 %v2925_v38, %v2925_v38  ;;  %v2926_v42 = vmax.f32 %v3631_v39, 0.0 }
 0x24f   : > { %v2376_v43 = vpop.f32.mrb[12].mxu1 }
 0x250   : > { %3136 = vst.msk [vmem:[%s4819_s5 + $0x10] sm:$0xf] %vm3131_vm0, %v3582_v41  ;;  %v3583_v44 = vpack.c.bf16 %v2926_v42, %v2926_v42  ;;  %v3632_v45 = vadd.f32 %v4812_v59, %v2376_v43  ;;  %v2778_v46 = vpop.f32.mrb[12].mxu0  ;;  %v2378_v47 = vpop.f32.mrb[13].mxu1 }
 0x251   : > { %v2780_v48 = vpop.f32.mrb[13].mxu0  ;;  %v2379_v49 = vpop.f32.mrb[14].mxu1 }
 0x252   : > { %3137 = vst.msk [vmem:[%s4819_s5 + $0x14] sm:$0xf] %vm3131_vm0, %v3583_v44  ;;  %v3633_v50 = vadd.f32 %v3632_v45, %v2778_v46  ;;  %v3634_v51 = vadd.f32 %v4812_v59, %v2379_v49  ;;  %v2781_v52 = vpop.f32.mrb[14].mxu0  ;;  %v2381_v53 = vpop.f32.mrb[15].mxu1 }
 0x253   : > { %v2783_v54 = vpop.f32.mrb[15].mxu0 }
 0x254   : > { %v2927_v55 = vmax.f32 %v3633_v50, 0.0  ;;  %v3635_v56 = vadd.f32 %v3634_v51, %v2781_v52 }
 0x256   : > { %v3584_v57 = vpack.c.bf16 %v2927_v55, %v2927_v55  ;;  %v2928_v58 = vmax.f32 %v3635_v56, 0.0 }
 0x257   : > { %v2384_v60 = vpop.f32.mrb[16].mxu1 }
 0x258   : > { %3138 = vst.msk [vmem:[%s4819_s5 + $0x18] sm:$0xf] %vm3131_vm0, %v3584_v57  ;;  %v3585_v61 = vpack.c.bf16 %v2928_v58, %v2928_v58  ;;  %v3636_v62 = vadd.f32 %v4812_v59, %v2384_v60  ;;  %v2786_v40 = vpop.f32.mrb[16].mxu0  ;;  %v2386_v63 = vpop.f32.mrb[17].mxu1 }
 0x259   : > { %v2788_v0 = vpop.f32.mrb[17].mxu0  ;;  %v2387_v1 = vpop.f32.mrb[18].mxu1 }
 0x25a   : > { %3139 = vst.msk [vmem:[%s4819_s5 + $0x1c] sm:$0xf] %vm3131_vm0, %v3585_v61  ;;  %v3637_v2 = vadd.f32 %v3636_v62, %v2786_v40  ;;  %v3638_v3 = vadd.f32 %v4812_v59, %v2387_v1  ;;  %v2789_v4 = vpop.f32.mrb[18].mxu0  ;;  %v2389_v5 = vpop.f32.mrb[19].mxu1 }
 0x25b   : > { %v2791_v6 = vpop.f32.mrb[19].mxu0 }
 0x25c   : > { %v2929_v7 = vmax.f32 %v3637_v2, 0.0  ;;  %v3639_v8 = vadd.f32 %v3638_v3, %v2789_v4 }
 0x25e   : > { %v3586_v9 = vpack.c.bf16 %v2929_v7, %v2929_v7  ;;  %v2930_v10 = vmax.f32 %v3639_v8, 0.0 }
 0x25f   : > { %v2392_v11 = vpop.f32.mrb[20].mxu1 }
 0x260   : > { %3140 = vst.msk [vmem:[%s4819_s5 + $0x20] sm:$0xf] %vm3131_vm0, %v3586_v9  ;;  %v3587_v12 = vpack.c.bf16 %v2930_v10, %v2930_v10  ;;  %v3640_v13 = vadd.f32 %v4812_v59, %v2392_v11  ;;  %v2794_v14 = vpop.f32.mrb[20].mxu0  ;;  %v2394_v15 = vpop.f32.mrb[21].mxu1 }
 0x261   : > { %v2796_v16 = vpop.f32.mrb[21].mxu0  ;;  %v2395_v17 = vpop.f32.mrb[22].mxu1 }
 0x262   : > { %3141 = vst.msk [vmem:[%s4819_s5 + $0x24] sm:$0xf] %vm3131_vm0, %v3587_v12  ;;  %v3641_v18 = vadd.f32 %v3640_v13, %v2794_v14  ;;  %v3642_v19 = vadd.f32 %v4812_v59, %v2395_v17  ;;  %v2797_v20 = vpop.f32.mrb[22].mxu0  ;;  %v2397_v21 = vpop.f32.mrb[23].mxu1 }
 0x263   : > { %v2799_v22 = vpop.f32.mrb[23].mxu0 }
 0x264   : > { %v2931_v23 = vmax.f32 %v3641_v18, 0.0  ;;  %v3643_v24 = vadd.f32 %v3642_v19, %v2797_v20 }
 0x266   : > { %v3588_v25 = vpack.c.bf16 %v2931_v23, %v2931_v23  ;;  %v2932_v26 = vmax.f32 %v3643_v24, 0.0 }
 0x267   : > { %v2400_v27 = vpop.f32.mrb[24].mxu1 }
 0x268   : > { %3142 = vst.msk [vmem:[%s4819_s5 + $0x28] sm:$0xf] %vm3131_vm0, %v3588_v25  ;;  %v3589_v28 = vpack.c.bf16 %v2932_v26, %v2932_v26  ;;  %v3644_v29 = vadd.f32 %v4812_v59, %v2400_v27  ;;  %v2802_v30 = vpop.f32.mrb[24].mxu0  ;;  %v2402_v31 = vpop.f32.mrb[25].mxu1 }
 0x269   : > { %v2804_v32 = vpop.f32.mrb[25].mxu0  ;;  %v2403_v33 = vpop.f32.mrb[26].mxu1 }
 0x26a   : > { %3143 = vst.msk [vmem:[%s4819_s5 + $0x2c] sm:$0xf] %vm3131_vm0, %v3589_v28  ;;  %v3645_v34 = vadd.f32 %v3644_v29, %v2802_v30  ;;  %v3646_v35 = vadd.f32 %v4812_v59, %v2403_v33  ;;  %v2805_v36 = vpop.f32.mrb[26].mxu0  ;;  %v2405_v37 = vpop.f32.mrb[27].mxu1 }
 0x26b   : > { %v2807_v38 = vpop.f32.mrb[27].mxu0 }
 0x26c   : > { %v2933_v39 = vmax.f32 %v3645_v34, 0.0  ;;  %v3647_v41 = vadd.f32 %v3646_v35, %v2805_v36 }
 0x26e   : > { %v3590_v42 = vpack.c.bf16 %v2933_v39, %v2933_v39  ;;  %v2934_v43 = vmax.f32 %v3647_v41, 0.0 }
 0x26f   : > { %v2408_v44 = vpop.f32.mrb[28].mxu1 }
 0x270   : > { %3144 = vst.msk [vmem:[%s4819_s5 + $0x30] sm:$0xf] %vm3131_vm0, %v3590_v42  ;;  %v3591_v45 = vpack.c.bf16 %v2934_v43, %v2934_v43  ;;  %v3648_v46 = vadd.f32 %v4812_v59, %v2408_v44  ;;  %v2810_v47 = vpop.f32.mrb[28].mxu0  ;;  %v2410_v48 = vpop.f32.mrb[29].mxu1 }
 0x271   : > { %v2812_v49 = vpop.f32.mrb[29].mxu0  ;;  %v2411_v50 = vpop.f32.mrb[30].mxu1 }
 0x272   : > { %3145 = vst.msk [vmem:[%s4819_s5 + $0x34] sm:$0xf] %vm3131_vm0, %v3591_v45  ;;  %v3649_v51 = vadd.f32 %v3648_v46, %v2810_v47  ;;  %v3650_v52 = vadd.f32 %v4812_v59, %v2411_v50  ;;  %v2813_v53 = vpop.f32.mrb[30].mxu0  ;;  %v2413_v54 = vpop.f32.mrb[31].mxu1 }
 0x273   : > { %v2815_v55 = vpop.f32.mrb[31].mxu0 }
 0x274   : > { %v2935_v56 = vmax.f32 %v3649_v51, 0.0  ;;  %v3651_v57 = vadd.f32 %v3650_v52, %v2813_v53 }
 0x276   : > { %v3592_v58 = vpack.c.bf16 %v2935_v56, %v2935_v56  ;;  %v2936_v60 = vmax.f32 %v3651_v57, 0.0 }
 0x277   : > { %v2416_v61 = vpop.f32.mrb[32].mxu1 }
 0x278   : > { %3146 = vst.msk [vmem:[%s4819_s5 + $0x38] sm:$0xf] %vm3131_vm0, %v3592_v58  ;;  %v3593_v62 = vpack.c.bf16 %v2936_v60, %v2936_v60  ;;  %v3652_v40 = vadd.f32 %v4812_v59, %v2416_v61  ;;  %v2818_v63 = vpop.f32.mrb[32].mxu0  ;;  %v2418_v0 = vpop.f32.mrb[33].mxu1 }
 0x279   : > { %v2820_v1 = vpop.f32.mrb[33].mxu0  ;;  %v2419_v2 = vpop.f32.mrb[34].mxu1 }
 0x27a   : > { %3147 = vst.msk [vmem:[%s4819_s5 + $0x3c] sm:$0xf] %vm3131_vm0, %v3593_v62  ;;  %v3653_v3 = vadd.f32 %v3652_v40, %v2818_v63  ;;  %v3654_v4 = vadd.f32 %v4812_v59, %v2419_v2  ;;  %v2821_v5 = vpop.f32.mrb[34].mxu0  ;;  %v2421_v6 = vpop.f32.mrb[35].mxu1 }
 0x27b   : > { %v2823_v7 = vpop.f32.mrb[35].mxu0 }
 0x27c   : > { %v2937_v8 = vmax.f32 %v3653_v3, 0.0  ;;  %v3655_v9 = vadd.f32 %v3654_v4, %v2821_v5 }
 0x27e   : > { %v3594_v10 = vpack.c.bf16 %v2937_v8, %v2937_v8  ;;  %v2938_v11 = vmax.f32 %v3655_v9, 0.0 }
 0x27f   : > { %v2424_v12 = vpop.f32.mrb[36].mxu1 }
 0x280   : > { %3148 = vst.msk [vmem:[%s4819_s5 + $0x40] sm:$0xf] %vm3131_vm0, %v3594_v10  ;;  %v3595_v13 = vpack.c.bf16 %v2938_v11, %v2938_v11  ;;  %v3656_v14 = vadd.f32 %v4812_v59, %v2424_v12  ;;  %v2826_v15 = vpop.f32.mrb[36].mxu0  ;;  %v2426_v16 = vpop.f32.mrb[37].mxu1 }
 0x281   : > { %v2828_v17 = vpop.f32.mrb[37].mxu0  ;;  %v2427_v18 = vpop.f32.mrb[38].mxu1 }
 0x282   : > { %3149 = vst.msk [vmem:[%s4819_s5 + $0x44] sm:$0xf] %vm3131_vm0, %v3595_v13  ;;  %v3657_v19 = vadd.f32 %v3656_v14, %v2826_v15  ;;  %v3658_v20 = vadd.f32 %v4812_v59, %v2427_v18  ;;  %v2829_v21 = vpop.f32.mrb[38].mxu0  ;;  %v2429_v22 = vpop.f32.mrb[39].mxu1 }
 0x283   : > { %v2831_v23 = vpop.f32.mrb[39].mxu0 }
 0x284   : > { %v2939_v24 = vmax.f32 %v3657_v19, 0.0  ;;  %v3659_v25 = vadd.f32 %v3658_v20, %v2829_v21 }
 0x286   : > { %v3596_v26 = vpack.c.bf16 %v2939_v24, %v2939_v24  ;;  %v2940_v27 = vmax.f32 %v3659_v25, 0.0 }
 0x287   : > { %v2432_v28 = vpop.f32.mrb[40].mxu1 }
 0x288   : > { %3150 = vst.msk [vmem:[%s4819_s5 + $0x48] sm:$0xf] %vm3131_vm0, %v3596_v26  ;;  %v3597_v29 = vpack.c.bf16 %v2940_v27, %v2940_v27  ;;  %v3660_v30 = vadd.f32 %v4812_v59, %v2432_v28  ;;  %v2834_v31 = vpop.f32.mrb[40].mxu0  ;;  %v2434_v32 = vpop.f32.mrb[41].mxu1 }
 0x289   : > { %v2836_v33 = vpop.f32.mrb[41].mxu0  ;;  %v2435_v34 = vpop.f32.mrb[42].mxu1 }
 0x28a   : > { %3151 = vst.msk [vmem:[%s4819_s5 + $0x4c] sm:$0xf] %vm3131_vm0, %v3597_v29  ;;  %v3661_v35 = vadd.f32 %v3660_v30, %v2834_v31  ;;  %v3662_v36 = vadd.f32 %v4812_v59, %v2435_v34  ;;  %v2837_v37 = vpop.f32.mrb[42].mxu0  ;;  %v2437_v38 = vpop.f32.mrb[43].mxu1 }
 0x28b   : > { %v2839_v39 = vpop.f32.mrb[43].mxu0 }
 0x28c   : > { %v2941_v41 = vmax.f32 %v3661_v35, 0.0  ;;  %v3663_v42 = vadd.f32 %v3662_v36, %v2837_v37 }
 0x28e   : > { %v3598_v43 = vpack.c.bf16 %v2941_v41, %v2941_v41  ;;  %v2942_v44 = vmax.f32 %v3663_v42, 0.0 }
 0x28f   : > { %v2440_v45 = vpop.f32.mrb[44].mxu1 }
 0x290   : > { %3152 = vst.msk [vmem:[%s4819_s5 + $0x50] sm:$0xf] %vm3131_vm0, %v3598_v43  ;;  %v3599_v46 = vpack.c.bf16 %v2942_v44, %v2942_v44  ;;  %v3664_v47 = vadd.f32 %v4812_v59, %v2440_v45  ;;  %v2842_v48 = vpop.f32.mrb[44].mxu0  ;;  %v2442_v49 = vpop.f32.mrb[45].mxu1 }
 0x291   : > { %v2844_v50 = vpop.f32.mrb[45].mxu0  ;;  %v2443_v51 = vpop.f32.mrb[46].mxu1 }
 0x292   : > { %3153 = vst.msk [vmem:[%s4819_s5 + $0x54] sm:$0xf] %vm3131_vm0, %v3599_v46  ;;  %v3665_v52 = vadd.f32 %v3664_v47, %v2842_v48  ;;  %v3666_v53 = vadd.f32 %v4812_v59, %v2443_v51  ;;  %v2845_v54 = vpop.f32.mrb[46].mxu0  ;;  %v2445_v55 = vpop.f32.mrb[47].mxu1 }
 0x293   : > { %v2847_v56 = vpop.f32.mrb[47].mxu0 }
 0x294   : > { %v2943_v57 = vmax.f32 %v3665_v52, 0.0  ;;  %v3667_v58 = vadd.f32 %v3666_v53, %v2845_v54 }
 0x296   : > { %v3600_v60 = vpack.c.bf16 %v2943_v57, %v2943_v57  ;;  %v2944_v61 = vmax.f32 %v3667_v58, 0.0 }
 0x297   : > { %v2448_v62 = vpop.f32.mrb[48].mxu1 }
 0x298   : > { %3154 = vst.msk [vmem:[%s4819_s5 + $0x58] sm:$0xf] %vm3131_vm0, %v3600_v60  ;;  %v3601_v40 = vpack.c.bf16 %v2944_v61, %v2944_v61  ;;  %v3668_v63 = vadd.f32 %v4812_v59, %v2448_v62  ;;  %v2850_v0 = vpop.f32.mrb[48].mxu0  ;;  %v2450_v1 = vpop.f32.mrb[49].mxu1 }
 0x299   : > { %v2852_v2 = vpop.f32.mrb[49].mxu0  ;;  %v2451_v3 = vpop.f32.mrb[50].mxu1 }
 0x29a   : > { %3155 = vst.msk [vmem:[%s4819_s5 + $0x5c] sm:$0xf] %vm3131_vm0, %v3601_v40  ;;  %v3669_v4 = vadd.f32 %v3668_v63, %v2850_v0  ;;  %v3670_v5 = vadd.f32 %v4812_v59, %v2451_v3  ;;  %v2853_v6 = vpop.f32.mrb[50].mxu0  ;;  %v2453_v7 = vpop.f32.mrb[51].mxu1 }
 0x29b   : > { %v2855_v8 = vpop.f32.mrb[51].mxu0 }
 0x29c   : > { %v2945_v9 = vmax.f32 %v3669_v4, 0.0  ;;  %v3671_v10 = vadd.f32 %v3670_v5, %v2853_v6 }
 0x29e   : > { %v3602_v11 = vpack.c.bf16 %v2945_v9, %v2945_v9  ;;  %v2946_v12 = vmax.f32 %v3671_v10, 0.0 }
 0x29f   : > { %v2456_v13 = vpop.f32.mrb[52].mxu1 }
 0x2a0   : > { %3156 = vst.msk [vmem:[%s4819_s5 + $0x60] sm:$0xf] %vm3131_vm0, %v3602_v11  ;;  %v3603_v14 = vpack.c.bf16 %v2946_v12, %v2946_v12  ;;  %v3672_v15 = vadd.f32 %v4812_v59, %v2456_v13  ;;  %v2858_v16 = vpop.f32.mrb[52].mxu0  ;;  %v2458_v17 = vpop.f32.mrb[53].mxu1 }
 0x2a1   : > { %v2860_v18 = vpop.f32.mrb[53].mxu0  ;;  %v2459_v19 = vpop.f32.mrb[54].mxu1 }
 0x2a2   : > { %3157 = vst.msk [vmem:[%s4819_s5 + $0x64] sm:$0xf] %vm3131_vm0, %v3603_v14  ;;  %v3673_v20 = vadd.f32 %v3672_v15, %v2858_v16  ;;  %v3674_v21 = vadd.f32 %v4812_v59, %v2459_v19  ;;  %v2861_v22 = vpop.f32.mrb[54].mxu0  ;;  %v2461_v23 = vpop.f32.mrb[55].mxu1 }
 0x2a3   : > { %v2863_v24 = vpop.f32.mrb[55].mxu0 }
 0x2a4   : > { %v2947_v25 = vmax.f32 %v3673_v20, 0.0  ;;  %v3675_v26 = vadd.f32 %v3674_v21, %v2861_v22 }
 0x2a6   : > { %v3604_v27 = vpack.c.bf16 %v2947_v25, %v2947_v25  ;;  %v2948_v28 = vmax.f32 %v3675_v26, 0.0 }
 0x2a7   : > { %v2464_v29 = vpop.f32.mrb[56].mxu1 }
 0x2a8   : > { %3158 = vst.msk [vmem:[%s4819_s5 + $0x68] sm:$0xf] %vm3131_vm0, %v3604_v27  ;;  %v3605_v30 = vpack.c.bf16 %v2948_v28, %v2948_v28  ;;  %v3676_v31 = vadd.f32 %v4812_v59, %v2464_v29  ;;  %v2866_v32 = vpop.f32.mrb[56].mxu0  ;;  %v2466_v33 = vpop.f32.mrb[57].mxu1 }
 0x2a9   : > { %v2868_v34 = vpop.f32.mrb[57].mxu0  ;;  %v2467_v35 = vpop.f32.mrb[58].mxu1 }
 0x2aa   : > { %3159 = vst.msk [vmem:[%s4819_s5 + $0x6c] sm:$0xf] %vm3131_vm0, %v3605_v30  ;;  %v3677_v36 = vadd.f32 %v3676_v31, %v2866_v32  ;;  %v3678_v37 = vadd.f32 %v4812_v59, %v2467_v35  ;;  %v2869_v38 = vpop.f32.mrb[58].mxu0  ;;  %v2469_v39 = vpop.f32.mrb[59].mxu1 }
 0x2ab   : > { %v2871_v41 = vpop.f32.mrb[59].mxu0 }
 0x2ac   : > { %v2949_v42 = vmax.f32 %v3677_v36, 0.0  ;;  %v3679_v43 = vadd.f32 %v3678_v37, %v2869_v38 }
 0x2ae   : > { %v3606_v44 = vpack.c.bf16 %v2949_v42, %v2949_v42  ;;  %v2950_v45 = vmax.f32 %v3679_v43, 0.0 }
 0x2af   : > { %v2472_v46 = vpop.f32.mrb[60].mxu1 }
 0x2b0   : > { %3160 = vst.msk [vmem:[%s4819_s5 + $0x70] sm:$0xf] %vm3131_vm0, %v3606_v44  ;;  %v3607_v47 = vpack.c.bf16 %v2950_v45, %v2950_v45  ;;  %v3680_v48 = vadd.f32 %v4812_v59, %v2472_v46  ;;  %v2874_v49 = vpop.f32.mrb[60].mxu0  ;;  %v2474_v50 = vpop.f32.mrb[61].mxu1 }
 0x2b1   : > { %v2876_v51 = vpop.f32.mrb[61].mxu0  ;;  %v2475_v52 = vpop.f32.mrb[62].mxu1 }
 0x2b2   : > { %3161 = vst.msk [vmem:[%s4819_s5 + $0x74] sm:$0xf] %vm3131_vm0, %v3607_v47  ;;  %v3681_v53 = vadd.f32 %v3680_v48, %v2874_v49  ;;  %v3682_v54 = vadd.f32 %v4812_v59, %v2475_v52  ;;  %v2877_v55 = vpop.f32.mrb[62].mxu0  ;;  %v2477_v56 = vpop.f32.mrb[63].mxu1 }
 0x2b3   : > { %v2879_v57 = vpop.f32.mrb[63].mxu0 }
 0x2b4   : > { %v2951_v58 = vmax.f32 %v3681_v53, 0.0  ;;  %v3683_v60 = vadd.f32 %v3682_v54, %v2877_v55 }
 0x2b6   : > { %v3608_v61 = vpack.c.bf16 %v2951_v58, %v2951_v58  ;;  %v2952_v62 = vmax.f32 %v3683_v60, 0.0 }
 0x2b7   : > { %v2480_v40 = vpop.f32.mrb[64].mxu1 }
 0x2b8   : > { %3162 = vst.msk [vmem:[%s4819_s5 + $0x78] sm:$0xf] %vm3131_vm0, %v3608_v61  ;;  %v3609_v63 = vpack.c.bf16 %v2952_v62, %v2952_v62  ;;  %v3684_v0 = vadd.f32 %v4812_v59, %v2480_v40  ;;  %v2882_v1 = vpop.f32.mrb[64].mxu0  ;;  %v2482_v2 = vpop.f32.mrb[65].mxu1 }
 0x2b9   : > { %v2884_v3 = vpop.f32.mrb[65].mxu0  ;;  %v2483_v4 = vpop.f32.mrb[66].mxu1 }
 0x2ba   : > { %3163 = vst.msk [vmem:[%s4819_s5 + $0x7c] sm:$0xf] %vm3131_vm0, %v3609_v63  ;;  %v3685_v5 = vadd.f32 %v3684_v0, %v2882_v1  ;;  %v3686_v6 = vadd.f32 %v4812_v59, %v2483_v4  ;;  %v2885_v7 = vpop.f32.mrb[66].mxu0  ;;  %v2485_v8 = vpop.f32.mrb[67].mxu1 }
 0x2bb   : > { %v2887_v9 = vpop.f32.mrb[67].mxu0 }
 0x2bc   : > { %v2953_v10 = vmax.f32 %v3685_v5, 0.0  ;;  %v3687_v11 = vadd.f32 %v3686_v6, %v2885_v7 }
 0x2be   : > { %v3610_v12 = vpack.c.bf16 %v2953_v10, %v2953_v10  ;;  %v2954_v13 = vmax.f32 %v3687_v11, 0.0 }
 0x2bf   : > { %v2488_v14 = vpop.f32.mrb[68].mxu1 }
 0x2c0   : > { %3164 = vst.msk [vmem:[%s4819_s5 + $0x80] sm:$0xf] %vm3131_vm0, %v3610_v12  ;;  %v3611_v15 = vpack.c.bf16 %v2954_v13, %v2954_v13  ;;  %v3688_v16 = vadd.f32 %v4812_v59, %v2488_v14  ;;  %v2890_v17 = vpop.f32.mrb[68].mxu0  ;;  %v2490_v18 = vpop.f32.mrb[69].mxu1 }
 0x2c1   : > { %v2892_v19 = vpop.f32.mrb[69].mxu0  ;;  %v2491_v20 = vpop.f32.mrb[70].mxu1 }
 0x2c2   : > { %3165 = vst.msk [vmem:[%s4819_s5 + $0x84] sm:$0xf] %vm3131_vm0, %v3611_v15  ;;  %v3689_v21 = vadd.f32 %v3688_v16, %v2890_v17  ;;  %v3690_v22 = vadd.f32 %v4812_v59, %v2491_v20  ;;  %v2893_v23 = vpop.f32.mrb[70].mxu0  ;;  %v2493_v24 = vpop.f32.mrb[71].mxu1 }
 0x2c3   : > { %v2895_v25 = vpop.f32.mrb[71].mxu0 }
 0x2c4   : > { %v2955_v26 = vmax.f32 %v3689_v21, 0.0  ;;  %v3691_v27 = vadd.f32 %v3690_v22, %v2893_v23 }
 0x2c6   : > { %v3612_v28 = vpack.c.bf16 %v2955_v26, %v2955_v26  ;;  %v2956_v29 = vmax.f32 %v3691_v27, 0.0 }
 0x2c7   : > { %v2496_v30 = vpop.f32.mrb[72].mxu1 }
 0x2c8   : > { %3166 = vst.msk [vmem:[%s4819_s5 + $0x88] sm:$0xf] %vm3131_vm0, %v3612_v28  ;;  %v3613_v31 = vpack.c.bf16 %v2956_v29, %v2956_v29  ;;  %v3692_v32 = vadd.f32 %v4812_v59, %v2496_v30  ;;  %v2898_v33 = vpop.f32.mrb[72].mxu0  ;;  %v2498_v34 = vpop.f32.mrb[73].mxu1 }
 0x2c9   : > { %v2900_v35 = vpop.f32.mrb[73].mxu0  ;;  %v2499_v36 = vpop.f32.mrb[74].mxu1 }
 0x2ca   : > { %3167 = vst.msk [vmem:[%s4819_s5 + $0x8c] sm:$0xf] %vm3131_vm0, %v3613_v31  ;;  %v3693_v37 = vadd.f32 %v3692_v32, %v2898_v33  ;;  %v3694_v38 = vadd.f32 %v4812_v59, %v2499_v36  ;;  %v2901_v39 = vpop.f32.mrb[74].mxu0  ;;  %v2501_v41 = vpop.f32.mrb[75].mxu1 }
 0x2cb   : > { %v2903_v42 = vpop.f32.mrb[75].mxu0 }
 0x2cc   : > { %v2957_v43 = vmax.f32 %v3693_v37, 0.0  ;;  %v3695_v44 = vadd.f32 %v3694_v38, %v2901_v39 }
 0x2ce   : > { %v3614_v45 = vpack.c.bf16 %v2957_v43, %v2957_v43  ;;  %v2958_v46 = vmax.f32 %v3695_v44, 0.0 }
 0x2cf   : > { %v2504_v47 = vpop.f32.mrb[76].mxu1 }
 0x2d0   : > { %3168 = vst.msk [vmem:[%s4819_s5 + $0x90] sm:$0xf] %vm3131_vm0, %v3614_v45  ;;  %v3615_v48 = vpack.c.bf16 %v2958_v46, %v2958_v46  ;;  %v3696_v49 = vadd.f32 %v4812_v59, %v2504_v47  ;;  %v2906_v50 = vpop.f32.mrb[76].mxu0  ;;  %v2506_v51 = vpop.f32.mrb[77].mxu1 }
 0x2d1   : > { %v2908_v52 = vpop.f32.mrb[77].mxu0  ;;  %v2507_v53 = vpop.f32.mrb[78].mxu1 }
 0x2d2   : > { %3169 = vst.msk [vmem:[%s4819_s5 + $0x94] sm:$0xf] %vm3131_vm0, %v3615_v48  ;;  %v3697_v54 = vadd.f32 %v3696_v49, %v2906_v50  ;;  %v3698_v55 = vadd.f32 %v4812_v59, %v2507_v53  ;;  %v2909_v56 = vpop.f32.mrb[78].mxu0  ;;  %v2509_v57 = vpop.f32.mrb[79].mxu1 }
 0x2d3   : > { %v2911_v58 = vpop.f32.mrb[79].mxu0 }
 0x2d4   : > { %v2959_v60 = vmax.f32 %v3697_v54, 0.0  ;;  %v3699_v61 = vadd.f32 %v3698_v55, %v2909_v56 }
 0x2d6   : > { %v3616_v62 = vpack.c.bf16 %v2959_v60, %v2959_v60  ;;  %v2960_v40 = vmax.f32 %v3699_v61, 0.0 }
 0x2d7   : > { %v2512_v63 = vpop.f32.mrb[80].mxu1 }
 0x2d8   : > { %3170 = vst.msk [vmem:[%s4819_s5 + $0x98] sm:$0xf] %vm3131_vm0, %v3616_v62  ;;  %v3617_v0 = vpack.c.bf16 %v2960_v40, %v2960_v40  ;;  %v3700_v1 = vadd.f32 %v4812_v59, %v2512_v63  ;;  %v2914_v2 = vpop.f32.mrb[80].mxu0  ;;  %v2514_v3 = vpop.f32.mrb[81].mxu1 }
 0x2d9   : > { %v2916_v4 = vpop.f32.mrb[81].mxu0  ;;  %v2515_v5 = vpop.f32.mrb[82].mxu1 }
 0x2da   : > { %3171 = vst.msk [vmem:[%s4819_s5 + $0x9c] sm:$0xf] %vm3131_vm0, %v3617_v0  ;;  %v3701_v6 = vadd.f32 %v3700_v1, %v2914_v2  ;;  %v3702_v7 = vadd.f32 %v4812_v59, %v2515_v5  ;;  %v2917_v8 = vpop.f32.mrb[82].mxu0  ;;  %v2517_v9 = vpop.f32.mrb[83].mxu1 }
 0x2db   : > { %v2919_v10 = vpop.f32.mrb[83].mxu0 }
 0x2dc   : > { %v2961_v11 = vmax.f32 %v3701_v6, 0.0  ;;  %v3703_v12 = vadd.f32 %v3702_v7, %v2917_v8 }
 0x2de   : > { %v3618_v13 = vpack.c.bf16 %v2961_v11, %v2961_v11  ;;  %v2962_v14 = vmax.f32 %v3703_v12, 0.0 }
 0x2e0   : > { %3172 = vst.msk [vmem:[%s4819_s5 + $0xa0] sm:$0xf] %vm3131_vm0, %v3618_v13  ;;  %v3619_v15 = vpack.c.bf16 %v2962_v14, %v2962_v14 }
 0x2e2   : > { %3173 = vst.msk [vmem:[%s4819_s5 + $0xa4] sm:$0xf] %vm3131_vm0, %v3619_v15 }
 0x2e3 PF: > { %s13_s18 = sadd.s32 1, %s4050_s18   ;;  %s4970_s12 = smov %s4030_s13 }
 0x2e4   : > { %p10_p12 = scmp.ge.s32.totalorder %s13_s18, 10   ;;  %s4971_s13 = smov %s4124_s25 }
 0x2e5   : > { %s4972_s14 = smov %s4042_s16  ;;  %s4973_s15 = smov %s4046_s17 }
 0x2e6   : > { %s4974_s16 = smov %s4977_s19  ;;  %s4975_s17 = smov %s4981_s20 }
 0x2e7   :  { %12 = sbr.rel (!%p10_p12) target bundleno = 4 (0x4), region = 96 }

// kernel: critic_forward.6
= control target key start
LH: loop header
LB: loop body
LE: loop exit
PB: predicated region body
PF: predicated region fallthrough
CT: control target
= control target key end

     0   :  { %s3291_s12 = smov 0   ;;  %s3293_s13 = smov 0   ;;  %s3729_s0 = inlined_call_operand.vmem [shape: bf16[2,280,1024], index: 0, kind: input, shape index: {}]   ;;  %s3730_s1 = inlined_call_operand.vmem [shape: bf16[2,1024,32], index: 1, kind: input, shape index: {}]   ;;  %s3731_s2 = inlined_call_operand.vmem [shape: f32[2,1,32], index: 2, kind: input, shape index: {}]   ;;  %s3732_s3 = inlined_call_operand.vmem [shape: bf16[2,280,32], index: 3, kind: output, shape index: {}]  }
   0x1   :  { %s3295_s14 = smov 0  }
   0x2 LB: > { %s25_s15 = sadd.s32 1, %s3264_s13  ;;  %p2646_p0 = scmp.ge.s32.totalorder %s3268_s14, 1  ;;  %s3268_s14 = sphi %s3295_s14, %s13_s14   ;;  %s3264_s13 = sphi %s3293_s13, %s3734_s13   ;;  %s3260_s12 = sphi %s3291_s12, %s3733_s12  }
   0x3   : > { %p27_p1 = scmp.ge.s32.totalorder %s25_s15, 2  ;;  %p177_p2 = scmp.lt.s32.totalorder %s3268_s14, 3 }
   0x5   : > { %s3736_s15 = smov (%p27_p1, %s25_s15), 0  ;;  %p178_p3 = pnand %p2646_p0, %p177_p2 }
   0x6   : > { %p219_p4 = scmp.lt.s32.totalorder (!%p178_p3), %s3260_s12, 1  ;;  %v3270_v0 = vmov (!%p178_p3), 0   ;;  %vm2495_vm0 = vcmask (!%p178_p3), 257024  }
   0x7   : > { %181 = sbr.rel (%p178_p3) target bundleno = 582 (0x246), region = 32  ;;  %1615 = vmatprep.subr.bf16.mxu1 (!%p178_p3), %v3270_v0  ;;  %1967 = vmatprep.subr.bf16.mxu0 (!%p178_p3), %v3270_v0 }
   0xe   : > { %s3738_s12 = smov (!%p219_p4, %s3260_s12), 1 }
   0xf   : > { %s2897_s16 = sshll.u32 %s3738_s12, 9  ;;  %s3147_s20 = smul.u32 1120, %s3738_s12 }
  0x10   : > { %s3317_s19 = scalar_lea.vmem %s3730_s1, %s2897_s16  ;;  %s236_s26 = scalar_lea.vmem %s3731_s2, %s3738_s12 }
  0x11   : > { %v3174_v1 = vld [vmem:[%s3317_s19] sm:$0xff]   ;;  %v3176_v3 = vld [vmem:[%s3317_s19 + $0x8] sm:$0xff]   ;;  %v3178_v5 = vld [vmem:[%s3317_s19 + $0x10] sm:$0xff]   ;;  %s3353_s23 = scalar_lea.vmem %s3729_s0, %s3147_s20  ;;  %s3148_s27 = smul.u32 140, %s3738_s12 }
  0x12   : > { %v3175_v2 = vld [vmem:[%s3317_s19 + $0x100] sm:$0xff]   ;;  %1616 = vmatpush1.bf16.msra.mxu1 %v3174_v1  ;;  %v3177_v4 = vld [vmem:[%s3317_s19 + $0x108] sm:$0xff]   ;;  %v3179_v6 = vld [vmem:[%s3317_s19 + $0x110] sm:$0xff]  }
  0x13   : > { %1968 = vmatpush1.bf16.msra.mxu0 %v3175_v2  ;;  %1617 = vmatprep.subr.bf16.mxu1 %v3270_v0  ;;  %v3180_v7 = vld [vmem:[%s3317_s19 + $0x18] sm:$0xff]   ;;  %v3182_v9 = vld [vmem:[%s3317_s19 + $0x20] sm:$0xff]   ;;  %v3184_v11 = vld [vmem:[%s3317_s19 + $0x28] sm:$0xff]   ;;  %s3615_s30 = scalar_lea.vmem %s3732_s3, %s3148_s27 }
  0x14   : > { %1969 = vmatprep.subr.bf16.mxu0 %v3270_v0  ;;  %v3181_v8 = vld [vmem:[%s3317_s19 + $0x118] sm:$0xff]   ;;  %v3183_v10 = vld [vmem:[%s3317_s19 + $0x120] sm:$0xff]   ;;  %v3185_v12 = vld [vmem:[%s3317_s19 + $0x128] sm:$0xff]  }
  0x15   : > { %v3186_v13 = vld [vmem:[%s3317_s19 + $0x30] sm:$0xff]   ;;  %v3188_v15 = vld [vmem:[%s3317_s19 + $0x38] sm:$0xff]   ;;  %v3190_v17 = vld [vmem:[%s3317_s19 + $0x40] sm:$0xff]  }
  0x16   : > { %1618 = vmatpush1.bf16.msra.mxu1 %v3176_v3  ;;  %v3187_v14 = vld [vmem:[%s3317_s19 + $0x130] sm:$0xff]   ;;  %v3189_v16 = vld [vmem:[%s3317_s19 + $0x138] sm:$0xff]   ;;  %v3191_v18 = vld [vmem:[%s3317_s19 + $0x140] sm:$0xff]  }
  0x17   : > { %1970 = vmatpush1.bf16.msra.mxu0 %v3177_v4  ;;  %1619 = vmatprep.subr.bf16.mxu1 %v3270_v0  ;;  %v3360_v19 = vld [vmem:[%s3353_s23] sm:$0xff]  ;;  %v3366_v21 = vld [vmem:[%s3353_s23 + $0x10] sm:$0xff]  ;;  %v3192_v24 = vld [vmem:[%s3317_s19 + $0x48] sm:$0xff]  }
  0x18   : > { %1971 = vmatprep.subr.bf16.mxu0 %v3270_v0  ;;  %v3363_v20 = vld [vmem:[%s3353_s23 + $0x20] sm:$0xff]  ;;  %v254_v23 = vld [vmem:[%s3353_s23 + $0x30] sm:$0xff]  ;;  %v3193_v26 = vld [vmem:[%s3317_s19 + $0x148] sm:$0xff]  }
  0x19   : > { %v2653_v22 = vcombine.high %v3360_v19, %v3363_v20  ;;  %v2657_v25 = vcombine.high %v3366_v21, %v254_v23  ;;  %v3194_v27 = vld [vmem:[%s3317_s19 + $0x50] sm:$0xff]   ;;  %v3196_v29 = vld [vmem:[%s3317_s19 + $0x58] sm:$0xff]   ;;  %v3198_v31 = vld [vmem:[%s3317_s19 + $0x60] sm:$0xff]   ;;  %v2652_v42 = vcombine.low %v3360_v19, %v3363_v20  ;;  %v2656_v44 = vcombine.low %v3366_v21, %v254_v23 }
  0x1a   : > { %1620 = vmatpush1.bf16.msra.mxu1 %v3178_v5  ;;  %v3195_v28 = vld [vmem:[%s3317_s19 + $0x150] sm:$0xff]   ;;  %v3197_v30 = vld [vmem:[%s3317_s19 + $0x158] sm:$0xff]   ;;  %v3199_v32 = vld [vmem:[%s3317_s19 + $0x160] sm:$0xff]  }
  0x1b   : > { %1972 = vmatpush1.bf16.msra.mxu0 %v3179_v6  ;;  %1621 = vmatprep.subr.bf16.mxu1 %v3270_v0  ;;  %v3200_v33 = vld [vmem:[%s3317_s19 + $0x68] sm:$0xff]   ;;  %v3202_v35 = vld [vmem:[%s3317_s19 + $0x70] sm:$0xff]   ;;  %v3204_v37 = vld [vmem:[%s3317_s19 + $0x78] sm:$0xff]  }
  0x1c   : > { %1973 = vmatprep.subr.bf16.mxu0 %v3270_v0  ;;  %1647 = vmatprep.mubr.bf16.mxu1 %v2653_v22  ;;  %v3201_v34 = vld [vmem:[%s3317_s19 + $0x168] sm:$0xff]   ;;  %v3203_v36 = vld [vmem:[%s3317_s19 + $0x170] sm:$0xff]   ;;  %v3205_v38 = vld [vmem:[%s3317_s19 + $0x178] sm:$0xff]  }
  0x1d   : > { %1999 = vmatprep.mubr.bf16.mxu0 %v2657_v25  ;;  %v256_v39 = vld [vmem:[%s3353_s23 + $0x40] sm:$0xff]  ;;  %v258_v41 = vld [vmem:[%s3353_s23 + $0x50] sm:$0xff]  ;;  %v3208_v49 = vld [vmem:[%s3317_s19 + $0x88] sm:$0xff]  }
  0x1e   : > { %1622 = vmatpush1.bf16.msra.mxu1 %v3180_v7  ;;  %v260_v40 = vld [vmem:[%s3353_s23 + $0x60] sm:$0xff]  ;;  %v262_v43 = vld [vmem:[%s3353_s23 + $0x70] sm:$0xff]  ;;  %v3209_v50 = vld [vmem:[%s3317_s19 + $0x188] sm:$0xff]  }
  0x1f   : > { %1974 = vmatpush1.bf16.msra.mxu0 %v3181_v8  ;;  %1623 = vmatprep.subr.bf16.mxu1 %v3270_v0  ;;  %v3206_v45 = vld [vmem:[%s3317_s19 + $0x80] sm:$0xff]   ;;  %v2661_v47 = vcombine.high %v256_v39, %v260_v40  ;;  %v2665_v48 = vcombine.high %v258_v41, %v262_v43  ;;  %v266_v53 = vld [vmem:[%s3353_s23 + $0x90] sm:$0xff]  ;;  %v2660_v55 = vcombine.low %v256_v39, %v260_v40  ;;  %v3212_v63 = vld [vmem:[%s3317_s19 + $0x98] sm:$0xff]  }
  0x20   : > { %1975 = vmatprep.subr.bf16.mxu0 %v3270_v0  ;;  %v3207_v46 = vld [vmem:[%s3317_s19 + $0x180] sm:$0xff]   ;;  %v270_v54 = vld [vmem:[%s3353_s23 + $0xb0] sm:$0xff]  ;;  %v2664_v56 = vcombine.low %v258_v41, %v262_v43  ;;  %v3213_v3 = vld [vmem:[%s3317_s19 + $0x198] sm:$0xff]  }
  0x21   : > { %v264_v51 = vld [vmem:[%s3353_s23 + $0x80] sm:$0xff]  ;;  %v2673_v58 = vcombine.high %v266_v53, %v270_v54  ;;  %v3210_v59 = vld [vmem:[%s3317_s19 + $0x90] sm:$0xff]   ;;  %v2672_v5 = vcombine.low %v266_v53, %v270_v54  ;;  %v3225_v39 = vld [vmem:[%s3317_s19 + $0x1c8] sm:$0xff]  }
  0x22   : > { %1624 = vmatpush1.bf16.msra.mxu1 %v3182_v9  ;;  %v268_v52 = vld [vmem:[%s3353_s23 + $0xa0] sm:$0xff]  ;;  %v3211_v60 = vld [vmem:[%s3317_s19 + $0x190] sm:$0xff]  }
  0x23   : > { %1976 = vmatpush1.bf16.msra.mxu0 %v3183_v10  ;;  %1625 = vmatprep.subr.bf16.mxu1 %v3270_v0  ;;  %v2669_v57 = vcombine.high %v264_v51, %v268_v52  ;;  %v272_v61 = vld [vmem:[%s3353_s23 + $0xc0] sm:$0xff]  ;;  %v274_v1 = vld [vmem:[%s3353_s23 + $0xd0] sm:$0xff]  ;;  %v2668_v4 = vcombine.low %v264_v51, %v268_v52  ;;  %v3229_v51 = vld [vmem:[%s3317_s19 + $0x1d8] sm:$0xff]  }
  0x24   : > { %1977 = vmatprep.subr.bf16.mxu0 %v3270_v0  ;;  %v276_v62 = vld [vmem:[%s3353_s23 + $0xe0] sm:$0xff]  ;;  %v278_v2 = vld [vmem:[%s3353_s23 + $0xf0] sm:$0xff] }
  0x25   : > { %v2677_v6 = vcombine.high %v272_v61, %v276_v62  ;;  %v2681_v7 = vcombine.high %v274_v1, %v278_v2  ;;  %v3214_v8 = vld [vmem:[%s3317_s19 + $0xa0] sm:$0xff]   ;;  %v3218_v20 = vld [vmem:[%s3317_s19 + $0xb0] sm:$0xff]  }
  0x26   : > { %1626 = vmatpush1.bf16.msra.mxu1 %v3184_v11  ;;  %v3215_v9 = vld [vmem:[%s3317_s19 + $0x1a0] sm:$0xff]   ;;  %v3219_v21 = vld [vmem:[%s3317_s19 + $0x1b0] sm:$0xff]  }
  0x27   : > { %1978 = vmatpush1.bf16.msra.mxu0 %v3185_v12  ;;  %1627 = vmatprep.subr.bf16.mxu1 %v3270_v0  ;;  %v280_v10 = vld [vmem:[%s3353_s23 + $0x100] sm:$0xff]  ;;  %v282_v12 = vld [vmem:[%s3353_s23 + $0x110] sm:$0xff] }
  0x28   : > { %1979 = vmatprep.subr.bf16.mxu0 %v3270_v0  ;;  %v284_v11 = vld [vmem:[%s3353_s23 + $0x120] sm:$0xff]  ;;  %v290_v25 = vld [vmem:[%s3353_s23 + $0x150] sm:$0xff] }
  0x29   : > { %v288_v22 = vld [vmem:[%s3353_s23 + $0x140] sm:$0xff] }
  0x2a   : > { %1628 = vmatpush1.bf16.msra.mxu1 %v3186_v13  ;;  %v3216_v13 = vld [vmem:[%s3317_s19 + $0xa8] sm:$0xff]   ;;  %v292_v23 = vld [vmem:[%s3353_s23 + $0x160] sm:$0xff] }
  0x2b   : > { %1980 = vmatpush1.bf16.msra.mxu0 %v3187_v14  ;;  %1629 = vmatprep.subr.bf16.mxu1 %v3270_v0  ;;  %v286_v14 = vld [vmem:[%s3353_s23 + $0x130] sm:$0xff]  ;;  %v2692_v40 = vcombine.low %v288_v22, %v292_v23 }
  0x2c   : > { %1981 = vmatprep.subr.bf16.mxu0 %v3270_v0  ;;  %v2689_v19 = vcombine.high %v282_v12, %v286_v14 }
  0x2e   : > { %1630 = vmatpush1.bf16.msra.mxu1 %v3188_v15  ;;  %v3217_v15 = vld [vmem:[%s3317_s19 + $0x1a8] sm:$0xff]  }
  0x2f   : > { %1982 = vmatpush1.bf16.msra.mxu0 %v3189_v16  ;;  %1631 = vmatprep.subr.bf16.mxu1 %v3270_v0  ;;  %v2676_v16 = vcombine.low %v272_v61, %v276_v62  ;;  %v314_v61 = vld [vmem:[%s3353_s23 + $0x210] sm:$0xff] }
  0x30   : > { %1983 = vmatprep.subr.bf16.mxu0 %v3270_v0  ;;  %v318_v62 = vld [vmem:[%s3353_s23 + $0x230] sm:$0xff] }
  0x32   : > { %1632 = vmatpush1.bf16.msra.mxu1 %v3190_v17  ;;  %v2680_v17 = vcombine.low %v274_v1, %v278_v2 }
  0x33   : > { %1984 = vmatpush1.bf16.msra.mxu0 %v3191_v18  ;;  %1633 = vmatprep.subr.bf16.mxu1 %v3270_v0  ;;  %v2685_v18 = vcombine.high %v280_v10, %v284_v11 }
  0x34   : > { %1985 = vmatprep.subr.bf16.mxu0 %v3270_v0 }
  0x36   : > { %1634 = vmatpush1.bf16.msra.mxu1 %v3192_v24  ;;  %v3220_v24 = vld [vmem:[%s3317_s19 + $0xb8] sm:$0xff]  }
  0x37   : > { %1986 = vmatpush1.bf16.msra.mxu0 %v3193_v26  ;;  %1635 = vmatprep.subr.bf16.mxu1 %v3270_v0  ;;  %v294_v26 = vld [vmem:[%s3353_s23 + $0x170] sm:$0xff] }
  0x38   : > { %1987 = vmatprep.subr.bf16.mxu0 %v3270_v0  ;;  %v2696_v41 = vcombine.low %v290_v25, %v294_v26 }
  0x3a   : > { %1636 = vmatpush1.bf16.msra.mxu1 %v3194_v27  ;;  %v3221_v27 = vld [vmem:[%s3317_s19 + $0x1b8] sm:$0xff]  }
  0x3b   : > { %1988 = vmatpush1.bf16.msra.mxu0 %v3195_v28  ;;  %1637 = vmatprep.subr.bf16.mxu1 %v3270_v0  ;;  %v2684_v28 = vcombine.low %v280_v10, %v284_v11  ;;  %v322_v10 = vld [vmem:[%s3353_s23 + $0x250] sm:$0xff] }
  0x3c   : > { %1989 = vmatprep.subr.bf16.mxu0 %v3270_v0  ;;  %v326_v11 = vld [vmem:[%s3353_s23 + $0x270] sm:$0xff] }
  0x3e   : > { %1638 = vmatpush1.bf16.msra.mxu1 %v3196_v29  ;;  %v2688_v29 = vcombine.low %v282_v12, %v286_v14  ;;  %v3241_v12 = vld [vmem:[%s3317_s19 + $0x1f8] sm:$0xff]   ;;  %v2720_v14 = vcombine.low %v314_v61, %v318_v62 }
  0x3f   : > { %1990 = vmatpush1.bf16.msra.mxu0 %v3197_v30  ;;  %1639 = vmatprep.subr.bf16.mxu1 %v3270_v0  ;;  %v2693_v30 = vcombine.high %v288_v22, %v292_v23  ;;  %v2728_v22 = vcombine.low %v322_v10, %v326_v11 }
  0x40   : > { %1991 = vmatprep.subr.bf16.mxu0 %v3270_v0 }
  0x42   : > { %1640 = vmatpush1.bf16.msra.mxu1 %v3198_v31  ;;  %v2697_v31 = vcombine.high %v290_v25, %v294_v26  ;;  %v340_v25 = vld [vmem:[%s3353_s23 + $0x2e0] sm:$0xff]  ;;  %v338_v26 = vld [vmem:[%s3353_s23 + $0x2d0] sm:$0xff] }
  0x43   : > { %1992 = vmatpush1.bf16.msra.mxu0 %v3199_v32  ;;  %1641 = vmatprep.subr.bf16.mxu1 %v3270_v0  ;;  %v3222_v32 = vld [vmem:[%s3317_s19 + $0xc0] sm:$0xff]  }
  0x44   : > { %1993 = vmatprep.subr.bf16.mxu0 %v3270_v0 }
  0x46   : > { %1642 = vmatpush1.bf16.msra.mxu1 %v3200_v33  ;;  %v3223_v33 = vld [vmem:[%s3317_s19 + $0x1c0] sm:$0xff]  }
  0x47   : > { %1994 = vmatpush1.bf16.msra.mxu0 %v3201_v34  ;;  %1643 = vmatprep.subr.bf16.mxu1 %v3270_v0  ;;  %v296_v34 = vld [vmem:[%s3353_s23 + $0x180] sm:$0xff] }
  0x48   : > { %1995 = vmatprep.subr.bf16.mxu0 %v3270_v0 }
  0x4a   : > { %1644 = vmatpush1.bf16.msra.mxu1 %v3202_v35  ;;  %v300_v35 = vld [vmem:[%s3353_s23 + $0x1a0] sm:$0xff] }
  0x4b   : > { %1996 = vmatpush1.bf16.msra.mxu0 %v3203_v36  ;;  %1645 = vmatprep.subr.bf16.mxu1 %v3270_v0  ;;  %v3224_v36 = vld [vmem:[%s3317_s19 + $0xc8] sm:$0xff]   ;;  %v2700_v52 = vcombine.low %v296_v34, %v300_v35 }
  0x4c   : > { %1997 = vmatprep.subr.bf16.mxu0 %v3270_v0 }
  0x4e   : > { %1646 = vmatpush1.bf16.msra.mxu1 %v3204_v37  ;;  %v298_v37 = vld [vmem:[%s3353_s23 + $0x190] sm:$0xff] }
  0x4f   : > { %1998 = vmatpush1.bf16.msra.mxu0 %v3205_v38  ;;  %1791 = vmatprep.subr.bf16.mxu1 %v3270_v0  ;;  %v302_v38 = vld [vmem:[%s3353_s23 + $0x1b0] sm:$0xff] }
  0x50   : > { %2143 = vmatprep.subr.bf16.mxu0 %v3270_v0  ;;  %v2705_v43 = vcombine.high %v298_v37, %v302_v38  ;;  %v2704_v53 = vcombine.low %v298_v37, %v302_v38 }
  0x51   : > { %1648 = vmatmul.mubr.bf16.vlgmr.msra.gmra.mrb[0].mxu1 %v2652_v42  ;;  %v2701_v42 = vcombine.high %v296_v34, %v300_v35  ;;  %v346_v34 = vld [vmem:[%s3353_s23 + $0x310] sm:$0xff] }
  0x52   : > { %2000 = vmatmul.mubr.bf16.vlgmr.msra.gmra.mrb[0].mxu0 %v2656_v44  ;;  %1792 = vmatpush1.bf16.msra.mxu1 %v3206_v45  ;;  %v3226_v44 = vld [vmem:[%s3317_s19 + $0xd0] sm:$0xff]  }
  0x53   : > { %2144 = vmatpush1.bf16.msra.mxu0 %v3207_v46  ;;  %1655 = vmatprep.mubr.bf16.mxu1 %v2661_v47  ;;  %v3227_v45 = vld [vmem:[%s3317_s19 + $0x1d0] sm:$0xff]   ;;  %v304_v46 = vld [vmem:[%s3353_s23 + $0x1c0] sm:$0xff] }
  0x54   : > { %2007 = vmatprep.mubr.bf16.mxu0 %v2665_v48  ;;  %1793 = vmatprep.subr.bf16.mxu1 %v3270_v0  ;;  %v308_v47 = vld [vmem:[%s3353_s23 + $0x1e0] sm:$0xff]  ;;  %v3228_v48 = vld [vmem:[%s3317_s19 + $0xd8] sm:$0xff]   ;;  %v350_v35 = vld [vmem:[%s3353_s23 + $0x330] sm:$0xff] }
  0x55   : > { %2145 = vmatprep.subr.bf16.mxu0 %v3270_v0  ;;  %v2709_v54 = vcombine.high %v304_v46, %v308_v47  ;;  %v2708_v1 = vcombine.low %v304_v46, %v308_v47 }
  0x56   : > { %1794 = vmatpush1.bf16.msra.mxu1 %v3208_v49  ;;  %v306_v49 = vld [vmem:[%s3353_s23 + $0x1d0] sm:$0xff] }
  0x57   : > { %2146 = vmatpush1.bf16.msra.mxu0 %v3209_v50  ;;  %1795 = vmatprep.subr.bf16.mxu1 %v3270_v0  ;;  %v310_v50 = vld [vmem:[%s3353_s23 + $0x1f0] sm:$0xff] }
  0x58   : > { %2147 = vmatprep.subr.bf16.mxu0 %v3270_v0  ;;  %v2712_v2 = vcombine.low %v306_v49, %v310_v50 }
  0x59   : > { %1656 = vmatmul.mubr.bf16.gmra.mrb[4].mxu1 %v2660_v55  ;;  %v2713_v55 = vcombine.high %v306_v49, %v310_v50  ;;  %v364_v49 = vld [vmem:[%s3353_s23 + $0x3a0] sm:$0xff]  ;;  %v362_v50 = vld [vmem:[%s3353_s23 + $0x390] sm:$0xff] }
  0x5a   : > { %2008 = vmatmul.mubr.bf16.gmra.mrb[4].mxu0 %v2664_v56  ;;  %1663 = vmatprep.mubr.bf16.mxu1 %v2669_v57  ;;  %v3230_v56 = vld [vmem:[%s3317_s19 + $0xe0] sm:$0xff]  }
  0x5b   : > { %2015 = vmatprep.mubr.bf16.mxu0 %v2673_v58  ;;  %1796 = vmatpush1.bf16.msra.mxu1 %v3210_v59  ;;  %v3231_v57 = vld [vmem:[%s3317_s19 + $0x1e0] sm:$0xff]  }
  0x5c   : > { %2148 = vmatpush1.bf16.msra.mxu0 %v3211_v60  ;;  %1797 = vmatprep.subr.bf16.mxu1 %v3270_v0  ;;  %v312_v58 = vld [vmem:[%s3353_s23 + $0x200] sm:$0xff]  ;;  %v3232_v60 = vld [vmem:[%s3317_s19 + $0xe8] sm:$0xff]  }
  0x5d   : > { %2149 = vmatprep.subr.bf16.mxu0 %v3270_v0  ;;  %v316_v59 = vld [vmem:[%s3353_s23 + $0x220] sm:$0xff] }
  0x5f   : > { %1798 = vmatpush1.bf16.msra.mxu1 %v3212_v63  ;;  %v3233_v63 = vld [vmem:[%s3317_s19 + $0x1e8] sm:$0xff]  }
  0x60   : > { %2150 = vmatpush1.bf16.msra.mxu0 %v3213_v3  ;;  %1799 = vmatprep.subr.bf16.mxu1 %v3270_v0  ;;  %v2717_v3 = vcombine.high %v312_v58, %v316_v59 }
  0x61   : > { %1664 = vmatmul.mubr.bf16.gmra.mrb[8].mxu1 %v2668_v4  ;;  %2151 = vmatprep.subr.bf16.mxu0 %v3270_v0  ;;  %v2721_v4 = vcombine.high %v314_v61, %v318_v62 }
  0x62   : > { %2016 = vmatmul.mubr.bf16.gmra.mrb[8].mxu0 %v2672_v5  ;;  %1671 = vmatprep.mubr.bf16.mxu1 %v2677_v6  ;;  %v3234_v5 = vld [vmem:[%s3317_s19 + $0xf0] sm:$0xff]  }
  0x63   : > { %2023 = vmatprep.mubr.bf16.mxu0 %v2681_v7  ;;  %1800 = vmatpush1.bf16.msra.mxu1 %v3214_v8  ;;  %v3235_v6 = vld [vmem:[%s3317_s19 + $0x1f0] sm:$0xff]   ;;  %v320_v7 = vld [vmem:[%s3353_s23 + $0x240] sm:$0xff] }
  0x64   : > { %2152 = vmatpush1.bf16.msra.mxu0 %v3215_v9  ;;  %1801 = vmatprep.subr.bf16.mxu1 %v3270_v0  ;;  %v324_v8 = vld [vmem:[%s3353_s23 + $0x260] sm:$0xff]  ;;  %v3239_v9 = vld [vmem:[%s3317_s19 + $0xf8] sm:$0xff]  }
  0x65   : > { %2153 = vmatprep.subr.bf16.mxu0 %v3270_v0 }
  0x67   : > { %1802 = vmatpush1.bf16.msra.mxu1 %v3216_v13  ;;  %v2716_v13 = vcombine.low %v312_v58, %v316_v59  ;;  %v370_v58 = vld [vmem:[%s3353_s23 + $0x3d0] sm:$0xff] }
  0x68   : > { %2154 = vmatpush1.bf16.msra.mxu0 %v3217_v15  ;;  %1803 = vmatprep.subr.bf16.mxu1 %v3270_v0  ;;  %v2725_v15 = vcombine.high %v320_v7, %v324_v8  ;;  %v374_v59 = vld [vmem:[%s3353_s23 + $0x3f0] sm:$0xff] }
  0x69   : > { %1672 = vmatmul.mubr.bf16.gmra.mrb[12].mxu1 %v2676_v16  ;;  %2155 = vmatprep.subr.bf16.mxu0 %v3270_v0  ;;  %v2729_v16 = vcombine.high %v322_v10, %v326_v11  ;;  %v386_v10 = vld [vmem:[%s3353_s23 + $0x450] sm:$0xff] }
  0x6a   : > { %2024 = vmatmul.mubr.bf16.gmra.mrb[12].mxu0 %v2680_v17  ;;  %1679 = vmatprep.mubr.bf16.mxu1 %v2685_v18  ;;  %v328_v17 = vld [vmem:[%s3353_s23 + $0x280] sm:$0xff] }
  0x6b   : > { %2031 = vmatprep.mubr.bf16.mxu0 %v2689_v19  ;;  %1804 = vmatpush1.bf16.msra.mxu1 %v3218_v20  ;;  %v332_v18 = vld [vmem:[%s3353_s23 + $0x2a0] sm:$0xff]  ;;  %v330_v19 = vld [vmem:[%s3353_s23 + $0x290] sm:$0xff] }
  0x6c   : > { %2156 = vmatpush1.bf16.msra.mxu0 %v3219_v21  ;;  %1805 = vmatprep.subr.bf16.mxu1 %v3270_v0  ;;  %v334_v20 = vld [vmem:[%s3353_s23 + $0x2b0] sm:$0xff]  ;;  %v2724_v21 = vcombine.low %v320_v7, %v324_v8 }
  0x6d   : > { %2157 = vmatprep.subr.bf16.mxu0 %v3270_v0  ;;  %v2737_v23 = vcombine.high %v330_v19, %v334_v20 }
  0x6f   : > { %1806 = vmatpush1.bf16.msra.mxu1 %v3220_v24  ;;  %v336_v24 = vld [vmem:[%s3353_s23 + $0x2c0] sm:$0xff] }
  0x70   : > { %2158 = vmatpush1.bf16.msra.mxu0 %v3221_v27  ;;  %1807 = vmatprep.subr.bf16.mxu1 %v3270_v0  ;;  %v342_v27 = vld [vmem:[%s3353_s23 + $0x2f0] sm:$0xff] }
  0x71   : > { %1680 = vmatmul.mubr.bf16.gmra.mrb[16].mxu1 %v2684_v28  ;;  %2159 = vmatprep.subr.bf16.mxu0 %v3270_v0  ;;  %v2732_v28 = vcombine.low %v328_v17, %v332_v18  ;;  %v2744_v37 = vcombine.low %v338_v26, %v342_v27 }
  0x72   : > { %2032 = vmatmul.mubr.bf16.gmra.mrb[16].mxu0 %v2688_v29  ;;  %1687 = vmatprep.mubr.bf16.mxu1 %v2693_v30  ;;  %v2736_v29 = vcombine.low %v330_v19, %v334_v20  ;;  %v2741_v30 = vcombine.high %v336_v24, %v340_v25  ;;  %v2792_v20 = vcombine.low %v386_v10, %v386_v10 }
  0x73   : > { %2039 = vmatprep.mubr.bf16.mxu0 %v2697_v31  ;;  %1808 = vmatpush1.bf16.msra.mxu1 %v3222_v32  ;;  %v2745_v31 = vcombine.high %v338_v26, %v342_v27  ;;  %v344_v32 = vld [vmem:[%s3353_s23 + $0x300] sm:$0xff] }
  0x74   : > { %2160 = vmatpush1.bf16.msra.mxu0 %v3223_v33  ;;  %1809 = vmatprep.subr.bf16.mxu1 %v3270_v0  ;;  %v348_v33 = vld [vmem:[%s3353_s23 + $0x320] sm:$0xff] }
  0x75   : > { %2161 = vmatprep.subr.bf16.mxu0 %v3270_v0  ;;  %v2749_v38 = vcombine.high %v344_v32, %v348_v33 }
  0x77   : > { %1810 = vmatpush1.bf16.msra.mxu1 %v3224_v36  ;;  %v2740_v36 = vcombine.low %v336_v24, %v340_v25  ;;  %v259_v24 = vld [vmem:[%s3353_s23 + $0x58] sm:$0xff] }
  0x78   : > { %2162 = vmatpush1.bf16.msra.mxu0 %v3225_v39  ;;  %1811 = vmatprep.subr.bf16.mxu1 %v3270_v0  ;;  %v2753_v39 = vcombine.high %v346_v34, %v350_v35  ;;  %v263_v25 = vld [vmem:[%s3353_s23 + $0x78] sm:$0xff] }
  0x79   : > { %1688 = vmatmul.mubr.bf16.gmra.mrb[20].mxu1 %v2692_v40  ;;  %2163 = vmatprep.subr.bf16.mxu0 %v3270_v0  ;;  %v352_v40 = vld [vmem:[%s3353_s23 + $0x340] sm:$0xff] }
  0x7a   : > { %2040 = vmatmul.mubr.bf16.gmra.mrb[20].mxu0 %v2696_v41  ;;  %1695 = vmatprep.mubr.bf16.mxu1 %v2701_v42  ;;  %v356_v41 = vld [vmem:[%s3353_s23 + $0x360] sm:$0xff]  ;;  %v354_v42 = vld [vmem:[%s3353_s23 + $0x350] sm:$0xff] }
  0x7b   : > { %2047 = vmatprep.mubr.bf16.mxu0 %v2705_v43  ;;  %1812 = vmatpush1.bf16.msra.mxu1 %v3226_v44  ;;  %v358_v43 = vld [vmem:[%s3353_s23 + $0x370] sm:$0xff]  ;;  %v2748_v44 = vcombine.low %v344_v32, %v348_v33  ;;  %v2757_v46 = vcombine.high %v352_v40, %v356_v41  ;;  %v267_v32 = vld [vmem:[%s3353_s23 + $0x98] sm:$0xff] }
  0x7c   : > { %2164 = vmatpush1.bf16.msra.mxu0 %v3227_v45  ;;  %1813 = vmatprep.subr.bf16.mxu1 %v3270_v0  ;;  %v2752_v45 = vcombine.low %v346_v34, %v350_v35  ;;  %v2761_v47 = vcombine.high %v354_v42, %v358_v43  ;;  %v271_v33 = vld [vmem:[%s3353_s23 + $0xb8] sm:$0xff]  ;;  %v2666_v35 = vcombine.low %v259_v24, %v263_v25 }
  0x7d   : > { %2165 = vmatprep.subr.bf16.mxu0 %v3270_v0 }
  0x7f   : > { %1814 = vmatpush1.bf16.msra.mxu1 %v3228_v48  ;;  %v360_v48 = vld [vmem:[%s3353_s23 + $0x380] sm:$0xff] }
  0x80   : > { %2166 = vmatpush1.bf16.msra.mxu0 %v3229_v51  ;;  %1815 = vmatprep.subr.bf16.mxu1 %v3270_v0  ;;  %v366_v51 = vld [vmem:[%s3353_s23 + $0x3b0] sm:$0xff] }
  0x81   : > { %1696 = vmatmul.mubr.bf16.gmra.mrb[24].mxu1 %v2700_v52  ;;  %2167 = vmatprep.subr.bf16.mxu0 %v3270_v0  ;;  %v2756_v52 = vcombine.low %v352_v40, %v356_v41  ;;  %v2768_v61 = vcombine.low %v362_v50, %v366_v51  ;;  %v275_v40 = vld [vmem:[%s3353_s23 + $0xd8] sm:$0xff] }
  0x82   : > { %2048 = vmatmul.mubr.bf16.gmra.mrb[24].mxu0 %v2704_v53  ;;  %1703 = vmatprep.mubr.bf16.mxu1 %v2709_v54  ;;  %v2760_v53 = vcombine.low %v354_v42, %v358_v43  ;;  %v2765_v54 = vcombine.high %v360_v48, %v364_v49  ;;  %v279_v41 = vld [vmem:[%s3353_s23 + $0xf8] sm:$0xff]  ;;  %v2674_v43 = vcombine.low %v267_v32, %v271_v33 }
  0x83   : > { %2055 = vmatprep.mubr.bf16.mxu0 %v2713_v55  ;;  %1816 = vmatpush1.bf16.msra.mxu1 %v3230_v56  ;;  %v2769_v55 = vcombine.high %v362_v50, %v366_v51  ;;  %v368_v56 = vld [vmem:[%s3353_s23 + $0x3c0] sm:$0xff]  ;;  %v2682_v51 = vcombine.low %v275_v40, %v279_v41 }
  0x84   : > { %2168 = vmatpush1.bf16.msra.mxu0 %v3231_v57  ;;  %1817 = vmatprep.subr.bf16.mxu1 %v3270_v0  ;;  %v372_v57 = vld [vmem:[%s3353_s23 + $0x3e0] sm:$0xff] }
  0x85   : > { %2169 = vmatprep.subr.bf16.mxu0 %v3270_v0  ;;  %v2773_v62 = vcombine.high %v368_v56, %v372_v57 }
  0x87   : > { %1818 = vmatpush1.bf16.msra.mxu1 %v3232_v60  ;;  %v2764_v60 = vcombine.low %v360_v48, %v364_v49  ;;  %v283_v48 = vld [vmem:[%s3353_s23 + $0x118] sm:$0xff] }
  0x88   : > { %2170 = vmatpush1.bf16.msra.mxu0 %v3233_v63  ;;  %1819 = vmatprep.subr.bf16.mxu1 %v3270_v0  ;;  %v2777_v63 = vcombine.high %v370_v58, %v374_v59  ;;  %v287_v49 = vld [vmem:[%s3353_s23 + $0x138] sm:$0xff] }
  0x89   : > { %1704 = vmatmul.mubr.bf16.gmra.mrb[28].mxu1 %v2708_v1  ;;  %2171 = vmatprep.subr.bf16.mxu0 %v3270_v0  ;;  %v376_v1 = vld [vmem:[%s3353_s23 + $0x400] sm:$0xff] }
  0x8a   : > { %2056 = vmatmul.mubr.bf16.gmra.mrb[28].mxu0 %v2712_v2  ;;  %1711 = vmatprep.mubr.bf16.mxu1 %v2717_v3  ;;  %v380_v2 = vld [vmem:[%s3353_s23 + $0x420] sm:$0xff]  ;;  %v378_v3 = vld [vmem:[%s3353_s23 + $0x410] sm:$0xff] }
  0x8b   : > { %2063 = vmatprep.mubr.bf16.mxu0 %v2721_v4  ;;  %1820 = vmatpush1.bf16.msra.mxu1 %v3234_v5  ;;  %v382_v4 = vld [vmem:[%s3353_s23 + $0x430] sm:$0xff]  ;;  %v2772_v5 = vcombine.low %v368_v56, %v372_v57  ;;  %v2781_v7 = vcombine.high %v376_v1, %v380_v2  ;;  %v2780_v11 = vcombine.low %v376_v1, %v380_v2  ;;  %v291_v56 = vld [vmem:[%s3353_s23 + $0x158] sm:$0xff] }
  0x8c   : > { %2172 = vmatpush1.bf16.msra.mxu0 %v3235_v6  ;;  %1821 = vmatprep.subr.bf16.mxu1 %v3270_v0  ;;  %v2776_v6 = vcombine.low %v370_v58, %v374_v59  ;;  %v2785_v8 = vcombine.high %v378_v3, %v382_v4  ;;  %v295_v57 = vld [vmem:[%s3353_s23 + $0x178] sm:$0xff]  ;;  %v2690_v59 = vcombine.low %v283_v48, %v287_v49 }
  0x8d   : > { %2173 = vmatprep.subr.bf16.mxu0 %v3270_v0  ;;  %v2733_v0 = vcombine.high %v328_v17, %v332_v18  ;;  %v251_v17 = vld [vmem:[%s3353_s23 + $0x18] sm:$0xff] }
  0x8e   : > { %v255_v18 = vld [vmem:[%s3353_s23 + $0x38] sm:$0xff] }
  0x8f   : > { %1822 = vmatpush1.bf16.msra.mxu1 %v3239_v9  ;;  %v384_v9 = vld [vmem:[%s3353_s23 + $0x440] sm:$0xff]  ;;  %v2658_v27 = vcombine.low %v251_v17, %v255_v18  ;;  %v299_v1 = vld [vmem:[%s3353_s23 + $0x198] sm:$0xff] }
  0x90   : > { %2174 = vmatpush1.bf16.msra.mxu0 %v3241_v12  ;;  %v2784_v12 = vcombine.low %v378_v3, %v382_v4  ;;  %v2788_v19 = vcombine.low %v384_v9, %v384_v9  ;;  %v303_v2 = vld [vmem:[%s3353_s23 + $0x1b8] sm:$0xff]  ;;  %v2698_v4 = vcombine.low %v291_v56, %v295_v57 }
  0x91   : > { %1712 = vmatmul.mubr.bf16.gmra.mrb[32].mxu1 %v2716_v13  ;;  %v2789_v13 = vcombine.high %v384_v9, %v384_v9  ;;  %v307_v9 = vld [vmem:[%s3353_s23 + $0x1d8] sm:$0xff] }
  0x92   : > { %2064 = vmatmul.mubr.bf16.gmra.mrb[32].mxu0 %v2720_v14  ;;  %1719 = vmatprep.mubr.bf16.mxu1 %v2725_v15  ;;  %v2793_v14 = vcombine.high %v386_v10, %v386_v10  ;;  %v249_v15 = vld [vmem:[%s3353_s23 + $0x8] sm:$0xff]  ;;  %v311_v10 = vld [vmem:[%s3353_s23 + $0x1f8] sm:$0xff] }
  0x93   : > { %2071 = vmatprep.mubr.bf16.mxu0 %v2729_v16  ;;  %v253_v16 = vld [vmem:[%s3353_s23 + $0x28] sm:$0xff] }
  0x94   : > { %v2654_v26 = vcombine.low %v249_v15, %v253_v16 }
  0x99   : > { %1720 = vmatmul.mubr.bf16.gmra.mrb[36].mxu1 %v2724_v21  ;;  %v2655_v21 = vcombine.high %v249_v15, %v253_v16  ;;  %v313_v15 = vld [vmem:[%s3353_s23 + $0x208] sm:$0xff] }
  0x9a   : > { %2072 = vmatmul.mubr.bf16.gmra.mrb[36].mxu0 %v2728_v22  ;;  %1727 = vmatprep.mubr.bf16.mxu1 %v2733_v0  ;;  %v2659_v22 = vcombine.high %v251_v17, %v255_v18  ;;  %v257_v0 = vld [vmem:[%s3353_s23 + $0x48] sm:$0xff]  ;;  %v315_v17 = vld [vmem:[%s3353_s23 + $0x218] sm:$0xff] }
  0x9b   : > { %2079 = vmatprep.mubr.bf16.mxu0 %v2737_v23  ;;  %v261_v23 = vld [vmem:[%s3353_s23 + $0x68] sm:$0xff]  ;;  %v319_v18 = vld [vmem:[%s3353_s23 + $0x238] sm:$0xff] }
  0x9c   : > { %v2662_v34 = vcombine.low %v257_v0, %v261_v23  ;;  %v317_v16 = vld [vmem:[%s3353_s23 + $0x228] sm:$0xff] }
  0xa1   : > { %1728 = vmatmul.mubr.bf16.gmra.mrb[40].mxu1 %v2732_v28  ;;  %v2663_v28 = vcombine.high %v257_v0, %v261_v23  ;;  %v321_v0 = vld [vmem:[%s3353_s23 + $0x248] sm:$0xff] }
  0xa2   : > { %2080 = vmatmul.mubr.bf16.gmra.mrb[40].mxu0 %v2736_v29  ;;  %1735 = vmatprep.mubr.bf16.mxu1 %v2741_v30  ;;  %v2667_v29 = vcombine.high %v259_v24, %v263_v25  ;;  %v265_v30 = vld [vmem:[%s3353_s23 + $0x88] sm:$0xff]  ;;  %v323_v24 = vld [vmem:[%s3353_s23 + $0x258] sm:$0xff] }
  0xa3   : > { %2087 = vmatprep.mubr.bf16.mxu0 %v2745_v31  ;;  %v269_v31 = vld [vmem:[%s3353_s23 + $0xa8] sm:$0xff]  ;;  %v327_v25 = vld [vmem:[%s3353_s23 + $0x278] sm:$0xff] }
  0xa4   : > { %v2670_v42 = vcombine.low %v265_v30, %v269_v31  ;;  %v325_v23 = vld [vmem:[%s3353_s23 + $0x268] sm:$0xff] }
  0xa9   : > { %1736 = vmatmul.mubr.bf16.gmra.mrb[44].mxu1 %v2740_v36  ;;  %v2671_v36 = vcombine.high %v265_v30, %v269_v31  ;;  %v329_v30 = vld [vmem:[%s3353_s23 + $0x288] sm:$0xff] }
  0xaa   : > { %2088 = vmatmul.mubr.bf16.gmra.mrb[44].mxu0 %v2744_v37  ;;  %1743 = vmatprep.mubr.bf16.mxu1 %v2749_v38  ;;  %v2675_v37 = vcombine.high %v267_v32, %v271_v33  ;;  %v273_v38 = vld [vmem:[%s3353_s23 + $0xc8] sm:$0xff]  ;;  %v331_v32 = vld [vmem:[%s3353_s23 + $0x298] sm:$0xff] }
  0xab   : > { %2095 = vmatprep.mubr.bf16.mxu0 %v2753_v39  ;;  %v277_v39 = vld [vmem:[%s3353_s23 + $0xe8] sm:$0xff]  ;;  %v335_v33 = vld [vmem:[%s3353_s23 + $0x2b8] sm:$0xff] }
  0xac   : > { %v2678_v50 = vcombine.low %v273_v38, %v277_v39  ;;  %v333_v31 = vld [vmem:[%s3353_s23 + $0x2a8] sm:$0xff] }
  0xb1   : > { %1744 = vmatmul.mubr.bf16.gmra.mrb[48].mxu1 %v2748_v44  ;;  %v2679_v44 = vcombine.high %v273_v38, %v277_v39  ;;  %v337_v38 = vld [vmem:[%s3353_s23 + $0x2c8] sm:$0xff] }
  0xb2   : > { %2096 = vmatmul.mubr.bf16.gmra.mrb[48].mxu0 %v2752_v45  ;;  %1751 = vmatprep.mubr.bf16.mxu1 %v2757_v46  ;;  %v2683_v45 = vcombine.high %v275_v40, %v279_v41  ;;  %v281_v46 = vld [vmem:[%s3353_s23 + $0x108] sm:$0xff]  ;;  %v339_v40 = vld [vmem:[%s3353_s23 + $0x2d8] sm:$0xff] }
  0xb3   : > { %2103 = vmatprep.mubr.bf16.mxu0 %v2761_v47  ;;  %v285_v47 = vld [vmem:[%s3353_s23 + $0x128] sm:$0xff]  ;;  %v343_v41 = vld [vmem:[%s3353_s23 + $0x2f8] sm:$0xff] }
  0xb4   : > { %v2686_v58 = vcombine.low %v281_v46, %v285_v47  ;;  %v341_v39 = vld [vmem:[%s3353_s23 + $0x2e8] sm:$0xff] }
  0xb9   : > { %1752 = vmatmul.mubr.bf16.gmra.mrb[52].mxu1 %v2756_v52  ;;  %v2687_v52 = vcombine.high %v281_v46, %v285_v47  ;;  %v345_v46 = vld [vmem:[%s3353_s23 + $0x308] sm:$0xff] }
  0xba   : > { %2104 = vmatmul.mubr.bf16.gmra.mrb[52].mxu0 %v2760_v53  ;;  %1759 = vmatprep.mubr.bf16.mxu1 %v2765_v54  ;;  %v2691_v53 = vcombine.high %v283_v48, %v287_v49  ;;  %v289_v54 = vld [vmem:[%s3353_s23 + $0x148] sm:$0xff]  ;;  %v347_v48 = vld [vmem:[%s3353_s23 + $0x318] sm:$0xff] }
  0xbb   : > { %2111 = vmatprep.mubr.bf16.mxu0 %v2769_v55  ;;  %v293_v55 = vld [vmem:[%s3353_s23 + $0x168] sm:$0xff]  ;;  %v351_v49 = vld [vmem:[%s3353_s23 + $0x338] sm:$0xff] }
  0xbc   : > { %v2694_v3 = vcombine.low %v289_v54, %v293_v55  ;;  %v349_v47 = vld [vmem:[%s3353_s23 + $0x328] sm:$0xff] }
  0xc1   : > { %1760 = vmatmul.mubr.bf16.gmra.mrb[56].mxu1 %v2764_v60  ;;  %v2695_v60 = vcombine.high %v289_v54, %v293_v55  ;;  %v353_v54 = vld [vmem:[%s3353_s23 + $0x348] sm:$0xff] }
  0xc2   : > { %2112 = vmatmul.mubr.bf16.gmra.mrb[56].mxu0 %v2768_v61  ;;  %1767 = vmatprep.mubr.bf16.mxu1 %v2773_v62  ;;  %v2699_v61 = vcombine.high %v291_v56, %v295_v57  ;;  %v297_v62 = vld [vmem:[%s3353_s23 + $0x188] sm:$0xff]  ;;  %v355_v56 = vld [vmem:[%s3353_s23 + $0x358] sm:$0xff] }
  0xc3   : > { %2119 = vmatprep.mubr.bf16.mxu0 %v2777_v63  ;;  %v301_v63 = vld [vmem:[%s3353_s23 + $0x1a8] sm:$0xff]  ;;  %v359_v57 = vld [vmem:[%s3353_s23 + $0x378] sm:$0xff] }
  0xc4   : > { %v357_v55 = vld [vmem:[%s3353_s23 + $0x368] sm:$0xff] }
  0xc9   : > { %1768 = vmatmul.mubr.bf16.gmra.mrb[60].mxu1 %v2772_v5  ;;  %v2703_v5 = vcombine.high %v297_v62, %v301_v63 }
  0xca   : > { %2120 = vmatmul.mubr.bf16.gmra.mrb[60].mxu0 %v2776_v6  ;;  %1775 = vmatprep.mubr.bf16.mxu1 %v2781_v7  ;;  %v2707_v6 = vcombine.high %v299_v1, %v303_v2  ;;  %v305_v7 = vld [vmem:[%s3353_s23 + $0x1c8] sm:$0xff] }
  0xcb   : > { %2127 = vmatprep.mubr.bf16.mxu0 %v2785_v8  ;;  %v309_v8 = vld [vmem:[%s3353_s23 + $0x1e8] sm:$0xff] }
  0xd1   : > { %1776 = vmatmul.mubr.bf16.gmra.mrb[64].mxu1 %v2780_v11  ;;  %v2702_v11 = vcombine.low %v297_v62, %v301_v63  ;;  %v361_v62 = vld [vmem:[%s3353_s23 + $0x388] sm:$0xff] }
  0xd2   : > { %2128 = vmatmul.mubr.bf16.gmra.mrb[64].mxu0 %v2784_v12  ;;  %1783 = vmatprep.mubr.bf16.mxu1 %v2789_v13  ;;  %v2706_v12 = vcombine.low %v299_v1, %v303_v2  ;;  %v2711_v13 = vcombine.high %v305_v7, %v309_v8  ;;  %v365_v63 = vld [vmem:[%s3353_s23 + $0x3a8] sm:$0xff]  ;;  %v363_v1 = vld [vmem:[%s3353_s23 + $0x398] sm:$0xff] }
  0xd3   : > { %2135 = vmatprep.mubr.bf16.mxu0 %v2793_v14  ;;  %v2715_v14 = vcombine.high %v307_v9, %v311_v10  ;;  %v367_v2 = vld [vmem:[%s3353_s23 + $0x3b8] sm:$0xff] }
  0xd9   : > { %1784 = vmatmul.mubr.bf16.gmra.mrb[68].mxu1 %v2788_v19  ;;  %v2710_v19 = vcombine.low %v305_v7, %v309_v8  ;;  %v369_v7 = vld [vmem:[%s3353_s23 + $0x3c8] sm:$0xff] }
  0xda   : > { %2136 = vmatmul.mubr.bf16.gmra.mrb[68].mxu0 %v2792_v20  ;;  %1823 = vmatprep.mubr.bf16.mxu1 %v2655_v21  ;;  %v2714_v20 = vcombine.low %v307_v9, %v311_v10  ;;  %v2719_v21 = vcombine.high %v313_v15, %v317_v16  ;;  %v373_v8 = vld [vmem:[%s3353_s23 + $0x3e8] sm:$0xff]  ;;  %v371_v9 = vld [vmem:[%s3353_s23 + $0x3d8] sm:$0xff] }
  0xdb   : > { %2175 = vmatprep.mubr.bf16.mxu0 %v2659_v22  ;;  %v2723_v22 = vcombine.high %v315_v17, %v319_v18  ;;  %v375_v10 = vld [vmem:[%s3353_s23 + $0x3f8] sm:$0xff] }
  0xe1   : > { %1824 = vmatmul.mubr.bf16.vlgmr.msra.gmra.mrb[0].mxu1 %v2654_v26  ;;  %v2718_v26 = vcombine.low %v313_v15, %v317_v16  ;;  %v377_v15 = vld [vmem:[%s3353_s23 + $0x408] sm:$0xff] }
  0xe2   : > { %2176 = vmatmul.mubr.bf16.vlgmr.msra.gmra.mrb[0].mxu0 %v2658_v27  ;;  %1831 = vmatprep.mubr.bf16.mxu1 %v2663_v28  ;;  %v2722_v27 = vcombine.low %v315_v17, %v319_v18  ;;  %v2727_v28 = vcombine.high %v321_v0, %v325_v23  ;;  %v381_v16 = vld [vmem:[%s3353_s23 + $0x428] sm:$0xff]  ;;  %v379_v17 = vld [vmem:[%s3353_s23 + $0x418] sm:$0xff] }
  0xe3   : > { %2183 = vmatprep.mubr.bf16.mxu0 %v2667_v29  ;;  %v2731_v29 = vcombine.high %v323_v24, %v327_v25  ;;  %v383_v18 = vld [vmem:[%s3353_s23 + $0x438] sm:$0xff] }
  0xe9   : > { %1832 = vmatmul.mubr.bf16.gmra.mrb[4].mxu1 %v2662_v34  ;;  %v2726_v34 = vcombine.low %v321_v0, %v325_v23  ;;  %v385_v0 = vld [vmem:[%s3353_s23 + $0x448] sm:$0xff]  ;;  %v387_v23 = vld [vmem:[%s3353_s23 + $0x458] sm:$0xff] }
  0xea   : > { %2184 = vmatmul.mubr.bf16.gmra.mrb[4].mxu0 %v2666_v35  ;;  %1839 = vmatprep.mubr.bf16.mxu1 %v2671_v36  ;;  %v2730_v35 = vcombine.low %v323_v24, %v327_v25  ;;  %v2735_v36 = vcombine.high %v329_v30, %v333_v31  ;;  %v2782_v24 = vcombine.low %v377_v15, %v381_v16 }
  0xeb   : > { %2191 = vmatprep.mubr.bf16.mxu0 %v2675_v37  ;;  %v2739_v37 = vcombine.high %v331_v32, %v335_v33  ;;  %v2786_v25 = vcombine.low %v379_v17, %v383_v18 }
  0xf1   : > { %1840 = vmatmul.mubr.bf16.gmra.mrb[8].mxu1 %v2670_v42  ;;  %v2734_v42 = vcombine.low %v329_v30, %v333_v31  ;;  %v3607_v30 = vld [vmem:[%s236_s26] ss:$0 sm:$0xff] }
  0xf2   : > { %2192 = vmatmul.mubr.bf16.gmra.mrb[8].mxu0 %v2674_v43  ;;  %1847 = vmatprep.mubr.bf16.mxu1 %v2679_v44  ;;  %v2738_v43 = vcombine.low %v331_v32, %v335_v33  ;;  %v2743_v44 = vcombine.high %v337_v38, %v341_v39 }
  0xf3   : > { %2199 = vmatprep.mubr.bf16.mxu0 %v2683_v45  ;;  %v2747_v45 = vcombine.high %v339_v40, %v343_v41 }
  0xf9   : > { %1848 = vmatmul.mubr.bf16.gmra.mrb[12].mxu1 %v2678_v50  ;;  %v2742_v50 = vcombine.low %v337_v38, %v341_v39 }
  0xfa   : > { %2200 = vmatmul.mubr.bf16.gmra.mrb[12].mxu0 %v2682_v51  ;;  %1855 = vmatprep.mubr.bf16.mxu1 %v2687_v52  ;;  %v2746_v51 = vcombine.low %v339_v40, %v343_v41  ;;  %v2751_v52 = vcombine.high %v345_v46, %v349_v47 }
  0xfb   : > { %2207 = vmatprep.mubr.bf16.mxu0 %v2691_v53  ;;  %v2755_v53 = vcombine.high %v347_v48, %v351_v49 }
 0x101   : > { %1856 = vmatmul.mubr.bf16.gmra.mrb[16].mxu1 %v2686_v58  ;;  %v2750_v58 = vcombine.low %v345_v46, %v349_v47 }
 0x102   : > { %2208 = vmatmul.mubr.bf16.gmra.mrb[16].mxu0 %v2690_v59  ;;  %1863 = vmatprep.mubr.bf16.mxu1 %v2695_v60  ;;  %v2754_v59 = vcombine.low %v347_v48, %v351_v49  ;;  %v2759_v60 = vcombine.high %v353_v54, %v357_v55 }
 0x103   : > { %2215 = vmatprep.mubr.bf16.mxu0 %v2699_v61  ;;  %v2763_v61 = vcombine.high %v355_v56, %v359_v57 }
 0x109   : > { %1864 = vmatmul.mubr.bf16.gmra.mrb[20].mxu1 %v2694_v3  ;;  %v2758_v3 = vcombine.low %v353_v54, %v357_v55 }
 0x10a   : > { %2216 = vmatmul.mubr.bf16.gmra.mrb[20].mxu0 %v2698_v4  ;;  %1871 = vmatprep.mubr.bf16.mxu1 %v2703_v5  ;;  %v2762_v4 = vcombine.low %v355_v56, %v359_v57  ;;  %v2767_v5 = vcombine.high %v361_v62, %v365_v63 }
 0x10b   : > { %2223 = vmatprep.mubr.bf16.mxu0 %v2707_v6  ;;  %v2771_v6 = vcombine.high %v363_v1, %v367_v2 }
 0x111   : > { %1872 = vmatmul.mubr.bf16.gmra.mrb[24].mxu1 %v2702_v11  ;;  %v2766_v11 = vcombine.low %v361_v62, %v365_v63 }
 0x112   : > { %2224 = vmatmul.mubr.bf16.gmra.mrb[24].mxu0 %v2706_v12  ;;  %1879 = vmatprep.mubr.bf16.mxu1 %v2711_v13  ;;  %v2770_v12 = vcombine.low %v363_v1, %v367_v2  ;;  %v2775_v13 = vcombine.high %v369_v7, %v373_v8 }
 0x113   : > { %2231 = vmatprep.mubr.bf16.mxu0 %v2715_v14  ;;  %v2779_v14 = vcombine.high %v371_v9, %v375_v10 }
 0x119   : > { %1880 = vmatmul.mubr.bf16.gmra.mrb[28].mxu1 %v2710_v19  ;;  %v2774_v19 = vcombine.low %v369_v7, %v373_v8 }
 0x11a   : > { %2232 = vmatmul.mubr.bf16.gmra.mrb[28].mxu0 %v2714_v20  ;;  %1887 = vmatprep.mubr.bf16.mxu1 %v2719_v21  ;;  %v2778_v20 = vcombine.low %v371_v9, %v375_v10  ;;  %v2783_v21 = vcombine.high %v377_v15, %v381_v16 }
 0x11b   : > { %2239 = vmatprep.mubr.bf16.mxu0 %v2723_v22  ;;  %v2787_v22 = vcombine.high %v379_v17, %v383_v18 }
 0x121   : > { %1888 = vmatmul.mubr.bf16.gmra.mrb[32].mxu1 %v2718_v26  ;;  %v2791_v26 = vcombine.high %v385_v0, %v385_v0 }
 0x122   : > { %2240 = vmatmul.mubr.bf16.gmra.mrb[32].mxu0 %v2722_v27  ;;  %1895 = vmatprep.mubr.bf16.mxu1 %v2727_v28  ;;  %v2795_v27 = vcombine.high %v387_v23, %v387_v23  ;;  %v2790_v28 = vcombine.low %v385_v0, %v385_v0 }
 0x123   : > { %2247 = vmatprep.mubr.bf16.mxu0 %v2731_v29  ;;  %v2794_v29 = vcombine.low %v387_v23, %v387_v23 }
 0x129   : > { %1896 = vmatmul.mubr.bf16.gmra.mrb[36].mxu1 %v2726_v34 }
 0x12a   : > { %2248 = vmatmul.mubr.bf16.gmra.mrb[36].mxu0 %v2730_v35  ;;  %1903 = vmatprep.mubr.bf16.mxu1 %v2735_v36 }
 0x12b   : > { %2255 = vmatprep.mubr.bf16.mxu0 %v2739_v37 }
 0x131   : > { %1904 = vmatmul.mubr.bf16.gmra.mrb[40].mxu1 %v2734_v42 }
 0x132   : > { %2256 = vmatmul.mubr.bf16.gmra.mrb[40].mxu0 %v2738_v43  ;;  %1911 = vmatprep.mubr.bf16.mxu1 %v2743_v44 }
 0x133   : > { %2263 = vmatprep.mubr.bf16.mxu0 %v2747_v45 }
 0x139   : > { %1912 = vmatmul.mubr.bf16.gmra.mrb[44].mxu1 %v2742_v50 }
 0x13a   : > { %2264 = vmatmul.mubr.bf16.gmra.mrb[44].mxu0 %v2746_v51  ;;  %1919 = vmatprep.mubr.bf16.mxu1 %v2751_v52 }
 0x13b   : > { %2271 = vmatprep.mubr.bf16.mxu0 %v2755_v53 }
 0x141   : > { %1920 = vmatmul.mubr.bf16.gmra.mrb[48].mxu1 %v2750_v58 }
 0x142   : > { %2272 = vmatmul.mubr.bf16.gmra.mrb[48].mxu0 %v2754_v59  ;;  %1927 = vmatprep.mubr.bf16.mxu1 %v2759_v60 }
 0x143   : > { %2279 = vmatprep.mubr.bf16.mxu0 %v2763_v61 }
 0x149   : > { %1928 = vmatmul.mubr.bf16.gmra.mrb[52].mxu1 %v2758_v3 }
 0x14a   : > { %2280 = vmatmul.mubr.bf16.gmra.mrb[52].mxu0 %v2762_v4  ;;  %1935 = vmatprep.mubr.bf16.mxu1 %v2767_v5 }
 0x14b   : > { %2287 = vmatprep.mubr.bf16.mxu0 %v2771_v6 }
 0x151   : > { %1936 = vmatmul.mubr.bf16.gmra.mrb[56].mxu1 %v2766_v11 }
 0x152   : > { %2288 = vmatmul.mubr.bf16.gmra.mrb[56].mxu0 %v2770_v12  ;;  %1943 = vmatprep.mubr.bf16.mxu1 %v2775_v13 }
 0x153   : > { %2295 = vmatprep.mubr.bf16.mxu0 %v2779_v14 }
 0x159   : > { %1944 = vmatmul.mubr.bf16.gmra.mrb[60].mxu1 %v2774_v19 }
 0x15a   : > { %2296 = vmatmul.mubr.bf16.gmra.mrb[60].mxu0 %v2778_v20  ;;  %1951 = vmatprep.mubr.bf16.mxu1 %v2783_v21 }
 0x15b   : > { %2303 = vmatprep.mubr.bf16.mxu0 %v2787_v22 }
 0x161   : > { %1952 = vmatmul.mubr.bf16.gmra.mrb[64].mxu1 %v2782_v24 }
 0x162   : > { %2304 = vmatmul.mubr.bf16.gmra.mrb[64].mxu0 %v2786_v25  ;;  %1959 = vmatprep.mubr.bf16.mxu1 %v2791_v26 }
 0x163   : > { %2311 = vmatprep.mubr.bf16.mxu0 %v2795_v27 }
 0x169   : > { %1960 = vmatmul.mubr.bf16.gmra.mrb[68].mxu1 %v2790_v28 }
 0x16a   : > { %2312 = vmatmul.mubr.bf16.gmra.mrb[68].mxu0 %v2794_v29 }
 0x1b4   : > { %v1825_v31 = vpop.f32.mrb[0].mxu1 }
 0x1b5   : > { %v2933_v32 = vadd.f32 %v3607_v30, %v1825_v31  ;;  %v2177_v33 = vpop.f32.mrb[0].mxu0  ;;  %v1827_v34 = vpop.f32.mrb[1].mxu1 }
 0x1b6   : > { %v2179_v35 = vpop.f32.mrb[1].mxu0  ;;  %v1828_v36 = vpop.f32.mrb[2].mxu1 }
 0x1b7   : > { %v2934_v37 = vadd.f32 %v2933_v32, %v2177_v33  ;;  %v2935_v38 = vadd.f32 %v3607_v30, %v1828_v36  ;;  %v2180_v39 = vpop.f32.mrb[2].mxu0  ;;  %v1830_v40 = vpop.f32.mrb[3].mxu1 }
 0x1b8   : > { %v2182_v41 = vpop.f32.mrb[3].mxu0 }
 0x1b9   : > { %v2319_v42 = vmax.f32 %v2934_v37, 0.0  ;;  %v2936_v43 = vadd.f32 %v2935_v38, %v2180_v39 }
 0x1bb   : > { %v2898_v44 = vpack.c.bf16 %v2319_v42, %v2319_v42  ;;  %v2320_v45 = vmax.f32 %v2936_v43, 0.0 }
 0x1bc   : > { %v1833_v46 = vpop.f32.mrb[4].mxu1 }
 0x1bd   : > { %2496 = vst.msk [vmem:[%s3615_s30] sm:$0xf] %vm2495_vm0, %v2898_v44  ;;  %v2899_v47 = vpack.c.bf16 %v2320_v45, %v2320_v45  ;;  %v2937_v48 = vadd.f32 %v3607_v30, %v1833_v46  ;;  %v2185_v49 = vpop.f32.mrb[4].mxu0  ;;  %v1835_v50 = vpop.f32.mrb[5].mxu1 }
 0x1be   : > { %v2187_v51 = vpop.f32.mrb[5].mxu0  ;;  %v1836_v52 = vpop.f32.mrb[6].mxu1 }
 0x1bf   : > { %2497 = vst.msk [vmem:[%s3615_s30 + $0x4] sm:$0xf] %vm2495_vm0, %v2899_v47  ;;  %v2938_v53 = vadd.f32 %v2937_v48, %v2185_v49  ;;  %v2939_v54 = vadd.f32 %v3607_v30, %v1836_v52  ;;  %v2188_v55 = vpop.f32.mrb[6].mxu0  ;;  %v1838_v56 = vpop.f32.mrb[7].mxu1 }
 0x1c0   : > { %v2190_v57 = vpop.f32.mrb[7].mxu0 }
 0x1c1   : > { %v2321_v58 = vmax.f32 %v2938_v53, 0.0  ;;  %v2940_v59 = vadd.f32 %v2939_v54, %v2188_v55 }
 0x1c3   : > { %v2900_v60 = vpack.c.bf16 %v2321_v58, %v2321_v58  ;;  %v2322_v61 = vmax.f32 %v2940_v59, 0.0 }
 0x1c4   : > { %v1841_v62 = vpop.f32.mrb[8].mxu1 }
 0x1c5   : > { %2498 = vst.msk [vmem:[%s3615_s30 + $0x8] sm:$0xf] %vm2495_vm0, %v2900_v60  ;;  %v2901_v63 = vpack.c.bf16 %v2322_v61, %v2322_v61  ;;  %v2941_v1 = vadd.f32 %v3607_v30, %v1841_v62  ;;  %v2193_v2 = vpop.f32.mrb[8].mxu0  ;;  %v1843_v3 = vpop.f32.mrb[9].mxu1 }
 0x1c6   : > { %v2195_v4 = vpop.f32.mrb[9].mxu0  ;;  %v1844_v5 = vpop.f32.mrb[10].mxu1 }
 0x1c7   : > { %2499 = vst.msk [vmem:[%s3615_s30 + $0xc] sm:$0xf] %vm2495_vm0, %v2901_v63  ;;  %v2942_v6 = vadd.f32 %v2941_v1, %v2193_v2  ;;  %v2943_v7 = vadd.f32 %v3607_v30, %v1844_v5  ;;  %v2196_v8 = vpop.f32.mrb[10].mxu0  ;;  %v1846_v9 = vpop.f32.mrb[11].mxu1 }
 0x1c8   : > { %v2198_v10 = vpop.f32.mrb[11].mxu0 }
 0x1c9   : > { %v2323_v11 = vmax.f32 %v2942_v6, 0.0  ;;  %v2944_v12 = vadd.f32 %v2943_v7, %v2196_v8 }
 0x1cb   : > { %v2902_v13 = vpack.c.bf16 %v2323_v11, %v2323_v11  ;;  %v2324_v14 = vmax.f32 %v2944_v12, 0.0 }
 0x1cc   : > { %v1849_v15 = vpop.f32.mrb[12].mxu1 }
 0x1cd   : > { %2500 = vst.msk [vmem:[%s3615_s30 + $0x10] sm:$0xf] %vm2495_vm0, %v2902_v13  ;;  %v2903_v16 = vpack.c.bf16 %v2324_v14, %v2324_v14  ;;  %v2945_v17 = vadd.f32 %v3607_v30, %v1849_v15  ;;  %v2201_v18 = vpop.f32.mrb[12].mxu0  ;;  %v1851_v19 = vpop.f32.mrb[13].mxu1 }
 0x1ce   : > { %v2203_v20 = vpop.f32.mrb[13].mxu0  ;;  %v1852_v21 = vpop.f32.mrb[14].mxu1 }
 0x1cf   : > { %2501 = vst.msk [vmem:[%s3615_s30 + $0x14] sm:$0xf] %vm2495_vm0, %v2903_v16  ;;  %v2946_v22 = vadd.f32 %v2945_v17, %v2201_v18  ;;  %v2947_v0 = vadd.f32 %v3607_v30, %v1852_v21  ;;  %v2204_v23 = vpop.f32.mrb[14].mxu0  ;;  %v1854_v24 = vpop.f32.mrb[15].mxu1 }
 0x1d0   : > { %v2206_v25 = vpop.f32.mrb[15].mxu0 }
 0x1d1   : > { %v2325_v26 = vmax.f32 %v2946_v22, 0.0  ;;  %v2948_v27 = vadd.f32 %v2947_v0, %v2204_v23 }
 0x1d3   : > { %v2904_v28 = vpack.c.bf16 %v2325_v26, %v2325_v26  ;;  %v2326_v29 = vmax.f32 %v2948_v27, 0.0 }
 0x1d4   : > { %v1857_v31 = vpop.f32.mrb[16].mxu1 }
 0x1d5   : > { %2502 = vst.msk [vmem:[%s3615_s30 + $0x18] sm:$0xf] %vm2495_vm0, %v2904_v28  ;;  %v2905_v32 = vpack.c.bf16 %v2326_v29, %v2326_v29  ;;  %v2949_v33 = vadd.f32 %v3607_v30, %v1857_v31  ;;  %v2209_v34 = vpop.f32.mrb[16].mxu0  ;;  %v1859_v35 = vpop.f32.mrb[17].mxu1 }
 0x1d6   : > { %v2211_v36 = vpop.f32.mrb[17].mxu0  ;;  %v1860_v37 = vpop.f32.mrb[18].mxu1 }
 0x1d7   : > { %2503 = vst.msk [vmem:[%s3615_s30 + $0x1c] sm:$0xf] %vm2495_vm0, %v2905_v32  ;;  %v2950_v38 = vadd.f32 %v2949_v33, %v2209_v34  ;;  %v2951_v39 = vadd.f32 %v3607_v30, %v1860_v37  ;;  %v2212_v40 = vpop.f32.mrb[18].mxu0  ;;  %v1862_v41 = vpop.f32.mrb[19].mxu1 }
 0x1d8   : > { %v2214_v42 = vpop.f32.mrb[19].mxu0 }
 0x1d9   : > { %v2327_v43 = vmax.f32 %v2950_v38, 0.0  ;;  %v2952_v44 = vadd.f32 %v2951_v39, %v2212_v40 }
 0x1db   : > { %v2906_v45 = vpack.c.bf16 %v2327_v43, %v2327_v43  ;;  %v2328_v46 = vmax.f32 %v2952_v44, 0.0 }
 0x1dc   : > { %v1865_v47 = vpop.f32.mrb[20].mxu1 }
 0x1dd   : > { %2504 = vst.msk [vmem:[%s3615_s30 + $0x20] sm:$0xf] %vm2495_vm0, %v2906_v45  ;;  %v2907_v48 = vpack.c.bf16 %v2328_v46, %v2328_v46  ;;  %v2953_v49 = vadd.f32 %v3607_v30, %v1865_v47  ;;  %v2217_v50 = vpop.f32.mrb[20].mxu0  ;;  %v1867_v51 = vpop.f32.mrb[21].mxu1 }
 0x1de   : > { %v2219_v52 = vpop.f32.mrb[21].mxu0  ;;  %v1868_v53 = vpop.f32.mrb[22].mxu1 }
 0x1df   : > { %2505 = vst.msk [vmem:[%s3615_s30 + $0x24] sm:$0xf] %vm2495_vm0, %v2907_v48  ;;  %v2954_v54 = vadd.f32 %v2953_v49, %v2217_v50  ;;  %v2955_v55 = vadd.f32 %v3607_v30, %v1868_v53  ;;  %v2220_v56 = vpop.f32.mrb[22].mxu0  ;;  %v1870_v57 = vpop.f32.mrb[23].mxu1 }
 0x1e0   : > { %v2222_v58 = vpop.f32.mrb[23].mxu0 }
 0x1e1   : > { %v2329_v59 = vmax.f32 %v2954_v54, 0.0  ;;  %v2956_v60 = vadd.f32 %v2955_v55, %v2220_v56 }
 0x1e3   : > { %v2908_v61 = vpack.c.bf16 %v2329_v59, %v2329_v59  ;;  %v2330_v62 = vmax.f32 %v2956_v60, 0.0 }
 0x1e4   : > { %v1873_v63 = vpop.f32.mrb[24].mxu1 }
 0x1e5   : > { %2506 = vst.msk [vmem:[%s3615_s30 + $0x28] sm:$0xf] %vm2495_vm0, %v2908_v61  ;;  %v2909_v1 = vpack.c.bf16 %v2330_v62, %v2330_v62  ;;  %v2957_v2 = vadd.f32 %v3607_v30, %v1873_v63  ;;  %v2225_v3 = vpop.f32.mrb[24].mxu0  ;;  %v1875_v4 = vpop.f32.mrb[25].mxu1 }
 0x1e6   : > { %v2227_v5 = vpop.f32.mrb[25].mxu0  ;;  %v1876_v6 = vpop.f32.mrb[26].mxu1 }
 0x1e7   : > { %2507 = vst.msk [vmem:[%s3615_s30 + $0x2c] sm:$0xf] %vm2495_vm0, %v2909_v1  ;;  %v2958_v7 = vadd.f32 %v2957_v2, %v2225_v3  ;;  %v2959_v8 = vadd.f32 %v3607_v30, %v1876_v6  ;;  %v2228_v9 = vpop.f32.mrb[26].mxu0  ;;  %v1878_v10 = vpop.f32.mrb[27].mxu1 }
 0x1e8   : > { %v2230_v11 = vpop.f32.mrb[27].mxu0 }
 0x1e9   : > { %v2331_v12 = vmax.f32 %v2958_v7, 0.0  ;;  %v2960_v13 = vadd.f32 %v2959_v8, %v2228_v9 }
 0x1eb   : > { %v2910_v14 = vpack.c.bf16 %v2331_v12, %v2331_v12  ;;  %v2332_v15 = vmax.f32 %v2960_v13, 0.0 }
 0x1ec   : > { %v1881_v16 = vpop.f32.mrb[28].mxu1 }
 0x1ed   : > { %2508 = vst.msk [vmem:[%s3615_s30 + $0x30] sm:$0xf] %vm2495_vm0, %v2910_v14  ;;  %v2911_v17 = vpack.c.bf16 %v2332_v15, %v2332_v15  ;;  %v2961_v18 = vadd.f32 %v3607_v30, %v1881_v16  ;;  %v2233_v19 = vpop.f32.mrb[28].mxu0  ;;  %v1883_v20 = vpop.f32.mrb[29].mxu1 }
 0x1ee   : > { %v2235_v21 = vpop.f32.mrb[29].mxu0  ;;  %v1884_v22 = vpop.f32.mrb[30].mxu1 }
 0x1ef   : > { %2509 = vst.msk [vmem:[%s3615_s30 + $0x34] sm:$0xf] %vm2495_vm0, %v2911_v17  ;;  %v2962_v0 = vadd.f32 %v2961_v18, %v2233_v19  ;;  %v2963_v23 = vadd.f32 %v3607_v30, %v1884_v22  ;;  %v2236_v24 = vpop.f32.mrb[30].mxu0  ;;  %v1886_v25 = vpop.f32.mrb[31].mxu1 }
 0x1f0   : > { %v2238_v26 = vpop.f32.mrb[31].mxu0 }
 0x1f1   : > { %v2333_v27 = vmax.f32 %v2962_v0, 0.0  ;;  %v2964_v28 = vadd.f32 %v2963_v23, %v2236_v24 }
 0x1f3   : > { %v2912_v29 = vpack.c.bf16 %v2333_v27, %v2333_v27  ;;  %v2334_v31 = vmax.f32 %v2964_v28, 0.0 }
 0x1f4   : > { %v1889_v32 = vpop.f32.mrb[32].mxu1 }
 0x1f5   : > { %2510 = vst.msk [vmem:[%s3615_s30 + $0x38] sm:$0xf] %vm2495_vm0, %v2912_v29  ;;  %v2913_v33 = vpack.c.bf16 %v2334_v31, %v2334_v31  ;;  %v2965_v34 = vadd.f32 %v3607_v30, %v1889_v32  ;;  %v2241_v35 = vpop.f32.mrb[32].mxu0  ;;  %v1891_v36 = vpop.f32.mrb[33].mxu1 }
 0x1f6   : > { %v2243_v37 = vpop.f32.mrb[33].mxu0  ;;  %v1892_v38 = vpop.f32.mrb[34].mxu1 }
 0x1f7   : > { %2511 = vst.msk [vmem:[%s3615_s30 + $0x3c] sm:$0xf] %vm2495_vm0, %v2913_v33  ;;  %v2966_v39 = vadd.f32 %v2965_v34, %v2241_v35  ;;  %v2967_v40 = vadd.f32 %v3607_v30, %v1892_v38  ;;  %v2244_v41 = vpop.f32.mrb[34].mxu0  ;;  %v1894_v42 = vpop.f32.mrb[35].mxu1 }
 0x1f8   : > { %v2246_v43 = vpop.f32.mrb[35].mxu0 }
 0x1f9   : > { %v2335_v44 = vmax.f32 %v2966_v39, 0.0  ;;  %v2968_v45 = vadd.f32 %v2967_v40, %v2244_v41 }
 0x1fb   : > { %v2914_v46 = vpack.c.bf16 %v2335_v44, %v2335_v44  ;;  %v2336_v47 = vmax.f32 %v2968_v45, 0.0 }
 0x1fc   : > { %v1897_v48 = vpop.f32.mrb[36].mxu1 }
 0x1fd   : > { %2512 = vst.msk [vmem:[%s3615_s30 + $0x40] sm:$0xf] %vm2495_vm0, %v2914_v46  ;;  %v2915_v49 = vpack.c.bf16 %v2336_v47, %v2336_v47  ;;  %v2969_v50 = vadd.f32 %v3607_v30, %v1897_v48  ;;  %v2249_v51 = vpop.f32.mrb[36].mxu0  ;;  %v1899_v52 = vpop.f32.mrb[37].mxu1 }
 0x1fe   : > { %v2251_v53 = vpop.f32.mrb[37].mxu0  ;;  %v1900_v54 = vpop.f32.mrb[38].mxu1 }
 0x1ff   : > { %2513 = vst.msk [vmem:[%s3615_s30 + $0x44] sm:$0xf] %vm2495_vm0, %v2915_v49  ;;  %v2970_v55 = vadd.f32 %v2969_v50, %v2249_v51  ;;  %v2971_v56 = vadd.f32 %v3607_v30, %v1900_v54  ;;  %v2252_v57 = vpop.f32.mrb[38].mxu0  ;;  %v1902_v58 = vpop.f32.mrb[39].mxu1 }
 0x200   : > { %v2254_v59 = vpop.f32.mrb[39].mxu0 }
 0x201   : > { %v2337_v60 = vmax.f32 %v2970_v55, 0.0  ;;  %v2972_v61 = vadd.f32 %v2971_v56, %v2252_v57 }
 0x203   : > { %v2916_v62 = vpack.c.bf16 %v2337_v60, %v2337_v60  ;;  %v2338_v63 = vmax.f32 %v2972_v61, 0.0 }
 0x204   : > { %v1905_v1 = vpop.f32.mrb[40].mxu1 }
 0x205   : > { %2514 = vst.msk [vmem:[%s3615_s30 + $0x48] sm:$0xf] %vm2495_vm0, %v2916_v62  ;;  %v2917_v2 = vpack.c.bf16 %v2338_v63, %v2338_v63  ;;  %v2973_v3 = vadd.f32 %v3607_v30, %v1905_v1  ;;  %v2257_v4 = vpop.f32.mrb[40].mxu0  ;;  %v1907_v5 = vpop.f32.mrb[41].mxu1 }
 0x206   : > { %v2259_v6 = vpop.f32.mrb[41].mxu0  ;;  %v1908_v7 = vpop.f32.mrb[42].mxu1 }
 0x207   : > { %2515 = vst.msk [vmem:[%s3615_s30 + $0x4c] sm:$0xf] %vm2495_vm0, %v2917_v2  ;;  %v2974_v8 = vadd.f32 %v2973_v3, %v2257_v4  ;;  %v2975_v9 = vadd.f32 %v3607_v30, %v1908_v7  ;;  %v2260_v10 = vpop.f32.mrb[42].mxu0  ;;  %v1910_v11 = vpop.f32.mrb[43].mxu1 }
 0x208   : > { %v2262_v12 = vpop.f32.mrb[43].mxu0 }
 0x209   : > { %v2339_v13 = vmax.f32 %v2974_v8, 0.0  ;;  %v2976_v14 = vadd.f32 %v2975_v9, %v2260_v10 }
 0x20b   : > { %v2918_v15 = vpack.c.bf16 %v2339_v13, %v2339_v13  ;;  %v2340_v16 = vmax.f32 %v2976_v14, 0.0 }
 0x20c   : > { %v1913_v17 = vpop.f32.mrb[44].mxu1 }
 0x20d   : > { %2516 = vst.msk [vmem:[%s3615_s30 + $0x50] sm:$0xf] %vm2495_vm0, %v2918_v15  ;;  %v2919_v18 = vpack.c.bf16 %v2340_v16, %v2340_v16  ;;  %v2977_v19 = vadd.f32 %v3607_v30, %v1913_v17  ;;  %v2265_v20 = vpop.f32.mrb[44].mxu0  ;;  %v1915_v21 = vpop.f32.mrb[45].mxu1 }
 0x20e   : > { %v2267_v22 = vpop.f32.mrb[45].mxu0  ;;  %v1916_v0 = vpop.f32.mrb[46].mxu1 }
 0x20f   : > { %2517 = vst.msk [vmem:[%s3615_s30 + $0x54] sm:$0xf] %vm2495_vm0, %v2919_v18  ;;  %v2978_v23 = vadd.f32 %v2977_v19, %v2265_v20  ;;  %v2979_v24 = vadd.f32 %v3607_v30, %v1916_v0  ;;  %v2268_v25 = vpop.f32.mrb[46].mxu0  ;;  %v1918_v26 = vpop.f32.mrb[47].mxu1 }
 0x210   : > { %v2270_v27 = vpop.f32.mrb[47].mxu0 }
 0x211   : > { %v2341_v28 = vmax.f32 %v2978_v23, 0.0  ;;  %v2980_v29 = vadd.f32 %v2979_v24, %v2268_v25 }
 0x213   : > { %v2920_v31 = vpack.c.bf16 %v2341_v28, %v2341_v28  ;;  %v2342_v32 = vmax.f32 %v2980_v29, 0.0 }
 0x214   : > { %v1921_v33 = vpop.f32.mrb[48].mxu1 }
 0x215   : > { %2518 = vst.msk [vmem:[%s3615_s30 + $0x58] sm:$0xf] %vm2495_vm0, %v2920_v31  ;;  %v2921_v34 = vpack.c.bf16 %v2342_v32, %v2342_v32  ;;  %v2981_v35 = vadd.f32 %v3607_v30, %v1921_v33  ;;  %v2273_v36 = vpop.f32.mrb[48].mxu0  ;;  %v1923_v37 = vpop.f32.mrb[49].mxu1 }
 0x216   : > { %v2275_v38 = vpop.f32.mrb[49].mxu0  ;;  %v1924_v39 = vpop.f32.mrb[50].mxu1 }
 0x217   : > { %2519 = vst.msk [vmem:[%s3615_s30 + $0x5c] sm:$0xf] %vm2495_vm0, %v2921_v34  ;;  %v2982_v40 = vadd.f32 %v2981_v35, %v2273_v36  ;;  %v2983_v41 = vadd.f32 %v3607_v30, %v1924_v39  ;;  %v2276_v42 = vpop.f32.mrb[50].mxu0  ;;  %v1926_v43 = vpop.f32.mrb[51].mxu1 }
 0x218   : > { %v2278_v44 = vpop.f32.mrb[51].mxu0 }
 0x219   : > { %v2343_v45 = vmax.f32 %v2982_v40, 0.0  ;;  %v2984_v46 = vadd.f32 %v2983_v41, %v2276_v42 }
 0x21b   : > { %v2922_v47 = vpack.c.bf16 %v2343_v45, %v2343_v45  ;;  %v2344_v48 = vmax.f32 %v2984_v46, 0.0 }
 0x21c   : > { %v1929_v49 = vpop.f32.mrb[52].mxu1 }
 0x21d   : > { %2520 = vst.msk [vmem:[%s3615_s30 + $0x60] sm:$0xf] %vm2495_vm0, %v2922_v47  ;;  %v2923_v50 = vpack.c.bf16 %v2344_v48, %v2344_v48  ;;  %v2985_v51 = vadd.f32 %v3607_v30, %v1929_v49  ;;  %v2281_v52 = vpop.f32.mrb[52].mxu0  ;;  %v1931_v53 = vpop.f32.mrb[53].mxu1 }
 0x21e   : > { %v2283_v54 = vpop.f32.mrb[53].mxu0  ;;  %v1932_v55 = vpop.f32.mrb[54].mxu1 }
 0x21f   : > { %2521 = vst.msk [vmem:[%s3615_s30 + $0x64] sm:$0xf] %vm2495_vm0, %v2923_v50  ;;  %v2986_v56 = vadd.f32 %v2985_v51, %v2281_v52  ;;  %v2987_v57 = vadd.f32 %v3607_v30, %v1932_v55  ;;  %v2284_v58 = vpop.f32.mrb[54].mxu0  ;;  %v1934_v59 = vpop.f32.mrb[55].mxu1 }
 0x220   : > { %v2286_v60 = vpop.f32.mrb[55].mxu0 }
 0x221   : > { %v2345_v61 = vmax.f32 %v2986_v56, 0.0  ;;  %v2988_v62 = vadd.f32 %v2987_v57, %v2284_v58 }
 0x223   : > { %v2924_v63 = vpack.c.bf16 %v2345_v61, %v2345_v61  ;;  %v2346_v1 = vmax.f32 %v2988_v62, 0.0 }
 0x224   : > { %v1937_v2 = vpop.f32.mrb[56].mxu1 }
 0x225   : > { %2522 = vst.msk [vmem:[%s3615_s30 + $0x68] sm:$0xf] %vm2495_vm0, %v2924_v63  ;;  %v2925_v3 = vpack.c.bf16 %v2346_v1, %v2346_v1  ;;  %v2989_v4 = vadd.f32 %v3607_v30, %v1937_v2  ;;  %v2289_v5 = vpop.f32.mrb[56].mxu0  ;;  %v1939_v6 = vpop.f32.mrb[57].mxu1 }
 0x226   : > { %v2291_v7 = vpop.f32.mrb[57].mxu0  ;;  %v1940_v8 = vpop.f32.mrb[58].mxu1 }
 0x227   : > { %2523 = vst.msk [vmem:[%s3615_s30 + $0x6c] sm:$0xf] %vm2495_vm0, %v2925_v3  ;;  %v2990_v9 = vadd.f32 %v2989_v4, %v2289_v5  ;;  %v2991_v10 = vadd.f32 %v3607_v30, %v1940_v8  ;;  %v2292_v11 = vpop.f32.mrb[58].mxu0  ;;  %v1942_v12 = vpop.f32.mrb[59].mxu1 }
 0x228   : > { %v2294_v13 = vpop.f32.mrb[59].mxu0 }
 0x229   : > { %v2347_v14 = vmax.f32 %v2990_v9, 0.0  ;;  %v2992_v15 = vadd.f32 %v2991_v10, %v2292_v11 }
 0x22b   : > { %v2926_v16 = vpack.c.bf16 %v2347_v14, %v2347_v14  ;;  %v2348_v17 = vmax.f32 %v2992_v15, 0.0 }
 0x22c   : > { %v1945_v18 = vpop.f32.mrb[60].mxu1 }
 0x22d   : > { %2524 = vst.msk [vmem:[%s3615_s30 + $0x70] sm:$0xf] %vm2495_vm0, %v2926_v16  ;;  %v2927_v19 = vpack.c.bf16 %v2348_v17, %v2348_v17  ;;  %v2993_v20 = vadd.f32 %v3607_v30, %v1945_v18  ;;  %v2297_v21 = vpop.f32.mrb[60].mxu0  ;;  %v1947_v22 = vpop.f32.mrb[61].mxu1 }
 0x22e   : > { %v2299_v0 = vpop.f32.mrb[61].mxu0  ;;  %v1948_v23 = vpop.f32.mrb[62].mxu1 }
 0x22f   : > { %2525 = vst.msk [vmem:[%s3615_s30 + $0x74] sm:$0xf] %vm2495_vm0, %v2927_v19  ;;  %v2994_v24 = vadd.f32 %v2993_v20, %v2297_v21  ;;  %v2995_v25 = vadd.f32 %v3607_v30, %v1948_v23  ;;  %v2300_v26 = vpop.f32.mrb[62].mxu0  ;;  %v1950_v27 = vpop.f32.mrb[63].mxu1 }
 0x230   : > { %v2302_v28 = vpop.f32.mrb[63].mxu0 }
 0x231   : > { %v2349_v29 = vmax.f32 %v2994_v24, 0.0  ;;  %v2996_v31 = vadd.f32 %v2995_v25, %v2300_v26 }
 0x233   : > { %v2928_v32 = vpack.c.bf16 %v2349_v29, %v2349_v29  ;;  %v2350_v33 = vmax.f32 %v2996_v31, 0.0 }
 0x234   : > { %v1953_v34 = vpop.f32.mrb[64].mxu1 }
 0x235   : > { %2526 = vst.msk [vmem:[%s3615_s30 + $0x78] sm:$0xf] %vm2495_vm0, %v2928_v32  ;;  %v2929_v35 = vpack.c.bf16 %v2350_v33, %v2350_v33  ;;  %v2997_v36 = vadd.f32 %v3607_v30, %v1953_v34  ;;  %v2305_v37 = vpop.f32.mrb[64].mxu0  ;;  %v1955_v38 = vpop.f32.mrb[65].mxu1 }
 0x236   : > { %v2307_v39 = vpop.f32.mrb[65].mxu0  ;;  %v1956_v40 = vpop.f32.mrb[66].mxu1 }
 0x237   : > { %2527 = vst.msk [vmem:[%s3615_s30 + $0x7c] sm:$0xf] %vm2495_vm0, %v2929_v35  ;;  %v2998_v41 = vadd.f32 %v2997_v36, %v2305_v37  ;;  %v2999_v42 = vadd.f32 %v3607_v30, %v1956_v40  ;;  %v2308_v43 = vpop.f32.mrb[66].mxu0  ;;  %v1958_v44 = vpop.f32.mrb[67].mxu1 }
 0x238   : > { %v2310_v45 = vpop.f32.mrb[67].mxu0 }
 0x239   : > { %v2351_v46 = vmax.f32 %v2998_v41, 0.0  ;;  %v3000_v47 = vadd.f32 %v2999_v42, %v2308_v43 }
 0x23b   : > { %v2930_v48 = vpack.c.bf16 %v2351_v46, %v2351_v46  ;;  %v2352_v49 = vmax.f32 %v3000_v47, 0.0 }
 0x23c   : > { %v1961_v50 = vpop.f32.mrb[68].mxu1 }
 0x23d   : > { %2528 = vst.msk [vmem:[%s3615_s30 + $0x80] sm:$0xf] %vm2495_vm0, %v2930_v48  ;;  %v2931_v51 = vpack.c.bf16 %v2352_v49, %v2352_v49  ;;  %v3001_v52 = vadd.f32 %v3607_v30, %v1961_v50  ;;  %v2313_v53 = vpop.f32.mrb[68].mxu0  ;;  %v1963_v54 = vpop.f32.mrb[69].mxu1 }
 0x23e   : > { %v2315_v55 = vpop.f32.mrb[69].mxu0  ;;  %v1964_v56 = vpop.f32.mrb[70].mxu1 }
 0x23f   : > { %2529 = vst.msk [vmem:[%s3615_s30 + $0x84] sm:$0xf] %vm2495_vm0, %v2931_v51  ;;  %v3002_v57 = vadd.f32 %v3001_v52, %v2313_v53  ;;  %v2316_v58 = vpop.f32.mrb[70].mxu0  ;;  %v1965_v59 = vpop.f32.mrb[71].mxu1 }
 0x240   : > { %v2317_v60 = vpop.f32.mrb[71].mxu0 }
 0x241   : > { %v2353_v61 = vmax.f32 %v3002_v57, 0.0 }
 0x243   : > { %v2932_v62 = vpack.c.bf16 %v2353_v61, %v2353_v61 }
 0x245   : > { %2530 = vst.msk [vmem:[%s3615_s30 + $0x88] sm:$0xf] %vm2495_vm0, %v2932_v62 }
 0x246 PF: > { %s13_s14 = sadd.s32 1, %s3268_s14   ;;  %s3733_s12 = smov %s3264_s13 }
 0x247   : > { %p10_p5 = scmp.ge.s32.totalorder %s13_s14, 4   ;;  %s3734_s13 = smov %s3736_s15 }
 0x249   :  { %12 = sbr.rel (!%p10_p5) target bundleno = 2 (0x2), region = 68 }

// kernel: critic_forward.7
= control target key start
LH: loop header
LB: loop body
LE: loop exit
PB: predicated region body
PF: predicated region fallthrough
CT: control target
= control target key end

     0   :  { %s6822_s25 = smov 0   ;;  %s8304_s0 = inlined_call_operand.vmem [shape: bf16[2,24,2,512], index: 0, kind: input, shape index: {}]   ;;  %s8305_s1 = inlined_call_operand.vmem [shape: f32[2,2], index: 1, kind: input, shape index: {}]   ;;  %s8306_s2 = inlined_call_operand.vmem [shape: bf16[2,512,8], index: 2, kind: input, shape index: {}]   ;;  %s8307_s3 = inlined_call_operand.vmem [shape: f32[2,1,8], index: 3, kind: input, shape index: {}]   ;;  %s8308_s4 = inlined_call_operand.vmem [shape: bf16[2,24,8,64], index: 4, kind: input, shape index: {}]   ;;  %s8309_s5 = inlined_call_operand.vmem [shape: f32[2,1,64], index: 5, kind: input, shape index: {}]   ;;  %s8310_s6 = inlined_call_operand.vmem [shape: f32[2,2,64], index: 6, kind: input, shape index: {}]   ;;  %s8311_s7 = inlined_call_operand.vmem [shape: f32[2,1,64], index: 7, kind: input, shape index: {}]   ;;  %s8312_s8 = inlined_call_operand.vmem [shape: bf16[2,64,64], index: 8, kind: input, shape index: {}]   ;;  %s8313_s9 = inlined_call_operand.vmem [shape: bf16[2,64,64], index: 9, kind: input, shape index: {}]   ;;  %s8314_s10 = inlined_call_operand.vmem [shape: f32[2,1,64], index: 10, kind: input, shape index: {}]   ;;  %s8315_s11 = inlined_call_operand.vmem [shape: f32[2,1,64], index: 11, kind: input, shape index: {}]   ;;  %s8316_s12 = inlined_call_operand.vmem [shape: f32[2,1,1], index: 12, kind: input, shape index: {}]   ;;  %s8317_s13 = inlined_call_operand.vmem [shape: f32[2,2,1], index: 13, kind: output, shape index: {}]  }
   0x1 LB: > { %s5156_s26 = sadd.s32 4294967295, %s6745_s25   ;;  %p5160_p0 = scmp.ge.s32.totalorder %s6745_s25, 1  ;;  %s6745_s25 = sphi %s6822_s25, %s23_s25  }
   0x2   : > { %p483_p1 = scmp.lt.s32.totalorder %s6745_s25, 3 }
   0x4   : > { %p484_p2 = pnand %p5160_p0, %p483_p1 }
   0x5   : > { %p567_p3 = scmp.lt.s32.totalorder (!%p484_p2), %s5156_s26, 1  ;;  %v702_v21 = vlaneseq (!%p484_p2)  ;;  %v6747_v23 = vmov (!%p484_p2), 1966171168   ;;  %vm1113_vm0 = vcmask (!%p484_p2), 1043456   ;;  %v6748_v51 = vmov (!%p484_p2), 0.0  }
   0x6   : > { %487 = sbr.rel (%p484_p2) target bundleno = 6457 (0x1939), region = 72  ;;  %v700_v24 = vunpack.c.l.s4 (!%p484_p2), %v6747_v23  ;;  %vm6749_vm1 = vmmov (!%p484_p2), 0   ;;  %vm1109_vm2 = vcmask (!%p484_p2), 64512   ;;  %vm4847_vm3 = vcmask (!%p484_p2), 523264  }
   0x7   : > { %v6936_v28 = vshrl.u32 (!%p484_p2), %v702_v21, 7  ;;  %vm4975_vm4 = vcmask (!%p484_p2), 517120   ;;  %vm4987_vm5 = vcmask (!%p484_p2), 1024  }
   0x8   : > { %v701_v30 = vunpack.c.0.s8 (!%p484_p2), %v700_v24 }
   0xa   : > { %v6967_v35 = vsub.s32 (!%p484_p2), %v701_v30, %v6936_v28 }
   0xd   : > { %s8319_s26 = smov (!%p567_p3, %s5156_s26), 1 }
   0xe   : > { %s5314_s27 = sshll.u32 %s8319_s26, 8  ;;  %s6599_s14 = smul.u32 96, %s8319_s26 }
   0xf   : > { %s6836_s30 = scalar_lea.vmem %s8306_s2, %s5314_s27  ;;  %s7040_s23 = scalar_lea.vmem %s8307_s3, %s8319_s26 }
  0x10   : > { %v6839_v0 = vld [vmem:[%s6836_s30 + $0x40] sm:$0xff]   ;;  %v6854_v4 = vld [vmem:[%s6836_s30 + $0x48] sm:$0xff]   ;;  %v6870_v8 = vld [vmem:[%s6836_s30 + $0x50] sm:$0xff]   ;;  %s6964_s17 = scalar_lea.vmem %s8304_s0, %s6599_s14  ;;  %s7022_s20 = scalar_lea.vmem %s8308_s4, %s6599_s14 }
  0x11   : > { %v6842_v1 = vld [vmem:[%s6836_s30 + $0xc0] sm:$0xff]   ;;  %5317 = vmatprep.subr.bf16.mxu0 %v6839_v0  ;;  %v6858_v5 = vld [vmem:[%s6836_s30 + $0xc8] sm:$0xff]   ;;  %v6874_v9 = vld [vmem:[%s6836_s30 + $0xd0] sm:$0xff]   ;;  %s5315_s28 = sshll.u32 %s8319_s26, 5  ;;  %s5164_s18 = sshll.u32 %s8319_s26, 1 }
  0x12   : > { %v6846_v2 = vld [vmem:[%s6836_s30] sm:$0xff]   ;;  %5339 = vmatprep.subr.bf16.mxu1 %v6842_v1  ;;  %v6862_v6 = vld [vmem:[%s6836_s30 + $0x8] sm:$0xff]   ;;  %v6878_v10 = vld [vmem:[%s6836_s30 + $0x10] sm:$0xff]   ;;  %s603_s14 = scalar_lea.vmem %s8313_s9, %s5315_s28  ;;  %s590_s21 = scalar_lea.vmem %s8310_s6, %s5164_s18 }
  0x13   : > { %v6850_v3 = vld [vmem:[%s6836_s30 + $0x80] sm:$0xff]   ;;  %5318 = vmatpush3.bf16.msra.mxu0 %v6846_v2  ;;  %v6866_v7 = vld [vmem:[%s6836_s30 + $0x88] sm:$0xff]   ;;  %v6882_v11 = vld [vmem:[%s6836_s30 + $0x90] sm:$0xff]   ;;  %s593_s24 = scalar_lea.vmem %s8311_s7, %s8319_s26  ;;  %s586_s29 = scalar_lea.vmem %s8309_s5, %s8319_s26 }
  0x14   : > { %5340 = vmatpush3.bf16.msra.mxu1 %v6850_v3  ;;  %5319 = vmatprep.subr.bf16.mxu0 %v6854_v4  ;;  %v6886_v12 = vld [vmem:[%s6836_s30 + $0x58] sm:$0xff]   ;;  %v6902_v16 = vld [vmem:[%s6836_s30 + $0x60] sm:$0xff]   ;;  %v6918_v20 = vld [vmem:[%s6836_s30 + $0x68] sm:$0xff]   ;;  %s606_s15 = scalar_lea.vmem %s8314_s10, %s8319_s26  ;;  %s609_s19 = scalar_lea.vmem %s8315_s11, %s8319_s26 }
  0x15   : > { %5341 = vmatprep.subr.bf16.mxu1 %v6858_v5  ;;  %v6890_v13 = vld [vmem:[%s6836_s30 + $0xd8] sm:$0xff]   ;;  %v6906_v17 = vld [vmem:[%s6836_s30 + $0xe0] sm:$0xff]   ;;  %v6922_v22 = vld [vmem:[%s6836_s30 + $0xe8] sm:$0xff]   ;;  %s612_s22 = scalar_lea.vmem %s8316_s12, %s8319_s26  ;;  %s616_s27 = scalar_lea.vmem %s8317_s13, %s5164_s18 }
  0x16   : > { %v6894_v14 = vld [vmem:[%s6836_s30 + $0x18] sm:$0xff]   ;;  %v6910_v18 = vld [vmem:[%s6836_s30 + $0x20] sm:$0xff]   ;;  %v6926_v25 = vld [vmem:[%s6836_s30 + $0x28] sm:$0xff]  }
  0x17   : > { %5320 = vmatpush3.bf16.msra.mxu0 %v6862_v6  ;;  %v6898_v15 = vld [vmem:[%s6836_s30 + $0x98] sm:$0xff]   ;;  %v6914_v19 = vld [vmem:[%s6836_s30 + $0xa0] sm:$0xff]   ;;  %v6930_v26 = vld [vmem:[%s6836_s30 + $0xa8] sm:$0xff]  }
  0x18   : > { %5342 = vmatpush3.bf16.msra.mxu1 %v6866_v7  ;;  %5321 = vmatprep.subr.bf16.mxu0 %v6870_v8  ;;  %v6934_v27 = vld [vmem:[%s6836_s30 + $0x70] sm:$0xff]   ;;  %v6953_v33 = vld [vmem:[%s6836_s30 + $0x78] sm:$0xff]   ;;  %v5171_v38 = vld.sshfl [vmem:[%s6964_s17] sm:$0x33 pattern:$0x75316420] }
  0x19   : > { %5343 = vmatprep.subr.bf16.mxu1 %v6874_v9  ;;  %v6940_v29 = vld [vmem:[%s6836_s30 + $0xf0] sm:$0xff]   ;;  %v6957_v34 = vld [vmem:[%s6836_s30 + $0xf8] sm:$0xff]   ;;  %v698_v39 = vcombine.high %v5171_v38, %v5171_v38  ;;  %v705_v40 = vrot.slane %v5171_v38, %v6967_v35  ;;  %v5205_v41 = vld.sshfl [vmem:[%s6964_s17 + $0x4] sm:$0x33 pattern:$0x75316420] }
  0x1a   : > { %v6945_v31 = vld [vmem:[%s6836_s30 + $0x30] sm:$0xff]   ;;  %v6971_v36 = vld [vmem:[%s6836_s30 + $0x38] sm:$0xff]   ;;  %v1004_v42 = vcombine.high %v5205_v41, %v5205_v41  ;;  %v1011_v48 = vrot.slane %v5205_v41, %v6967_v35  ;;  %v993_v50 = vld [vmem:[%s7022_s20] sm:$0xf] }
  0x1b   : > { %5322 = vmatpush3.bf16.msra.mxu0 %v6878_v10  ;;  %v6949_v32 = vld [vmem:[%s6836_s30 + $0xb0] sm:$0xff]   ;;  %v6975_v37 = vld [vmem:[%s6836_s30 + $0xb8] sm:$0xff]   ;;  %v712_v43 = vrot.slane %v698_v39, %v6967_v35  ;;  %v713_v44 = vcombine.high %v705_v40, %v705_v40  ;;  %v1161_v52 = vsel %vm1113_vm0, %v993_v50, 0  ;;  %v5206_v53 = vld [vmem:[%s7022_s20 + $0x4] sm:$0xf] }
  0x1c   : > { %5344 = vmatpush3.bf16.msra.mxu1 %v6882_v11  ;;  %5323 = vmatprep.subr.bf16.mxu0 %v6886_v12  ;;  %v1018_v45 = vrot.slane %v1004_v42, %v6967_v35  ;;  %v1019_v49 = vcombine.high %v1011_v48, %v1011_v48  ;;  %v1115_v54 = vsel %vm1113_vm0, %v5206_v53, 0  ;;  %v5210_v55 = vld.sshfl [vmem:[%s6964_s17 + $0x8] sm:$0x33 pattern:$0x75316420] }
  0x1d   : > { %5345 = vmatprep.subr.bf16.mxu1 %v6890_v13  ;;  %943 = vmatprep.mubr.bf16.mxu0 %v712_v43  ;;  %v714_v46 = vcombine.high %v712_v43, %v712_v43  ;;  %v7044_v57 = vld [vmem:[%s7040_s23] ss:$0 sm:$0xff]  ;;  %v1213_v59 = vcombine.high %v5210_v55, %v5210_v55 }
  0x1e   : > { %v1020_v47 = vcombine.high %v1018_v45, %v1018_v45 }
  0x1f   : > { %5324 = vmatpush3.bf16.msra.mxu0 %v6894_v14  ;;  %983 = vmatprep.mubr.bf16.mxu1 %v714_v46  ;;  %v1227_v39 = vrot.slane %v1213_v59, %v6967_v35 }
  0x20   : > { %5346 = vmatpush3.bf16.msra.mxu1 %v6898_v15  ;;  %5325 = vmatprep.subr.bf16.mxu0 %v6902_v16 }
  0x21   : > { %5347 = vmatprep.subr.bf16.mxu1 %v6906_v17  ;;  %v1229_v42 = vcombine.high %v1227_v39, %v1227_v39 }
  0x23   : > { %5326 = vmatpush3.bf16.msra.mxu0 %v6910_v18 }
  0x24   : > { %5348 = vmatpush3.bf16.msra.mxu1 %v6914_v19  ;;  %5327 = vmatprep.subr.bf16.mxu0 %v6918_v20 }
  0x25   : > { %5349 = vmatprep.subr.bf16.mxu1 %v6922_v22 }
  0x27   : > { %5328 = vmatpush3.bf16.msra.mxu0 %v6926_v25 }
  0x28   : > { %5350 = vmatpush3.bf16.msra.mxu1 %v6930_v26  ;;  %5329 = vmatprep.subr.bf16.mxu0 %v6934_v27 }
  0x29   : > { %5351 = vmatprep.subr.bf16.mxu1 %v6940_v29 }
  0x2b   : > { %5330 = vmatpush3.bf16.msra.mxu0 %v6945_v31 }
  0x2c   : > { %5352 = vmatpush3.bf16.msra.mxu1 %v6949_v32  ;;  %5331 = vmatprep.subr.bf16.mxu0 %v6953_v33 }
  0x2d   : > { %5353 = vmatprep.subr.bf16.mxu1 %v6957_v34 }
  0x2f   : > { %5332 = vmatpush3.bf16.msra.mxu0 %v6971_v36 }
  0x30   : > { %5354 = vmatpush3.bf16.msra.mxu1 %v6975_v37  ;;  %5361 = vmatprep.subr.bf16.mxu0 %v6839_v0 }
  0x31   : > { %5383 = vmatprep.subr.bf16.mxu1 %v6842_v1 }
  0x32   : > { %944 = vmatmul.mubr.bf16.vlgmr.msra.gmra.mrb[0].mxu0 %v705_v40 }
  0x33   : > { %5362 = vmatpush3.bf16.msra.mxu0 %v6846_v2  ;;  %984 = vmatmul.mubr.bf16.vlgmr.msra.gmra.mrb[0].mxu1 %v713_v44 }
  0x34   : > { %5363 = vmatprep.subr.bf16.mxu0 %v6854_v4  ;;  %5384 = vmatpush3.bf16.msra.mxu1 %v6850_v3 }
  0x35   : > { %1057 = vmatprep.mubr.bf16.mxu0 %v1018_v45  ;;  %5385 = vmatprep.subr.bf16.mxu1 %v6858_v5 }
  0x36   : > { %1097 = vmatprep.mubr.bf16.mxu1 %v1020_v47 }
  0x37   : > { %5364 = vmatpush3.bf16.msra.mxu0 %v6862_v6 }
  0x38   : > { %5365 = vmatprep.subr.bf16.mxu0 %v6870_v8  ;;  %5386 = vmatpush3.bf16.msra.mxu1 %v6866_v7 }
  0x39   : > { %5387 = vmatprep.subr.bf16.mxu1 %v6874_v9 }
  0x3b   : > { %5366 = vmatpush3.bf16.msra.mxu0 %v6878_v10 }
  0x3c   : > { %5367 = vmatprep.subr.bf16.mxu0 %v6886_v12  ;;  %5388 = vmatpush3.bf16.msra.mxu1 %v6882_v11 }
  0x3d   : > { %5389 = vmatprep.subr.bf16.mxu1 %v6890_v13 }
  0x3f   : > { %5368 = vmatpush3.bf16.msra.mxu0 %v6894_v14 }
  0x40   : > { %5369 = vmatprep.subr.bf16.mxu0 %v6902_v16  ;;  %5390 = vmatpush3.bf16.msra.mxu1 %v6898_v15 }
  0x41   : > { %5391 = vmatprep.subr.bf16.mxu1 %v6906_v17 }
  0x43   : > { %5370 = vmatpush3.bf16.msra.mxu0 %v6910_v18 }
  0x44   : > { %5371 = vmatprep.subr.bf16.mxu0 %v6918_v20  ;;  %5392 = vmatpush3.bf16.msra.mxu1 %v6914_v19 }
  0x45   : > { %5393 = vmatprep.subr.bf16.mxu1 %v6922_v22 }
  0x47   : > { %5372 = vmatpush3.bf16.msra.mxu0 %v6926_v25 }
  0x48   : > { %5373 = vmatprep.subr.bf16.mxu0 %v6934_v27  ;;  %5394 = vmatpush3.bf16.msra.mxu1 %v6930_v26 }
  0x49   : > { %5395 = vmatprep.subr.bf16.mxu1 %v6940_v29 }
  0x4b   : > { %5374 = vmatpush3.bf16.msra.mxu0 %v6945_v31 }
  0x4c   : > { %5375 = vmatprep.subr.bf16.mxu0 %v6953_v33  ;;  %5396 = vmatpush3.bf16.msra.mxu1 %v6949_v32 }
  0x4d   : > { %5397 = vmatprep.subr.bf16.mxu1 %v6957_v34 }
  0x4f   : > { %5376 = vmatpush3.bf16.msra.mxu0 %v6971_v36 }
  0x50   : > { %5398 = vmatpush3.bf16.msra.mxu1 %v6975_v37  ;;  %6431 = vmatprep.subr.bf16.mxu0 %v6748_v51 }
  0x51   : > { %6437 = vmatprep.subr.bf16.mxu1 %v6748_v51 }
  0x52   : > { %1058 = vmatmul.mubr.bf16.vlgmr.msra.gmra.mrb[4].mxu0 %v1011_v48 }
  0x53   : > { %1098 = vmatmul.mubr.bf16.vlgmr.msra.gmra.mrb[4].mxu1 %v1019_v49  ;;  %6433 = vmatprep.mubr.msk.bf16.mxu0 %vm6749_vm1, %v6748_v51 }
  0x54   : > { %6438 = vmatpush3.bf16.msra.mxu1 %v1161_v52  ;;  %6439 = vmatprep.mubr.msk.bf16.mxu1 %vm6749_vm1, %v6748_v51 }
  0x55   : > { %5431 = vmatprep.subr.bf16.mxu1 %v6842_v1  ;;  %6432 = vmatpush3.bf16.msra.mxu0 %v1115_v54 }
  0x56   : > { %5409 = vmatprep.subr.bf16.mxu0 %v6839_v0 }
 0x105   : > { %v5333_v56 = vpop.f32.mrb[0].mxu0 }
 0x106   : > { %v5334_v58 = vpop.f32.mrb[1].mxu0  ;;  %v5355_v60 = vpop.f32.mrb[0].mxu1 }
 0x107   : > { %v5335_v61 = vadd.f32 %v5334_v58, %v5333_v56  ;;  %v5336_v62 = vpop.f32.mrb[2].mxu0  ;;  %v5356_v63 = vpop.f32.mrb[1].mxu1  ;;  %v1220_v56 = vrot.slane %v5210_v55, %v6967_v35  ;;  %v5211_v55 = vld [vmem:[%s7022_s20 + $0x8] sm:$0xf] }
 0x108   : > { %v5337_v21 = vpop.f32.mrb[3].mxu0  ;;  %v5357_v24 = vadd.f32 %v5356_v63, %v5355_v60  ;;  %v5358_v30 = vpop.f32.mrb[2].mxu1  ;;  %v1322_v63 = vsel %vm1113_vm0, %v5211_v55, 0 }
 0x109   : > { %v946_v23 = vadd.f32 %v5335_v61, %v7044_v57  ;;  %v5359_v38 = vpop.f32.mrb[3].mxu1  ;;  %v1228_v61 = vcombine.high %v1220_v56, %v1220_v56  ;;  %v5214_v21 = vld.sshfl [vmem:[%s6964_s17 + $0xc] sm:$0x33 pattern:$0x75316420] }
 0x10a   : > { %v1382_v30 = vrot.slane %v5214_v21, %v6967_v35 }
 0x10b   : > { %v986_v40 = vadd.f32 %v5357_v24, %v946_v23  ;;  %v1375_v23 = vcombine.high %v5214_v21, %v5214_v21 }
 0x10c   : > { %v1390_v21 = vcombine.high %v1382_v30, %v1382_v30 }
 0x10d   : > { %v991_v41 = vmax.f32 %v986_v40, 0.0  ;;  %v1389_v24 = vrot.slane %v1375_v23, %v6967_v35 }
 0x10f   : > { %v992_v43 = vpack.c.bf16 %v991_v41, %v991_v41  ;;  %v1391_v55 = vcombine.high %v1389_v24, %v1389_v24 }
 0x111   : > { %6440 = vmatmul.mubr.msk.bf16.vlgmr.msra.gmra.mrb[8].mxu1 %vm1109_vm2, %v992_v43 }
 0x112   : > { %5432 = vmatpush3.bf16.msra.mxu1 %v6850_v3  ;;  %1306 = vmatprep.mubr.bf16.mxu1 %v1229_v42 }
 0x113   : > { %5433 = vmatprep.subr.bf16.mxu1 %v6858_v5 }
 0x116   : > { %5434 = vmatpush3.bf16.msra.mxu1 %v6866_v7 }
 0x117   : > { %5435 = vmatprep.subr.bf16.mxu1 %v6874_v9 }
 0x11a   : > { %5436 = vmatpush3.bf16.msra.mxu1 %v6882_v11 }
 0x11b   : > { %5437 = vmatprep.subr.bf16.mxu1 %v6890_v13 }
 0x11e   : > { %5438 = vmatpush3.bf16.msra.mxu1 %v6898_v15 }
 0x11f   : > { %5439 = vmatprep.subr.bf16.mxu1 %v6906_v17 }
 0x122   : > { %5440 = vmatpush3.bf16.msra.mxu1 %v6914_v19 }
 0x123   : > { %5441 = vmatprep.subr.bf16.mxu1 %v6922_v22 }
 0x125   : > { %v5377_v44 = vpop.f32.mrb[4].mxu0 }
 0x126   : > { %v5378_v45 = vpop.f32.mrb[5].mxu0  ;;  %5442 = vmatpush3.bf16.msra.mxu1 %v6930_v26  ;;  %v5399_v46 = vpop.f32.mrb[4].mxu1 }
 0x127   : > { %v5379_v47 = vadd.f32 %v5378_v45, %v5377_v44  ;;  %v5380_v48 = vpop.f32.mrb[6].mxu0  ;;  %5443 = vmatprep.subr.bf16.mxu1 %v6940_v29  ;;  %v5400_v49 = vpop.f32.mrb[5].mxu1 }
 0x128   : > { %v5381_v50 = vpop.f32.mrb[7].mxu0  ;;  %v5401_v53 = vadd.f32 %v5400_v49, %v5399_v46  ;;  %v5402_v54 = vpop.f32.mrb[6].mxu1 }
 0x129   : > { %v1060_v52 = vadd.f32 %v5379_v47, %v7044_v57  ;;  %v5403_v58 = vpop.f32.mrb[7].mxu1 }
 0x12a   : > { %5444 = vmatpush3.bf16.msra.mxu1 %v6949_v32 }
 0x12b   : > { %v1100_v59 = vadd.f32 %v5401_v53, %v1060_v52  ;;  %5445 = vmatprep.subr.bf16.mxu1 %v6957_v34 }
 0x12d   : > { %v1105_v60 = vmax.f32 %v1100_v59, 0.0 }
 0x12e   : > { %5446 = vmatpush3.bf16.msra.mxu1 %v6975_v37 }
 0x12f   : > { %v1106_v62 = vpack.c.bf16 %v1105_v60, %v1105_v60  ;;  %5455 = vmatprep.subr.bf16.mxu1 %v6839_v0 }
 0x131   : > { %6434 = vmatmul.mubr.msk.bf16.vlgmr.msra.gmra.mrb[8].mxu0 %vm1109_vm2, %v1106_v62  ;;  %1307 = vmatmul.mubr.bf16.vlgmr.msra.gmra.mrb[12].mxu1 %v1228_v61 }
 0x132   : > { %5410 = vmatpush3.bf16.msra.mxu0 %v6846_v2  ;;  %1266 = vmatprep.mubr.bf16.mxu0 %v1227_v39 }
 0x133   : > { %5411 = vmatprep.subr.bf16.mxu0 %v6854_v4  ;;  %5456 = vmatpush3.bf16.msra.mxu1 %v6846_v2 }
 0x134   : > { %5457 = vmatprep.subr.bf16.mxu1 %v6854_v4  ;;  %1428 = vmatprep.mubr.bf16.mxu1 %v1389_v24 }
 0x136   : > { %5412 = vmatpush3.bf16.msra.mxu0 %v6862_v6 }
 0x137   : > { %5413 = vmatprep.subr.bf16.mxu0 %v6870_v8  ;;  %5458 = vmatpush3.bf16.msra.mxu1 %v6862_v6 }
 0x138   : > { %5459 = vmatprep.subr.bf16.mxu1 %v6870_v8 }
 0x13a   : > { %5414 = vmatpush3.bf16.msra.mxu0 %v6878_v10 }
 0x13b   : > { %5415 = vmatprep.subr.bf16.mxu0 %v6886_v12  ;;  %5460 = vmatpush3.bf16.msra.mxu1 %v6878_v10 }
 0x13c   : > { %5461 = vmatprep.subr.bf16.mxu1 %v6886_v12 }
 0x13e   : > { %5416 = vmatpush3.bf16.msra.mxu0 %v6894_v14 }
 0x13f   : > { %5417 = vmatprep.subr.bf16.mxu0 %v6902_v16  ;;  %5462 = vmatpush3.bf16.msra.mxu1 %v6894_v14 }
 0x140   : > { %5463 = vmatprep.subr.bf16.mxu1 %v6902_v16 }
 0x142   : > { %5418 = vmatpush3.bf16.msra.mxu0 %v6910_v18 }
 0x143   : > { %5419 = vmatprep.subr.bf16.mxu0 %v6918_v20  ;;  %5464 = vmatpush3.bf16.msra.mxu1 %v6910_v18 }
 0x144   : > { %5465 = vmatprep.subr.bf16.mxu1 %v6918_v20 }
 0x146   : > { %5420 = vmatpush3.bf16.msra.mxu0 %v6926_v25 }
 0x147   : > { %5421 = vmatprep.subr.bf16.mxu0 %v6934_v27  ;;  %5466 = vmatpush3.bf16.msra.mxu1 %v6926_v25 }
 0x148   : > { %5467 = vmatprep.subr.bf16.mxu1 %v6934_v27 }
 0x14a   : > { %5422 = vmatpush3.bf16.msra.mxu0 %v6945_v31 }
 0x14b   : > { %5423 = vmatprep.subr.bf16.mxu0 %v6953_v33  ;;  %5468 = vmatpush3.bf16.msra.mxu1 %v6945_v31 }
 0x14c   : > { %5469 = vmatprep.subr.bf16.mxu1 %v6953_v33 }
 0x14e   : > { %5424 = vmatpush3.bf16.msra.mxu0 %v6971_v36 }
 0x14f   : > { %6443 = vmatprep.subr.bf16.mxu0 %v6748_v51  ;;  %5470 = vmatpush3.bf16.msra.mxu1 %v6971_v36 }
 0x150   : > { %6449 = vmatprep.subr.bf16.mxu1 %v6748_v51 }
 0x151   : > { %1267 = vmatmul.mubr.bf16.vlgmr.msra.gmra.mrb[12].mxu0 %v1220_v56 }
 0x152   : > { %6445 = vmatprep.mubr.msk.bf16.mxu0 %vm6749_vm1, %v6748_v51  ;;  %6444 = vmatpush3.bf16.msra.mxu0 %v1322_v63 }
 0x153   : > { %5477 = vmatprep.subr.bf16.mxu0 %v6842_v1  ;;  %1429 = vmatmul.mubr.bf16.vlgmr.msra.gmra.mrb[16].mxu1 %v1382_v30 }
 0x154   : > { %6451 = vmatprep.mubr.msk.bf16.mxu1 %vm6749_vm1, %v6748_v51 }
 0x1e4   : > { %v1197_v38 = vpop.f32.mrb[8].mxu1 }
 0x1e5   : > { %v6441_v39 = vpop.f32.mrb[9].mxu1 }
 0x1e6   : > { %v1200_v40 = vpop.f32.mrb[10].mxu1 }
 0x1e7   : > { %v6442_v41 = vpop.f32.mrb[11].mxu1  ;;  %v5215_v40 = vld [vmem:[%s7022_s20 + $0xc] sm:$0xf] }
 0x1e8   : > { %v1484_v41 = vsel %vm1113_vm0, %v5215_v40, 0 }
 0x1e9   : > { %6450 = vmatpush3.bf16.msra.mxu1 %v1484_v41  ;;  %v5222_v41 = vld.sshfl [vmem:[%s6964_s17 + $0x14] sm:$0x33 pattern:$0x75316420] }
 0x1ea   : > { %5523 = vmatprep.subr.bf16.mxu1 %v6842_v1 }
 0x204   : > { %v1151_v42 = vpop.f32.mrb[8].mxu0  ;;  %v5447_v43 = vpop.f32.mrb[12].mxu1 }
 0x205   : > { %v7110_v44 = vadd.f32 %v1197_v38, %v1151_v42  ;;  %v6435_v45 = vpop.f32.mrb[9].mxu0  ;;  %v5448_v46 = vpop.f32.mrb[13].mxu1  ;;  %v5218_v42 = vld.sshfl [vmem:[%s6964_s17 + $0x10] sm:$0x33 pattern:$0x75316420] }
 0x206   : > { %v1154_v47 = vpop.f32.mrb[10].mxu0  ;;  %v5449_v48 = vadd.f32 %v5448_v46, %v5447_v43  ;;  %v5450_v49 = vpop.f32.mrb[14].mxu1  ;;  %v1537_v43 = vcombine.high %v5218_v42, %v5218_v42  ;;  %v1544_v46 = vrot.slane %v5218_v42, %v6967_v35  ;;  %v1699_v42 = vcombine.high %v5222_v41, %v5222_v41 }
 0x207   : > { %v6436_v50 = vpop.f32.mrb[11].mxu0  ;;  %v5451_v52 = vpop.f32.mrb[15].mxu1 }
 0x208   : > { %v1551_v45 = vrot.slane %v1537_v43, %v6967_v35  ;;  %v1713_v43 = vrot.slane %v1699_v42, %v6967_v35 }
 0x224   : > { %v5425_v53 = vpop.f32.mrb[12].mxu0 }
 0x225   : > { %v5426_v54 = vpop.f32.mrb[13].mxu0 }
 0x226   : > { %v5427_v56 = vadd.f32 %v5426_v54, %v5425_v53  ;;  %v5428_v58 = vpop.f32.mrb[14].mxu0  ;;  %v5471_v23 = vpop.f32.mrb[16].mxu1 }
 0x227   : > { %v5429_v59 = vpop.f32.mrb[15].mxu0  ;;  %v5472_v24 = vpop.f32.mrb[17].mxu1 }
 0x228   : > { %v1269_v60 = vadd.f32 %v5427_v56, %v7044_v57  ;;  %v5473_v30 = vadd.f32 %v5472_v24, %v5471_v23  ;;  %v5474_v38 = vpop.f32.mrb[18].mxu1 }
 0x229   : > { %v5475_v39 = vpop.f32.mrb[19].mxu1 }
 0x22a   : > { %v1309_v61 = vadd.f32 %v5449_v48, %v1269_v60  ;;  %v1431_v53 = vadd.f32 %v5473_v30, %v7044_v57  ;;  %v5219_v39 = vld [vmem:[%s7022_s20 + $0x10] sm:$0xf] }
 0x22b   : > { %v1646_v40 = vsel %vm1113_vm0, %v5219_v39, 0 }
 0x22c   : > { %v1314_v62 = vmax.f32 %v1309_v61, 0.0 }
 0x22e   : > { %v1315_v63 = vpack.c.bf16 %v1314_v62, %v1314_v62 }
 0x230   : > { %6446 = vmatmul.mubr.msk.bf16.vlgmr.msra.gmra.mrb[16].mxu0 %vm1109_vm2, %v1315_v63 }
 0x231   : > { %5478 = vmatpush3.bf16.msra.mxu0 %v6850_v3  ;;  %1468 = vmatprep.mubr.bf16.mxu0 %v1391_v55  ;;  %v1553_v55 = vcombine.high %v1551_v45, %v1551_v45 }
 0x232   : > { %5479 = vmatprep.subr.bf16.mxu0 %v6858_v5 }
 0x235   : > { %5480 = vmatpush3.bf16.msra.mxu0 %v6866_v7 }
 0x236   : > { %5481 = vmatprep.subr.bf16.mxu0 %v6874_v9 }
 0x239   : > { %5482 = vmatpush3.bf16.msra.mxu0 %v6882_v11 }
 0x23a   : > { %5483 = vmatprep.subr.bf16.mxu0 %v6890_v13 }
 0x23d   : > { %5484 = vmatpush3.bf16.msra.mxu0 %v6898_v15 }
 0x23e   : > { %5485 = vmatprep.subr.bf16.mxu0 %v6906_v17 }
 0x241   : > { %5486 = vmatpush3.bf16.msra.mxu0 %v6914_v19 }
 0x242   : > { %5487 = vmatprep.subr.bf16.mxu0 %v6922_v22 }
 0x245   : > { %5488 = vmatpush3.bf16.msra.mxu0 %v6930_v26 }
 0x246   : > { %5489 = vmatprep.subr.bf16.mxu0 %v6940_v29 }
 0x249   : > { %5490 = vmatpush3.bf16.msra.mxu0 %v6949_v32 }
 0x24a   : > { %5491 = vmatprep.subr.bf16.mxu0 %v6957_v34 }
 0x24d   : > { %5492 = vmatpush3.bf16.msra.mxu0 %v6975_v37 }
 0x24e   : > { %5501 = vmatprep.subr.bf16.mxu0 %v6839_v0 }
 0x250   : > { %1469 = vmatmul.mubr.bf16.vlgmr.msra.gmra.mrb[20].mxu0 %v1390_v21 }
 0x251   : > { %5502 = vmatpush3.bf16.msra.mxu0 %v6846_v2  ;;  %1590 = vmatprep.mubr.bf16.mxu0 %v1551_v45  ;;  %v1706_v45 = vrot.slane %v5222_v41, %v6967_v35 }
 0x252   : > { %5503 = vmatprep.subr.bf16.mxu0 %v6854_v4 }
 0x255   : > { %5504 = vmatpush3.bf16.msra.mxu0 %v6862_v6 }
 0x256   : > { %5505 = vmatprep.subr.bf16.mxu0 %v6870_v8 }
 0x259   : > { %5506 = vmatpush3.bf16.msra.mxu0 %v6878_v10 }
 0x25a   : > { %5507 = vmatprep.subr.bf16.mxu0 %v6886_v12 }
 0x25d   : > { %5508 = vmatpush3.bf16.msra.mxu0 %v6894_v14 }
 0x25e   : > { %5509 = vmatprep.subr.bf16.mxu0 %v6902_v16 }
 0x261   : > { %5510 = vmatpush3.bf16.msra.mxu0 %v6910_v18 }
 0x262   : > { %5511 = vmatprep.subr.bf16.mxu0 %v6918_v20 }
 0x265   : > { %5512 = vmatpush3.bf16.msra.mxu0 %v6926_v25 }
 0x266   : > { %5513 = vmatprep.subr.bf16.mxu0 %v6934_v27 }
 0x269   : > { %5514 = vmatpush3.bf16.msra.mxu0 %v6945_v31 }
 0x26a   : > { %5515 = vmatprep.subr.bf16.mxu0 %v6953_v33 }
 0x26d   : > { %5516 = vmatpush3.bf16.msra.mxu0 %v6971_v36 }
 0x26e   : > { %6455 = vmatprep.subr.bf16.mxu0 %v6748_v51 }
 0x270   : > { %1591 = vmatmul.mubr.bf16.vlgmr.msra.gmra.mrb[24].mxu0 %v1544_v46 }
 0x271   : > { %6457 = vmatprep.mubr.msk.bf16.mxu0 %vm6749_vm1, %v6748_v51  ;;  %6456 = vmatpush3.bf16.msra.mxu0 %v1646_v40 }
 0x272   : > { %5569 = vmatprep.subr.bf16.mxu0 %v6842_v1 }
 0x303   : > { %v1358_v47 = vpop.f32.mrb[16].mxu0 }
 0x304   : > { %v7155_v48 = vadd.f32 %v1358_v47, %v7110_v44  ;;  %v6447_v49 = vpop.f32.mrb[17].mxu0  ;;  %v1552_v44 = vcombine.high %v1544_v46, %v1544_v46 }
 0x305   : > { %v1361_v50 = vpop.f32.mrb[18].mxu0 }
 0x306   : > { %v6448_v52 = vpop.f32.mrb[19].mxu0 }
 0x323   : > { %v5493_v54 = vpop.f32.mrb[20].mxu0 }
 0x324   : > { %v5494_v56 = vpop.f32.mrb[21].mxu0 }
 0x325   : > { %v5495_v58 = vadd.f32 %v5494_v56, %v5493_v54  ;;  %v5496_v59 = vpop.f32.mrb[22].mxu0 }
 0x326   : > { %v5497_v60 = vpop.f32.mrb[23].mxu0 }
 0x327   : > { %v1471_v61 = vadd.f32 %v5495_v58, %v1431_v53 }
 0x329   : > { %v1476_v62 = vmax.f32 %v1471_v61, 0.0 }
 0x32b   : > { %v1477_v63 = vpack.c.bf16 %v1476_v62, %v1476_v62 }
 0x32d   : > { %6452 = vmatmul.mubr.msk.bf16.vlgmr.msra.gmra.mrb[20].mxu1 %vm1109_vm2, %v1477_v63 }
 0x32e   : > { %5524 = vmatpush3.bf16.msra.mxu1 %v6850_v3  ;;  %1630 = vmatprep.mubr.bf16.mxu1 %v1553_v55  ;;  %v1715_v55 = vcombine.high %v1713_v43, %v1713_v43 }
 0x32f   : > { %5525 = vmatprep.subr.bf16.mxu1 %v6858_v5 }
 0x332   : > { %5526 = vmatpush3.bf16.msra.mxu1 %v6866_v7 }
 0x333   : > { %5527 = vmatprep.subr.bf16.mxu1 %v6874_v9 }
 0x336   : > { %5528 = vmatpush3.bf16.msra.mxu1 %v6882_v11 }
 0x337   : > { %5529 = vmatprep.subr.bf16.mxu1 %v6890_v13 }
 0x33a   : > { %5530 = vmatpush3.bf16.msra.mxu1 %v6898_v15 }
 0x33b   : > { %5531 = vmatprep.subr.bf16.mxu1 %v6906_v17 }
 0x33e   : > { %5532 = vmatpush3.bf16.msra.mxu1 %v6914_v19 }
 0x33f   : > { %5533 = vmatprep.subr.bf16.mxu1 %v6922_v22 }
 0x342   : > { %5534 = vmatpush3.bf16.msra.mxu1 %v6930_v26 }
 0x343   : > { %5535 = vmatprep.subr.bf16.mxu1 %v6940_v29  ;;  %v5517_v21 = vpop.f32.mrb[24].mxu0 }
 0x344   : > { %v5518_v23 = vpop.f32.mrb[25].mxu0 }
 0x345   : > { %v5519_v24 = vadd.f32 %v5518_v23, %v5517_v21  ;;  %v5520_v30 = vpop.f32.mrb[26].mxu0 }
 0x346   : > { %5536 = vmatpush3.bf16.msra.mxu1 %v6949_v32  ;;  %v5521_v38 = vpop.f32.mrb[27].mxu0 }
 0x347   : > { %5537 = vmatprep.subr.bf16.mxu1 %v6957_v34  ;;  %v1593_v53 = vadd.f32 %v5519_v24, %v7044_v57 }
 0x34a   : > { %5538 = vmatpush3.bf16.msra.mxu1 %v6975_v37 }
 0x34b   : > { %5547 = vmatprep.subr.bf16.mxu1 %v6839_v0 }
 0x34d   : > { %1631 = vmatmul.mubr.bf16.vlgmr.msra.gmra.mrb[24].mxu1 %v1552_v44 }
 0x34e   : > { %5548 = vmatpush3.bf16.msra.mxu1 %v6846_v2  ;;  %1752 = vmatprep.mubr.bf16.mxu1 %v1713_v43 }
 0x34f   : > { %5549 = vmatprep.subr.bf16.mxu1 %v6854_v4 }
 0x352   : > { %5550 = vmatpush3.bf16.msra.mxu1 %v6862_v6 }
 0x353   : > { %5551 = vmatprep.subr.bf16.mxu1 %v6870_v8 }
 0x356   : > { %5552 = vmatpush3.bf16.msra.mxu1 %v6878_v10 }
 0x357   : > { %5553 = vmatprep.subr.bf16.mxu1 %v6886_v12 }
 0x35a   : > { %5554 = vmatpush3.bf16.msra.mxu1 %v6894_v14 }
 0x35b   : > { %5555 = vmatprep.subr.bf16.mxu1 %v6902_v16 }
 0x35e   : > { %5556 = vmatpush3.bf16.msra.mxu1 %v6910_v18 }
 0x35f   : > { %5557 = vmatprep.subr.bf16.mxu1 %v6918_v20 }
 0x362   : > { %5558 = vmatpush3.bf16.msra.mxu1 %v6926_v25 }
 0x363   : > { %5559 = vmatprep.subr.bf16.mxu1 %v6934_v27 }
 0x366   : > { %5560 = vmatpush3.bf16.msra.mxu1 %v6945_v31 }
 0x367   : > { %5561 = vmatprep.subr.bf16.mxu1 %v6953_v33 }
 0x36a   : > { %5562 = vmatpush3.bf16.msra.mxu1 %v6971_v36 }
 0x36b   : > { %6461 = vmatprep.subr.bf16.mxu1 %v6748_v51 }
 0x36d   : > { %1753 = vmatmul.mubr.bf16.vlgmr.msra.gmra.mrb[28].mxu1 %v1706_v45 }
 0x36e   : > { %6463 = vmatprep.mubr.msk.bf16.mxu1 %vm6749_vm1, %v6748_v51 }
 0x400   : > { %v1520_v46 = vpop.f32.mrb[20].mxu1 }
 0x401   : > { %v7200_v47 = vadd.f32 %v1520_v46, %v7155_v48  ;;  %v6453_v49 = vpop.f32.mrb[21].mxu1  ;;  %v5226_v48 = vld.sshfl [vmem:[%s6964_s17 + $0x18] sm:$0x33 pattern:$0x75316420] }
 0x402   : > { %v1523_v50 = vpop.f32.mrb[22].mxu1  ;;  %v1861_v44 = vcombine.high %v5226_v48, %v5226_v48  ;;  %v1868_v23 = vrot.slane %v5226_v48, %v6967_v35  ;;  %v7324_v48 = vld [vmem:[%s6836_s30 + $0x88] sm:$0xff]  }
 0x403   : > { %v6454_v52 = vpop.f32.mrb[23].mxu1 }
 0x404   : > { %v1875_v21 = vrot.slane %v1861_v44, %v6967_v35  ;;  %v7328_v44 = vld [vmem:[%s6836_s30 + $0xd0] sm:$0xff]  }
 0x406   : > { %v1877_v52 = vcombine.high %v1875_v21, %v1875_v21 }
 0x420   : > { %v5539_v54 = vpop.f32.mrb[24].mxu1 }
 0x421   : > { %v5540_v56 = vpop.f32.mrb[25].mxu1 }
 0x422   : > { %v5541_v58 = vadd.f32 %v5540_v56, %v5539_v54  ;;  %v5542_v59 = vpop.f32.mrb[26].mxu1  ;;  %v7250_v54 = vld [vmem:[%s6836_s30 + $0x80] sm:$0xff]  }
 0x423   : > { %v5543_v60 = vpop.f32.mrb[27].mxu1 }
 0x424   : > { %v1633_v61 = vadd.f32 %v5541_v58, %v1593_v53 }
 0x426   : > { %v1638_v62 = vmax.f32 %v1633_v61, 0.0 }
 0x428   : > { %v1639_v63 = vpack.c.bf16 %v1638_v62, %v1638_v62 }
 0x42a   : > { %6458 = vmatmul.mubr.msk.bf16.vlgmr.msra.gmra.mrb[28].mxu0 %vm1109_vm2, %v1639_v63 }
 0x42b   : > { %5570 = vmatpush3.bf16.msra.mxu0 %v6850_v3  ;;  %1792 = vmatprep.mubr.bf16.mxu0 %v1715_v55  ;;  %v1714_v3 = vcombine.high %v1706_v45, %v1706_v45 }
 0x42c   : > { %5571 = vmatprep.subr.bf16.mxu0 %v6858_v5 }
 0x42f   : > { %5572 = vmatpush3.bf16.msra.mxu0 %v6866_v7 }
 0x430   : > { %5573 = vmatprep.subr.bf16.mxu0 %v6874_v9 }
 0x433   : > { %5574 = vmatpush3.bf16.msra.mxu0 %v6882_v11 }
 0x434   : > { %5575 = vmatprep.subr.bf16.mxu0 %v6890_v13 }
 0x437   : > { %5576 = vmatpush3.bf16.msra.mxu0 %v6898_v15 }
 0x438   : > { %5577 = vmatprep.subr.bf16.mxu0 %v6906_v17 }
 0x43b   : > { %5578 = vmatpush3.bf16.msra.mxu0 %v6914_v19 }
 0x43c   : > { %5579 = vmatprep.subr.bf16.mxu0 %v6922_v22 }
 0x43f   : > { %5580 = vmatpush3.bf16.msra.mxu0 %v6930_v26 }
 0x440   : > { %5581 = vmatprep.subr.bf16.mxu0 %v6940_v29 }
 0x443   : > { %5582 = vmatpush3.bf16.msra.mxu0 %v6949_v32 }
 0x444   : > { %5583 = vmatprep.subr.bf16.mxu0 %v6957_v34 }
 0x447   : > { %5584 = vmatpush3.bf16.msra.mxu0 %v6975_v37 }
 0x448   : > { %5593 = vmatprep.subr.bf16.mxu0 %v6839_v0  ;;  %v5563_v0 = vpop.f32.mrb[28].mxu1 }
 0x44a   : > { %1793 = vmatmul.mubr.bf16.vlgmr.msra.gmra.mrb[32].mxu0 %v1714_v3 }
 0x44b   : > { %5594 = vmatpush3.bf16.msra.mxu0 %v6846_v2  ;;  %v5564_v2 = vpop.f32.mrb[29].mxu1  ;;  %1914 = vmatprep.mubr.bf16.mxu0 %v1875_v21  ;;  %v7332_v21 = vld [vmem:[%s6836_s30 + $0x90] sm:$0xff]  }
 0x44c   : > { %5595 = vmatprep.subr.bf16.mxu0 %v6854_v4  ;;  %v5565_v4 = vadd.f32 %v5564_v2, %v5563_v0  ;;  %v5566_v5 = vpop.f32.mrb[30].mxu1 }
 0x44e   : > { %v1755_v40 = vadd.f32 %v5565_v4, %v7044_v57 }
 0x44f   : > { %5596 = vmatpush3.bf16.msra.mxu0 %v6862_v6  ;;  %v5567_v6 = vpop.f32.mrb[31].mxu1 }
 0x450   : > { %5597 = vmatprep.subr.bf16.mxu0 %v6870_v8  ;;  %v5223_v8 = vld [vmem:[%s7022_s20 + $0x14] sm:$0xf] }
 0x453   : > { %5598 = vmatpush3.bf16.msra.mxu0 %v6878_v10  ;;  %v1808_v10 = vsel %vm1113_vm0, %v5223_v8, 0 }
 0x454   : > { %5599 = vmatprep.subr.bf16.mxu0 %v6886_v12  ;;  %6462 = vmatpush3.bf16.msra.mxu1 %v1808_v10 }
 0x455   : > { %5615 = vmatprep.subr.bf16.mxu1 %v6842_v1 }
 0x457   : > { %5600 = vmatpush3.bf16.msra.mxu0 %v6894_v14 }
 0x458   : > { %5601 = vmatprep.subr.bf16.mxu0 %v6902_v16 }
 0x45b   : > { %5602 = vmatpush3.bf16.msra.mxu0 %v6910_v18 }
 0x45c   : > { %5603 = vmatprep.subr.bf16.mxu0 %v6918_v20 }
 0x45f   : > { %5604 = vmatpush3.bf16.msra.mxu0 %v6926_v25 }
 0x460   : > { %5605 = vmatprep.subr.bf16.mxu0 %v6934_v27 }
 0x463   : > { %5606 = vmatpush3.bf16.msra.mxu0 %v6945_v31 }
 0x464   : > { %5607 = vmatprep.subr.bf16.mxu0 %v6953_v33 }
 0x467   : > { %5608 = vmatpush3.bf16.msra.mxu0 %v6971_v36 }
 0x468   : > { %6467 = vmatprep.subr.bf16.mxu0 %v6748_v51 }
 0x46a   : > { %1915 = vmatmul.mubr.bf16.vlgmr.msra.gmra.mrb[36].mxu0 %v1868_v23 }
 0x46b   : > { %6469 = vmatprep.mubr.msk.bf16.mxu0 %vm6749_vm1, %v6748_v51 }
 0x4fd   : > { %v1682_v24 = vpop.f32.mrb[28].mxu0 }
 0x4fe   : > { %v7245_v30 = vadd.f32 %v1682_v24, %v7200_v47  ;;  %v6459_v38 = vpop.f32.mrb[29].mxu0  ;;  %v7254_v47 = vld [vmem:[%s6836_s30 + $0xc8] sm:$0xff]   ;;  %v7340_v24 = vld [vmem:[%s6836_s30 + $0x98] sm:$0xff]  }
 0x4ff   : > { %v1685_v39 = vpop.f32.mrb[30].mxu0  ;;  %v7348_v38 = vld [vmem:[%s6836_s30 + $0xa0] sm:$0xff]  }
 0x500   : > { %v6460_v1 = vpop.f32.mrb[31].mxu0  ;;  %v7352_v39 = vld [vmem:[%s6836_s30 + $0xe8] sm:$0xff]  }
 0x501   : > { %v7356_v1 = vld [vmem:[%s6836_s30 + $0xa8] sm:$0xff]  }
 0x51d   : > { %v5585_v41 = vpop.f32.mrb[32].mxu0 }
 0x51e   : > { %v5586_v42 = vpop.f32.mrb[33].mxu0 }
 0x51f   : > { %v5587_v43 = vadd.f32 %v5586_v42, %v5585_v41  ;;  %v5588_v45 = vpop.f32.mrb[34].mxu0  ;;  %v7386_v41 = vld [vmem:[%s6836_s30 + $0x68] sm:$0xff]  }
 0x520   : > { %v5589_v46 = vpop.f32.mrb[35].mxu0  ;;  %v7390_v42 = vld [vmem:[%s6836_s30 + $0x28] sm:$0xff]   ;;  %v7398_v45 = vld [vmem:[%s6836_s30 + $0x30] sm:$0xff]  }
 0x521   : > { %v1795_v49 = vadd.f32 %v5587_v43, %v1755_v40  ;;  %v7394_v43 = vld [vmem:[%s6836_s30 + $0x70] sm:$0xff]   ;;  %v7402_v46 = vld [vmem:[%s6836_s30 + $0x78] sm:$0xff]  }
 0x523   : > { %v1800_v50 = vmax.f32 %v1795_v49, 0.0 }
 0x525   : > { %v1801_v53 = vpack.c.bf16 %v1800_v50, %v1800_v50 }
 0x527   : > { %6464 = vmatmul.mubr.msk.bf16.vlgmr.msra.gmra.mrb[32].mxu1 %vm1109_vm2, %v1801_v53 }
 0x528   : > { %5616 = vmatpush3.bf16.msra.mxu1 %v7250_v54  ;;  %1954 = vmatprep.mubr.bf16.mxu1 %v1877_v52 }
 0x529   : > { %5617 = vmatprep.subr.bf16.mxu1 %v7254_v47 }
 0x52c   : > { %5618 = vmatpush3.bf16.msra.mxu1 %v6866_v7  ;;  %v1876_v7 = vcombine.high %v1868_v23, %v1868_v23  ;;  %v7336_v23 = vld [vmem:[%s6836_s30 + $0xd8] sm:$0xff]  }
 0x52d   : > { %5619 = vmatprep.subr.bf16.mxu1 %v6874_v9  ;;  %v7271_v9 = vld [vmem:[%s6836_s30 + $0x40] sm:$0xff]  }
 0x530   : > { %5620 = vmatpush3.bf16.msra.mxu1 %v6882_v11  ;;  %v7275_v11 = vld [vmem:[%s6836_s30] sm:$0xff]  }
 0x531   : > { %5621 = vmatprep.subr.bf16.mxu1 %v6890_v13  ;;  %v7279_v13 = vld [vmem:[%s6836_s30 + $0x48] sm:$0xff]  }
 0x534   : > { %5622 = vmatpush3.bf16.msra.mxu1 %v6898_v15  ;;  %v7283_v15 = vld [vmem:[%s6836_s30 + $0x8] sm:$0xff]  }
 0x535   : > { %5623 = vmatprep.subr.bf16.mxu1 %v6906_v17  ;;  %v7287_v17 = vld [vmem:[%s6836_s30 + $0x50] sm:$0xff]  }
 0x538   : > { %5624 = vmatpush3.bf16.msra.mxu1 %v6914_v19  ;;  %v7291_v19 = vld [vmem:[%s6836_s30 + $0x10] sm:$0xff]  }
 0x539   : > { %5625 = vmatprep.subr.bf16.mxu1 %v6922_v22 }
 0x53c   : > { %5626 = vmatpush3.bf16.msra.mxu1 %v6930_v26  ;;  %v5227_v26 = vld [vmem:[%s7022_s20 + $0x18] sm:$0xf] }
 0x53d   : > { %5627 = vmatprep.subr.bf16.mxu1 %v6940_v29 }
 0x540   : > { %5628 = vmatpush3.bf16.msra.mxu1 %v6949_v32 }
 0x541   : > { %5629 = vmatprep.subr.bf16.mxu1 %v6957_v34 }
 0x544   : > { %5630 = vmatpush3.bf16.msra.mxu1 %v6975_v37 }
 0x545   : > { %5639 = vmatprep.subr.bf16.mxu1 %v7271_v9 }
 0x547   : > { %1955 = vmatmul.mubr.bf16.vlgmr.msra.gmra.mrb[36].mxu1 %v1876_v7 }
 0x548   : > { %5640 = vmatpush3.bf16.msra.mxu1 %v7275_v11 }
 0x549   : > { %5641 = vmatprep.subr.bf16.mxu1 %v7279_v13 }
 0x54c   : > { %5642 = vmatpush3.bf16.msra.mxu1 %v7283_v15 }
 0x54d   : > { %5643 = vmatprep.subr.bf16.mxu1 %v7287_v17 }
 0x550   : > { %5644 = vmatpush3.bf16.msra.mxu1 %v7291_v19 }
 0x551   : > { %5645 = vmatprep.subr.bf16.mxu1 %v6886_v12  ;;  %v5609_v12 = vpop.f32.mrb[36].mxu0 }
 0x554   : > { %5646 = vmatpush3.bf16.msra.mxu1 %v6894_v14  ;;  %v5610_v14 = vpop.f32.mrb[37].mxu0 }
 0x555   : > { %5647 = vmatprep.subr.bf16.mxu1 %v6902_v16  ;;  %v5611_v16 = vadd.f32 %v5610_v14, %v5609_v12  ;;  %v5231_v12 = vld [vmem:[%s7022_s20 + $0x1c] sm:$0xf] }
 0x556   : > { %v2132_v14 = vsel %vm1113_vm0, %v5231_v12, 0  ;;  %v5238_v12 = vld.sshfl [vmem:[%s6964_s17 + $0x24] sm:$0x33 pattern:$0x75316420] }
 0x557   : > { %v1917_v55 = vadd.f32 %v5611_v16, %v7044_v57  ;;  %v5234_v16 = vld.sshfl [vmem:[%s6964_s17 + $0x20] sm:$0x33 pattern:$0x75316420] }
 0x558   : > { %5648 = vmatpush3.bf16.msra.mxu1 %v6910_v18  ;;  %v5612_v18 = vpop.f32.mrb[38].mxu0 }
 0x559   : > { %5649 = vmatprep.subr.bf16.mxu1 %v6918_v20  ;;  %v5613_v22 = vpop.f32.mrb[39].mxu0  ;;  %v1970_v20 = vsel %vm1113_vm0, %v5227_v26, 0  ;;  %v2185_v18 = vcombine.high %v5234_v16, %v5234_v16  ;;  %v2192_v26 = vrot.slane %v5234_v16, %v6967_v35 }
 0x55a   : > { %6468 = vmatpush3.bf16.msra.mxu0 %v1970_v20 }
 0x55b   : > { %v2199_v22 = vrot.slane %v2185_v18, %v6967_v35  ;;  %v2354_v18 = vrot.slane %v5238_v12, %v6967_v35 }
 0x55c   : > { %5650 = vmatpush3.bf16.msra.mxu1 %v6926_v25  ;;  %v7308_v25 = vld [vmem:[%s6836_s30 + $0xc0] sm:$0xff]  }
 0x55d   : > { %5651 = vmatprep.subr.bf16.mxu1 %v6934_v27  ;;  %5661 = vmatprep.subr.bf16.mxu0 %v7308_v25  ;;  %v5230_v27 = vld.sshfl [vmem:[%s6964_s17 + $0x1c] sm:$0x33 pattern:$0x75316420] }
 0x55e   : > { %v2030_v56 = vrot.slane %v5230_v27, %v6967_v35 }
 0x560   : > { %5652 = vmatpush3.bf16.msra.mxu1 %v6945_v31  ;;  %v2023_v31 = vcombine.high %v5230_v27, %v5230_v27  ;;  %v2038_v40 = vcombine.high %v2030_v56, %v2030_v56 }
 0x561   : > { %5653 = vmatprep.subr.bf16.mxu1 %v6953_v33 }
 0x562   : > { %v2037_v33 = vrot.slane %v2023_v31, %v6967_v35 }
 0x564   : > { %5654 = vmatpush3.bf16.msra.mxu1 %v6971_v36  ;;  %2076 = vmatprep.mubr.bf16.mxu1 %v2037_v33  ;;  %v2039_v8 = vcombine.high %v2037_v33, %v2037_v33 }
 0x565   : > { %6473 = vmatprep.subr.bf16.mxu1 %v6748_v51 }
 0x567   : > { %2077 = vmatmul.mubr.bf16.vlgmr.msra.gmra.mrb[40].mxu1 %v2030_v56 }
 0x568   : > { %6475 = vmatprep.mubr.msk.bf16.mxu1 %vm6749_vm1, %v6748_v51  ;;  %6474 = vmatpush3.bf16.msra.mxu1 %v2132_v14  ;;  %v2347_v14 = vcombine.high %v5238_v12, %v5238_v12 }
 0x569   : > { %5707 = vmatprep.subr.bf16.mxu1 %v7308_v25 }
 0x56a   : > { %v2361_v16 = vrot.slane %v2347_v14, %v6967_v35 }
 0x5fa   : > { %v1844_v58 = vpop.f32.mrb[32].mxu1 }
 0x5fb   : > { %v7317_v59 = vadd.f32 %v1844_v58, %v7245_v30  ;;  %v6465_v60 = vpop.f32.mrb[33].mxu1  ;;  %v7344_v30 = vld [vmem:[%s6836_s30 + $0xe0] sm:$0xff]  }
 0x5fc   : > { %v1847_v61 = vpop.f32.mrb[34].mxu1 }
 0x5fd   : > { %v6466_v62 = vpop.f32.mrb[35].mxu1 }
 0x61a   : > { %v5631_v63 = vpop.f32.mrb[36].mxu1 }
 0x61b   : > { %v5632_v3 = vpop.f32.mrb[37].mxu1 }
 0x61c   : > { %v5633_v0 = vadd.f32 %v5632_v3, %v5631_v63  ;;  %v5634_v2 = vpop.f32.mrb[38].mxu1 }
 0x61d   : > { %v5635_v4 = vpop.f32.mrb[39].mxu1 }
 0x61e   : > { %v1957_v5 = vadd.f32 %v5633_v0, %v1917_v55  ;;  %v2201_v0 = vcombine.high %v2199_v22, %v2199_v22  ;;  %v7440_v4 = vld [vmem:[%s6836_s30 + $0xf8] sm:$0xff]  }
 0x620   : > { %v1962_v6 = vmax.f32 %v1957_v5, 0.0  ;;  %v2200_v5 = vcombine.high %v2192_v26, %v2192_v26 }
 0x622   : > { %v1963_v10 = vpack.c.bf16 %v1962_v6, %v1962_v6  ;;  %v7444_v6 = vld [vmem:[%s6836_s30 + $0xb8] sm:$0xff]  }
 0x624   : > { %6470 = vmatmul.mubr.msk.bf16.vlgmr.msra.gmra.mrb[40].mxu0 %vm1109_vm2, %v1963_v10 }
 0x625   : > { %5662 = vmatpush3.bf16.msra.mxu0 %v7250_v54  ;;  %2116 = vmatprep.mubr.bf16.mxu0 %v2039_v8  ;;  %v7463_v8 = vld [vmem:[%s6836_s30 + $0x38] sm:$0xff]  }
 0x626   : > { %5663 = vmatprep.subr.bf16.mxu0 %v7254_v47 }
 0x629   : > { %5664 = vmatpush3.bf16.msra.mxu0 %v7324_v48 }
 0x62a   : > { %5665 = vmatprep.subr.bf16.mxu0 %v7328_v44 }
 0x62d   : > { %5666 = vmatpush3.bf16.msra.mxu0 %v7332_v21 }
 0x62e   : > { %5667 = vmatprep.subr.bf16.mxu0 %v7336_v23 }
 0x631   : > { %5668 = vmatpush3.bf16.msra.mxu0 %v7340_v24 }
 0x632   : > { %5669 = vmatprep.subr.bf16.mxu0 %v7344_v30 }
 0x635   : > { %5670 = vmatpush3.bf16.msra.mxu0 %v7348_v38 }
 0x636   : > { %5671 = vmatprep.subr.bf16.mxu0 %v7352_v39 }
 0x639   : > { %5672 = vmatpush3.bf16.msra.mxu0 %v7356_v1 }
 0x63a   : > { %5673 = vmatprep.subr.bf16.mxu0 %v6940_v29  ;;  %v7370_v29 = vld [vmem:[%s6836_s30 + $0x58] sm:$0xff]   ;;  %v5655_v49 = vpop.f32.mrb[40].mxu1 }
 0x63b   : > { %v5656_v50 = vpop.f32.mrb[41].mxu1 }
 0x63c   : > { %v5657_v52 = vadd.f32 %v5656_v50, %v5655_v49  ;;  %v5658_v53 = vpop.f32.mrb[42].mxu1 }
 0x63d   : > { %5674 = vmatpush3.bf16.msra.mxu0 %v6949_v32  ;;  %v7374_v32 = vld [vmem:[%s6836_s30 + $0x18] sm:$0xff]   ;;  %v5659_v7 = vpop.f32.mrb[43].mxu1  ;;  %v5235_v53 = vld [vmem:[%s7022_s20 + $0x20] sm:$0xf] }
 0x63e   : > { %5675 = vmatprep.subr.bf16.mxu0 %v6957_v34  ;;  %v7378_v34 = vld [vmem:[%s6836_s30 + $0x60] sm:$0xff]   ;;  %v2079_v56 = vadd.f32 %v5657_v52, %v7044_v57  ;;  %v7432_v57 = vld [vmem:[%s6836_s30 + $0xf0] sm:$0xff]   ;;  %v2294_v7 = vsel %vm1113_vm0, %v5235_v53, 0 }
 0x641   : > { %5676 = vmatpush3.bf16.msra.mxu0 %v6975_v37  ;;  %v7382_v37 = vld [vmem:[%s6836_s30 + $0x20] sm:$0xff]  }
 0x642   : > { %5685 = vmatprep.subr.bf16.mxu0 %v7271_v9 }
 0x644   : > { %2117 = vmatmul.mubr.bf16.vlgmr.msra.gmra.mrb[44].mxu0 %v2038_v40 }
 0x645   : > { %5686 = vmatpush3.bf16.msra.mxu0 %v7275_v11  ;;  %2238 = vmatprep.mubr.bf16.mxu0 %v2199_v22 }
 0x646   : > { %5687 = vmatprep.subr.bf16.mxu0 %v7279_v13 }
 0x649   : > { %5688 = vmatpush3.bf16.msra.mxu0 %v7283_v15 }
 0x64a   : > { %5689 = vmatprep.subr.bf16.mxu0 %v7287_v17 }
 0x64d   : > { %5690 = vmatpush3.bf16.msra.mxu0 %v7291_v19 }
 0x64e   : > { %5691 = vmatprep.subr.bf16.mxu0 %v7370_v29 }
 0x651   : > { %5692 = vmatpush3.bf16.msra.mxu0 %v7374_v32 }
 0x652   : > { %5693 = vmatprep.subr.bf16.mxu0 %v7378_v34 }
 0x655   : > { %5694 = vmatpush3.bf16.msra.mxu0 %v7382_v37 }
 0x656   : > { %5695 = vmatprep.subr.bf16.mxu0 %v7386_v41 }
 0x659   : > { %5696 = vmatpush3.bf16.msra.mxu0 %v7390_v42 }
 0x65a   : > { %5697 = vmatprep.subr.bf16.mxu0 %v7394_v43 }
 0x65d   : > { %5698 = vmatpush3.bf16.msra.mxu0 %v7398_v45 }
 0x65e   : > { %5699 = vmatprep.subr.bf16.mxu0 %v7402_v46 }
 0x661   : > { %5700 = vmatpush3.bf16.msra.mxu0 %v6971_v36 }
 0x662   : > { %6479 = vmatprep.subr.bf16.mxu0 %v6748_v51 }
 0x664   : > { %2239 = vmatmul.mubr.bf16.vlgmr.msra.gmra.mrb[48].mxu0 %v2192_v26 }
 0x665   : > { %6481 = vmatprep.mubr.msk.bf16.mxu0 %vm6749_vm1, %v6748_v51  ;;  %6480 = vmatpush3.bf16.msra.mxu0 %v2294_v7  ;;  %v5242_v7 = vld.sshfl [vmem:[%s6964_s17 + $0x28] sm:$0x33 pattern:$0x75316420] }
 0x666   : > { %5753 = vmatprep.subr.bf16.mxu0 %v7308_v25  ;;  %v2509_v12 = vcombine.high %v5242_v7, %v5242_v7 }
 0x668   : > { %v2523_v14 = vrot.slane %v2509_v12, %v6967_v35 }
 0x6f7   : > { %v2006_v36 = vpop.f32.mrb[40].mxu0 }
 0x6f8   : > { %v7416_v20 = vadd.f32 %v2006_v36, %v7317_v59  ;;  %v6471_v27 = vpop.f32.mrb[41].mxu0  ;;  %v7436_v59 = vld [vmem:[%s6836_s30 + $0xb0] sm:$0xff]  }
 0x6f9   : > { %v2009_v31 = vpop.f32.mrb[42].mxu0 }
 0x6fa   : > { %v6472_v33 = vpop.f32.mrb[43].mxu0 }
 0x6fb   : > { %v7479_v33 = vld [vmem:[%s7040_s23] ss:$0 sm:$0xff] }
 0x717   : > { %v5677_v58 = vpop.f32.mrb[44].mxu0 }
 0x718   : > { %v5678_v60 = vpop.f32.mrb[45].mxu0 }
 0x719   : > { %v5679_v61 = vadd.f32 %v5678_v60, %v5677_v58  ;;  %v5680_v62 = vpop.f32.mrb[46].mxu0 }
 0x71a   : > { %v5681_v55 = vpop.f32.mrb[47].mxu0 }
 0x71b   : > { %v2119_v63 = vadd.f32 %v5679_v61, %v2079_v56 }
 0x71d   : > { %v2124_v3 = vmax.f32 %v2119_v63, 0.0 }
 0x71f   : > { %v2125_v2 = vpack.c.bf16 %v2124_v3, %v2124_v3 }
 0x721   : > { %6476 = vmatmul.mubr.msk.bf16.vlgmr.msra.gmra.mrb[44].mxu1 %vm1109_vm2, %v2125_v2 }
 0x722   : > { %5708 = vmatpush3.bf16.msra.mxu1 %v7250_v54  ;;  %2278 = vmatprep.mubr.bf16.mxu1 %v2201_v0  ;;  %v2363_v0 = vcombine.high %v2361_v16, %v2361_v16 }
 0x723   : > { %5709 = vmatprep.subr.bf16.mxu1 %v7254_v47 }
 0x726   : > { %5710 = vmatpush3.bf16.msra.mxu1 %v7324_v48 }
 0x727   : > { %5711 = vmatprep.subr.bf16.mxu1 %v7328_v44 }
 0x72a   : > { %5712 = vmatpush3.bf16.msra.mxu1 %v7332_v21 }
 0x72b   : > { %5713 = vmatprep.subr.bf16.mxu1 %v7336_v23 }
 0x72e   : > { %5714 = vmatpush3.bf16.msra.mxu1 %v7340_v24 }
 0x72f   : > { %5715 = vmatprep.subr.bf16.mxu1 %v7344_v30 }
 0x732   : > { %5716 = vmatpush3.bf16.msra.mxu1 %v7348_v38 }
 0x733   : > { %5717 = vmatprep.subr.bf16.mxu1 %v7352_v39 }
 0x736   : > { %5718 = vmatpush3.bf16.msra.mxu1 %v7356_v1 }
 0x737   : > { %5719 = vmatprep.subr.bf16.mxu1 %v7432_v57  ;;  %v5701_v10 = vpop.f32.mrb[48].mxu0 }
 0x738   : > { %v5702_v40 = vpop.f32.mrb[49].mxu0 }
 0x739   : > { %v5703_v49 = vadd.f32 %v5702_v40, %v5701_v10  ;;  %v5704_v50 = vpop.f32.mrb[50].mxu0 }
 0x73a   : > { %5720 = vmatpush3.bf16.msra.mxu1 %v7436_v59  ;;  %v5705_v52 = vpop.f32.mrb[51].mxu0 }
 0x73b   : > { %5721 = vmatprep.subr.bf16.mxu1 %v7440_v4  ;;  %v2241_v56 = vadd.f32 %v7479_v33, %v5703_v49  ;;  %v5239_v52 = vld [vmem:[%s7022_s20 + $0x24] sm:$0xf] }
 0x73c   : > { %v2456_v53 = vsel %vm1113_vm0, %v5239_v52, 0 }
 0x73e   : > { %5722 = vmatpush3.bf16.msra.mxu1 %v7444_v6 }
 0x73f   : > { %5731 = vmatprep.subr.bf16.mxu1 %v7271_v9 }
 0x741   : > { %2279 = vmatmul.mubr.bf16.vlgmr.msra.gmra.mrb[48].mxu1 %v2200_v5 }
 0x742   : > { %5732 = vmatpush3.bf16.msra.mxu1 %v7275_v11  ;;  %2400 = vmatprep.mubr.bf16.mxu1 %v2361_v16  ;;  %v2516_v16 = vrot.slane %v5242_v7, %v6967_v35 }
 0x743   : > { %5733 = vmatprep.subr.bf16.mxu1 %v7279_v13 }
 0x746   : > { %5734 = vmatpush3.bf16.msra.mxu1 %v7283_v15 }
 0x747   : > { %5735 = vmatprep.subr.bf16.mxu1 %v7287_v17 }
 0x74a   : > { %5736 = vmatpush3.bf16.msra.mxu1 %v7291_v19 }
 0x74b   : > { %5737 = vmatprep.subr.bf16.mxu1 %v7370_v29 }
 0x74e   : > { %5738 = vmatpush3.bf16.msra.mxu1 %v7374_v32 }
 0x74f   : > { %5739 = vmatprep.subr.bf16.mxu1 %v7378_v34 }
 0x752   : > { %5740 = vmatpush3.bf16.msra.mxu1 %v7382_v37 }
 0x753   : > { %5741 = vmatprep.subr.bf16.mxu1 %v7386_v41 }
 0x756   : > { %5742 = vmatpush3.bf16.msra.mxu1 %v7390_v42 }
 0x757   : > { %5743 = vmatprep.subr.bf16.mxu1 %v7394_v43 }
 0x75a   : > { %5744 = vmatpush3.bf16.msra.mxu1 %v7398_v45 }
 0x75b   : > { %5745 = vmatprep.subr.bf16.mxu1 %v7402_v46 }
 0x75e   : > { %5746 = vmatpush3.bf16.msra.mxu1 %v7463_v8 }
 0x75f   : > { %6485 = vmatprep.subr.bf16.mxu1 %v6748_v51 }
 0x761   : > { %2401 = vmatmul.mubr.bf16.vlgmr.msra.gmra.mrb[52].mxu1 %v2354_v18 }
 0x762   : > { %6487 = vmatprep.mubr.msk.bf16.mxu1 %vm6749_vm1, %v6748_v51  ;;  %6486 = vmatpush3.bf16.msra.mxu1 %v2456_v53  ;;  %v5246_v53 = vld.sshfl [vmem:[%s6964_s17 + $0x2c] sm:$0x33 pattern:$0x75316420] }
 0x763   : > { %5799 = vmatprep.subr.bf16.mxu1 %v7308_v25  ;;  %v2671_v7 = vcombine.high %v5246_v53, %v5246_v53 }
 0x765   : > { %v2685_v12 = vrot.slane %v2671_v7, %v6967_v35 }
 0x7f4   : > { %v2168_v22 = vpop.f32.mrb[44].mxu1 }
 0x7f5   : > { %v7476_v26 = vadd.f32 %v2168_v22, %v7416_v20  ;;  %v6477_v36 = vpop.f32.mrb[45].mxu1  ;;  %v2362_v20 = vcombine.high %v2354_v18, %v2354_v18 }
 0x7f6   : > { %v2171_v27 = vpop.f32.mrb[46].mxu1 }
 0x7f7   : > { %v6478_v31 = vpop.f32.mrb[47].mxu1 }
 0x814   : > { %v5723_v58 = vpop.f32.mrb[48].mxu1 }
 0x815   : > { %v5724_v60 = vpop.f32.mrb[49].mxu1 }
 0x816   : > { %v5725_v61 = vadd.f32 %v5724_v60, %v5723_v58  ;;  %v5726_v62 = vpop.f32.mrb[50].mxu1 }
 0x817   : > { %v5727_v55 = vpop.f32.mrb[51].mxu1 }
 0x818   : > { %v2281_v63 = vadd.f32 %v5725_v61, %v2241_v56 }
 0x81a   : > { %v2286_v3 = vmax.f32 %v2281_v63, 0.0 }
 0x81c   : > { %v2287_v2 = vpack.c.bf16 %v2286_v3, %v2286_v3 }
 0x81e   : > { %6482 = vmatmul.mubr.msk.bf16.vlgmr.msra.gmra.mrb[52].mxu0 %vm1109_vm2, %v2287_v2 }
 0x81f   : > { %5754 = vmatpush3.bf16.msra.mxu0 %v7250_v54  ;;  %2440 = vmatprep.mubr.bf16.mxu0 %v2363_v0  ;;  %v2525_v0 = vcombine.high %v2523_v14, %v2523_v14 }
 0x820   : > { %5755 = vmatprep.subr.bf16.mxu0 %v7254_v47 }
 0x823   : > { %5756 = vmatpush3.bf16.msra.mxu0 %v7324_v48 }
 0x824   : > { %5757 = vmatprep.subr.bf16.mxu0 %v7328_v44 }
 0x827   : > { %5758 = vmatpush3.bf16.msra.mxu0 %v7332_v21 }
 0x828   : > { %5759 = vmatprep.subr.bf16.mxu0 %v7336_v23 }
 0x82b   : > { %5760 = vmatpush3.bf16.msra.mxu0 %v7340_v24 }
 0x82c   : > { %5761 = vmatprep.subr.bf16.mxu0 %v7344_v30 }
 0x82f   : > { %5762 = vmatpush3.bf16.msra.mxu0 %v7348_v38 }
 0x830   : > { %5763 = vmatprep.subr.bf16.mxu0 %v7352_v39 }
 0x833   : > { %5764 = vmatpush3.bf16.msra.mxu0 %v7356_v1 }
 0x834   : > { %5765 = vmatprep.subr.bf16.mxu0 %v7432_v57  ;;  %v5747_v5 = vpop.f32.mrb[52].mxu1 }
 0x835   : > { %v5748_v10 = vpop.f32.mrb[53].mxu1 }
 0x836   : > { %v5749_v40 = vadd.f32 %v5748_v10, %v5747_v5  ;;  %v5750_v49 = vpop.f32.mrb[54].mxu1 }
 0x837   : > { %5766 = vmatpush3.bf16.msra.mxu0 %v7436_v59  ;;  %v5751_v50 = vpop.f32.mrb[55].mxu1 }
 0x838   : > { %5767 = vmatprep.subr.bf16.mxu0 %v7440_v4  ;;  %v2403_v56 = vadd.f32 %v7479_v33, %v5749_v40  ;;  %v5243_v50 = vld [vmem:[%s7022_s20 + $0x28] sm:$0xf] }
 0x839   : > { %v2618_v52 = vsel %vm1113_vm0, %v5243_v50, 0 }
 0x83b   : > { %5768 = vmatpush3.bf16.msra.mxu0 %v7444_v6 }
 0x83c   : > { %5777 = vmatprep.subr.bf16.mxu0 %v7271_v9 }
 0x83e   : > { %2441 = vmatmul.mubr.bf16.vlgmr.msra.gmra.mrb[56].mxu0 %v2362_v20 }
 0x83f   : > { %5778 = vmatpush3.bf16.msra.mxu0 %v7275_v11  ;;  %2562 = vmatprep.mubr.bf16.mxu0 %v2523_v14  ;;  %v2678_v14 = vrot.slane %v5246_v53, %v6967_v35 }
 0x840   : > { %5779 = vmatprep.subr.bf16.mxu0 %v7279_v13 }
 0x843   : > { %5780 = vmatpush3.bf16.msra.mxu0 %v7283_v15 }
 0x844   : > { %5781 = vmatprep.subr.bf16.mxu0 %v7287_v17 }
 0x847   : > { %5782 = vmatpush3.bf16.msra.mxu0 %v7291_v19 }
 0x848   : > { %5783 = vmatprep.subr.bf16.mxu0 %v7370_v29 }
 0x84b   : > { %5784 = vmatpush3.bf16.msra.mxu0 %v7374_v32 }
 0x84c   : > { %5785 = vmatprep.subr.bf16.mxu0 %v7378_v34 }
 0x84f   : > { %5786 = vmatpush3.bf16.msra.mxu0 %v7382_v37 }
 0x850   : > { %5787 = vmatprep.subr.bf16.mxu0 %v7386_v41 }
 0x853   : > { %5788 = vmatpush3.bf16.msra.mxu0 %v7390_v42 }
 0x854   : > { %5789 = vmatprep.subr.bf16.mxu0 %v7394_v43 }
 0x857   : > { %5790 = vmatpush3.bf16.msra.mxu0 %v7398_v45 }
 0x858   : > { %5791 = vmatprep.subr.bf16.mxu0 %v7402_v46 }
 0x85b   : > { %5792 = vmatpush3.bf16.msra.mxu0 %v7463_v8 }
 0x85c   : > { %6491 = vmatprep.subr.bf16.mxu0 %v6748_v51 }
 0x85e   : > { %2563 = vmatmul.mubr.bf16.vlgmr.msra.gmra.mrb[60].mxu0 %v2516_v16 }
 0x85f   : > { %6493 = vmatprep.mubr.msk.bf16.mxu0 %vm6749_vm1, %v6748_v51  ;;  %6492 = vmatpush3.bf16.msra.mxu0 %v2618_v52  ;;  %v5250_v52 = vld.sshfl [vmem:[%s6964_s17 + $0x30] sm:$0x33 pattern:$0x75316420] }
 0x860   : > { %5845 = vmatprep.subr.bf16.mxu0 %v7308_v25  ;;  %v2833_v53 = vcombine.high %v5250_v52, %v5250_v52 }
 0x862   : > { %v2847_v7 = vrot.slane %v2833_v53, %v6967_v35 }
 0x8f1   : > { %v2330_v18 = vpop.f32.mrb[52].mxu0 }
 0x8f2   : > { %v7524_v22 = vadd.f32 %v2330_v18, %v7476_v26  ;;  %v6483_v36 = vpop.f32.mrb[53].mxu0  ;;  %v2524_v26 = vcombine.high %v2516_v16, %v2516_v16 }
 0x8f3   : > { %v2333_v27 = vpop.f32.mrb[54].mxu0 }
 0x8f4   : > { %v6484_v31 = vpop.f32.mrb[55].mxu0 }
 0x911   : > { %v5769_v58 = vpop.f32.mrb[56].mxu0 }
 0x912   : > { %v5770_v60 = vpop.f32.mrb[57].mxu0 }
 0x913   : > { %v5771_v61 = vadd.f32 %v5770_v60, %v5769_v58  ;;  %v5772_v62 = vpop.f32.mrb[58].mxu0 }
 0x914   : > { %v5773_v55 = vpop.f32.mrb[59].mxu0 }
 0x915   : > { %v2443_v63 = vadd.f32 %v5771_v61, %v2403_v56 }
 0x917   : > { %v2448_v3 = vmax.f32 %v2443_v63, 0.0 }
 0x919   : > { %v2449_v2 = vpack.c.bf16 %v2448_v3, %v2448_v3 }
 0x91b   : > { %6488 = vmatmul.mubr.msk.bf16.vlgmr.msra.gmra.mrb[56].mxu1 %vm1109_vm2, %v2449_v2 }
 0x91c   : > { %5800 = vmatpush3.bf16.msra.mxu1 %v7250_v54  ;;  %2602 = vmatprep.mubr.bf16.mxu1 %v2525_v0  ;;  %v2687_v0 = vcombine.high %v2685_v12, %v2685_v12 }
 0x91d   : > { %5801 = vmatprep.subr.bf16.mxu1 %v7254_v47 }
 0x920   : > { %5802 = vmatpush3.bf16.msra.mxu1 %v7324_v48 }
 0x921   : > { %5803 = vmatprep.subr.bf16.mxu1 %v7328_v44 }
 0x924   : > { %5804 = vmatpush3.bf16.msra.mxu1 %v7332_v21 }
 0x925   : > { %5805 = vmatprep.subr.bf16.mxu1 %v7336_v23 }
 0x928   : > { %5806 = vmatpush3.bf16.msra.mxu1 %v7340_v24 }
 0x929   : > { %5807 = vmatprep.subr.bf16.mxu1 %v7344_v30 }
 0x92c   : > { %5808 = vmatpush3.bf16.msra.mxu1 %v7348_v38 }
 0x92d   : > { %5809 = vmatprep.subr.bf16.mxu1 %v7352_v39 }
 0x930   : > { %5810 = vmatpush3.bf16.msra.mxu1 %v7356_v1 }
 0x931   : > { %5811 = vmatprep.subr.bf16.mxu1 %v7432_v57  ;;  %v5793_v20 = vpop.f32.mrb[60].mxu0 }
 0x932   : > { %v5794_v5 = vpop.f32.mrb[61].mxu0 }
 0x933   : > { %v5795_v10 = vadd.f32 %v5794_v5, %v5793_v20  ;;  %v5796_v40 = vpop.f32.mrb[62].mxu0 }
 0x934   : > { %5812 = vmatpush3.bf16.msra.mxu1 %v7436_v59  ;;  %v5797_v49 = vpop.f32.mrb[63].mxu0 }
 0x935   : > { %5813 = vmatprep.subr.bf16.mxu1 %v7440_v4  ;;  %v2565_v56 = vadd.f32 %v7479_v33, %v5795_v10  ;;  %v5247_v49 = vld [vmem:[%s7022_s20 + $0x2c] sm:$0xf] }
 0x936   : > { %v2780_v50 = vsel %vm1113_vm0, %v5247_v49, 0 }
 0x938   : > { %5814 = vmatpush3.bf16.msra.mxu1 %v7444_v6 }
 0x939   : > { %5823 = vmatprep.subr.bf16.mxu1 %v7271_v9 }
 0x93b   : > { %2603 = vmatmul.mubr.bf16.vlgmr.msra.gmra.mrb[60].mxu1 %v2524_v26 }
 0x93c   : > { %5824 = vmatpush3.bf16.msra.mxu1 %v7275_v11  ;;  %2724 = vmatprep.mubr.bf16.mxu1 %v2685_v12  ;;  %v2840_v12 = vrot.slane %v5250_v52, %v6967_v35 }
 0x93d   : > { %5825 = vmatprep.subr.bf16.mxu1 %v7279_v13 }
 0x940   : > { %5826 = vmatpush3.bf16.msra.mxu1 %v7283_v15 }
 0x941   : > { %5827 = vmatprep.subr.bf16.mxu1 %v7287_v17 }
 0x944   : > { %5828 = vmatpush3.bf16.msra.mxu1 %v7291_v19 }
 0x945   : > { %5829 = vmatprep.subr.bf16.mxu1 %v7370_v29 }
 0x948   : > { %5830 = vmatpush3.bf16.msra.mxu1 %v7374_v32 }
 0x949   : > { %5831 = vmatprep.subr.bf16.mxu1 %v7378_v34 }
 0x94c   : > { %5832 = vmatpush3.bf16.msra.mxu1 %v7382_v37 }
 0x94d   : > { %5833 = vmatprep.subr.bf16.mxu1 %v7386_v41 }
 0x950   : > { %5834 = vmatpush3.bf16.msra.mxu1 %v7390_v42 }
 0x951   : > { %5835 = vmatprep.subr.bf16.mxu1 %v7394_v43 }
 0x954   : > { %5836 = vmatpush3.bf16.msra.mxu1 %v7398_v45 }
 0x955   : > { %5837 = vmatprep.subr.bf16.mxu1 %v7402_v46 }
 0x958   : > { %5838 = vmatpush3.bf16.msra.mxu1 %v7463_v8 }
 0x959   : > { %6497 = vmatprep.subr.bf16.mxu1 %v6748_v51 }
 0x95b   : > { %2725 = vmatmul.mubr.bf16.vlgmr.msra.gmra.mrb[64].mxu1 %v2678_v14 }
 0x95c   : > { %6499 = vmatprep.mubr.msk.bf16.mxu1 %vm6749_vm1, %v6748_v51  ;;  %6498 = vmatpush3.bf16.msra.mxu1 %v2780_v50  ;;  %v5254_v50 = vld.sshfl [vmem:[%s6964_s17 + $0x34] sm:$0x33 pattern:$0x75316420] }
 0x95d   : > { %5891 = vmatprep.subr.bf16.mxu1 %v7308_v25  ;;  %v2995_v52 = vcombine.high %v5254_v50, %v5254_v50 }
 0x95f   : > { %v3009_v53 = vrot.slane %v2995_v52, %v6967_v35 }
 0x9ee   : > { %v2492_v16 = vpop.f32.mrb[56].mxu1 }
 0x9ef   : > { %v7569_v18 = vadd.f32 %v2492_v16, %v7524_v22  ;;  %v6489_v36 = vpop.f32.mrb[57].mxu1  ;;  %v2686_v22 = vcombine.high %v2678_v14, %v2678_v14 }
 0x9f0   : > { %v2495_v27 = vpop.f32.mrb[58].mxu1 }
 0x9f1   : > { %v6490_v31 = vpop.f32.mrb[59].mxu1 }
 0xa0e   : > { %v5815_v58 = vpop.f32.mrb[60].mxu1 }
 0xa0f   : > { %v5816_v60 = vpop.f32.mrb[61].mxu1 }
 0xa10   : > { %v5817_v61 = vadd.f32 %v5816_v60, %v5815_v58  ;;  %v5818_v62 = vpop.f32.mrb[62].mxu1 }
 0xa11   : > { %v5819_v55 = vpop.f32.mrb[63].mxu1 }
 0xa12   : > { %v2605_v63 = vadd.f32 %v5817_v61, %v2565_v56 }
 0xa14   : > { %v2610_v3 = vmax.f32 %v2605_v63, 0.0 }
 0xa16   : > { %v2611_v2 = vpack.c.bf16 %v2610_v3, %v2610_v3 }
 0xa18   : > { %6494 = vmatmul.mubr.msk.bf16.vlgmr.msra.gmra.mrb[64].mxu0 %vm1109_vm2, %v2611_v2 }
 0xa19   : > { %5846 = vmatpush3.bf16.msra.mxu0 %v7250_v54  ;;  %2764 = vmatprep.mubr.bf16.mxu0 %v2687_v0  ;;  %v2849_v0 = vcombine.high %v2847_v7, %v2847_v7 }
 0xa1a   : > { %5847 = vmatprep.subr.bf16.mxu0 %v7254_v47 }
 0xa1d   : > { %5848 = vmatpush3.bf16.msra.mxu0 %v7324_v48 }
 0xa1e   : > { %5849 = vmatprep.subr.bf16.mxu0 %v7328_v44 }
 0xa21   : > { %5850 = vmatpush3.bf16.msra.mxu0 %v7332_v21 }
 0xa22   : > { %5851 = vmatprep.subr.bf16.mxu0 %v7336_v23 }
 0xa25   : > { %5852 = vmatpush3.bf16.msra.mxu0 %v7340_v24 }
 0xa26   : > { %5853 = vmatprep.subr.bf16.mxu0 %v7344_v30 }
 0xa29   : > { %5854 = vmatpush3.bf16.msra.mxu0 %v7348_v38 }
 0xa2a   : > { %5855 = vmatprep.subr.bf16.mxu0 %v7352_v39 }
 0xa2d   : > { %5856 = vmatpush3.bf16.msra.mxu0 %v7356_v1 }
 0xa2e   : > { %5857 = vmatprep.subr.bf16.mxu0 %v7432_v57  ;;  %v5839_v26 = vpop.f32.mrb[64].mxu1 }
 0xa2f   : > { %v5840_v20 = vpop.f32.mrb[65].mxu1 }
 0xa30   : > { %v5841_v5 = vadd.f32 %v5840_v20, %v5839_v26  ;;  %v5842_v10 = vpop.f32.mrb[66].mxu1 }
 0xa31   : > { %5858 = vmatpush3.bf16.msra.mxu0 %v7436_v59  ;;  %v5843_v40 = vpop.f32.mrb[67].mxu1 }
 0xa32   : > { %5859 = vmatprep.subr.bf16.mxu0 %v7440_v4  ;;  %v2727_v56 = vadd.f32 %v7479_v33, %v5841_v5  ;;  %v5251_v40 = vld [vmem:[%s7022_s20 + $0x30] sm:$0xf] }
 0xa33   : > { %v2942_v49 = vsel %vm1113_vm0, %v5251_v40, 0 }
 0xa35   : > { %5860 = vmatpush3.bf16.msra.mxu0 %v7444_v6 }
 0xa36   : > { %5869 = vmatprep.subr.bf16.mxu0 %v7271_v9 }
 0xa38   : > { %2765 = vmatmul.mubr.bf16.vlgmr.msra.gmra.mrb[68].mxu0 %v2686_v22 }
 0xa39   : > { %5870 = vmatpush3.bf16.msra.mxu0 %v7275_v11  ;;  %2886 = vmatprep.mubr.bf16.mxu0 %v2847_v7  ;;  %v3002_v7 = vrot.slane %v5254_v50, %v6967_v35 }
 0xa3a   : > { %5871 = vmatprep.subr.bf16.mxu0 %v7279_v13 }
 0xa3d   : > { %5872 = vmatpush3.bf16.msra.mxu0 %v7283_v15 }
 0xa3e   : > { %5873 = vmatprep.subr.bf16.mxu0 %v7287_v17 }
 0xa41   : > { %5874 = vmatpush3.bf16.msra.mxu0 %v7291_v19 }
 0xa42   : > { %5875 = vmatprep.subr.bf16.mxu0 %v7370_v29 }
 0xa45   : > { %5876 = vmatpush3.bf16.msra.mxu0 %v7374_v32 }
 0xa46   : > { %5877 = vmatprep.subr.bf16.mxu0 %v7378_v34 }
 0xa49   : > { %5878 = vmatpush3.bf16.msra.mxu0 %v7382_v37 }
 0xa4a   : > { %5879 = vmatprep.subr.bf16.mxu0 %v7386_v41 }
 0xa4d   : > { %5880 = vmatpush3.bf16.msra.mxu0 %v7390_v42 }
 0xa4e   : > { %5881 = vmatprep.subr.bf16.mxu0 %v7394_v43 }
 0xa51   : > { %5882 = vmatpush3.bf16.msra.mxu0 %v7398_v45 }
 0xa52   : > { %5883 = vmatprep.subr.bf16.mxu0 %v7402_v46 }
 0xa55   : > { %5884 = vmatpush3.bf16.msra.mxu0 %v7463_v8 }
 0xa56   : > { %6503 = vmatprep.subr.bf16.mxu0 %v6748_v51 }
 0xa58   : > { %2887 = vmatmul.mubr.bf16.vlgmr.msra.gmra.mrb[72].mxu0 %v2840_v12 }
 0xa59   : > { %6505 = vmatprep.mubr.msk.bf16.mxu0 %vm6749_vm1, %v6748_v51  ;;  %6504 = vmatpush3.bf16.msra.mxu0 %v2942_v49 }
 0xa5a   : > { %5937 = vmatprep.subr.bf16.mxu0 %v7308_v25 }
 0xaeb   : > { %v2654_v14 = vpop.f32.mrb[64].mxu0 }
 0xaec   : > { %v7614_v16 = vadd.f32 %v2654_v14, %v7569_v18  ;;  %v6495_v36 = vpop.f32.mrb[65].mxu0  ;;  %v2848_v18 = vcombine.high %v2840_v12, %v2840_v12 }
 0xaed   : > { %v2657_v27 = vpop.f32.mrb[66].mxu0 }
 0xaee   : > { %v6496_v31 = vpop.f32.mrb[67].mxu0 }
 0xb0b   : > { %v5861_v58 = vpop.f32.mrb[68].mxu0 }
 0xb0c   : > { %v5862_v60 = vpop.f32.mrb[69].mxu0 }
 0xb0d   : > { %v5863_v61 = vadd.f32 %v5862_v60, %v5861_v58  ;;  %v5864_v62 = vpop.f32.mrb[70].mxu0 }
 0xb0e   : > { %v5865_v55 = vpop.f32.mrb[71].mxu0 }
 0xb0f   : > { %v2767_v63 = vadd.f32 %v5863_v61, %v2727_v56 }
 0xb11   : > { %v2772_v3 = vmax.f32 %v2767_v63, 0.0 }
 0xb13   : > { %v2773_v2 = vpack.c.bf16 %v2772_v3, %v2772_v3 }
 0xb15   : > { %6500 = vmatmul.mubr.msk.bf16.vlgmr.msra.gmra.mrb[68].mxu1 %vm1109_vm2, %v2773_v2 }
 0xb16   : > { %5892 = vmatpush3.bf16.msra.mxu1 %v7250_v54  ;;  %2926 = vmatprep.mubr.bf16.mxu1 %v2849_v0  ;;  %v3011_v0 = vcombine.high %v3009_v53, %v3009_v53 }
 0xb17   : > { %5893 = vmatprep.subr.bf16.mxu1 %v7254_v47 }
 0xb1a   : > { %5894 = vmatpush3.bf16.msra.mxu1 %v7324_v48 }
 0xb1b   : > { %5895 = vmatprep.subr.bf16.mxu1 %v7328_v44 }
 0xb1e   : > { %5896 = vmatpush3.bf16.msra.mxu1 %v7332_v21 }
 0xb1f   : > { %5897 = vmatprep.subr.bf16.mxu1 %v7336_v23 }
 0xb22   : > { %5898 = vmatpush3.bf16.msra.mxu1 %v7340_v24 }
 0xb23   : > { %5899 = vmatprep.subr.bf16.mxu1 %v7344_v30 }
 0xb26   : > { %5900 = vmatpush3.bf16.msra.mxu1 %v7348_v38 }
 0xb27   : > { %5901 = vmatprep.subr.bf16.mxu1 %v7352_v39 }
 0xb2a   : > { %5902 = vmatpush3.bf16.msra.mxu1 %v7356_v1 }
 0xb2b   : > { %5903 = vmatprep.subr.bf16.mxu1 %v7432_v57  ;;  %v5885_v22 = vpop.f32.mrb[72].mxu0 }
 0xb2c   : > { %v5886_v26 = vpop.f32.mrb[73].mxu0 }
 0xb2d   : > { %v5887_v20 = vadd.f32 %v5886_v26, %v5885_v22  ;;  %v5888_v5 = vpop.f32.mrb[74].mxu0 }
 0xb2e   : > { %5904 = vmatpush3.bf16.msra.mxu1 %v7436_v59  ;;  %v5889_v10 = vpop.f32.mrb[75].mxu0 }
 0xb2f   : > { %5905 = vmatprep.subr.bf16.mxu1 %v7440_v4  ;;  %v2889_v56 = vadd.f32 %v7479_v33, %v5887_v20 }
 0xb32   : > { %5906 = vmatpush3.bf16.msra.mxu1 %v7444_v6 }
 0xb33   : > { %5915 = vmatprep.subr.bf16.mxu1 %v7271_v9 }
 0xb35   : > { %2927 = vmatmul.mubr.bf16.vlgmr.msra.gmra.mrb[72].mxu1 %v2848_v18 }
 0xb36   : > { %5916 = vmatpush3.bf16.msra.mxu1 %v7275_v11  ;;  %3048 = vmatprep.mubr.bf16.mxu1 %v3009_v53 }
 0xb37   : > { %5917 = vmatprep.subr.bf16.mxu1 %v7279_v13 }
 0xb3a   : > { %5918 = vmatpush3.bf16.msra.mxu1 %v7283_v15 }
 0xb3b   : > { %5919 = vmatprep.subr.bf16.mxu1 %v7287_v17 }
 0xb3e   : > { %5920 = vmatpush3.bf16.msra.mxu1 %v7291_v19 }
 0xb3f   : > { %5921 = vmatprep.subr.bf16.mxu1 %v7370_v29 }
 0xb42   : > { %5922 = vmatpush3.bf16.msra.mxu1 %v7374_v32 }
 0xb43   : > { %5923 = vmatprep.subr.bf16.mxu1 %v7378_v34 }
 0xb46   : > { %5924 = vmatpush3.bf16.msra.mxu1 %v7382_v37 }
 0xb47   : > { %5925 = vmatprep.subr.bf16.mxu1 %v7386_v41 }
 0xb4a   : > { %5926 = vmatpush3.bf16.msra.mxu1 %v7390_v42 }
 0xb4b   : > { %5927 = vmatprep.subr.bf16.mxu1 %v7394_v43 }
 0xb4e   : > { %5928 = vmatpush3.bf16.msra.mxu1 %v7398_v45 }
 0xb4f   : > { %5929 = vmatprep.subr.bf16.mxu1 %v7402_v46 }
 0xb52   : > { %5930 = vmatpush3.bf16.msra.mxu1 %v7463_v8 }
 0xb53   : > { %6509 = vmatprep.subr.bf16.mxu1 %v6748_v51 }
 0xb55   : > { %3049 = vmatmul.mubr.bf16.vlgmr.msra.gmra.mrb[76].mxu1 %v3002_v7 }
 0xb56   : > { %6511 = vmatprep.mubr.msk.bf16.mxu1 %vm6749_vm1, %v6748_v51 }
 0xbe8   : > { %v2816_v12 = vpop.f32.mrb[68].mxu1 }
 0xbe9   : > { %v7659_v14 = vadd.f32 %v2816_v12, %v7614_v16  ;;  %v6501_v36 = vpop.f32.mrb[69].mxu1  ;;  %v5258_v16 = vld.sshfl [vmem:[%s6964_s17 + $0x38] sm:$0x33 pattern:$0x75316420] }
 0xbea   : > { %v2819_v27 = vpop.f32.mrb[70].mxu1  ;;  %v3157_v18 = vcombine.high %v5258_v16, %v5258_v16  ;;  %v3164_v26 = vrot.slane %v5258_v16, %v6967_v35  ;;  %v7783_v16 = vld [vmem:[%s6836_s30 + $0x88] sm:$0xff]  }
 0xbeb   : > { %v6502_v31 = vpop.f32.mrb[71].mxu1 }
 0xbec   : > { %v3171_v22 = vrot.slane %v3157_v18, %v6967_v35  ;;  %v7787_v18 = vld [vmem:[%s6836_s30 + $0xd0] sm:$0xff]  }
 0xbee   : > { %v3173_v31 = vcombine.high %v3171_v22, %v3171_v22 }
 0xc08   : > { %v5907_v58 = vpop.f32.mrb[72].mxu1 }
 0xc09   : > { %v5908_v60 = vpop.f32.mrb[73].mxu1 }
 0xc0a   : > { %v5909_v61 = vadd.f32 %v5908_v60, %v5907_v58  ;;  %v5910_v62 = vpop.f32.mrb[74].mxu1  ;;  %v7709_v58 = vld [vmem:[%s6836_s30 + $0x80] sm:$0xff]  }
 0xc0b   : > { %v5911_v55 = vpop.f32.mrb[75].mxu1 }
 0xc0c   : > { %v2929_v63 = vadd.f32 %v5909_v61, %v2889_v56 }
 0xc0e   : > { %v2934_v3 = vmax.f32 %v2929_v63, 0.0 }
 0xc10   : > { %v2935_v2 = vpack.c.bf16 %v2934_v3, %v2934_v3 }
 0xc12   : > { %6506 = vmatmul.mubr.msk.bf16.vlgmr.msra.gmra.mrb[76].mxu0 %vm1109_vm2, %v2935_v2 }
 0xc13   : > { %5938 = vmatpush3.bf16.msra.mxu0 %v7250_v54  ;;  %3088 = vmatprep.mubr.bf16.mxu0 %v3011_v0  ;;  %v3010_v54 = vcombine.high %v3002_v7, %v3002_v7 }
 0xc14   : > { %5939 = vmatprep.subr.bf16.mxu0 %v7254_v47 }
 0xc17   : > { %5940 = vmatpush3.bf16.msra.mxu0 %v7324_v48 }
 0xc18   : > { %5941 = vmatprep.subr.bf16.mxu0 %v7328_v44 }
 0xc1b   : > { %5942 = vmatpush3.bf16.msra.mxu0 %v7332_v21 }
 0xc1c   : > { %5943 = vmatprep.subr.bf16.mxu0 %v7336_v23 }
 0xc1f   : > { %5944 = vmatpush3.bf16.msra.mxu0 %v7340_v24 }
 0xc20   : > { %5945 = vmatprep.subr.bf16.mxu0 %v7344_v30 }
 0xc23   : > { %5946 = vmatpush3.bf16.msra.mxu0 %v7348_v38 }
 0xc24   : > { %5947 = vmatprep.subr.bf16.mxu0 %v7352_v39 }
 0xc27   : > { %5948 = vmatpush3.bf16.msra.mxu0 %v7356_v1 }
 0xc28   : > { %5949 = vmatprep.subr.bf16.mxu0 %v7432_v57  ;;  %v5931_v47 = vpop.f32.mrb[76].mxu1 }
 0xc2b   : > { %5950 = vmatpush3.bf16.msra.mxu0 %v7436_v59 }
 0xc2c   : > { %5951 = vmatprep.subr.bf16.mxu0 %v7440_v4 }
 0xc2f   : > { %5952 = vmatpush3.bf16.msra.mxu0 %v7444_v6 }
 0xc30   : > { %5961 = vmatprep.subr.bf16.mxu0 %v7271_v9  ;;  %v5932_v9 = vpop.f32.mrb[77].mxu1 }
 0xc32   : > { %3089 = vmatmul.mubr.bf16.vlgmr.msra.gmra.mrb[80].mxu0 %v3010_v54 }
 0xc33   : > { %5962 = vmatpush3.bf16.msra.mxu0 %v7275_v11  ;;  %v5933_v11 = vadd.f32 %v5932_v9, %v5931_v47  ;;  %3210 = vmatprep.mubr.bf16.mxu0 %v3171_v22  ;;  %v7791_v22 = vld [vmem:[%s6836_s30 + $0x90] sm:$0xff]  }
 0xc34   : > { %5963 = vmatprep.subr.bf16.mxu0 %v7279_v13  ;;  %v5934_v13 = vpop.f32.mrb[78].mxu1 }
 0xc35   : > { %v3051_v49 = vadd.f32 %v7479_v33, %v5933_v11 }
 0xc37   : > { %5964 = vmatpush3.bf16.msra.mxu0 %v7283_v15  ;;  %v5935_v15 = vpop.f32.mrb[79].mxu1 }
 0xc38   : > { %5965 = vmatprep.subr.bf16.mxu0 %v7287_v17  ;;  %v5255_v17 = vld [vmem:[%s7022_s20 + $0x34] sm:$0xf] }
 0xc3b   : > { %5966 = vmatpush3.bf16.msra.mxu0 %v7291_v19  ;;  %v3104_v19 = vsel %vm1113_vm0, %v5255_v17, 0 }
 0xc3c   : > { %5967 = vmatprep.subr.bf16.mxu0 %v7370_v29  ;;  %6510 = vmatpush3.bf16.msra.mxu1 %v3104_v19 }
 0xc3d   : > { %5983 = vmatprep.subr.bf16.mxu1 %v7308_v25 }
 0xc3f   : > { %5968 = vmatpush3.bf16.msra.mxu0 %v7374_v32 }
 0xc40   : > { %5969 = vmatprep.subr.bf16.mxu0 %v7378_v34 }
 0xc43   : > { %5970 = vmatpush3.bf16.msra.mxu0 %v7382_v37 }
 0xc44   : > { %5971 = vmatprep.subr.bf16.mxu0 %v7386_v41 }
 0xc47   : > { %5972 = vmatpush3.bf16.msra.mxu0 %v7390_v42 }
 0xc48   : > { %5973 = vmatprep.subr.bf16.mxu0 %v7394_v43 }
 0xc4b   : > { %5974 = vmatpush3.bf16.msra.mxu0 %v7398_v45 }
 0xc4c   : > { %5975 = vmatprep.subr.bf16.mxu0 %v7402_v46 }
 0xc4f   : > { %5976 = vmatpush3.bf16.msra.mxu0 %v7463_v8 }
 0xc50   : > { %6515 = vmatprep.subr.bf16.mxu0 %v6748_v51 }
 0xc52   : > { %3211 = vmatmul.mubr.bf16.vlgmr.msra.gmra.mrb[84].mxu0 %v3164_v26 }
 0xc53   : > { %6517 = vmatprep.mubr.msk.bf16.mxu0 %vm6749_vm1, %v6748_v51 }
 0xce5   : > { %v2978_v20 = vpop.f32.mrb[76].mxu0 }
 0xce6   : > { %v7704_v5 = vadd.f32 %v2978_v20, %v7659_v14  ;;  %v6507_v10 = vpop.f32.mrb[77].mxu0  ;;  %v7713_v14 = vld [vmem:[%s6836_s30 + $0xc8] sm:$0xff]   ;;  %v7799_v20 = vld [vmem:[%s6836_s30 + $0x98] sm:$0xff]  }
 0xce7   : > { %v2981_v40 = vpop.f32.mrb[78].mxu0  ;;  %v7807_v10 = vld [vmem:[%s6836_s30 + $0xa0] sm:$0xff]  }
 0xce8   : > { %v6508_v25 = vpop.f32.mrb[79].mxu0  ;;  %v7811_v40 = vld [vmem:[%s6836_s30 + $0xe8] sm:$0xff]  }
 0xce9   : > { %v7815_v25 = vld [vmem:[%s6836_s30 + $0xa8] sm:$0xff]  }
 0xd05   : > { %v5953_v50 = vpop.f32.mrb[80].mxu0 }
 0xd06   : > { %v5954_v52 = vpop.f32.mrb[81].mxu0 }
 0xd07   : > { %v5955_v53 = vadd.f32 %v5954_v52, %v5953_v50  ;;  %v5956_v7 = vpop.f32.mrb[82].mxu0  ;;  %v7845_v50 = vld [vmem:[%s6836_s30 + $0x68] sm:$0xff]  }
 0xd08   : > { %v5957_v12 = vpop.f32.mrb[83].mxu0  ;;  %v7849_v52 = vld [vmem:[%s6836_s30 + $0x28] sm:$0xff]   ;;  %v7857_v7 = vld [vmem:[%s6836_s30 + $0x30] sm:$0xff]  }
 0xd09   : > { %v3091_v36 = vadd.f32 %v5955_v53, %v3051_v49  ;;  %v7853_v53 = vld [vmem:[%s6836_s30 + $0x70] sm:$0xff]   ;;  %v7861_v12 = vld [vmem:[%s6836_s30 + $0x78] sm:$0xff]  }
 0xd0b   : > { %v3096_v27 = vmax.f32 %v3091_v36, 0.0 }
 0xd0d   : > { %v3097_v56 = vpack.c.bf16 %v3096_v27, %v3096_v27 }
 0xd0f   : > { %6512 = vmatmul.mubr.msk.bf16.vlgmr.msra.gmra.mrb[80].mxu1 %vm1109_vm2, %v3097_v56 }
 0xd10   : > { %5984 = vmatpush3.bf16.msra.mxu1 %v7709_v58  ;;  %3250 = vmatprep.mubr.bf16.mxu1 %v3173_v31 }
 0xd11   : > { %5985 = vmatprep.subr.bf16.mxu1 %v7713_v14 }
 0xd14   : > { %5986 = vmatpush3.bf16.msra.mxu1 %v7324_v48  ;;  %v3172_v48 = vcombine.high %v3164_v26, %v3164_v26  ;;  %v7795_v26 = vld [vmem:[%s6836_s30 + $0xd8] sm:$0xff]  }
 0xd15   : > { %5987 = vmatprep.subr.bf16.mxu1 %v7328_v44  ;;  %v7730_v44 = vld [vmem:[%s6836_s30 + $0x40] sm:$0xff]  }
 0xd18   : > { %5988 = vmatpush3.bf16.msra.mxu1 %v7332_v21  ;;  %v7734_v21 = vld [vmem:[%s6836_s30] sm:$0xff]  }
 0xd19   : > { %5989 = vmatprep.subr.bf16.mxu1 %v7336_v23  ;;  %v7738_v23 = vld [vmem:[%s6836_s30 + $0x48] sm:$0xff]  }
 0xd1c   : > { %5990 = vmatpush3.bf16.msra.mxu1 %v7340_v24  ;;  %v7742_v24 = vld [vmem:[%s6836_s30 + $0x8] sm:$0xff]  }
 0xd1d   : > { %5991 = vmatprep.subr.bf16.mxu1 %v7344_v30  ;;  %v7746_v30 = vld [vmem:[%s6836_s30 + $0x50] sm:$0xff]  }
 0xd20   : > { %5992 = vmatpush3.bf16.msra.mxu1 %v7348_v38  ;;  %v7750_v38 = vld [vmem:[%s6836_s30 + $0x10] sm:$0xff]  }
 0xd21   : > { %5993 = vmatprep.subr.bf16.mxu1 %v7352_v39 }
 0xd24   : > { %5994 = vmatpush3.bf16.msra.mxu1 %v7356_v1 }
 0xd25   : > { %5995 = vmatprep.subr.bf16.mxu1 %v7432_v57  ;;  %v5977_v39 = vpop.f32.mrb[84].mxu0 }
 0xd26   : > { %v5978_v1 = vpop.f32.mrb[85].mxu0 }
 0xd28   : > { %5996 = vmatpush3.bf16.msra.mxu1 %v7436_v59 }
 0xd29   : > { %5997 = vmatprep.subr.bf16.mxu1 %v7440_v4 }
 0xd2c   : > { %5998 = vmatpush3.bf16.msra.mxu1 %v7444_v6 }
 0xd2d   : > { %6007 = vmatprep.subr.bf16.mxu1 %v7730_v44 }
 0xd2f   : > { %3251 = vmatmul.mubr.bf16.vlgmr.msra.gmra.mrb[84].mxu1 %v3172_v48 }
 0xd30   : > { %6008 = vmatpush3.bf16.msra.mxu1 %v7734_v21 }
 0xd31   : > { %6009 = vmatprep.subr.bf16.mxu1 %v7738_v23 }
 0xd34   : > { %6010 = vmatpush3.bf16.msra.mxu1 %v7742_v24 }
 0xd35   : > { %6011 = vmatprep.subr.bf16.mxu1 %v7746_v30 }
 0xd38   : > { %6012 = vmatpush3.bf16.msra.mxu1 %v7750_v38 }
 0xd39   : > { %6013 = vmatprep.subr.bf16.mxu1 %v7370_v29  ;;  %v5979_v29 = vadd.f32 %v5978_v1, %v5977_v39  ;;  %v5263_v39 = vld [vmem:[%s7022_s20 + $0x3c] sm:$0xf] }
 0xd3a   : > { %v3428_v1 = vsel %vm1113_vm0, %v5263_v39, 0  ;;  %v5270_v39 = vld.sshfl [vmem:[%s6964_s17 + $0x44] sm:$0x33 pattern:$0x75316420] }
 0xd3b   : > { %v3213_v0 = vadd.f32 %v7479_v33, %v5979_v29  ;;  %v5266_v29 = vld.sshfl [vmem:[%s6964_s17 + $0x40] sm:$0x33 pattern:$0x75316420] }
 0xd3c   : > { %6014 = vmatpush3.bf16.msra.mxu1 %v7374_v32  ;;  %v5980_v32 = vpop.f32.mrb[86].mxu0 }
 0xd3d   : > { %6015 = vmatprep.subr.bf16.mxu1 %v7378_v34  ;;  %v5981_v34 = vpop.f32.mrb[87].mxu0  ;;  %v3481_v32 = vcombine.high %v5266_v29, %v5266_v29 }
 0xd3f   : > { %v3495_v34 = vrot.slane %v3481_v32, %v6967_v35  ;;  %v3650_v32 = vrot.slane %v5270_v39, %v6967_v35 }
 0xd40   : > { %6016 = vmatpush3.bf16.msra.mxu1 %v7382_v37  ;;  %v5259_v37 = vld [vmem:[%s7022_s20 + $0x38] sm:$0xf] }
 0xd41   : > { %6017 = vmatprep.subr.bf16.mxu1 %v7386_v41  ;;  %v3266_v41 = vsel %vm1113_vm0, %v5259_v37, 0  ;;  %v3488_v37 = vrot.slane %v5266_v29, %v6967_v35 }
 0xd42   : > { %6516 = vmatpush3.bf16.msra.mxu0 %v3266_v41 }
 0xd44   : > { %6018 = vmatpush3.bf16.msra.mxu1 %v7390_v42  ;;  %v7767_v42 = vld [vmem:[%s6836_s30 + $0xc0] sm:$0xff]  }
 0xd45   : > { %6019 = vmatprep.subr.bf16.mxu1 %v7394_v43  ;;  %6029 = vmatprep.subr.bf16.mxu0 %v7767_v42  ;;  %v5262_v43 = vld.sshfl [vmem:[%s6964_s17 + $0x3c] sm:$0x33 pattern:$0x75316420] }
 0xd46   : > { %v3326_v60 = vrot.slane %v5262_v43, %v6967_v35 }
 0xd48   : > { %6020 = vmatpush3.bf16.msra.mxu1 %v7398_v45  ;;  %v3319_v45 = vcombine.high %v5262_v43, %v5262_v43  ;;  %v3334_v49 = vcombine.high %v3326_v60, %v3326_v60 }
 0xd49   : > { %6021 = vmatprep.subr.bf16.mxu1 %v7402_v46 }
 0xd4a   : > { %v3333_v46 = vrot.slane %v3319_v45, %v6967_v35 }
 0xd4c   : > { %6022 = vmatpush3.bf16.msra.mxu1 %v7463_v8  ;;  %3372 = vmatprep.mubr.bf16.mxu1 %v3333_v46  ;;  %v3335_v17 = vcombine.high %v3333_v46, %v3333_v46 }
 0xd4d   : > { %6521 = vmatprep.subr.bf16.mxu1 %v6748_v51 }
 0xd4f   : > { %3373 = vmatmul.mubr.bf16.vlgmr.msra.gmra.mrb[88].mxu1 %v3326_v60 }
 0xd50   : > { %6523 = vmatprep.mubr.msk.bf16.mxu1 %vm6749_vm1, %v6748_v51  ;;  %6522 = vmatpush3.bf16.msra.mxu1 %v3428_v1  ;;  %v3643_v1 = vcombine.high %v5270_v39, %v5270_v39 }
 0xd51   : > { %6075 = vmatprep.subr.bf16.mxu1 %v7767_v42 }
 0xd52   : > { %v3657_v29 = vrot.slane %v3643_v1, %v6967_v35 }
 0xde2   : > { %v3140_v61 = vpop.f32.mrb[80].mxu1 }
 0xde3   : > { %v7776_v62 = vadd.f32 %v3140_v61, %v7704_v5  ;;  %v6513_v55 = vpop.f32.mrb[81].mxu1  ;;  %v7803_v5 = vld [vmem:[%s6836_s30 + $0xe0] sm:$0xff]  }
 0xde4   : > { %v3143_v63 = vpop.f32.mrb[82].mxu1 }
 0xde5   : > { %v6514_v3 = vpop.f32.mrb[83].mxu1 }
 0xe02   : > { %v5999_v2 = vpop.f32.mrb[84].mxu1 }
 0xe03   : > { %v6000_v54 = vpop.f32.mrb[85].mxu1 }
 0xe04   : > { %v6001_v47 = vadd.f32 %v6000_v54, %v5999_v2  ;;  %v6002_v9 = vpop.f32.mrb[86].mxu1 }
 0xe05   : > { %v6003_v11 = vpop.f32.mrb[87].mxu1 }
 0xe06   : > { %v3253_v13 = vadd.f32 %v6001_v47, %v3213_v0  ;;  %v3497_v47 = vcombine.high %v3495_v34, %v3495_v34  ;;  %v7899_v11 = vld [vmem:[%s6836_s30 + $0xf8] sm:$0xff]  }
 0xe08   : > { %v3258_v15 = vmax.f32 %v3253_v13, 0.0  ;;  %v3496_v13 = vcombine.high %v3488_v37, %v3488_v37 }
 0xe0a   : > { %v3259_v19 = vpack.c.bf16 %v3258_v15, %v3258_v15  ;;  %v7903_v15 = vld [vmem:[%s6836_s30 + $0xb8] sm:$0xff]  }
 0xe0c   : > { %6518 = vmatmul.mubr.msk.bf16.vlgmr.msra.gmra.mrb[88].mxu0 %vm1109_vm2, %v3259_v19 }
 0xe0d   : > { %6030 = vmatpush3.bf16.msra.mxu0 %v7709_v58  ;;  %3412 = vmatprep.mubr.bf16.mxu0 %v3335_v17  ;;  %v7922_v17 = vld [vmem:[%s6836_s30 + $0x38] sm:$0xff]  }
 0xe0e   : > { %6031 = vmatprep.subr.bf16.mxu0 %v7713_v14 }
 0xe11   : > { %6032 = vmatpush3.bf16.msra.mxu0 %v7783_v16 }
 0xe12   : > { %6033 = vmatprep.subr.bf16.mxu0 %v7787_v18 }
 0xe15   : > { %6034 = vmatpush3.bf16.msra.mxu0 %v7791_v22 }
 0xe16   : > { %6035 = vmatprep.subr.bf16.mxu0 %v7795_v26 }
 0xe19   : > { %6036 = vmatpush3.bf16.msra.mxu0 %v7799_v20 }
 0xe1a   : > { %6037 = vmatprep.subr.bf16.mxu0 %v7803_v5 }
 0xe1d   : > { %6038 = vmatpush3.bf16.msra.mxu0 %v7807_v10 }
 0xe1e   : > { %6039 = vmatprep.subr.bf16.mxu0 %v7811_v40 }
 0xe21   : > { %6040 = vmatpush3.bf16.msra.mxu0 %v7815_v25 }
 0xe22   : > { %6041 = vmatprep.subr.bf16.mxu0 %v7432_v57  ;;  %v7829_v57 = vld [vmem:[%s6836_s30 + $0x58] sm:$0xff]   ;;  %v6023_v36 = vpop.f32.mrb[88].mxu1 }
 0xe23   : > { %v6024_v27 = vpop.f32.mrb[89].mxu1 }
 0xe24   : > { %v6025_v31 = vadd.f32 %v6024_v27, %v6023_v36  ;;  %v6026_v56 = vpop.f32.mrb[90].mxu1 }
 0xe25   : > { %6042 = vmatpush3.bf16.msra.mxu0 %v7436_v59  ;;  %v7833_v59 = vld [vmem:[%s6836_s30 + $0x18] sm:$0xff]   ;;  %v6027_v48 = vpop.f32.mrb[91].mxu1  ;;  %v5267_v56 = vld [vmem:[%s7022_s20 + $0x40] sm:$0xf] }
 0xe26   : > { %6043 = vmatprep.subr.bf16.mxu0 %v7440_v4  ;;  %v7837_v4 = vld [vmem:[%s6836_s30 + $0x60] sm:$0xff]   ;;  %v3375_v60 = vadd.f32 %v7479_v33, %v6025_v31  ;;  %v7891_v33 = vld [vmem:[%s6836_s30 + $0xf0] sm:$0xff]   ;;  %v3590_v48 = vsel %vm1113_vm0, %v5267_v56, 0 }
 0xe29   : > { %6044 = vmatpush3.bf16.msra.mxu0 %v7444_v6  ;;  %v7841_v6 = vld [vmem:[%s6836_s30 + $0x20] sm:$0xff]  }
 0xe2a   : > { %6053 = vmatprep.subr.bf16.mxu0 %v7730_v44 }
 0xe2c   : > { %3413 = vmatmul.mubr.bf16.vlgmr.msra.gmra.mrb[92].mxu0 %v3334_v49 }
 0xe2d   : > { %6054 = vmatpush3.bf16.msra.mxu0 %v7734_v21  ;;  %3534 = vmatprep.mubr.bf16.mxu0 %v3495_v34 }
 0xe2e   : > { %6055 = vmatprep.subr.bf16.mxu0 %v7738_v23 }
 0xe31   : > { %6056 = vmatpush3.bf16.msra.mxu0 %v7742_v24 }
 0xe32   : > { %6057 = vmatprep.subr.bf16.mxu0 %v7746_v30 }
 0xe35   : > { %6058 = vmatpush3.bf16.msra.mxu0 %v7750_v38 }
 0xe36   : > { %6059 = vmatprep.subr.bf16.mxu0 %v7829_v57 }
 0xe39   : > { %6060 = vmatpush3.bf16.msra.mxu0 %v7833_v59 }
 0xe3a   : > { %6061 = vmatprep.subr.bf16.mxu0 %v7837_v4 }
 0xe3d   : > { %6062 = vmatpush3.bf16.msra.mxu0 %v7841_v6 }
 0xe3e   : > { %6063 = vmatprep.subr.bf16.mxu0 %v7845_v50 }
 0xe41   : > { %6064 = vmatpush3.bf16.msra.mxu0 %v7849_v52 }
 0xe42   : > { %6065 = vmatprep.subr.bf16.mxu0 %v7853_v53 }
 0xe45   : > { %6066 = vmatpush3.bf16.msra.mxu0 %v7857_v7 }
 0xe46   : > { %6067 = vmatprep.subr.bf16.mxu0 %v7861_v12 }
 0xe49   : > { %6068 = vmatpush3.bf16.msra.mxu0 %v7463_v8 }
 0xe4a   : > { %6527 = vmatprep.subr.bf16.mxu0 %v6748_v51 }
 0xe4c   : > { %3535 = vmatmul.mubr.bf16.vlgmr.msra.gmra.mrb[96].mxu0 %v3488_v37 }
 0xe4d   : > { %6529 = vmatprep.mubr.msk.bf16.mxu0 %vm6749_vm1, %v6748_v51  ;;  %6528 = vmatpush3.bf16.msra.mxu0 %v3590_v48  ;;  %v5274_v48 = vld.sshfl [vmem:[%s6964_s17 + $0x48] sm:$0x33 pattern:$0x75316420] }
 0xe4e   : > { %6121 = vmatprep.subr.bf16.mxu0 %v7767_v42  ;;  %v3805_v39 = vcombine.high %v5274_v48, %v5274_v48 }
 0xe50   : > { %v3819_v1 = vrot.slane %v3805_v39, %v6967_v35 }
 0xedf   : > { %v3302_v8 = vpop.f32.mrb[88].mxu0 }
 0xee0   : > { %v7875_v41 = vadd.f32 %v3302_v8, %v7776_v62  ;;  %v6519_v43 = vpop.f32.mrb[89].mxu0  ;;  %v7895_v62 = vld [vmem:[%s6836_s30 + $0xb0] sm:$0xff]  }
 0xee1   : > { %v3305_v45 = vpop.f32.mrb[90].mxu0 }
 0xee2   : > { %v6520_v46 = vpop.f32.mrb[91].mxu0 }
 0xee3   : > { %v7938_v46 = vld [vmem:[%s7040_s23] ss:$0 sm:$0xff] }
 0xeff   : > { %v6045_v61 = vpop.f32.mrb[92].mxu0 }
 0xf00   : > { %v6046_v55 = vpop.f32.mrb[93].mxu0 }
 0xf01   : > { %v6047_v63 = vadd.f32 %v6046_v55, %v6045_v61  ;;  %v6048_v3 = vpop.f32.mrb[94].mxu0 }
 0xf02   : > { %v6049_v0 = vpop.f32.mrb[95].mxu0 }
 0xf03   : > { %v3415_v2 = vadd.f32 %v6047_v63, %v3375_v60 }
 0xf05   : > { %v3420_v54 = vmax.f32 %v3415_v2, 0.0 }
 0xf07   : > { %v3421_v9 = vpack.c.bf16 %v3420_v54, %v3420_v54 }
 0xf09   : > { %6524 = vmatmul.mubr.msk.bf16.vlgmr.msra.gmra.mrb[92].mxu1 %vm1109_vm2, %v3421_v9 }
 0xf0a   : > { %6076 = vmatpush3.bf16.msra.mxu1 %v7709_v58  ;;  %3574 = vmatprep.mubr.bf16.mxu1 %v3497_v47  ;;  %v3659_v47 = vcombine.high %v3657_v29, %v3657_v29 }
 0xf0b   : > { %6077 = vmatprep.subr.bf16.mxu1 %v7713_v14 }
 0xf0e   : > { %6078 = vmatpush3.bf16.msra.mxu1 %v7783_v16 }
 0xf0f   : > { %6079 = vmatprep.subr.bf16.mxu1 %v7787_v18 }
 0xf12   : > { %6080 = vmatpush3.bf16.msra.mxu1 %v7791_v22 }
 0xf13   : > { %6081 = vmatprep.subr.bf16.mxu1 %v7795_v26 }
 0xf16   : > { %6082 = vmatpush3.bf16.msra.mxu1 %v7799_v20 }
 0xf17   : > { %6083 = vmatprep.subr.bf16.mxu1 %v7803_v5 }
 0xf1a   : > { %6084 = vmatpush3.bf16.msra.mxu1 %v7807_v10 }
 0xf1b   : > { %6085 = vmatprep.subr.bf16.mxu1 %v7811_v40 }
 0xf1e   : > { %6086 = vmatpush3.bf16.msra.mxu1 %v7815_v25 }
 0xf1f   : > { %6087 = vmatprep.subr.bf16.mxu1 %v7891_v33  ;;  %v6069_v19 = vpop.f32.mrb[96].mxu0 }
 0xf20   : > { %v6070_v49 = vpop.f32.mrb[97].mxu0 }
 0xf21   : > { %v6071_v36 = vadd.f32 %v6070_v49, %v6069_v19  ;;  %v6072_v27 = vpop.f32.mrb[98].mxu0 }
 0xf22   : > { %6088 = vmatpush3.bf16.msra.mxu1 %v7895_v62  ;;  %v6073_v31 = vpop.f32.mrb[99].mxu0 }
 0xf23   : > { %6089 = vmatprep.subr.bf16.mxu1 %v7899_v11  ;;  %v3537_v60 = vadd.f32 %v7938_v46, %v6071_v36  ;;  %v5271_v31 = vld [vmem:[%s7022_s20 + $0x44] sm:$0xf] }
 0xf24   : > { %v3752_v56 = vsel %vm1113_vm0, %v5271_v31, 0 }
 0xf26   : > { %6090 = vmatpush3.bf16.msra.mxu1 %v7903_v15 }
 0xf27   : > { %6099 = vmatprep.subr.bf16.mxu1 %v7730_v44 }
 0xf29   : > { %3575 = vmatmul.mubr.bf16.vlgmr.msra.gmra.mrb[96].mxu1 %v3496_v13 }
 0xf2a   : > { %6100 = vmatpush3.bf16.msra.mxu1 %v7734_v21  ;;  %3696 = vmatprep.mubr.bf16.mxu1 %v3657_v29  ;;  %v3812_v29 = vrot.slane %v5274_v48, %v6967_v35 }
 0xf2b   : > { %6101 = vmatprep.subr.bf16.mxu1 %v7738_v23 }
 0xf2e   : > { %6102 = vmatpush3.bf16.msra.mxu1 %v7742_v24 }
 0xf2f   : > { %6103 = vmatprep.subr.bf16.mxu1 %v7746_v30 }
 0xf32   : > { %6104 = vmatpush3.bf16.msra.mxu1 %v7750_v38 }
 0xf33   : > { %6105 = vmatprep.subr.bf16.mxu1 %v7829_v57 }
 0xf36   : > { %6106 = vmatpush3.bf16.msra.mxu1 %v7833_v59 }
 0xf37   : > { %6107 = vmatprep.subr.bf16.mxu1 %v7837_v4 }
 0xf3a   : > { %6108 = vmatpush3.bf16.msra.mxu1 %v7841_v6 }
 0xf3b   : > { %6109 = vmatprep.subr.bf16.mxu1 %v7845_v50 }
 0xf3e   : > { %6110 = vmatpush3.bf16.msra.mxu1 %v7849_v52 }
 0xf3f   : > { %6111 = vmatprep.subr.bf16.mxu1 %v7853_v53 }
 0xf42   : > { %6112 = vmatpush3.bf16.msra.mxu1 %v7857_v7 }
 0xf43   : > { %6113 = vmatprep.subr.bf16.mxu1 %v7861_v12 }
 0xf46   : > { %6114 = vmatpush3.bf16.msra.mxu1 %v7922_v17 }
 0xf47   : > { %6533 = vmatprep.subr.bf16.mxu1 %v6748_v51 }
 0xf49   : > { %3697 = vmatmul.mubr.bf16.vlgmr.msra.gmra.mrb[100].mxu1 %v3650_v32 }
 0xf4a   : > { %6535 = vmatprep.mubr.msk.bf16.mxu1 %vm6749_vm1, %v6748_v51  ;;  %6534 = vmatpush3.bf16.msra.mxu1 %v3752_v56  ;;  %v5278_v56 = vld.sshfl [vmem:[%s6964_s17 + $0x4c] sm:$0x33 pattern:$0x75316420] }
 0xf4b   : > { %6167 = vmatprep.subr.bf16.mxu1 %v7767_v42  ;;  %v3967_v48 = vcombine.high %v5278_v56, %v5278_v56 }
 0xf4d   : > { %v3981_v39 = vrot.slane %v3967_v48, %v6967_v35 }
 0xfdc   : > { %v3464_v34 = vpop.f32.mrb[92].mxu1 }
 0xfdd   : > { %v7935_v37 = vadd.f32 %v3464_v34, %v7875_v41  ;;  %v6525_v8 = vpop.f32.mrb[93].mxu1  ;;  %v3658_v41 = vcombine.high %v3650_v32, %v3650_v32 }
 0xfde   : > { %v3467_v43 = vpop.f32.mrb[94].mxu1 }
 0xfdf   : > { %v6526_v45 = vpop.f32.mrb[95].mxu1 }
 0xffc   : > { %v6091_v61 = vpop.f32.mrb[96].mxu1 }
 0xffd   : > { %v6092_v55 = vpop.f32.mrb[97].mxu1 }
 0xffe   : > { %v6093_v63 = vadd.f32 %v6092_v55, %v6091_v61  ;;  %v6094_v3 = vpop.f32.mrb[98].mxu1 }
 0xfff   : > { %v6095_v0 = vpop.f32.mrb[99].mxu1 }
0x1000   : > { %v3577_v2 = vadd.f32 %v6093_v63, %v3537_v60 }
0x1002   : > { %v3582_v54 = vmax.f32 %v3577_v2, 0.0 }
0x1004   : > { %v3583_v9 = vpack.c.bf16 %v3582_v54, %v3582_v54 }
0x1006   : > { %6530 = vmatmul.mubr.msk.bf16.vlgmr.msra.gmra.mrb[100].mxu0 %vm1109_vm2, %v3583_v9 }
0x1007   : > { %6122 = vmatpush3.bf16.msra.mxu0 %v7709_v58  ;;  %3736 = vmatprep.mubr.bf16.mxu0 %v3659_v47  ;;  %v3821_v47 = vcombine.high %v3819_v1, %v3819_v1 }
0x1008   : > { %6123 = vmatprep.subr.bf16.mxu0 %v7713_v14 }
0x100b   : > { %6124 = vmatpush3.bf16.msra.mxu0 %v7783_v16 }
0x100c   : > { %6125 = vmatprep.subr.bf16.mxu0 %v7787_v18 }
0x100f   : > { %6126 = vmatpush3.bf16.msra.mxu0 %v7791_v22 }
0x1010   : > { %6127 = vmatprep.subr.bf16.mxu0 %v7795_v26 }
0x1013   : > { %6128 = vmatpush3.bf16.msra.mxu0 %v7799_v20 }
0x1014   : > { %6129 = vmatprep.subr.bf16.mxu0 %v7803_v5 }
0x1017   : > { %6130 = vmatpush3.bf16.msra.mxu0 %v7807_v10 }
0x1018   : > { %6131 = vmatprep.subr.bf16.mxu0 %v7811_v40 }
0x101b   : > { %6132 = vmatpush3.bf16.msra.mxu0 %v7815_v25 }
0x101c   : > { %6133 = vmatprep.subr.bf16.mxu0 %v7891_v33  ;;  %v6115_v13 = vpop.f32.mrb[100].mxu1 }
0x101d   : > { %v6116_v19 = vpop.f32.mrb[101].mxu1 }
0x101e   : > { %v6117_v49 = vadd.f32 %v6116_v19, %v6115_v13  ;;  %v6118_v36 = vpop.f32.mrb[102].mxu1 }
0x101f   : > { %6134 = vmatpush3.bf16.msra.mxu0 %v7895_v62  ;;  %v6119_v27 = vpop.f32.mrb[103].mxu1 }
0x1020   : > { %6135 = vmatprep.subr.bf16.mxu0 %v7899_v11  ;;  %v3699_v60 = vadd.f32 %v7938_v46, %v6117_v49  ;;  %v5275_v27 = vld [vmem:[%s7022_s20 + $0x48] sm:$0xf] }
0x1021   : > { %v3914_v31 = vsel %vm1113_vm0, %v5275_v27, 0 }
0x1023   : > { %6136 = vmatpush3.bf16.msra.mxu0 %v7903_v15 }
0x1024   : > { %6145 = vmatprep.subr.bf16.mxu0 %v7730_v44 }
0x1026   : > { %3737 = vmatmul.mubr.bf16.vlgmr.msra.gmra.mrb[104].mxu0 %v3658_v41 }
0x1027   : > { %6146 = vmatpush3.bf16.msra.mxu0 %v7734_v21  ;;  %3858 = vmatprep.mubr.bf16.mxu0 %v3819_v1  ;;  %v3974_v1 = vrot.slane %v5278_v56, %v6967_v35 }
0x1028   : > { %6147 = vmatprep.subr.bf16.mxu0 %v7738_v23 }
0x102b   : > { %6148 = vmatpush3.bf16.msra.mxu0 %v7742_v24 }
0x102c   : > { %6149 = vmatprep.subr.bf16.mxu0 %v7746_v30 }
0x102f   : > { %6150 = vmatpush3.bf16.msra.mxu0 %v7750_v38 }
0x1030   : > { %6151 = vmatprep.subr.bf16.mxu0 %v7829_v57 }
0x1033   : > { %6152 = vmatpush3.bf16.msra.mxu0 %v7833_v59 }
0x1034   : > { %6153 = vmatprep.subr.bf16.mxu0 %v7837_v4 }
0x1037   : > { %6154 = vmatpush3.bf16.msra.mxu0 %v7841_v6 }
0x1038   : > { %6155 = vmatprep.subr.bf16.mxu0 %v7845_v50 }
0x103b   : > { %6156 = vmatpush3.bf16.msra.mxu0 %v7849_v52 }
0x103c   : > { %6157 = vmatprep.subr.bf16.mxu0 %v7853_v53 }
0x103f   : > { %6158 = vmatpush3.bf16.msra.mxu0 %v7857_v7 }
0x1040   : > { %6159 = vmatprep.subr.bf16.mxu0 %v7861_v12 }
0x1043   : > { %6160 = vmatpush3.bf16.msra.mxu0 %v7922_v17 }
0x1044   : > { %6539 = vmatprep.subr.bf16.mxu0 %v6748_v51 }
0x1046   : > { %3859 = vmatmul.mubr.bf16.vlgmr.msra.gmra.mrb[108].mxu0 %v3812_v29 }
0x1047   : > { %6541 = vmatprep.mubr.msk.bf16.mxu0 %vm6749_vm1, %v6748_v51  ;;  %6540 = vmatpush3.bf16.msra.mxu0 %v3914_v31  ;;  %v5282_v31 = vld.sshfl [vmem:[%s6964_s17 + $0x50] sm:$0x33 pattern:$0x75316420] }
0x1048   : > { %6213 = vmatprep.subr.bf16.mxu0 %v7767_v42  ;;  %v4129_v56 = vcombine.high %v5282_v31, %v5282_v31 }
0x104a   : > { %v4143_v48 = vrot.slane %v4129_v56, %v6967_v35 }
0x10d9   : > { %v3626_v32 = vpop.f32.mrb[100].mxu0 }
0x10da   : > { %v7983_v34 = vadd.f32 %v3626_v32, %v7935_v37  ;;  %v6531_v8 = vpop.f32.mrb[101].mxu0  ;;  %v3820_v37 = vcombine.high %v3812_v29, %v3812_v29 }
0x10db   : > { %v3629_v43 = vpop.f32.mrb[102].mxu0 }
0x10dc   : > { %v6532_v45 = vpop.f32.mrb[103].mxu0 }
0x10f9   : > { %v6137_v61 = vpop.f32.mrb[104].mxu0 }
0x10fa   : > { %v6138_v55 = vpop.f32.mrb[105].mxu0 }
0x10fb   : > { %v6139_v63 = vadd.f32 %v6138_v55, %v6137_v61  ;;  %v6140_v3 = vpop.f32.mrb[106].mxu0 }
0x10fc   : > { %v6141_v0 = vpop.f32.mrb[107].mxu0 }
0x10fd   : > { %v3739_v2 = vadd.f32 %v6139_v63, %v3699_v60 }
0x10ff   : > { %v3744_v54 = vmax.f32 %v3739_v2, 0.0 }
0x1101   : > { %v3745_v9 = vpack.c.bf16 %v3744_v54, %v3744_v54 }
0x1103   : > { %6536 = vmatmul.mubr.msk.bf16.vlgmr.msra.gmra.mrb[104].mxu1 %vm1109_vm2, %v3745_v9 }
0x1104   : > { %6168 = vmatpush3.bf16.msra.mxu1 %v7709_v58  ;;  %3898 = vmatprep.mubr.bf16.mxu1 %v3821_v47  ;;  %v3983_v47 = vcombine.high %v3981_v39, %v3981_v39 }
0x1105   : > { %6169 = vmatprep.subr.bf16.mxu1 %v7713_v14 }
0x1108   : > { %6170 = vmatpush3.bf16.msra.mxu1 %v7783_v16 }
0x1109   : > { %6171 = vmatprep.subr.bf16.mxu1 %v7787_v18 }
0x110c   : > { %6172 = vmatpush3.bf16.msra.mxu1 %v7791_v22 }
0x110d   : > { %6173 = vmatprep.subr.bf16.mxu1 %v7795_v26 }
0x1110   : > { %6174 = vmatpush3.bf16.msra.mxu1 %v7799_v20 }
0x1111   : > { %6175 = vmatprep.subr.bf16.mxu1 %v7803_v5 }
0x1114   : > { %6176 = vmatpush3.bf16.msra.mxu1 %v7807_v10 }
0x1115   : > { %6177 = vmatprep.subr.bf16.mxu1 %v7811_v40 }
0x1118   : > { %6178 = vmatpush3.bf16.msra.mxu1 %v7815_v25 }
0x1119   : > { %6179 = vmatprep.subr.bf16.mxu1 %v7891_v33  ;;  %v6161_v41 = vpop.f32.mrb[108].mxu0 }
0x111a   : > { %v6162_v13 = vpop.f32.mrb[109].mxu0 }
0x111b   : > { %v6163_v19 = vadd.f32 %v6162_v13, %v6161_v41  ;;  %v6164_v49 = vpop.f32.mrb[110].mxu0 }
0x111c   : > { %6180 = vmatpush3.bf16.msra.mxu1 %v7895_v62  ;;  %v6165_v36 = vpop.f32.mrb[111].mxu0 }
0x111d   : > { %6181 = vmatprep.subr.bf16.mxu1 %v7899_v11  ;;  %v3861_v60 = vadd.f32 %v7938_v46, %v6163_v19  ;;  %v5279_v36 = vld [vmem:[%s7022_s20 + $0x4c] sm:$0xf] }
0x111e   : > { %v4076_v27 = vsel %vm1113_vm0, %v5279_v36, 0 }
0x1120   : > { %6182 = vmatpush3.bf16.msra.mxu1 %v7903_v15 }
0x1121   : > { %6191 = vmatprep.subr.bf16.mxu1 %v7730_v44 }
0x1123   : > { %3899 = vmatmul.mubr.bf16.vlgmr.msra.gmra.mrb[108].mxu1 %v3820_v37 }
0x1124   : > { %6192 = vmatpush3.bf16.msra.mxu1 %v7734_v21  ;;  %4020 = vmatprep.mubr.bf16.mxu1 %v3981_v39  ;;  %v4136_v39 = vrot.slane %v5282_v31, %v6967_v35 }
0x1125   : > { %6193 = vmatprep.subr.bf16.mxu1 %v7738_v23 }
0x1128   : > { %6194 = vmatpush3.bf16.msra.mxu1 %v7742_v24 }
0x1129   : > { %6195 = vmatprep.subr.bf16.mxu1 %v7746_v30 }
0x112c   : > { %6196 = vmatpush3.bf16.msra.mxu1 %v7750_v38 }
0x112d   : > { %6197 = vmatprep.subr.bf16.mxu1 %v7829_v57 }
0x1130   : > { %6198 = vmatpush3.bf16.msra.mxu1 %v7833_v59 }
0x1131   : > { %6199 = vmatprep.subr.bf16.mxu1 %v7837_v4 }
0x1134   : > { %6200 = vmatpush3.bf16.msra.mxu1 %v7841_v6 }
0x1135   : > { %6201 = vmatprep.subr.bf16.mxu1 %v7845_v50 }
0x1138   : > { %6202 = vmatpush3.bf16.msra.mxu1 %v7849_v52 }
0x1139   : > { %6203 = vmatprep.subr.bf16.mxu1 %v7853_v53 }
0x113c   : > { %6204 = vmatpush3.bf16.msra.mxu1 %v7857_v7 }
0x113d   : > { %6205 = vmatprep.subr.bf16.mxu1 %v7861_v12 }
0x1140   : > { %6206 = vmatpush3.bf16.msra.mxu1 %v7922_v17 }
0x1141   : > { %6545 = vmatprep.subr.bf16.mxu1 %v6748_v51 }
0x1143   : > { %4021 = vmatmul.mubr.bf16.vlgmr.msra.gmra.mrb[112].mxu1 %v3974_v1 }
0x1144   : > { %6547 = vmatprep.mubr.msk.bf16.mxu1 %vm6749_vm1, %v6748_v51  ;;  %6546 = vmatpush3.bf16.msra.mxu1 %v4076_v27  ;;  %v5286_v27 = vld.sshfl [vmem:[%s6964_s17 + $0x54] sm:$0x33 pattern:$0x75316420] }
0x1145   : > { %6259 = vmatprep.subr.bf16.mxu1 %v7767_v42  ;;  %v4291_v31 = vcombine.high %v5286_v27, %v5286_v27 }
0x1147   : > { %v4305_v56 = vrot.slane %v4291_v31, %v6967_v35 }
0x11d6   : > { %v3788_v29 = vpop.f32.mrb[104].mxu1 }
0x11d7   : > { %v8028_v32 = vadd.f32 %v3788_v29, %v7983_v34  ;;  %v6537_v8 = vpop.f32.mrb[105].mxu1  ;;  %v3982_v34 = vcombine.high %v3974_v1, %v3974_v1 }
0x11d8   : > { %v3791_v43 = vpop.f32.mrb[106].mxu1 }
0x11d9   : > { %v6538_v45 = vpop.f32.mrb[107].mxu1 }
0x11f6   : > { %v6183_v61 = vpop.f32.mrb[108].mxu1 }
0x11f7   : > { %v6184_v55 = vpop.f32.mrb[109].mxu1 }
0x11f8   : > { %v6185_v63 = vadd.f32 %v6184_v55, %v6183_v61  ;;  %v6186_v3 = vpop.f32.mrb[110].mxu1 }
0x11f9   : > { %v6187_v0 = vpop.f32.mrb[111].mxu1 }
0x11fa   : > { %v3901_v2 = vadd.f32 %v6185_v63, %v3861_v60 }
0x11fc   : > { %v3906_v54 = vmax.f32 %v3901_v2, 0.0 }
0x11fe   : > { %v3907_v9 = vpack.c.bf16 %v3906_v54, %v3906_v54 }
0x1200   : > { %6542 = vmatmul.mubr.msk.bf16.vlgmr.msra.gmra.mrb[112].mxu0 %vm1109_vm2, %v3907_v9 }
0x1201   : > { %6214 = vmatpush3.bf16.msra.mxu0 %v7709_v58  ;;  %4060 = vmatprep.mubr.bf16.mxu0 %v3983_v47  ;;  %v4145_v47 = vcombine.high %v4143_v48, %v4143_v48 }
0x1202   : > { %6215 = vmatprep.subr.bf16.mxu0 %v7713_v14 }
0x1205   : > { %6216 = vmatpush3.bf16.msra.mxu0 %v7783_v16 }
0x1206   : > { %6217 = vmatprep.subr.bf16.mxu0 %v7787_v18 }
0x1209   : > { %6218 = vmatpush3.bf16.msra.mxu0 %v7791_v22 }
0x120a   : > { %6219 = vmatprep.subr.bf16.mxu0 %v7795_v26 }
0x120d   : > { %6220 = vmatpush3.bf16.msra.mxu0 %v7799_v20 }
0x120e   : > { %6221 = vmatprep.subr.bf16.mxu0 %v7803_v5 }
0x1211   : > { %6222 = vmatpush3.bf16.msra.mxu0 %v7807_v10 }
0x1212   : > { %6223 = vmatprep.subr.bf16.mxu0 %v7811_v40 }
0x1215   : > { %6224 = vmatpush3.bf16.msra.mxu0 %v7815_v25 }
0x1216   : > { %6225 = vmatprep.subr.bf16.mxu0 %v7891_v33  ;;  %v6207_v37 = vpop.f32.mrb[112].mxu1 }
0x1217   : > { %v6208_v41 = vpop.f32.mrb[113].mxu1 }
0x1218   : > { %v6209_v13 = vadd.f32 %v6208_v41, %v6207_v37  ;;  %v6210_v19 = vpop.f32.mrb[114].mxu1 }
0x1219   : > { %6226 = vmatpush3.bf16.msra.mxu0 %v7895_v62  ;;  %v6211_v49 = vpop.f32.mrb[115].mxu1 }
0x121a   : > { %6227 = vmatprep.subr.bf16.mxu0 %v7899_v11  ;;  %v4023_v60 = vadd.f32 %v7938_v46, %v6209_v13  ;;  %v5283_v49 = vld [vmem:[%s7022_s20 + $0x50] sm:$0xf] }
0x121b   : > { %v4238_v36 = vsel %vm1113_vm0, %v5283_v49, 0 }
0x121d   : > { %6228 = vmatpush3.bf16.msra.mxu0 %v7903_v15 }
0x121e   : > { %6237 = vmatprep.subr.bf16.mxu0 %v7730_v44 }
0x1220   : > { %4061 = vmatmul.mubr.bf16.vlgmr.msra.gmra.mrb[116].mxu0 %v3982_v34 }
0x1221   : > { %6238 = vmatpush3.bf16.msra.mxu0 %v7734_v21  ;;  %4182 = vmatprep.mubr.bf16.mxu0 %v4143_v48  ;;  %v4298_v48 = vrot.slane %v5286_v27, %v6967_v35 }
0x1222   : > { %6239 = vmatprep.subr.bf16.mxu0 %v7738_v23 }
0x1225   : > { %6240 = vmatpush3.bf16.msra.mxu0 %v7742_v24 }
0x1226   : > { %6241 = vmatprep.subr.bf16.mxu0 %v7746_v30 }
0x1229   : > { %6242 = vmatpush3.bf16.msra.mxu0 %v7750_v38 }
0x122a   : > { %6243 = vmatprep.subr.bf16.mxu0 %v7829_v57 }
0x122d   : > { %6244 = vmatpush3.bf16.msra.mxu0 %v7833_v59 }
0x122e   : > { %6245 = vmatprep.subr.bf16.mxu0 %v7837_v4 }
0x1231   : > { %6246 = vmatpush3.bf16.msra.mxu0 %v7841_v6 }
0x1232   : > { %6247 = vmatprep.subr.bf16.mxu0 %v7845_v50 }
0x1235   : > { %6248 = vmatpush3.bf16.msra.mxu0 %v7849_v52 }
0x1236   : > { %6249 = vmatprep.subr.bf16.mxu0 %v7853_v53 }
0x1239   : > { %6250 = vmatpush3.bf16.msra.mxu0 %v7857_v7 }
0x123a   : > { %6251 = vmatprep.subr.bf16.mxu0 %v7861_v12 }
0x123d   : > { %6252 = vmatpush3.bf16.msra.mxu0 %v7922_v17 }
0x123e   : > { %6551 = vmatprep.subr.bf16.mxu0 %v6748_v51 }
0x1240   : > { %4183 = vmatmul.mubr.bf16.vlgmr.msra.gmra.mrb[120].mxu0 %v4136_v39 }
0x1241   : > { %6553 = vmatprep.mubr.msk.bf16.mxu0 %vm6749_vm1, %v6748_v51  ;;  %6552 = vmatpush3.bf16.msra.mxu0 %v4238_v36 }
0x1242   : > { %6305 = vmatprep.subr.bf16.mxu0 %v7767_v42 }
0x12d3   : > { %v3950_v1 = vpop.f32.mrb[112].mxu0 }
0x12d4   : > { %v8073_v29 = vadd.f32 %v3950_v1, %v8028_v32  ;;  %v6543_v8 = vpop.f32.mrb[113].mxu0  ;;  %v4144_v32 = vcombine.high %v4136_v39, %v4136_v39 }
0x12d5   : > { %v3953_v43 = vpop.f32.mrb[114].mxu0 }
0x12d6   : > { %v6544_v45 = vpop.f32.mrb[115].mxu0 }
0x12f3   : > { %v6229_v61 = vpop.f32.mrb[116].mxu0 }
0x12f4   : > { %v6230_v55 = vpop.f32.mrb[117].mxu0 }
0x12f5   : > { %v6231_v63 = vadd.f32 %v6230_v55, %v6229_v61  ;;  %v6232_v3 = vpop.f32.mrb[118].mxu0 }
0x12f6   : > { %v6233_v0 = vpop.f32.mrb[119].mxu0 }
0x12f7   : > { %v4063_v2 = vadd.f32 %v6231_v63, %v4023_v60 }
0x12f9   : > { %v4068_v54 = vmax.f32 %v4063_v2, 0.0 }
0x12fb   : > { %v4069_v9 = vpack.c.bf16 %v4068_v54, %v4068_v54 }
0x12fd   : > { %6548 = vmatmul.mubr.msk.bf16.vlgmr.msra.gmra.mrb[116].mxu1 %vm1109_vm2, %v4069_v9 }
0x12fe   : > { %6260 = vmatpush3.bf16.msra.mxu1 %v7709_v58  ;;  %4222 = vmatprep.mubr.bf16.mxu1 %v4145_v47  ;;  %v4307_v47 = vcombine.high %v4305_v56, %v4305_v56 }
0x12ff   : > { %6261 = vmatprep.subr.bf16.mxu1 %v7713_v14 }
0x1302   : > { %6262 = vmatpush3.bf16.msra.mxu1 %v7783_v16 }
0x1303   : > { %6263 = vmatprep.subr.bf16.mxu1 %v7787_v18 }
0x1306   : > { %6264 = vmatpush3.bf16.msra.mxu1 %v7791_v22 }
0x1307   : > { %6265 = vmatprep.subr.bf16.mxu1 %v7795_v26 }
0x130a   : > { %6266 = vmatpush3.bf16.msra.mxu1 %v7799_v20 }
0x130b   : > { %6267 = vmatprep.subr.bf16.mxu1 %v7803_v5 }
0x130e   : > { %6268 = vmatpush3.bf16.msra.mxu1 %v7807_v10 }
0x130f   : > { %6269 = vmatprep.subr.bf16.mxu1 %v7811_v40 }
0x1312   : > { %6270 = vmatpush3.bf16.msra.mxu1 %v7815_v25 }
0x1313   : > { %6271 = vmatprep.subr.bf16.mxu1 %v7891_v33  ;;  %v6253_v34 = vpop.f32.mrb[120].mxu0 }
0x1314   : > { %v6254_v37 = vpop.f32.mrb[121].mxu0 }
0x1315   : > { %v6255_v41 = vadd.f32 %v6254_v37, %v6253_v34  ;;  %v6256_v13 = vpop.f32.mrb[122].mxu0 }
0x1316   : > { %6272 = vmatpush3.bf16.msra.mxu1 %v7895_v62  ;;  %v6257_v19 = vpop.f32.mrb[123].mxu0 }
0x1317   : > { %6273 = vmatprep.subr.bf16.mxu1 %v7899_v11  ;;  %v4185_v60 = vadd.f32 %v7938_v46, %v6255_v41 }
0x131a   : > { %6274 = vmatpush3.bf16.msra.mxu1 %v7903_v15 }
0x131b   : > { %6283 = vmatprep.subr.bf16.mxu1 %v7730_v44 }
0x131d   : > { %4223 = vmatmul.mubr.bf16.vlgmr.msra.gmra.mrb[120].mxu1 %v4144_v32 }
0x131e   : > { %6284 = vmatpush3.bf16.msra.mxu1 %v7734_v21  ;;  %4344 = vmatprep.mubr.bf16.mxu1 %v4305_v56 }
0x131f   : > { %6285 = vmatprep.subr.bf16.mxu1 %v7738_v23 }
0x1322   : > { %6286 = vmatpush3.bf16.msra.mxu1 %v7742_v24 }
0x1323   : > { %6287 = vmatprep.subr.bf16.mxu1 %v7746_v30 }
0x1326   : > { %6288 = vmatpush3.bf16.msra.mxu1 %v7750_v38 }
0x1327   : > { %6289 = vmatprep.subr.bf16.mxu1 %v7829_v57 }
0x132a   : > { %6290 = vmatpush3.bf16.msra.mxu1 %v7833_v59 }
0x132b   : > { %6291 = vmatprep.subr.bf16.mxu1 %v7837_v4 }
0x132e   : > { %6292 = vmatpush3.bf16.msra.mxu1 %v7841_v6 }
0x132f   : > { %6293 = vmatprep.subr.bf16.mxu1 %v7845_v50 }
0x1332   : > { %6294 = vmatpush3.bf16.msra.mxu1 %v7849_v52 }
0x1333   : > { %6295 = vmatprep.subr.bf16.mxu1 %v7853_v53 }
0x1336   : > { %6296 = vmatpush3.bf16.msra.mxu1 %v7857_v7 }
0x1337   : > { %6297 = vmatprep.subr.bf16.mxu1 %v7861_v12 }
0x133a   : > { %6298 = vmatpush3.bf16.msra.mxu1 %v7922_v17 }
0x133b   : > { %6557 = vmatprep.subr.bf16.mxu1 %v6748_v51 }
0x133d   : > { %4345 = vmatmul.mubr.bf16.vlgmr.msra.gmra.mrb[124].mxu1 %v4298_v48 }
0x133e   : > { %6559 = vmatprep.mubr.msk.bf16.mxu1 %vm6749_vm1, %v6748_v51 }
0x13d0   : > { %v4112_v39 = vpop.f32.mrb[116].mxu1 }
0x13d1   : > { %v8118_v1 = vadd.f32 %v4112_v39, %v8073_v29  ;;  %v6549_v8 = vpop.f32.mrb[117].mxu1  ;;  %v5290_v29 = vld.sshfl [vmem:[%s6964_s17 + $0x58] sm:$0x33 pattern:$0x75316420] }
0x13d2   : > { %v4115_v43 = vpop.f32.mrb[118].mxu1  ;;  %v4453_v32 = vcombine.high %v5290_v29, %v5290_v29  ;;  %v4460_v37 = vrot.slane %v5290_v29, %v6967_v35  ;;  %v6732_v29 = vld [vmem:[%s6836_s30 + $0x90] sm:$0xff]  }
0x13d3   : > { %v6550_v45 = vpop.f32.mrb[119].mxu1 }
0x13d4   : > { %v4467_v34 = vrot.slane %v4453_v32, %v6967_v35  ;;  %v6733_v32 = vld [vmem:[%s6836_s30 + $0xd8] sm:$0xff]  }
0x13d6   : > { %v4469_v45 = vcombine.high %v4467_v34, %v4467_v34 }
0x13f0   : > { %v6275_v61 = vpop.f32.mrb[120].mxu1 }
0x13f1   : > { %v6276_v55 = vpop.f32.mrb[121].mxu1 }
0x13f2   : > { %v6277_v63 = vadd.f32 %v6276_v55, %v6275_v61  ;;  %v6278_v3 = vpop.f32.mrb[122].mxu1  ;;  %v8168_v61 = vld [vmem:[%s6836_s30 + $0x80] sm:$0xff]  }
0x13f3   : > { %v6279_v0 = vpop.f32.mrb[123].mxu1 }
0x13f4   : > { %v4225_v2 = vadd.f32 %v6277_v63, %v4185_v60 }
0x13f6   : > { %v4230_v54 = vmax.f32 %v4225_v2, 0.0 }
0x13f8   : > { %v4231_v9 = vpack.c.bf16 %v4230_v54, %v4230_v54 }
0x13fa   : > { %6554 = vmatmul.mubr.msk.bf16.vlgmr.msra.gmra.mrb[124].mxu0 %vm1109_vm2, %v4231_v9 }
0x13fb   : > { %6306 = vmatpush3.bf16.msra.mxu0 %v7709_v58  ;;  %4384 = vmatprep.mubr.bf16.mxu0 %v4307_v47  ;;  %v4306_v58 = vcombine.high %v4298_v48, %v4298_v48 }
0x13fc   : > { %6307 = vmatprep.subr.bf16.mxu0 %v7713_v14 }
0x13ff   : > { %6308 = vmatpush3.bf16.msra.mxu0 %v7783_v16 }
0x1400   : > { %6309 = vmatprep.subr.bf16.mxu0 %v7787_v18 }
0x1403   : > { %6310 = vmatpush3.bf16.msra.mxu0 %v7791_v22 }
0x1404   : > { %6311 = vmatprep.subr.bf16.mxu0 %v7795_v26 }
0x1407   : > { %6312 = vmatpush3.bf16.msra.mxu0 %v7799_v20 }
0x1408   : > { %6313 = vmatprep.subr.bf16.mxu0 %v7803_v5 }
0x140b   : > { %6314 = vmatpush3.bf16.msra.mxu0 %v7807_v10 }
0x140c   : > { %6315 = vmatprep.subr.bf16.mxu0 %v7811_v40 }
0x140f   : > { %6316 = vmatpush3.bf16.msra.mxu0 %v7815_v25 }
0x1410   : > { %6317 = vmatprep.subr.bf16.mxu0 %v7891_v33  ;;  %v6299_v14 = vpop.f32.mrb[124].mxu1 }
0x1413   : > { %6318 = vmatpush3.bf16.msra.mxu0 %v7895_v62 }
0x1414   : > { %6319 = vmatprep.subr.bf16.mxu0 %v7899_v11 }
0x1417   : > { %6320 = vmatpush3.bf16.msra.mxu0 %v7903_v15 }
0x1418   : > { %6329 = vmatprep.subr.bf16.mxu0 %v7730_v44  ;;  %v6300_v44 = vpop.f32.mrb[125].mxu1 }
0x141a   : > { %4385 = vmatmul.mubr.bf16.vlgmr.msra.gmra.mrb[128].mxu0 %v4306_v58 }
0x141b   : > { %6330 = vmatpush3.bf16.msra.mxu0 %v7734_v21  ;;  %v6301_v21 = vadd.f32 %v6300_v44, %v6299_v14  ;;  %4506 = vmatprep.mubr.bf16.mxu0 %v4467_v34  ;;  %v6734_v34 = vld [vmem:[%s6836_s30 + $0x98] sm:$0xff]  }
0x141c   : > { %6331 = vmatprep.subr.bf16.mxu0 %v7738_v23  ;;  %v6302_v23 = vpop.f32.mrb[126].mxu1 }
0x141d   : > { %v4347_v36 = vadd.f32 %v7938_v46, %v6301_v21 }
0x141f   : > { %6332 = vmatpush3.bf16.msra.mxu0 %v7742_v24  ;;  %v6303_v24 = vpop.f32.mrb[127].mxu1 }
0x1420   : > { %6333 = vmatprep.subr.bf16.mxu0 %v7746_v30  ;;  %v5287_v30 = vld [vmem:[%s7022_s20 + $0x54] sm:$0xf] }
0x1423   : > { %6334 = vmatpush3.bf16.msra.mxu0 %v7750_v38  ;;  %v4400_v38 = vsel %vm1113_vm0, %v5287_v30, 0  ;;  %v6730_v30 = vld [vmem:[%s6836_s30 + $0x88] sm:$0xff]  }
0x1424   : > { %6335 = vmatprep.subr.bf16.mxu0 %v7829_v57  ;;  %6558 = vmatpush3.bf16.msra.mxu1 %v4400_v38  ;;  %v6731_v38 = vld [vmem:[%s6836_s30 + $0xd0] sm:$0xff]  }
0x1425   : > { %6351 = vmatprep.subr.bf16.mxu1 %v7767_v42 }
0x1427   : > { %6336 = vmatpush3.bf16.msra.mxu0 %v7833_v59 }
0x1428   : > { %6337 = vmatprep.subr.bf16.mxu0 %v7837_v4 }
0x142b   : > { %6338 = vmatpush3.bf16.msra.mxu0 %v7841_v6 }
0x142c   : > { %6339 = vmatprep.subr.bf16.mxu0 %v7845_v50 }
0x142f   : > { %6340 = vmatpush3.bf16.msra.mxu0 %v7849_v52 }
0x1430   : > { %6341 = vmatprep.subr.bf16.mxu0 %v7853_v53 }
0x1433   : > { %6342 = vmatpush3.bf16.msra.mxu0 %v7857_v7 }
0x1434   : > { %6343 = vmatprep.subr.bf16.mxu0 %v7861_v12 }
0x1437   : > { %6344 = vmatpush3.bf16.msra.mxu0 %v7922_v17 }
0x1438   : > { %6563 = vmatprep.subr.bf16.mxu0 %v6748_v51 }
0x143a   : > { %4507 = vmatmul.mubr.bf16.vlgmr.msra.gmra.mrb[132].mxu0 %v4460_v37 }
0x143b   : > { %6565 = vmatprep.mubr.msk.bf16.mxu0 %vm6749_vm1, %v6748_v51 }
0x14cd   : > { %v4274_v41 = vpop.f32.mrb[124].mxu0 }
0x14ce   : > { %v8163_v13 = vadd.f32 %v4274_v41, %v8118_v1  ;;  %v6555_v19 = vpop.f32.mrb[125].mxu0  ;;  %v8172_v1 = vld [vmem:[%s6836_s30 + $0xc8] sm:$0xff]   ;;  %v6736_v41 = vld [vmem:[%s6836_s30 + $0xa0] sm:$0xff]  }
0x14cf   : > { %v4277_v49 = vpop.f32.mrb[126].mxu0  ;;  %v6738_v19 = vld [vmem:[%s6836_s30 + $0xa8] sm:$0xff]  }
0x14d0   : > { %v6556_v42 = vpop.f32.mrb[127].mxu0 }
0x14ed   : > { %v6321_v27 = vpop.f32.mrb[128].mxu0 }
0x14ee   : > { %v6322_v31 = vpop.f32.mrb[129].mxu0 }
0x14ef   : > { %v6323_v56 = vadd.f32 %v6322_v31, %v6321_v27  ;;  %v6324_v48 = vpop.f32.mrb[130].mxu0 }
0x14f0   : > { %v6325_v39 = vpop.f32.mrb[131].mxu0  ;;  %v6647_v48 = vld [vmem:[%s603_s14] sm:$0xff]  }
0x14f1   : > { %v4387_v8 = vadd.f32 %v6323_v56, %v4347_v36  ;;  %v6648_v39 = vld [vmem:[%s603_s14 + $0x8] sm:$0xff]  }
0x14f3   : > { %v4392_v43 = vmax.f32 %v4387_v8, 0.0  ;;  %v6751_v8 = vmov 1  }
0x14f5   : > { %v4393_v60 = vpack.c.bf16 %v4392_v43, %v4392_v43  ;;  %v6649_v43 = vld [vmem:[%s603_s14 + $0x10] sm:$0xff]  }
0x14f7   : > { %6560 = vmatmul.mubr.msk.bf16.vlgmr.msra.gmra.mrb[128].mxu1 %vm1109_vm2, %v4393_v60 }
0x14f8   : > { %6352 = vmatpush3.bf16.msra.mxu1 %v8168_v61  ;;  %4546 = vmatprep.mubr.bf16.mxu1 %v4469_v45  ;;  %v6651_v45 = vld [vmem:[%s603_s14 + $0x18] sm:$0xff]  }
0x14f9   : > { %6353 = vmatprep.subr.bf16.mxu1 %v8172_v1 }
0x14fc   : > { %6354 = vmatpush3.bf16.msra.mxu1 %v7783_v16  ;;  %v4468_v16 = vcombine.high %v4460_v37, %v4460_v37  ;;  %v6735_v37 = vld [vmem:[%s6836_s30 + $0xe0] sm:$0xff]  }
0x14fd   : > { %6355 = vmatprep.subr.bf16.mxu1 %v7787_v18  ;;  %v6723_v18 = vld [vmem:[%s6836_s30 + $0x40] sm:$0xff]  }
0x1500   : > { %6356 = vmatpush3.bf16.msra.mxu1 %v7791_v22  ;;  %v6724_v22 = vld [vmem:[%s6836_s30] sm:$0xff]  }
0x1501   : > { %6357 = vmatprep.subr.bf16.mxu1 %v7795_v26  ;;  %v6725_v26 = vld [vmem:[%s6836_s30 + $0x48] sm:$0xff]  }
0x1504   : > { %6358 = vmatpush3.bf16.msra.mxu1 %v7799_v20  ;;  %v6726_v20 = vld [vmem:[%s6836_s30 + $0x8] sm:$0xff]  }
0x1505   : > { %6359 = vmatprep.subr.bf16.mxu1 %v7803_v5  ;;  %v6727_v5 = vld [vmem:[%s6836_s30 + $0x50] sm:$0xff]  }
0x1508   : > { %6360 = vmatpush3.bf16.msra.mxu1 %v7807_v10  ;;  %v6728_v10 = vld [vmem:[%s6836_s30 + $0x10] sm:$0xff]  }
0x1509   : > { %6361 = vmatprep.subr.bf16.mxu1 %v7811_v40 }
0x150c   : > { %6362 = vmatpush3.bf16.msra.mxu1 %v7815_v25 }
0x150d   : > { %6363 = vmatprep.subr.bf16.mxu1 %v7891_v33  ;;  %v6345_v40 = vpop.f32.mrb[132].mxu0 }
0x150e   : > { %v6346_v25 = vpop.f32.mrb[133].mxu0 }
0x1510   : > { %6364 = vmatpush3.bf16.msra.mxu1 %v7895_v62 }
0x1511   : > { %6365 = vmatprep.subr.bf16.mxu1 %v7899_v11 }
0x1514   : > { %6366 = vmatpush3.bf16.msra.mxu1 %v7903_v15 }
0x1515   : > { %6375 = vmatprep.subr.bf16.mxu1 %v6723_v18 }
0x1517   : > { %4547 = vmatmul.mubr.bf16.vlgmr.msra.gmra.mrb[132].mxu1 %v4468_v16 }
0x1518   : > { %6376 = vmatpush3.bf16.msra.mxu1 %v6724_v22 }
0x1519   : > { %6377 = vmatprep.subr.bf16.mxu1 %v6725_v26 }
0x151c   : > { %6378 = vmatpush3.bf16.msra.mxu1 %v6726_v20 }
0x151d   : > { %6379 = vmatprep.subr.bf16.mxu1 %v6727_v5 }
0x1520   : > { %6380 = vmatpush3.bf16.msra.mxu1 %v6728_v10 }
0x1521   : > { %6381 = vmatprep.subr.bf16.mxu1 %v7829_v57  ;;  %v6347_v57 = vadd.f32 %v6346_v25, %v6345_v40 }
0x1523   : > { %v4509_v54 = vadd.f32 %v7938_v46, %v6347_v57 }
0x1524   : > { %6382 = vmatpush3.bf16.msra.mxu1 %v7833_v59  ;;  %v6348_v59 = vpop.f32.mrb[134].mxu0 }
0x1525   : > { %6383 = vmatprep.subr.bf16.mxu1 %v7837_v4  ;;  %v6349_v4 = vpop.f32.mrb[135].mxu0  ;;  %v4784_v59 = vsub.s32 0, %v6936_v28 }
0x1528   : > { %6384 = vmatpush3.bf16.msra.mxu1 %v7841_v6  ;;  %v5291_v6 = vld [vmem:[%s7022_s20 + $0x58] sm:$0xf] }
0x1529   : > { %6385 = vmatprep.subr.bf16.mxu1 %v7845_v50  ;;  %v4562_v50 = vsel %vm1113_vm0, %v5291_v6, 0 }
0x152a   : > { %6564 = vmatpush3.bf16.msra.mxu0 %v4562_v50  ;;  %v4793_v50 = vsub.s32 1, %v6936_v28 }
0x152c   : > { %6386 = vmatpush3.bf16.msra.mxu1 %v7849_v52  ;;  %v6729_v52 = vld [vmem:[%s6836_s30 + $0xc0] sm:$0xff]  }
0x152d   : > { %6387 = vmatprep.subr.bf16.mxu1 %v7853_v53  ;;  %6397 = vmatprep.subr.bf16.mxu0 %v6729_v52  ;;  %v5294_v53 = vld.sshfl [vmem:[%s6964_s17 + $0x5c] sm:$0x33 pattern:$0x75316420]  ;;  %s8251_s17 = scalar_lea.vmem %s8312_s8, %s5315_s28 }
0x152e   : > { %v4615_v55 = vcombine.high %v5294_v53, %v5294_v53  ;;  %v6650_v4 = vld [vmem:[%s8251_s17] sm:$0xff]  }
0x1530   : > { %6388 = vmatpush3.bf16.msra.mxu1 %v7857_v7  ;;  %v4629_v7 = vrot.slane %v4615_v55, %v6967_v35  ;;  %v6652_v55 = vld [vmem:[%s8251_s17 + $0x8] sm:$0xff]  }
0x1531   : > { %6389 = vmatprep.subr.bf16.mxu1 %v7861_v12  ;;  %v4622_v12 = vrot.slane %v5294_v53, %v6967_v35 }
0x1532   : > { %4668 = vmatprep.mubr.bf16.mxu1 %v4629_v7  ;;  %v4631_v23 = vcombine.high %v4629_v7, %v4629_v7 }
0x1533   : > { %v4630_v49 = vcombine.high %v4622_v12, %v4622_v12 }
0x1534   : > { %6390 = vmatpush3.bf16.msra.mxu1 %v7922_v17 }
0x1535   : > { %6569 = vmatprep.subr.bf16.mxu1 %v6748_v51 }
0x1537   : > { %4669 = vmatmul.mubr.bf16.vlgmr.msra.gmra.mrb[136].mxu1 %v4622_v12 }
0x1538   : > { %6571 = vmatprep.mubr.msk.bf16.mxu1 %vm6749_vm1, %v6748_v51 }
0x15ca   : > { %v4436_v17 = vpop.f32.mrb[128].mxu1 }
0x15cb   : > { %v8214_v63 = vadd.f32 %v4436_v17, %v8163_v13  ;;  %v6561_v3 = vpop.f32.mrb[129].mxu1  ;;  %v6737_v13 = vld [vmem:[%s6836_s30 + $0xe8] sm:$0xff]  }
0x15cc   : > { %v4439_v0 = vpop.f32.mrb[130].mxu1 }
0x15cd   : > { %v6562_v2 = vpop.f32.mrb[131].mxu1 }
0x15ea   : > { %v6367_v47 = vpop.f32.mrb[132].mxu1 }
0x15eb   : > { %v6368_v9 = vpop.f32.mrb[133].mxu1 }
0x15ec   : > { %v6369_v35 = vadd.f32 %v6368_v9, %v6367_v47  ;;  %v6370_v58 = vpop.f32.mrb[134].mxu1  ;;  %v6654_v47 = vld [vmem:[%s8251_s17 + $0x18] sm:$0xff]  }
0x15ed   : > { %v6371_v14 = vpop.f32.mrb[135].mxu1 }
0x15ee   : > { %v4549_v44 = vadd.f32 %v6369_v35, %v4509_v54  ;;  %v6653_v54 = vld [vmem:[%s8251_s17 + $0x10] sm:$0xff]   ;;  %v5297_v35 = vld [vmem:[%s586_s29] ss:$0 sm:$0xff] }
0x15f0   : > { %v4554_v21 = vmax.f32 %v4549_v44, 0.0 }
0x15f2   : > { %v4555_v24 = vpack.c.bf16 %v4554_v21, %v4554_v21 }
0x15f4   : > { %6566 = vmatmul.mubr.msk.bf16.vlgmr.msra.gmra.mrb[136].mxu0 %vm1109_vm2, %v4555_v24 }
0x15f5   : > { %6398 = vmatpush3.bf16.msra.mxu0 %v8168_v61  ;;  %4708 = vmatprep.mubr.bf16.mxu0 %v4631_v23 }
0x15f6   : > { %6399 = vmatprep.subr.bf16.mxu0 %v8172_v1 }
0x15f9   : > { %6400 = vmatpush3.bf16.msra.mxu0 %v6730_v30 }
0x15fa   : > { %6401 = vmatprep.subr.bf16.mxu0 %v6731_v38 }
0x15fd   : > { %6402 = vmatpush3.bf16.msra.mxu0 %v6732_v29 }
0x15fe   : > { %6403 = vmatprep.subr.bf16.mxu0 %v6733_v32 }
0x1601   : > { %6404 = vmatpush3.bf16.msra.mxu0 %v6734_v34  ;;  %v5309_v34 = vld [vmem:[%s606_s15] ss:$0 sm:$0xff] }
0x1602   : > { %6405 = vmatprep.subr.bf16.mxu0 %v6735_v37 }
0x1605   : > { %6406 = vmatpush3.bf16.msra.mxu0 %v6736_v41 }
0x1606   : > { %6407 = vmatprep.subr.bf16.mxu0 %v6737_v13 }
0x1609   : > { %6408 = vmatpush3.bf16.msra.mxu0 %v6738_v19 }
0x160a   : > { %6409 = vmatprep.subr.bf16.mxu0 %v7891_v33  ;;  %v6391_v42 = vpop.f32.mrb[136].mxu1  ;;  %v5295_v33 = vld [vmem:[%s7022_s20 + $0x5c] sm:$0xf] }
0x160b   : > { %v6392_v36 = vpop.f32.mrb[137].mxu1 }
0x160c   : > { %v6393_v27 = vadd.f32 %v6392_v36, %v6391_v42  ;;  %v6394_v31 = vpop.f32.mrb[138].mxu1  ;;  %v5310_v42 = vld [vmem:[%s609_s19] ss:$0 sm:$0xff] }
0x160d   : > { %6410 = vmatpush3.bf16.msra.mxu0 %v7895_v62  ;;  %v6395_v56 = vpop.f32.mrb[139].mxu1  ;;  %v4724_v62 = vsel %vm1113_vm0, %v5295_v33, 0 }
0x160e   : > { %6411 = vmatprep.subr.bf16.mxu0 %v7899_v11  ;;  %6570 = vmatpush3.bf16.msra.mxu1 %v4724_v62  ;;  %v4775_v11 = vld [vmem:[%s8305_s1] sm:$0x3]  ;;  %v4671_v22 = vadd.f32 %v7938_v46, %v6393_v27 }
0x160f   : > { %6587 = vmatprep.subr.bf16.mxu1 %v6748_v51  ;;  %v4776_v46 = vld [vmem:[%s590_s21] sm:$0x3] }
0x1610   : > { %v4785_v53 = vrot.slane %v4776_v46, %v4784_v59  ;;  %v4794_v7 = vrot.slane %v4776_v46, %v4793_v50  ;;  %v5311_v56 = vld [vmem:[%s612_s22] ss:$0 sm:$0xff] }
0x1611   : > { %6412 = vmatpush3.bf16.msra.mxu0 %v7903_v15  ;;  %v6750_v15 = vmov 0  }
0x1612   : > { %6575 = vmatprep.subr.bf16.mxu0 %v6748_v51  ;;  %6613 = vset.pattern.permute.xlu0 %v6750_v15 }
0x1613   : > { %4779 = vperm.xlu0 %6613, %v4775_v11  }
0x1614   : > { %4709 = vmatmul.mubr.bf16.vlgmr.msra.gmra.mrb[140].mxu0 %v4630_v49 }
0x1615   : > { %6583 = vmatprep.mubr.msk.bf16.mxu0 %vm6749_vm1, %v6748_v51  ;;  %6576 = vmatpush3.bf16.msra.mxu0 %v6647_v48 }
0x1616   : > { %6577 = vmatprep.subr.bf16.mxu0 %v6748_v51 }
0x1617   : > { %6614 = vset.pattern.permute.xlu0 %v6751_v8 }
0x1618   : > { %4788 = vperm.xlu0 %6614, %v4775_v11  }
0x1619   : > { %6578 = vmatpush3.bf16.msra.mxu0 %v6648_v39 }
0x161a   : > { %6579 = vmatprep.subr.bf16.mxu0 %v6748_v51 }
0x161d   : > { %6580 = vmatpush3.bf16.msra.mxu0 %v6649_v43 }
0x161e   : > { %6581 = vmatprep.subr.bf16.mxu0 %v6748_v51 }
0x1621   : > { %6582 = vmatpush3.bf16.msra.mxu0 %v6651_v45 }
0x1692   : > { %v4780_v52 = vpop.permute.xlu0 %4779 }
0x1693   : > { %v4786_v12 = vmul.f32 %v4785_v53, %v4780_v52 }
0x1697   : > { %v4789_v28 = vpop.permute.xlu0 %4788 }
0x1698   : > { %v4795_v17 = vmul.f32 %v4794_v7, %v4789_v28 }
0x169a   : > { %v4796_v3 = vadd.f32 %v4795_v17, %v4786_v12 }
0x16c7   : > { %v4598_v60 = vpop.f32.mrb[136].mxu0 }
0x16c8   : > { %v4604_v61 = vadd.f32 %v4598_v60, %v8214_v63  ;;  %v6567_v1 = vpop.f32.mrb[137].mxu0  ;;  %v5298_v63 = vld [vmem:[%s593_s24] ss:$0 sm:$0xff] }
0x16c9   : > { %v4601_v16 = vpop.f32.mrb[138].mxu0  ;;  %v4804_v0 = vadd.f32 %v5298_v63, %v4796_v3 }
0x16ca   : > { %v6568_v18 = vpop.f32.mrb[139].mxu0 }
0x16cb   : > { %v4814_v2 = vpack.c.bf16 %v4804_v0, %v4804_v0 }
0x16cd   : > { %6584 = vmatmul.mubr.msk.bf16.vlgmr.msra.gmra.mrb[144].mxu0 %vm4847_vm3, %v4814_v2 }
0x16e7   : > { %v6413_v26 = vpop.f32.mrb[140].mxu0 }
0x16e8   : > { %v6414_v20 = vpop.f32.mrb[141].mxu0 }
0x16e9   : > { %v6415_v5 = vadd.f32 %v6414_v20, %v6413_v26  ;;  %v6416_v10 = vpop.f32.mrb[142].mxu0 }
0x16ea   : > { %v6417_v40 = vpop.f32.mrb[143].mxu0 }
0x16eb   : > { %v4711_v25 = vadd.f32 %v6415_v5, %v4671_v22 }
0x16ed   : > { %v4716_v57 = vmax.f32 %v4711_v25, 0.0 }
0x16ef   : > { %v4717_v6 = vpack.c.bf16 %v4716_v57, %v4716_v57 }
0x16f1   : > { %6572 = vmatmul.mubr.msk.bf16.vlgmr.msra.gmra.mrb[140].mxu1 %vm1109_vm2, %v4717_v6 }
0x16f2   : > { %6588 = vmatpush3.bf16.msra.mxu1 %v6650_v4  ;;  %6595 = vmatprep.mubr.msk.bf16.mxu1 %vm6749_vm1, %v6748_v51 }
0x16f3   : > { %6589 = vmatprep.subr.bf16.mxu1 %v6748_v51 }
0x16f6   : > { %6590 = vmatpush3.bf16.msra.mxu1 %v6652_v55 }
0x16f7   : > { %6591 = vmatprep.subr.bf16.mxu1 %v6748_v51 }
0x16fa   : > { %6592 = vmatpush3.bf16.msra.mxu1 %v6653_v54 }
0x16fb   : > { %6593 = vmatprep.subr.bf16.mxu1 %v6748_v51 }
0x16fe   : > { %6594 = vmatpush3.bf16.msra.mxu1 %v6654_v47 }
0x17a0   : > { %v4885_v30 = vpop.f32.mrb[144].mxu0 }
0x17a1   : > { %v6585_v51 = vpop.f32.mrb[145].mxu0 }
0x17a2   : > { %v4888_v38 = vpop.f32.mrb[146].mxu0 }
0x17a3   : > { %v6586_v29 = vpop.f32.mrb[147].mxu0 }
0x17c4   : > { %v4760_v9 = vpop.f32.mrb[140].mxu1 }
0x17c5   : > { %v4766_v58 = vadd.f32 %v4760_v9, %v4604_v61  ;;  %v6573_v14 = vpop.f32.mrb[141].mxu1 }
0x17c6   : > { %v4763_v44 = vpop.f32.mrb[142].mxu1 }
0x17c7   : > { %v4774_v21 = vadd.f32 %v5297_v35, %v4766_v58  ;;  %v6574_v23 = vpop.f32.mrb[143].mxu1 }
0x17c9   : > { %v4805_v24 = vpack.c.bf16 %v4774_v21, %v4774_v21 }
0x17cb   : > { %6596 = vmatmul.mubr.msk.bf16.vlgmr.msra.gmra.mrb[144].mxu1 %vm4847_vm3, %v4805_v24 }
0x189e   : > { %v4952_v32 = vpop.f32.mrb[144].mxu1 }
0x189f   : > { %v4953_v37 = vadd.f32 %v4952_v32, %v4885_v30  ;;  %v6597_v41 = vpop.f32.mrb[145].mxu1 }
0x18a0   : > { %v4955_v13 = vpop.f32.mrb[146].mxu1 }
0x18a1   : > { %v4965_v19 = vadd.f32 %v5309_v34, %v4953_v37  ;;  %v6598_v49 = vpop.f32.mrb[147].mxu1 }
0x18a3   : > { %v4966_v36 = vmax.f32 %v4965_v19, 0.0 }
0x18a5   : > { %v4974_v27 = vmul.f32 %v5310_v42, %v4966_v36 }
0x18a7   : > { %v4976_v31 = vsel %vm4975_vm4, %v4974_v27, 0.0 }
0x18a8   : > { %4977 = vadd.xlane.f32.xlu1 %v4976_v31 }
0x1935   : > { %v4978_v33 = vpop.xlane.xlu1 %4977 }
0x1936   : > { %v4986_v62 = vadd.f32 %v5311_v56, %v4978_v33 }
0x1938   : > { %4988 = vst.msk [vmem:[%s616_s27] sm:$0x3] %vm4987_vm5, %v4986_v62 }
0x1939 PF: > { %s23_s25 = sadd.s32 1, %s6745_s25  }
0x193a   : > { %p20_p4 = scmp.ge.s32.totalorder %s23_s25, 4  }
0x193c   :  { %22 = sbr.rel (!%p20_p4) target bundleno = 1 (0x1), region = 181 }

</bundles_post_ra>
